<compile_context>
chip_gen: v7x
topology: tpu7x:2x2x1
jax: 0.10.0
libtpu: 0.0.40
codegen_flags: <defaults>
</compile_context>

<pallas_src>
import numpy as np
import jax
import jax.numpy as jnp
from jax.experimental import pallas as pl
from jax.experimental.pallas import tpu as pltpu

BN_EPS = 1e-5

# Packed-lane layout of the fused head:
#   lanes [0, 4)    : cls logits / softmax
#   lanes [4, 69)   : cou logits / softmax
#   lanes [69, 73)  : cou2cls segment sums (output only)
#   lanes [73, 128) : zero padding
N_CLS = 4
N_COU = 65
PACK_W = 128
# cou segment boundaries in packed-lane coords: cou[:, :5], [5:20], [20:50], [50:]
SEG_BOUNDS = ((4, 9), (9, 24), (24, 54), (54, 69))


def _round_up(x, m):
    return (x + m - 1) // m * m


# ----------------------------------------------------------------------------
# Plain-JAX backbone (glue): ResNet-50 children[:-1]  (conv stack + avgpool)
# bf16 NHWC convolutions with f32 accumulation.
# ----------------------------------------------------------------------------
_BN_SCALE = np.float32(1.0 / np.sqrt(1.0 + BN_EPS))


def _bn_eval_f32(x_f32):
    # BatchNorm2d, eval mode, default stats/affine -> x / sqrt(1 + eps)
    return x_f32 * _BN_SCALE


def _bn_relu_bf16(x_f32):
    return jnp.maximum(_bn_eval_f32(x_f32), 0.0).astype(jnp.bfloat16)


def _conv2d(x_bf16, w_bf16, stride=1, padding=0):
    # NHWC / HWIO bf16 inputs, f32 accumulation/output.
    return jax.lax.conv_general_dilated(
        x_bf16, w_bf16,
        window_strides=(stride, stride),
        padding=[(padding, padding), (padding, padding)],
        dimension_numbers=("NHWC", "HWIO", "NHWC"),
        preferred_element_type=jnp.float32)


def _maxpool_3x3_s2(x):
    return jax.lax.reduce_window(
        x, jnp.array(-jnp.inf, x.dtype), jax.lax.max,
        window_dimensions=(1, 3, 3, 1),
        window_strides=(1, 2, 2, 1),
        padding=((0, 0), (1, 1), (1, 1), (0, 0)))


def _kaiming_conv_hwio(key, oihw_shape):
    # kaiming_normal(mode='fan_out') on an (O, I, KH, KW) weight, stored HWIO bf16.
    out_ch, _in_ch, kh, kw = oihw_shape
    fan_out = out_ch * kh * kw
    std = np.sqrt(2.0 / fan_out)
    w = std * jax.random.normal(key, oihw_shape, jnp.float32)
    return jnp.transpose(w, (2, 3, 1, 0)).astype(jnp.bfloat16)


def make_resnet50_params(key):
    keys = iter(jax.random.split(key, 256))
    params = {"conv1": _kaiming_conv_hwio(next(keys), (64, 3, 7, 7)), "layers": []}
    layer_cfg = [(64, 3, 1), (128, 4, 2), (256, 6, 2), (512, 3, 2)]
    in_ch = 64
    for planes, n_blocks, _stride in layer_cfg:
        layer = []
        for b in range(n_blocks):
            blk = {
                "conv1": _kaiming_conv_hwio(next(keys), (planes, in_ch, 1, 1)),
                "conv2": _kaiming_conv_hwio(next(keys), (planes, planes, 3, 3)),
                "conv3": _kaiming_conv_hwio(next(keys), (planes * 4, planes, 1, 1)),
            }
            if b == 0:
                blk["down"] = _kaiming_conv_hwio(next(keys), (planes * 4, in_ch, 1, 1))
            layer.append(blk)
            in_ch = planes * 4
        params["layers"].append(layer)
    return params


def _bottleneck(x_bf16, blk, stride):
    out = _bn_relu_bf16(_conv2d(x_bf16, blk["conv1"]))
    out = _bn_relu_bf16(_conv2d(out, blk["conv2"], stride=stride, padding=1))
    out = _bn_eval_f32(_conv2d(out, blk["conv3"]))                       # f32
    if "down" in blk:
        identity = _bn_eval_f32(_conv2d(x_bf16, blk["down"], stride=stride))
    else:
        identity = x_bf16.astype(jnp.float32)
    return jnp.maximum(out + identity, 0.0).astype(jnp.bfloat16)


def resnet50_backbone(x_nchw, params):
    # x: (B, 3, H, W) NCHW f32 -> (B, H/32, W/32, 2048) NHWC bf16
    x = jnp.transpose(x_nchw, (0, 2, 3, 1)).astype(jnp.bfloat16)
    x = _bn_relu_bf16(_conv2d(x, params["conv1"], stride=2, padding=3))
    x = _maxpool_3x3_s2(x)
    for layer, stride in zip(params["layers"], (1, 2, 2, 2)):
        for i, blk in enumerate(layer):
            x = _bottleneck(x, blk, stride if i == 0 else 1)
    return x


# ----------------------------------------------------------------------------
# Pallas head kernel: fused fc_cls + fc_cou + fused 2x softmax + cou->cls
# segment reduction.  One lane-dense bf16 (TB,2048)@(2048,128) MXU pass, one
# f32 (TB,128)@(128,128) MXU scatter pass, one lane-dense packed output.
# ----------------------------------------------------------------------------
def head_kernel(feat_ref, w_ref, b_ref, out_ref):
    # bf16 operands (halves the two input DMA streams), f32 accumulation.
    logits = jnp.dot(feat_ref[...], w_ref[...],
                     preferred_element_type=jnp.float32) + b_ref[...]    # (TB,128) f32

    col = jax.lax.broadcasted_iota(jnp.int32, logits.shape, 1)           # lane index
    cls_mask = col < N_CLS
    cou_mask = (col >= N_CLS) & (col < N_CLS + N_COU)
    valid = col < N_CLS + N_COU
    neg_inf = jnp.float32(-jnp.inf)

    # Fused dual softmax: two cross-lane maxes, ONE exp pass, two masked sums.
    m_cls = jnp.max(jnp.where(cls_mask, logits, neg_inf), axis=-1, keepdims=True)
    m_cou = jnp.max(jnp.where(cou_mask, logits, neg_inf), axis=-1, keepdims=True)
    lane_max = jnp.where(cls_mask, m_cls, m_cou)
    e = jnp.exp(jnp.where(valid, logits - lane_max, neg_inf))            # 0 on pad lanes
    s_cls = jnp.sum(jnp.where(cls_mask, e, 0.0), axis=-1, keepdims=True)
    s_cou = jnp.sum(jnp.where(cou_mask, e, 0.0), axis=-1, keepdims=True)
    probs = e / jnp.where(cls_mask, s_cls, s_cou)                        # exact division (f32)

    # cou->cls segment sums on the MXU: constant scatter matrix (rows lo..hi of
    # a segment map to column 69+k), built from iota compares.  f32 matmul at
    # HIGHEST precision keeps the sums exact; the MXU is idle here anyway.
    r = jax.lax.broadcasted_iota(jnp.int32, (PACK_W, PACK_W), 0)
    c = jax.lax.broadcasted_iota(jnp.int32, (PACK_W, PACK_W), 1)
    scat = jnp.zeros((PACK_W, PACK_W), jnp.float32)
    for k, (lo, hi) in enumerate(SEG_BOUNDS):
        scat = scat + jnp.where((r >= lo) & (r < hi) & (c == N_CLS + N_COU + k),
                                1.0, 0.0)
    seg = jnp.dot(probs, scat, preferred_element_type=jnp.float32,
                  precision=jax.lax.Precision.HIGHEST)                   # (TB,128)

    out_ref[...] = probs + seg


def head_pallas(feat_bf16, w_packed, b_packed):
    B, C = feat_bf16.shape
    # Tile the batch:
    #  * >=2 grid steps for B in 16..1024 so v7x's two TensorCores both get work
    #    (axis marked "parallel"),
    #  * tiles up to 512 rows amortize the ~0.35us per-step overhead,
    #  * TB is a multiple of 8 (sublane constraint).
    TB = max(8, min(512, _round_up(pl.cdiv(B, 2), 8)))
    Bp = _round_up(B, TB)
    if Bp != B:
        # Zero-pad so no stale/OOB rows ever reach the matmul / exp.
        feat_bf16 = jnp.pad(feat_bf16, ((0, Bp - B), (0, 0)))
    grid = (Bp // TB,)

    packed = pl.pallas_call(
        head_kernel,
        out_shape=jax.ShapeDtypeStruct((Bp, PACK_W), jnp.float32),
        grid=grid,
        in_specs=[
            pl.BlockSpec((TB, C), lambda i: (i, 0)),          # feat tile (only per-step DMA)
            pl.BlockSpec((C, PACK_W), lambda i: (0, 0)),      # weight stays resident
            pl.BlockSpec((1, PACK_W), lambda i: (0, 0)),      # bias stays resident
        ],
        out_specs=pl.BlockSpec((TB, PACK_W), lambda i: (i, 0)),
        compiler_params=pltpu.CompilerParams(
            dimension_semantics=("parallel",)),               # batch tiles -> both TCs on v7x
    )(feat_bf16, w_packed, b_packed)

    packed = packed[:B]
    cls = packed[:, :N_CLS]
    cou = packed[:, N_CLS:N_CLS + N_COU]
    cou2cls = packed[:, N_CLS + N_COU:N_CLS + N_COU + 4]
    return cls, cou, cou2cls


def pack_head_weights(w_cls, b_cls, w_cou, b_cou):
    """Pack [W_cls | W_cou | pad] -> (2048, 128) bf16 and biases -> (1, 128) f32."""
    C = w_cls.shape[0]
    w = jnp.zeros((C, PACK_W), jnp.float32)
    w = w.at[:, :N_CLS].set(w_cls).at[:, N_CLS:N_CLS + N_COU].set(w_cou)
    b = jnp.zeros((1, PACK_W), jnp.float32)
    b = b.at[0, :N_CLS].set(jnp.reshape(b_cls, (-1,)))
    b = b.at[0, N_CLS:N_CLS + N_COU].set(jnp.reshape(b_cou, (-1,)))
    return w.astype(jnp.bfloat16), b


@jax.jit
def resnet50_semi_distribution_forward(x, backbone_params, w_packed, b_packed):
    """Full forward: returns (features, cls, cou, cou2cls) like the PyTorch module."""
    fm = resnet50_backbone(x, backbone_params)                 # (B, h, w, 2048) bf16 NHWC
    feat = jnp.mean(fm.astype(jnp.float32), axis=(1, 2))       # adaptive avg pool, f32
    cls, cou, cou2cls = head_pallas(feat.astype(jnp.bfloat16), w_packed, b_packed)
    return feat, cls, cou, cou2cls


# ----------------------------------------------------------------------------
if __name__ == "__main__":
    key = jax.random.PRNGKey(0)
    k_img, k_bb, k_cls, k_cou = jax.random.split(key, 4)

    B = 2
    x = jax.random.normal(k_img, (B, 3, 32, 32), jnp.float32)   # NCHW, like PyTorch

    backbone_params = make_resnet50_params(k_bb)

    # fc heads: weights_init -> normal(std=0.001), bias = 0
    w_cls = 0.001 * jax.random.normal(k_cls, (2048, N_CLS), jnp.float32)
    b_cls = jnp.zeros((N_CLS,), jnp.float32)
    w_cou = 0.001 * jax.random.normal(k_cou, (2048, N_COU), jnp.float32)
    b_cou = jnp.zeros((N_COU,), jnp.float32)

    w_packed, b_packed = pack_head_weights(w_cls, b_cls, w_cou, b_cou)

    features, cls, cou, cou2cls = jax.block_until_ready(
        resnet50_semi_distribution_forward(x, backbone_params, w_packed, b_packed))

    assert features.shape == (B, 2048)
    assert cls.shape == (B, N_CLS) and cou.shape == (B, N_COU) and cou2cls.shape == (B, 4)
    assert np.all(np.isfinite(np.asarray(features)))

    # Reference head computed from the SAME pooled features returned by the
    # forward pass (validates the Pallas head independently of the bf16
    # backbone), using the same bf16 matmul operands as the kernel.
    feat_bf = features.astype(jnp.bfloat16)
    cls_ref = jax.nn.softmax(
        jnp.dot(feat_bf, w_cls.astype(jnp.bfloat16),
                preferred_element_type=jnp.float32) + b_cls[None, :], axis=1)
    cou_ref = jax.nn.softmax(
        jnp.dot(feat_bf, w_cou.astype(jnp.bfloat16),
                preferred_element_type=jnp.float32) + b_cou[None, :], axis=1)
    cou2cls_ref = jnp.stack(
        (jnp.sum(cou_ref[:, :5], 1), jnp.sum(cou_ref[:, 5:20], 1),
         jnp.sum(cou_ref[:, 20:50], 1), jnp.sum(cou_ref[:, 50:], 1)), axis=1)

    np.testing.assert_allclose(np.asarray(cls), np.asarray(cls_ref),
                               rtol=1e-3, atol=1e-4)
    np.testing.assert_allclose(np.asarray(cou), np.asarray(cou_ref),
                               rtol=1e-3, atol=1e-4)
    np.testing.assert_allclose(np.asarray(cou2cls), np.asarray(cou2cls_ref),
                               rtol=1e-3, atol=1e-4)

    print("KERNEL_OK")
</pallas_src>

<mosaic_0001>
module attributes {stable_mosaic.version = 11 : i64} {
  func.func @head_kernel(%arg0: i32, %arg1: memref<8x2048xbf16, #tpu.memory_space<vmem>>, %arg2: memref<2048x128xbf16, #tpu.memory_space<vmem>>, %arg3: memref<1x128xf32, #tpu.memory_space<vmem>>, %arg4: memref<8x128xf32, #tpu.memory_space<vmem>>) attributes {dimension_semantics = [#tpu.dimension_semantics<parallel>], iteration_bounds = array<i64: 1>, scalar_prefetch = 0 : i64, scratch_operands = 0 : i64, tpu.core_type = #tpu.core_type<tc>, window_params = [{transform_indices = @transform_0, window_bounds = array<i64: 8, 2048>}, {pipeline_mode = #tpu.pipeline_mode<synchronous>, transform_indices = @transform_1, window_bounds = array<i64: 2048, 128>}, {pipeline_mode = #tpu.pipeline_mode<synchronous>, transform_indices = @transform_2, window_bounds = array<i64: 1, 128>}, {transform_indices = @transform_3, window_bounds = array<i64: 8, 128>}]} {
    %c0 = arith.constant 0 : index
    %c0_0 = arith.constant 0 : index
    %0 = vector.load %arg1[%c0, %c0_0] : memref<8x2048xbf16, #tpu.memory_space<vmem>>, vector<8x2048xbf16>
    %c0_1 = arith.constant 0 : index
    %c0_2 = arith.constant 0 : index
    %1 = vector.load %arg2[%c0_1, %c0_2] : memref<2048x128xbf16, #tpu.memory_space<vmem>>, vector<2048x128xbf16>
    %cst = arith.constant dense<0.000000e+00> : vector<8x128xf32>
    %2 = tpu.matmul %0, %1, %cst {dimension_numbers = #tpu.dot_dimension_numbers<[1], [0], [0], [1], [0, 0, 1, 1], [], []>} : vector<8x2048xbf16>, vector<2048x128xbf16>, vector<8x128xf32> -> vector<8x128xf32>
    %c0_3 = arith.constant 0 : index
    %c0_4 = arith.constant 0 : index
    %3 = vector.load %arg3[%c0_3, %c0_4] : memref<1x128xf32, #tpu.memory_space<vmem>>, vector<1x128xf32>
    %4 = vector.broadcast %3 : vector<1x128xf32> to vector<8x128xf32>
    %5 = arith.addf %2, %4 : vector<8x128xf32>
    %6 = tpu.iota {dimensions = array<i32: 1>} : vector<8x128xi32>
    %c4_i32 = arith.constant 4 : i32
    %7 = vector.broadcast %c4_i32 : i32 to vector<8x128xi32>
    %8 = arith.cmpi slt, %6, %7 : vector<8x128xi32>
    %c4_i32_5 = arith.constant 4 : i32
    %9 = vector.broadcast %c4_i32_5 : i32 to vector<8x128xi32>
    %10 = arith.cmpi sge, %6, %9 : vector<8x128xi32>
    %c69_i32 = arith.constant 69 : i32
    %11 = vector.broadcast %c69_i32 : i32 to vector<8x128xi32>
    %12 = arith.cmpi slt, %6, %11 : vector<8x128xi32>
    %13 = arith.andi %10, %12 : vector<8x128xi1>
    %c69_i32_6 = arith.constant 69 : i32
    %14 = vector.broadcast %c69_i32_6 : i32 to vector<8x128xi32>
    %15 = arith.cmpi slt, %6, %14 : vector<8x128xi32>
    %cst_7 = arith.constant 0xFF800000 : f32
    %16 = vector.broadcast %cst_7 : f32 to vector<8x128xf32>
    %17 = arith.select %8, %5, %16 : vector<8x128xi1>, vector<8x128xf32>
    %cst_8 = arith.constant dense<0xFF800000> : vector<8xf32>
    %18 = vector.multi_reduction <maximumf>, %17, %cst_8 [1] : vector<8x128xf32> to vector<8xf32>
    %19 = vector.shape_cast %18 : vector<8xf32> to vector<8x1xf32>
    %cst_9 = arith.constant 0xFF800000 : f32
    %20 = vector.broadcast %cst_9 : f32 to vector<8x128xf32>
    %21 = arith.select %13, %5, %20 : vector<8x128xi1>, vector<8x128xf32>
    %cst_10 = arith.constant dense<0xFF800000> : vector<8xf32>
    %22 = vector.multi_reduction <maximumf>, %21, %cst_10 [1] : vector<8x128xf32> to vector<8xf32>
    %23 = vector.shape_cast %22 : vector<8xf32> to vector<8x1xf32>
    %24 = vector.shape_cast %19 : vector<8x1xf32> to vector<8x1xf32>
    %25 = vector.broadcast %24 : vector<8x1xf32> to vector<8x128xf32>
    %26 = vector.shape_cast %23 : vector<8x1xf32> to vector<8x1xf32>
    %27 = vector.broadcast %26 : vector<8x1xf32> to vector<8x128xf32>
    %28 = arith.select %8, %25, %27 : vector<8x128xi1>, vector<8x128xf32>
    %29 = arith.subf %5, %28 : vector<8x128xf32>
    %cst_11 = arith.constant 0xFF800000 : f32
    %30 = vector.broadcast %cst_11 : f32 to vector<8x128xf32>
    %31 = arith.select %15, %29, %30 : vector<8x128xi1>, vector<8x128xf32>
    %32 = math.exp %31 : vector<8x128xf32>
    %cst_12 = arith.constant 0.000000e+00 : f32
    %33 = vector.broadcast %cst_12 : f32 to vector<8x128xf32>
    %34 = arith.select %8, %32, %33 : vector<8x128xi1>, vector<8x128xf32>
    %cst_13 = arith.constant dense<0.000000e+00> : vector<8xf32>
    %35 = vector.multi_reduction <add>, %34, %cst_13 [1] : vector<8x128xf32> to vector<8xf32>
    %36 = vector.shape_cast %35 : vector<8xf32> to vector<8x1xf32>
    %cst_14 = arith.constant 0.000000e+00 : f32
    %37 = vector.broadcast %cst_14 : f32 to vector<8x128xf32>
    %38 = arith.select %13, %32, %37 : vector<8x128xi1>, vector<8x128xf32>
    %cst_15 = arith.constant dense<0.000000e+00> : vector<8xf32>
    %39 = vector.multi_reduction <add>, %38, %cst_15 [1] : vector<8x128xf32> to vector<8xf32>
    %40 = vector.shape_cast %39 : vector<8xf32> to vector<8x1xf32>
    %41 = vector.shape_cast %36 : vector<8x1xf32> to vector<8x1xf32>
    %42 = vector.broadcast %41 : vector<8x1xf32> to vector<8x128xf32>
    %43 = vector.shape_cast %40 : vector<8x1xf32> to vector<8x1xf32>
    %44 = vector.broadcast %43 : vector<8x1xf32> to vector<8x128xf32>
    %45 = arith.select %8, %42, %44 : vector<8x128xi1>, vector<8x128xf32>
    %46 = arith.divf %32, %45 : vector<8x128xf32>
    %47 = tpu.iota {dimensions = array<i32: 0>} : vector<128x128xi32>
    %48 = tpu.iota {dimensions = array<i32: 1>} : vector<128x128xi32>
    %cst_16 = arith.constant 0.000000e+00 : f32
    %49 = vector.broadcast %cst_16 : f32 to vector<128x128xf32>
    %c4_i32_17 = arith.constant 4 : i32
    %50 = vector.broadcast %c4_i32_17 : i32 to vector<128x128xi32>
    %51 = arith.cmpi sge, %47, %50 : vector<128x128xi32>
    %c9_i32 = arith.constant 9 : i32
    %52 = vector.broadcast %c9_i32 : i32 to vector<128x128xi32>
    %53 = arith.cmpi slt, %47, %52 : vector<128x128xi32>
    %54 = arith.andi %51, %53 : vector<128x128xi1>
    %c69_i32_18 = arith.constant 69 : i32
    %55 = vector.broadcast %c69_i32_18 : i32 to vector<128x128xi32>
    %56 = arith.cmpi eq, %48, %55 : vector<128x128xi32>
    %57 = arith.andi %54, %56 : vector<128x128xi1>
    %cst_19 = arith.constant 1.000000e+00 : f32
    %cst_20 = arith.constant 0.000000e+00 : f32
    %58 = vector.broadcast %cst_19 : f32 to vector<128x128xf32>
    %59 = vector.broadcast %cst_20 : f32 to vector<128x128xf32>
    %60 = arith.select %57, %58, %59 : vector<128x128xi1>, vector<128x128xf32>
    %61 = arith.addf %49, %60 : vector<128x128xf32>
    %c9_i32_21 = arith.constant 9 : i32
    %62 = vector.broadcast %c9_i32_21 : i32 to vector<128x128xi32>
    %63 = arith.cmpi sge, %47, %62 : vector<128x128xi32>
    %c24_i32 = arith.constant 24 : i32
    %64 = vector.broadcast %c24_i32 : i32 to vector<128x128xi32>
    %65 = arith.cmpi slt, %47, %64 : vector<128x128xi32>
    %66 = arith.andi %63, %65 : vector<128x128xi1>
    %c70_i32 = arith.constant 70 : i32
    %67 = vector.broadcast %c70_i32 : i32 to vector<128x128xi32>
    %68 = arith.cmpi eq, %48, %67 : vector<128x128xi32>
    %69 = arith.andi %66, %68 : vector<128x128xi1>
    %cst_22 = arith.constant 1.000000e+00 : f32
    %cst_23 = arith.constant 0.000000e+00 : f32
    %70 = vector.broadcast %cst_22 : f32 to vector<128x128xf32>
    %71 = vector.broadcast %cst_23 : f32 to vector<128x128xf32>
    %72 = arith.select %69, %70, %71 : vector<128x128xi1>, vector<128x128xf32>
    %73 = arith.addf %61, %72 : vector<128x128xf32>
    %c24_i32_24 = arith.constant 24 : i32
    %74 = vector.broadcast %c24_i32_24 : i32 to vector<128x128xi32>
    %75 = arith.cmpi sge, %47, %74 : vector<128x128xi32>
    %c54_i32 = arith.constant 54 : i32
    %76 = vector.broadcast %c54_i32 : i32 to vector<128x128xi32>
    %77 = arith.cmpi slt, %47, %76 : vector<128x128xi32>
    %78 = arith.andi %75, %77 : vector<128x128xi1>
    %c71_i32 = arith.constant 71 : i32
    %79 = vector.broadcast %c71_i32 : i32 to vector<128x128xi32>
    %80 = arith.cmpi eq, %48, %79 : vector<128x128xi32>
    %81 = arith.andi %78, %80 : vector<128x128xi1>
    %cst_25 = arith.constant 1.000000e+00 : f32
    %cst_26 = arith.constant 0.000000e+00 : f32
    %82 = vector.broadcast %cst_25 : f32 to vector<128x128xf32>
    %83 = vector.broadcast %cst_26 : f32 to vector<128x128xf32>
    %84 = arith.select %81, %82, %83 : vector<128x128xi1>, vector<128x128xf32>
    %85 = arith.addf %73, %84 : vector<128x128xf32>
    %c54_i32_27 = arith.constant 54 : i32
    %86 = vector.broadcast %c54_i32_27 : i32 to vector<128x128xi32>
    %87 = arith.cmpi sge, %47, %86 : vector<128x128xi32>
    %c69_i32_28 = arith.constant 69 : i32
    %88 = vector.broadcast %c69_i32_28 : i32 to vector<128x128xi32>
    %89 = arith.cmpi slt, %47, %88 : vector<128x128xi32>
    %90 = arith.andi %87, %89 : vector<128x128xi1>
    %c72_i32 = arith.constant 72 : i32
    %91 = vector.broadcast %c72_i32 : i32 to vector<128x128xi32>
    %92 = arith.cmpi eq, %48, %91 : vector<128x128xi32>
    %93 = arith.andi %90, %92 : vector<128x128xi1>
    %cst_29 = arith.constant 1.000000e+00 : f32
    %cst_30 = arith.constant 0.000000e+00 : f32
    %94 = vector.broadcast %cst_29 : f32 to vector<128x128xf32>
    %95 = vector.broadcast %cst_30 : f32 to vector<128x128xf32>
    %96 = arith.select %93, %94, %95 : vector<128x128xi1>, vector<128x128xf32>
    %97 = arith.addf %85, %96 : vector<128x128xf32>
    %cst_31 = arith.constant dense<0.000000e+00> : vector<8x128xf32>
    %98 = tpu.matmul %46, %97, %cst_31 {dimension_numbers = #tpu.dot_dimension_numbers<[1], [0], [0], [1], [0, 0, 1, 1], [], []>, precision = #tpu.contract_precision<fp32>} : vector<8x128xf32>, vector<128x128xf32>, vector<8x128xf32> -> vector<8x128xf32>
    %99 = arith.addf %46, %98 : vector<8x128xf32>
    %c0_32 = arith.constant 0 : index
    %c0_33 = arith.constant 0 : index
    %100 = vector.load %arg4[%c0_32, %c0_33] : memref<8x128xf32, #tpu.memory_space<vmem>>, vector<8x128xf32>
    tpu.vector_store %arg4[%c0_32, %c0_33], %99 {strides = array<i32>} : memref<8x128xf32, #tpu.memory_space<vmem>>, vector<8x128xf32>,
    return
  }
  func.func @transform_0(%arg0: i32) -> (i32, i32) {
    %c0_i32 = arith.constant 0 : i32
    %c0_i32_0 = arith.constant 0 : i32
    return %arg0, %c0_i32 : i32, i32
  }
  func.func @transform_1(%arg0: i32) -> (i32, i32) {
    %c0_i32 = arith.constant 0 : i32
    %c0_i32_0 = arith.constant 0 : i32
    %c0_i32_1 = arith.constant 0 : i32
    return %c0_i32, %c0_i32_0 : i32, i32
  }
  func.func @transform_2(%arg0: i32) -> (i32, i32) {
    %c0_i32 = arith.constant 0 : i32
    %c0_i32_0 = arith.constant 0 : i32
    %c0_i32_1 = arith.constant 0 : i32
    return %c0_i32, %c0_i32_0 : i32, i32
  }
  func.func @transform_3(%arg0: i32) -> (i32, i32) {
    %c0_i32 = arith.constant 0 : i32
    %c0_i32_0 = arith.constant 0 : i32
    return %arg0, %c0_i32 : i32, i32
  }
}

</mosaic_0001>

<bundles_post_ra>
// kernel: reverse
= control target key start
LH: loop header
LB: loop body
LE: loop exit
PB: predicated region body
PF: predicated region fallthrough
CT: control target
= control target key end

     0   :  { %s8361_s0 = inlined_call_operand.vmem [shape: bf16[3,3,256,256], index: 0, kind: input, shape index: {}]   ;;  %s8362_s1 = inlined_call_operand.vmem [shape: bf16[3,3,256,256], index: 1, kind: output, shape index: {}]  }
   0x1   :  { %v6335_v0 = vld [vmem:[%s8361_s0 + $0x800] sm:$0xff]   ;;  %v6344_v9 = vld [vmem:[%s8361_s0 + $0x808] sm:$0xff]   ;;  %v6353_v18 = vld [vmem:[%s8361_s0 + $0x810] sm:$0xff]  }
   0x2   :  { %v6336_v1 = vld [vmem:[%s8361_s0 + $0x500] sm:$0xff]   ;;  %5186 = vst [vmem:[%s8362_s1] sm:$0xff] %v6335_v0  ;;  %v6345_v10 = vld [vmem:[%s8361_s0 + $0x508] sm:$0xff]   ;;  %5222 = vst [vmem:[%s8362_s1 + $0x8] sm:$0xff] %v6344_v9 }
   0x3   :  { %v6337_v2 = vld [vmem:[%s8361_s0 + $0x200] sm:$0xff]   ;;  %5190 = vst [vmem:[%s8362_s1 + $0x300] sm:$0xff] %v6336_v1  ;;  %v6346_v11 = vld [vmem:[%s8361_s0 + $0x208] sm:$0xff]   ;;  %5226 = vst [vmem:[%s8362_s1 + $0x308] sm:$0xff] %v6345_v10 }
   0x4   :  { %v6338_v3 = vld [vmem:[%s8361_s0 + $0x700] sm:$0xff]   ;;  %5194 = vst [vmem:[%s8362_s1 + $0x600] sm:$0xff] %v6337_v2  ;;  %v6347_v12 = vld [vmem:[%s8361_s0 + $0x708] sm:$0xff]   ;;  %5230 = vst [vmem:[%s8362_s1 + $0x608] sm:$0xff] %v6346_v11 }
   0x5   :  { %v6339_v4 = vld [vmem:[%s8361_s0 + $0x400] sm:$0xff]   ;;  %5198 = vst [vmem:[%s8362_s1 + $0x100] sm:$0xff] %v6338_v3  ;;  %v6348_v13 = vld [vmem:[%s8361_s0 + $0x408] sm:$0xff]   ;;  %5234 = vst [vmem:[%s8362_s1 + $0x108] sm:$0xff] %v6347_v12 }
   0x6   :  { %v6340_v5 = vld [vmem:[%s8361_s0 + $0x100] sm:$0xff]   ;;  %5202 = vst [vmem:[%s8362_s1 + $0x400] sm:$0xff] %v6339_v4  ;;  %v6349_v14 = vld [vmem:[%s8361_s0 + $0x108] sm:$0xff]   ;;  %5238 = vst [vmem:[%s8362_s1 + $0x408] sm:$0xff] %v6348_v13 }
   0x7   :  { %v6341_v6 = vld [vmem:[%s8361_s0 + $0x600] sm:$0xff]   ;;  %5206 = vst [vmem:[%s8362_s1 + $0x700] sm:$0xff] %v6340_v5  ;;  %v6350_v15 = vld [vmem:[%s8361_s0 + $0x608] sm:$0xff]   ;;  %5242 = vst [vmem:[%s8362_s1 + $0x708] sm:$0xff] %v6349_v14 }
   0x8   :  { %v6342_v7 = vld [vmem:[%s8361_s0 + $0x300] sm:$0xff]   ;;  %5210 = vst [vmem:[%s8362_s1 + $0x200] sm:$0xff] %v6341_v6  ;;  %v6351_v16 = vld [vmem:[%s8361_s0 + $0x308] sm:$0xff]   ;;  %5246 = vst [vmem:[%s8362_s1 + $0x208] sm:$0xff] %v6350_v15 }
   0x9   :  { %v6343_v8 = vld [vmem:[%s8361_s0] sm:$0xff]   ;;  %5214 = vst [vmem:[%s8362_s1 + $0x500] sm:$0xff] %v6342_v7  ;;  %v6352_v17 = vld [vmem:[%s8361_s0 + $0x8] sm:$0xff]   ;;  %5250 = vst [vmem:[%s8362_s1 + $0x508] sm:$0xff] %v6351_v16 }
   0xa   :  { %5218 = vst [vmem:[%s8362_s1 + $0x800] sm:$0xff] %v6343_v8  ;;  %5254 = vst [vmem:[%s8362_s1 + $0x808] sm:$0xff] %v6352_v17  ;;  %v6354_v19 = vld [vmem:[%s8361_s0 + $0x510] sm:$0xff]   ;;  %v6362_v27 = vld [vmem:[%s8361_s0 + $0x818] sm:$0xff]  }
   0xb   :  { %v6355_v20 = vld [vmem:[%s8361_s0 + $0x210] sm:$0xff]   ;;  %5258 = vst [vmem:[%s8362_s1 + $0x10] sm:$0xff] %v6353_v18  ;;  %5262 = vst [vmem:[%s8362_s1 + $0x310] sm:$0xff] %v6354_v19  ;;  %v6363_v28 = vld [vmem:[%s8361_s0 + $0x518] sm:$0xff]  }
   0xc   :  { %v6356_v21 = vld [vmem:[%s8361_s0 + $0x710] sm:$0xff]   ;;  %5266 = vst [vmem:[%s8362_s1 + $0x610] sm:$0xff] %v6355_v20  ;;  %v6364_v29 = vld [vmem:[%s8361_s0 + $0x218] sm:$0xff]   ;;  %5294 = vst [vmem:[%s8362_s1 + $0x18] sm:$0xff] %v6362_v27 }
   0xd   :  { %v6357_v22 = vld [vmem:[%s8361_s0 + $0x410] sm:$0xff]   ;;  %5270 = vst [vmem:[%s8362_s1 + $0x110] sm:$0xff] %v6356_v21  ;;  %v6365_v30 = vld [vmem:[%s8361_s0 + $0x718] sm:$0xff]   ;;  %5298 = vst [vmem:[%s8362_s1 + $0x318] sm:$0xff] %v6363_v28 }
   0xe   :  { %v6358_v23 = vld [vmem:[%s8361_s0 + $0x110] sm:$0xff]   ;;  %5274 = vst [vmem:[%s8362_s1 + $0x410] sm:$0xff] %v6357_v22  ;;  %5302 = vst [vmem:[%s8362_s1 + $0x618] sm:$0xff] %v6364_v29  ;;  %v6366_v31 = vld [vmem:[%s8361_s0 + $0x418] sm:$0xff]  }
   0xf   :  { %v6359_v24 = vld [vmem:[%s8361_s0 + $0x610] sm:$0xff]   ;;  %5278 = vst [vmem:[%s8362_s1 + $0x710] sm:$0xff] %v6358_v23  ;;  %v6367_v32 = vld [vmem:[%s8361_s0 + $0x118] sm:$0xff]   ;;  %5306 = vst [vmem:[%s8362_s1 + $0x118] sm:$0xff] %v6365_v30 }
  0x10   :  { %v6360_v25 = vld [vmem:[%s8361_s0 + $0x310] sm:$0xff]   ;;  %5282 = vst [vmem:[%s8362_s1 + $0x210] sm:$0xff] %v6359_v24  ;;  %v6368_v33 = vld [vmem:[%s8361_s0 + $0x618] sm:$0xff]   ;;  %5310 = vst [vmem:[%s8362_s1 + $0x418] sm:$0xff] %v6366_v31 }
  0x11   :  { %v6361_v26 = vld [vmem:[%s8361_s0 + $0x10] sm:$0xff]   ;;  %5286 = vst [vmem:[%s8362_s1 + $0x510] sm:$0xff] %v6360_v25  ;;  %5314 = vst [vmem:[%s8362_s1 + $0x718] sm:$0xff] %v6367_v32  ;;  %v6369_v34 = vld [vmem:[%s8361_s0 + $0x318] sm:$0xff]  }
  0x12   :  { %5290 = vst [vmem:[%s8362_s1 + $0x810] sm:$0xff] %v6361_v26  ;;  %v6370_v35 = vld [vmem:[%s8361_s0 + $0x18] sm:$0xff]   ;;  %5318 = vst [vmem:[%s8362_s1 + $0x218] sm:$0xff] %v6368_v33  ;;  %v6371_v36 = vld [vmem:[%s8361_s0 + $0x820] sm:$0xff]  }
  0x13   :  { %5322 = vst [vmem:[%s8362_s1 + $0x518] sm:$0xff] %v6369_v34  ;;  %5326 = vst [vmem:[%s8362_s1 + $0x818] sm:$0xff] %v6370_v35  ;;  %v6372_v37 = vld [vmem:[%s8361_s0 + $0x520] sm:$0xff]   ;;  %v6380_v45 = vld [vmem:[%s8361_s0 + $0x828] sm:$0xff]  }
  0x14   :  { %v6373_v38 = vld [vmem:[%s8361_s0 + $0x220] sm:$0xff]   ;;  %5330 = vst [vmem:[%s8362_s1 + $0x20] sm:$0xff] %v6371_v36  ;;  %5334 = vst [vmem:[%s8362_s1 + $0x320] sm:$0xff] %v6372_v37  ;;  %v6381_v46 = vld [vmem:[%s8361_s0 + $0x528] sm:$0xff]  }
  0x15   :  { %v6374_v39 = vld [vmem:[%s8361_s0 + $0x720] sm:$0xff]   ;;  %5338 = vst [vmem:[%s8362_s1 + $0x620] sm:$0xff] %v6373_v38  ;;  %v6382_v47 = vld [vmem:[%s8361_s0 + $0x228] sm:$0xff]   ;;  %5366 = vst [vmem:[%s8362_s1 + $0x28] sm:$0xff] %v6380_v45 }
  0x16   :  { %v6375_v40 = vld [vmem:[%s8361_s0 + $0x420] sm:$0xff]   ;;  %5342 = vst [vmem:[%s8362_s1 + $0x120] sm:$0xff] %v6374_v39  ;;  %v6383_v48 = vld [vmem:[%s8361_s0 + $0x728] sm:$0xff]   ;;  %5370 = vst [vmem:[%s8362_s1 + $0x328] sm:$0xff] %v6381_v46 }
  0x17   :  { %v6376_v41 = vld [vmem:[%s8361_s0 + $0x120] sm:$0xff]   ;;  %5346 = vst [vmem:[%s8362_s1 + $0x420] sm:$0xff] %v6375_v40  ;;  %5374 = vst [vmem:[%s8362_s1 + $0x628] sm:$0xff] %v6382_v47  ;;  %v6384_v49 = vld [vmem:[%s8361_s0 + $0x428] sm:$0xff]  }
  0x18   :  { %v6377_v42 = vld [vmem:[%s8361_s0 + $0x620] sm:$0xff]   ;;  %5350 = vst [vmem:[%s8362_s1 + $0x720] sm:$0xff] %v6376_v41  ;;  %v6385_v50 = vld [vmem:[%s8361_s0 + $0x128] sm:$0xff]   ;;  %5378 = vst [vmem:[%s8362_s1 + $0x128] sm:$0xff] %v6383_v48 }
  0x19   :  { %v6378_v43 = vld [vmem:[%s8361_s0 + $0x320] sm:$0xff]   ;;  %5354 = vst [vmem:[%s8362_s1 + $0x220] sm:$0xff] %v6377_v42  ;;  %v6386_v51 = vld [vmem:[%s8361_s0 + $0x628] sm:$0xff]   ;;  %5382 = vst [vmem:[%s8362_s1 + $0x428] sm:$0xff] %v6384_v49 }
  0x1a   :  { %v6379_v44 = vld [vmem:[%s8361_s0 + $0x20] sm:$0xff]   ;;  %5358 = vst [vmem:[%s8362_s1 + $0x520] sm:$0xff] %v6378_v43  ;;  %5386 = vst [vmem:[%s8362_s1 + $0x728] sm:$0xff] %v6385_v50  ;;  %v6387_v52 = vld [vmem:[%s8361_s0 + $0x328] sm:$0xff]  }
  0x1b   :  { %5362 = vst [vmem:[%s8362_s1 + $0x820] sm:$0xff] %v6379_v44  ;;  %v6388_v53 = vld [vmem:[%s8361_s0 + $0x28] sm:$0xff]   ;;  %5390 = vst [vmem:[%s8362_s1 + $0x228] sm:$0xff] %v6386_v51  ;;  %v6389_v54 = vld [vmem:[%s8361_s0 + $0x830] sm:$0xff]  }
  0x1c   :  { %5394 = vst [vmem:[%s8362_s1 + $0x528] sm:$0xff] %v6387_v52  ;;  %5398 = vst [vmem:[%s8362_s1 + $0x828] sm:$0xff] %v6388_v53  ;;  %v6390_v55 = vld [vmem:[%s8361_s0 + $0x530] sm:$0xff]   ;;  %v6398_v63 = vld [vmem:[%s8361_s0 + $0x838] sm:$0xff]  }
  0x1d   :  { %v6391_v56 = vld [vmem:[%s8361_s0 + $0x230] sm:$0xff]   ;;  %5402 = vst [vmem:[%s8362_s1 + $0x30] sm:$0xff] %v6389_v54  ;;  %5406 = vst [vmem:[%s8362_s1 + $0x330] sm:$0xff] %v6390_v55  ;;  %v6399_v0 = vld [vmem:[%s8361_s0 + $0x538] sm:$0xff]  }
  0x1e   :  { %v6392_v57 = vld [vmem:[%s8361_s0 + $0x730] sm:$0xff]   ;;  %5410 = vst [vmem:[%s8362_s1 + $0x630] sm:$0xff] %v6391_v56  ;;  %v6400_v1 = vld [vmem:[%s8361_s0 + $0x238] sm:$0xff]   ;;  %5438 = vst [vmem:[%s8362_s1 + $0x38] sm:$0xff] %v6398_v63 }
  0x1f   :  { %v6393_v58 = vld [vmem:[%s8361_s0 + $0x430] sm:$0xff]   ;;  %5414 = vst [vmem:[%s8362_s1 + $0x130] sm:$0xff] %v6392_v57  ;;  %v6401_v2 = vld [vmem:[%s8361_s0 + $0x738] sm:$0xff]   ;;  %5442 = vst [vmem:[%s8362_s1 + $0x338] sm:$0xff] %v6399_v0 }
  0x20   :  { %v6394_v59 = vld [vmem:[%s8361_s0 + $0x130] sm:$0xff]   ;;  %5418 = vst [vmem:[%s8362_s1 + $0x430] sm:$0xff] %v6393_v58  ;;  %5446 = vst [vmem:[%s8362_s1 + $0x638] sm:$0xff] %v6400_v1  ;;  %v6402_v3 = vld [vmem:[%s8361_s0 + $0x438] sm:$0xff]  }
  0x21   :  { %v6395_v60 = vld [vmem:[%s8361_s0 + $0x630] sm:$0xff]   ;;  %5422 = vst [vmem:[%s8362_s1 + $0x730] sm:$0xff] %v6394_v59  ;;  %v6403_v4 = vld [vmem:[%s8361_s0 + $0x138] sm:$0xff]   ;;  %5450 = vst [vmem:[%s8362_s1 + $0x138] sm:$0xff] %v6401_v2 }
  0x22   :  { %v6396_v61 = vld [vmem:[%s8361_s0 + $0x330] sm:$0xff]   ;;  %5426 = vst [vmem:[%s8362_s1 + $0x230] sm:$0xff] %v6395_v60  ;;  %v6404_v5 = vld [vmem:[%s8361_s0 + $0x638] sm:$0xff]   ;;  %5454 = vst [vmem:[%s8362_s1 + $0x438] sm:$0xff] %v6402_v3 }
  0x23   :  { %v6397_v62 = vld [vmem:[%s8361_s0 + $0x30] sm:$0xff]   ;;  %5430 = vst [vmem:[%s8362_s1 + $0x530] sm:$0xff] %v6396_v61  ;;  %5458 = vst [vmem:[%s8362_s1 + $0x738] sm:$0xff] %v6403_v4  ;;  %v6405_v6 = vld [vmem:[%s8361_s0 + $0x338] sm:$0xff]  }
  0x24   :  { %5434 = vst [vmem:[%s8362_s1 + $0x830] sm:$0xff] %v6397_v62  ;;  %v6406_v7 = vld [vmem:[%s8361_s0 + $0x38] sm:$0xff]   ;;  %5462 = vst [vmem:[%s8362_s1 + $0x238] sm:$0xff] %v6404_v5  ;;  %v6407_v8 = vld [vmem:[%s8361_s0 + $0x840] sm:$0xff]  }
  0x25   :  { %5466 = vst [vmem:[%s8362_s1 + $0x538] sm:$0xff] %v6405_v6  ;;  %5470 = vst [vmem:[%s8362_s1 + $0x838] sm:$0xff] %v6406_v7  ;;  %v6408_v9 = vld [vmem:[%s8361_s0 + $0x540] sm:$0xff]   ;;  %v6416_v17 = vld [vmem:[%s8361_s0 + $0x848] sm:$0xff]  }
  0x26   :  { %v6409_v10 = vld [vmem:[%s8361_s0 + $0x240] sm:$0xff]   ;;  %5474 = vst [vmem:[%s8362_s1 + $0x40] sm:$0xff] %v6407_v8  ;;  %5478 = vst [vmem:[%s8362_s1 + $0x340] sm:$0xff] %v6408_v9  ;;  %v6417_v18 = vld [vmem:[%s8361_s0 + $0x548] sm:$0xff]  }
  0x27   :  { %v6410_v11 = vld [vmem:[%s8361_s0 + $0x740] sm:$0xff]   ;;  %5482 = vst [vmem:[%s8362_s1 + $0x640] sm:$0xff] %v6409_v10  ;;  %v6418_v19 = vld [vmem:[%s8361_s0 + $0x248] sm:$0xff]   ;;  %5510 = vst [vmem:[%s8362_s1 + $0x48] sm:$0xff] %v6416_v17 }
  0x28   :  { %v6411_v12 = vld [vmem:[%s8361_s0 + $0x440] sm:$0xff]   ;;  %5486 = vst [vmem:[%s8362_s1 + $0x140] sm:$0xff] %v6410_v11  ;;  %v6419_v20 = vld [vmem:[%s8361_s0 + $0x748] sm:$0xff]   ;;  %5514 = vst [vmem:[%s8362_s1 + $0x348] sm:$0xff] %v6417_v18 }
  0x29   :  { %v6412_v13 = vld [vmem:[%s8361_s0 + $0x140] sm:$0xff]   ;;  %5490 = vst [vmem:[%s8362_s1 + $0x440] sm:$0xff] %v6411_v12  ;;  %5518 = vst [vmem:[%s8362_s1 + $0x648] sm:$0xff] %v6418_v19  ;;  %v6420_v21 = vld [vmem:[%s8361_s0 + $0x448] sm:$0xff]  }
  0x2a   :  { %v6413_v14 = vld [vmem:[%s8361_s0 + $0x640] sm:$0xff]   ;;  %5494 = vst [vmem:[%s8362_s1 + $0x740] sm:$0xff] %v6412_v13  ;;  %v6421_v22 = vld [vmem:[%s8361_s0 + $0x148] sm:$0xff]   ;;  %5522 = vst [vmem:[%s8362_s1 + $0x148] sm:$0xff] %v6419_v20 }
  0x2b   :  { %v6414_v15 = vld [vmem:[%s8361_s0 + $0x340] sm:$0xff]   ;;  %5498 = vst [vmem:[%s8362_s1 + $0x240] sm:$0xff] %v6413_v14  ;;  %v6422_v23 = vld [vmem:[%s8361_s0 + $0x648] sm:$0xff]   ;;  %5526 = vst [vmem:[%s8362_s1 + $0x448] sm:$0xff] %v6420_v21 }
  0x2c   :  { %v6415_v16 = vld [vmem:[%s8361_s0 + $0x40] sm:$0xff]   ;;  %5502 = vst [vmem:[%s8362_s1 + $0x540] sm:$0xff] %v6414_v15  ;;  %5530 = vst [vmem:[%s8362_s1 + $0x748] sm:$0xff] %v6421_v22  ;;  %v6423_v24 = vld [vmem:[%s8361_s0 + $0x348] sm:$0xff]  }
  0x2d   :  { %5506 = vst [vmem:[%s8362_s1 + $0x840] sm:$0xff] %v6415_v16  ;;  %v6424_v25 = vld [vmem:[%s8361_s0 + $0x48] sm:$0xff]   ;;  %5534 = vst [vmem:[%s8362_s1 + $0x248] sm:$0xff] %v6422_v23  ;;  %v6425_v26 = vld [vmem:[%s8361_s0 + $0x850] sm:$0xff]  }
  0x2e   :  { %5538 = vst [vmem:[%s8362_s1 + $0x548] sm:$0xff] %v6423_v24  ;;  %5542 = vst [vmem:[%s8362_s1 + $0x848] sm:$0xff] %v6424_v25  ;;  %v6426_v27 = vld [vmem:[%s8361_s0 + $0x550] sm:$0xff]   ;;  %v6434_v35 = vld [vmem:[%s8361_s0 + $0x858] sm:$0xff]  }
  0x2f   :  { %v6427_v28 = vld [vmem:[%s8361_s0 + $0x250] sm:$0xff]   ;;  %5546 = vst [vmem:[%s8362_s1 + $0x50] sm:$0xff] %v6425_v26  ;;  %5550 = vst [vmem:[%s8362_s1 + $0x350] sm:$0xff] %v6426_v27  ;;  %v6435_v36 = vld [vmem:[%s8361_s0 + $0x558] sm:$0xff]  }
  0x30   :  { %v6428_v29 = vld [vmem:[%s8361_s0 + $0x750] sm:$0xff]   ;;  %5554 = vst [vmem:[%s8362_s1 + $0x650] sm:$0xff] %v6427_v28  ;;  %v6436_v37 = vld [vmem:[%s8361_s0 + $0x258] sm:$0xff]   ;;  %5582 = vst [vmem:[%s8362_s1 + $0x58] sm:$0xff] %v6434_v35 }
  0x31   :  { %v6429_v30 = vld [vmem:[%s8361_s0 + $0x450] sm:$0xff]   ;;  %5558 = vst [vmem:[%s8362_s1 + $0x150] sm:$0xff] %v6428_v29  ;;  %v6437_v38 = vld [vmem:[%s8361_s0 + $0x758] sm:$0xff]   ;;  %5586 = vst [vmem:[%s8362_s1 + $0x358] sm:$0xff] %v6435_v36 }
  0x32   :  { %v6430_v31 = vld [vmem:[%s8361_s0 + $0x150] sm:$0xff]   ;;  %5562 = vst [vmem:[%s8362_s1 + $0x450] sm:$0xff] %v6429_v30  ;;  %5590 = vst [vmem:[%s8362_s1 + $0x658] sm:$0xff] %v6436_v37  ;;  %v6438_v39 = vld [vmem:[%s8361_s0 + $0x458] sm:$0xff]  }
  0x33   :  { %v6431_v32 = vld [vmem:[%s8361_s0 + $0x650] sm:$0xff]   ;;  %5566 = vst [vmem:[%s8362_s1 + $0x750] sm:$0xff] %v6430_v31  ;;  %v6439_v40 = vld [vmem:[%s8361_s0 + $0x158] sm:$0xff]   ;;  %5594 = vst [vmem:[%s8362_s1 + $0x158] sm:$0xff] %v6437_v38 }
  0x34   :  { %v6432_v33 = vld [vmem:[%s8361_s0 + $0x350] sm:$0xff]   ;;  %5570 = vst [vmem:[%s8362_s1 + $0x250] sm:$0xff] %v6431_v32  ;;  %v6440_v41 = vld [vmem:[%s8361_s0 + $0x658] sm:$0xff]   ;;  %5598 = vst [vmem:[%s8362_s1 + $0x458] sm:$0xff] %v6438_v39 }
  0x35   :  { %v6433_v34 = vld [vmem:[%s8361_s0 + $0x50] sm:$0xff]   ;;  %5574 = vst [vmem:[%s8362_s1 + $0x550] sm:$0xff] %v6432_v33  ;;  %5602 = vst [vmem:[%s8362_s1 + $0x758] sm:$0xff] %v6439_v40  ;;  %v6441_v42 = vld [vmem:[%s8361_s0 + $0x358] sm:$0xff]  }
  0x36   :  { %5578 = vst [vmem:[%s8362_s1 + $0x850] sm:$0xff] %v6433_v34  ;;  %v6442_v43 = vld [vmem:[%s8361_s0 + $0x58] sm:$0xff]   ;;  %5606 = vst [vmem:[%s8362_s1 + $0x258] sm:$0xff] %v6440_v41  ;;  %v6443_v44 = vld [vmem:[%s8361_s0 + $0x860] sm:$0xff]  }
  0x37   :  { %5610 = vst [vmem:[%s8362_s1 + $0x558] sm:$0xff] %v6441_v42  ;;  %5614 = vst [vmem:[%s8362_s1 + $0x858] sm:$0xff] %v6442_v43  ;;  %v6444_v45 = vld [vmem:[%s8361_s0 + $0x560] sm:$0xff]   ;;  %v6452_v53 = vld [vmem:[%s8361_s0 + $0x868] sm:$0xff]  }
  0x38   :  { %v6445_v46 = vld [vmem:[%s8361_s0 + $0x260] sm:$0xff]   ;;  %5618 = vst [vmem:[%s8362_s1 + $0x60] sm:$0xff] %v6443_v44  ;;  %5622 = vst [vmem:[%s8362_s1 + $0x360] sm:$0xff] %v6444_v45  ;;  %v6453_v54 = vld [vmem:[%s8361_s0 + $0x568] sm:$0xff]  }
  0x39   :  { %v6446_v47 = vld [vmem:[%s8361_s0 + $0x760] sm:$0xff]   ;;  %5626 = vst [vmem:[%s8362_s1 + $0x660] sm:$0xff] %v6445_v46  ;;  %v6454_v55 = vld [vmem:[%s8361_s0 + $0x268] sm:$0xff]   ;;  %5654 = vst [vmem:[%s8362_s1 + $0x68] sm:$0xff] %v6452_v53 }
  0x3a   :  { %v6447_v48 = vld [vmem:[%s8361_s0 + $0x460] sm:$0xff]   ;;  %5630 = vst [vmem:[%s8362_s1 + $0x160] sm:$0xff] %v6446_v47  ;;  %v6455_v56 = vld [vmem:[%s8361_s0 + $0x768] sm:$0xff]   ;;  %5658 = vst [vmem:[%s8362_s1 + $0x368] sm:$0xff] %v6453_v54 }
  0x3b   :  { %v6448_v49 = vld [vmem:[%s8361_s0 + $0x160] sm:$0xff]   ;;  %5634 = vst [vmem:[%s8362_s1 + $0x460] sm:$0xff] %v6447_v48  ;;  %5662 = vst [vmem:[%s8362_s1 + $0x668] sm:$0xff] %v6454_v55  ;;  %v6456_v57 = vld [vmem:[%s8361_s0 + $0x468] sm:$0xff]  }
  0x3c   :  { %v6449_v50 = vld [vmem:[%s8361_s0 + $0x660] sm:$0xff]   ;;  %5638 = vst [vmem:[%s8362_s1 + $0x760] sm:$0xff] %v6448_v49  ;;  %v6457_v58 = vld [vmem:[%s8361_s0 + $0x168] sm:$0xff]   ;;  %5666 = vst [vmem:[%s8362_s1 + $0x168] sm:$0xff] %v6455_v56 }
  0x3d   :  { %v6450_v51 = vld [vmem:[%s8361_s0 + $0x360] sm:$0xff]   ;;  %5642 = vst [vmem:[%s8362_s1 + $0x260] sm:$0xff] %v6449_v50  ;;  %v6458_v59 = vld [vmem:[%s8361_s0 + $0x668] sm:$0xff]   ;;  %5670 = vst [vmem:[%s8362_s1 + $0x468] sm:$0xff] %v6456_v57 }
  0x3e   :  { %v6451_v52 = vld [vmem:[%s8361_s0 + $0x60] sm:$0xff]   ;;  %5646 = vst [vmem:[%s8362_s1 + $0x560] sm:$0xff] %v6450_v51  ;;  %5674 = vst [vmem:[%s8362_s1 + $0x768] sm:$0xff] %v6457_v58  ;;  %v6459_v60 = vld [vmem:[%s8361_s0 + $0x368] sm:$0xff]  }
  0x3f   :  { %5650 = vst [vmem:[%s8362_s1 + $0x860] sm:$0xff] %v6451_v52  ;;  %v6460_v61 = vld [vmem:[%s8361_s0 + $0x68] sm:$0xff]   ;;  %5678 = vst [vmem:[%s8362_s1 + $0x268] sm:$0xff] %v6458_v59  ;;  %v6461_v62 = vld [vmem:[%s8361_s0 + $0x870] sm:$0xff]  }
  0x40   :  { %5682 = vst [vmem:[%s8362_s1 + $0x568] sm:$0xff] %v6459_v60  ;;  %5686 = vst [vmem:[%s8362_s1 + $0x868] sm:$0xff] %v6460_v61  ;;  %v6462_v63 = vld [vmem:[%s8361_s0 + $0x570] sm:$0xff]   ;;  %v6470_v7 = vld [vmem:[%s8361_s0 + $0x878] sm:$0xff]  }
  0x41   :  { %v6463_v0 = vld [vmem:[%s8361_s0 + $0x270] sm:$0xff]   ;;  %5690 = vst [vmem:[%s8362_s1 + $0x70] sm:$0xff] %v6461_v62  ;;  %5694 = vst [vmem:[%s8362_s1 + $0x370] sm:$0xff] %v6462_v63  ;;  %v6471_v8 = vld [vmem:[%s8361_s0 + $0x578] sm:$0xff]  }
  0x42   :  { %v6464_v1 = vld [vmem:[%s8361_s0 + $0x770] sm:$0xff]   ;;  %5698 = vst [vmem:[%s8362_s1 + $0x670] sm:$0xff] %v6463_v0  ;;  %v6472_v9 = vld [vmem:[%s8361_s0 + $0x278] sm:$0xff]   ;;  %5726 = vst [vmem:[%s8362_s1 + $0x78] sm:$0xff] %v6470_v7 }
  0x43   :  { %v6465_v2 = vld [vmem:[%s8361_s0 + $0x470] sm:$0xff]   ;;  %5702 = vst [vmem:[%s8362_s1 + $0x170] sm:$0xff] %v6464_v1  ;;  %v6473_v10 = vld [vmem:[%s8361_s0 + $0x778] sm:$0xff]   ;;  %5730 = vst [vmem:[%s8362_s1 + $0x378] sm:$0xff] %v6471_v8 }
  0x44   :  { %v6466_v3 = vld [vmem:[%s8361_s0 + $0x170] sm:$0xff]   ;;  %5706 = vst [vmem:[%s8362_s1 + $0x470] sm:$0xff] %v6465_v2  ;;  %5734 = vst [vmem:[%s8362_s1 + $0x678] sm:$0xff] %v6472_v9  ;;  %v6474_v11 = vld [vmem:[%s8361_s0 + $0x478] sm:$0xff]  }
  0x45   :  { %v6467_v4 = vld [vmem:[%s8361_s0 + $0x670] sm:$0xff]   ;;  %5710 = vst [vmem:[%s8362_s1 + $0x770] sm:$0xff] %v6466_v3  ;;  %v6475_v12 = vld [vmem:[%s8361_s0 + $0x178] sm:$0xff]   ;;  %5738 = vst [vmem:[%s8362_s1 + $0x178] sm:$0xff] %v6473_v10 }
  0x46   :  { %v6468_v5 = vld [vmem:[%s8361_s0 + $0x370] sm:$0xff]   ;;  %5714 = vst [vmem:[%s8362_s1 + $0x270] sm:$0xff] %v6467_v4  ;;  %v6476_v13 = vld [vmem:[%s8361_s0 + $0x678] sm:$0xff]   ;;  %5742 = vst [vmem:[%s8362_s1 + $0x478] sm:$0xff] %v6474_v11 }
  0x47   :  { %v6469_v6 = vld [vmem:[%s8361_s0 + $0x70] sm:$0xff]   ;;  %5718 = vst [vmem:[%s8362_s1 + $0x570] sm:$0xff] %v6468_v5  ;;  %5746 = vst [vmem:[%s8362_s1 + $0x778] sm:$0xff] %v6475_v12  ;;  %v6477_v14 = vld [vmem:[%s8361_s0 + $0x378] sm:$0xff]  }
  0x48   :  { %5722 = vst [vmem:[%s8362_s1 + $0x870] sm:$0xff] %v6469_v6  ;;  %v6478_v15 = vld [vmem:[%s8361_s0 + $0x78] sm:$0xff]   ;;  %5750 = vst [vmem:[%s8362_s1 + $0x278] sm:$0xff] %v6476_v13  ;;  %v6479_v16 = vld [vmem:[%s8361_s0 + $0x880] sm:$0xff]  }
  0x49   :  { %5754 = vst [vmem:[%s8362_s1 + $0x578] sm:$0xff] %v6477_v14  ;;  %5758 = vst [vmem:[%s8362_s1 + $0x878] sm:$0xff] %v6478_v15  ;;  %v6480_v17 = vld [vmem:[%s8361_s0 + $0x580] sm:$0xff]   ;;  %v6488_v25 = vld [vmem:[%s8361_s0 + $0x888] sm:$0xff]  }
  0x4a   :  { %v6481_v18 = vld [vmem:[%s8361_s0 + $0x280] sm:$0xff]   ;;  %5762 = vst [vmem:[%s8362_s1 + $0x80] sm:$0xff] %v6479_v16  ;;  %5766 = vst [vmem:[%s8362_s1 + $0x380] sm:$0xff] %v6480_v17  ;;  %v6489_v26 = vld [vmem:[%s8361_s0 + $0x588] sm:$0xff]  }
  0x4b   :  { %v6482_v19 = vld [vmem:[%s8361_s0 + $0x780] sm:$0xff]   ;;  %5770 = vst [vmem:[%s8362_s1 + $0x680] sm:$0xff] %v6481_v18  ;;  %v6490_v27 = vld [vmem:[%s8361_s0 + $0x288] sm:$0xff]   ;;  %5798 = vst [vmem:[%s8362_s1 + $0x88] sm:$0xff] %v6488_v25 }
  0x4c   :  { %v6483_v20 = vld [vmem:[%s8361_s0 + $0x480] sm:$0xff]   ;;  %5774 = vst [vmem:[%s8362_s1 + $0x180] sm:$0xff] %v6482_v19  ;;  %v6491_v28 = vld [vmem:[%s8361_s0 + $0x788] sm:$0xff]   ;;  %5802 = vst [vmem:[%s8362_s1 + $0x388] sm:$0xff] %v6489_v26 }
  0x4d   :  { %v6484_v21 = vld [vmem:[%s8361_s0 + $0x180] sm:$0xff]   ;;  %5778 = vst [vmem:[%s8362_s1 + $0x480] sm:$0xff] %v6483_v20  ;;  %5806 = vst [vmem:[%s8362_s1 + $0x688] sm:$0xff] %v6490_v27  ;;  %v6492_v29 = vld [vmem:[%s8361_s0 + $0x488] sm:$0xff]  }
  0x4e   :  { %v6485_v22 = vld [vmem:[%s8361_s0 + $0x680] sm:$0xff]   ;;  %5782 = vst [vmem:[%s8362_s1 + $0x780] sm:$0xff] %v6484_v21  ;;  %v6493_v30 = vld [vmem:[%s8361_s0 + $0x188] sm:$0xff]   ;;  %5810 = vst [vmem:[%s8362_s1 + $0x188] sm:$0xff] %v6491_v28 }
  0x4f   :  { %v6486_v23 = vld [vmem:[%s8361_s0 + $0x380] sm:$0xff]   ;;  %5786 = vst [vmem:[%s8362_s1 + $0x280] sm:$0xff] %v6485_v22  ;;  %v6494_v31 = vld [vmem:[%s8361_s0 + $0x688] sm:$0xff]   ;;  %5814 = vst [vmem:[%s8362_s1 + $0x488] sm:$0xff] %v6492_v29 }
  0x50   :  { %v6487_v24 = vld [vmem:[%s8361_s0 + $0x80] sm:$0xff]   ;;  %5790 = vst [vmem:[%s8362_s1 + $0x580] sm:$0xff] %v6486_v23  ;;  %5818 = vst [vmem:[%s8362_s1 + $0x788] sm:$0xff] %v6493_v30  ;;  %v6495_v32 = vld [vmem:[%s8361_s0 + $0x388] sm:$0xff]  }
  0x51   :  { %5794 = vst [vmem:[%s8362_s1 + $0x880] sm:$0xff] %v6487_v24  ;;  %v6496_v33 = vld [vmem:[%s8361_s0 + $0x88] sm:$0xff]   ;;  %5822 = vst [vmem:[%s8362_s1 + $0x288] sm:$0xff] %v6494_v31  ;;  %v6497_v34 = vld [vmem:[%s8361_s0 + $0x890] sm:$0xff]  }
  0x52   :  { %5826 = vst [vmem:[%s8362_s1 + $0x588] sm:$0xff] %v6495_v32  ;;  %5830 = vst [vmem:[%s8362_s1 + $0x888] sm:$0xff] %v6496_v33  ;;  %v6498_v35 = vld [vmem:[%s8361_s0 + $0x590] sm:$0xff]   ;;  %v6506_v43 = vld [vmem:[%s8361_s0 + $0x898] sm:$0xff]  }
  0x53   :  { %v6499_v36 = vld [vmem:[%s8361_s0 + $0x290] sm:$0xff]   ;;  %5834 = vst [vmem:[%s8362_s1 + $0x90] sm:$0xff] %v6497_v34  ;;  %5838 = vst [vmem:[%s8362_s1 + $0x390] sm:$0xff] %v6498_v35  ;;  %v6507_v44 = vld [vmem:[%s8361_s0 + $0x598] sm:$0xff]  }
  0x54   :  { %v6500_v37 = vld [vmem:[%s8361_s0 + $0x790] sm:$0xff]   ;;  %5842 = vst [vmem:[%s8362_s1 + $0x690] sm:$0xff] %v6499_v36  ;;  %v6508_v45 = vld [vmem:[%s8361_s0 + $0x298] sm:$0xff]   ;;  %5870 = vst [vmem:[%s8362_s1 + $0x98] sm:$0xff] %v6506_v43 }
  0x55   :  { %v6501_v38 = vld [vmem:[%s8361_s0 + $0x490] sm:$0xff]   ;;  %5846 = vst [vmem:[%s8362_s1 + $0x190] sm:$0xff] %v6500_v37  ;;  %v6509_v46 = vld [vmem:[%s8361_s0 + $0x798] sm:$0xff]   ;;  %5874 = vst [vmem:[%s8362_s1 + $0x398] sm:$0xff] %v6507_v44 }
  0x56   :  { %v6502_v39 = vld [vmem:[%s8361_s0 + $0x190] sm:$0xff]   ;;  %5850 = vst [vmem:[%s8362_s1 + $0x490] sm:$0xff] %v6501_v38  ;;  %5878 = vst [vmem:[%s8362_s1 + $0x698] sm:$0xff] %v6508_v45  ;;  %v6510_v47 = vld [vmem:[%s8361_s0 + $0x498] sm:$0xff]  }
  0x57   :  { %v6503_v40 = vld [vmem:[%s8361_s0 + $0x690] sm:$0xff]   ;;  %5854 = vst [vmem:[%s8362_s1 + $0x790] sm:$0xff] %v6502_v39  ;;  %v6511_v48 = vld [vmem:[%s8361_s0 + $0x198] sm:$0xff]   ;;  %5882 = vst [vmem:[%s8362_s1 + $0x198] sm:$0xff] %v6509_v46 }
  0x58   :  { %v6504_v41 = vld [vmem:[%s8361_s0 + $0x390] sm:$0xff]   ;;  %5858 = vst [vmem:[%s8362_s1 + $0x290] sm:$0xff] %v6503_v40  ;;  %v6512_v49 = vld [vmem:[%s8361_s0 + $0x698] sm:$0xff]   ;;  %5886 = vst [vmem:[%s8362_s1 + $0x498] sm:$0xff] %v6510_v47 }
  0x59   :  { %v6505_v42 = vld [vmem:[%s8361_s0 + $0x90] sm:$0xff]   ;;  %5862 = vst [vmem:[%s8362_s1 + $0x590] sm:$0xff] %v6504_v41  ;;  %5890 = vst [vmem:[%s8362_s1 + $0x798] sm:$0xff] %v6511_v48  ;;  %v6513_v50 = vld [vmem:[%s8361_s0 + $0x398] sm:$0xff]  }
  0x5a   :  { %5866 = vst [vmem:[%s8362_s1 + $0x890] sm:$0xff] %v6505_v42  ;;  %v6514_v51 = vld [vmem:[%s8361_s0 + $0x98] sm:$0xff]   ;;  %5894 = vst [vmem:[%s8362_s1 + $0x298] sm:$0xff] %v6512_v49  ;;  %v6515_v52 = vld [vmem:[%s8361_s0 + $0x8a0] sm:$0xff]  }
  0x5b   :  { %5898 = vst [vmem:[%s8362_s1 + $0x598] sm:$0xff] %v6513_v50  ;;  %5902 = vst [vmem:[%s8362_s1 + $0x898] sm:$0xff] %v6514_v51  ;;  %v6516_v53 = vld [vmem:[%s8361_s0 + $0x5a0] sm:$0xff]   ;;  %v6524_v61 = vld [vmem:[%s8361_s0 + $0x8a8] sm:$0xff]  }
  0x5c   :  { %v6517_v54 = vld [vmem:[%s8361_s0 + $0x2a0] sm:$0xff]   ;;  %5906 = vst [vmem:[%s8362_s1 + $0xa0] sm:$0xff] %v6515_v52  ;;  %5910 = vst [vmem:[%s8362_s1 + $0x3a0] sm:$0xff] %v6516_v53  ;;  %v6525_v62 = vld [vmem:[%s8361_s0 + $0x5a8] sm:$0xff]  }
  0x5d   :  { %v6518_v55 = vld [vmem:[%s8361_s0 + $0x7a0] sm:$0xff]   ;;  %5914 = vst [vmem:[%s8362_s1 + $0x6a0] sm:$0xff] %v6517_v54  ;;  %v6526_v63 = vld [vmem:[%s8361_s0 + $0x2a8] sm:$0xff]   ;;  %5942 = vst [vmem:[%s8362_s1 + $0xa8] sm:$0xff] %v6524_v61 }
  0x5e   :  { %v6519_v56 = vld [vmem:[%s8361_s0 + $0x4a0] sm:$0xff]   ;;  %5918 = vst [vmem:[%s8362_s1 + $0x1a0] sm:$0xff] %v6518_v55  ;;  %v6527_v0 = vld [vmem:[%s8361_s0 + $0x7a8] sm:$0xff]   ;;  %5946 = vst [vmem:[%s8362_s1 + $0x3a8] sm:$0xff] %v6525_v62 }
  0x5f   :  { %v6520_v57 = vld [vmem:[%s8361_s0 + $0x1a0] sm:$0xff]   ;;  %5922 = vst [vmem:[%s8362_s1 + $0x4a0] sm:$0xff] %v6519_v56  ;;  %5950 = vst [vmem:[%s8362_s1 + $0x6a8] sm:$0xff] %v6526_v63  ;;  %v6528_v1 = vld [vmem:[%s8361_s0 + $0x4a8] sm:$0xff]  }
  0x60   :  { %v6521_v58 = vld [vmem:[%s8361_s0 + $0x6a0] sm:$0xff]   ;;  %5926 = vst [vmem:[%s8362_s1 + $0x7a0] sm:$0xff] %v6520_v57  ;;  %v6529_v2 = vld [vmem:[%s8361_s0 + $0x1a8] sm:$0xff]   ;;  %5954 = vst [vmem:[%s8362_s1 + $0x1a8] sm:$0xff] %v6527_v0 }
  0x61   :  { %v6522_v59 = vld [vmem:[%s8361_s0 + $0x3a0] sm:$0xff]   ;;  %5930 = vst [vmem:[%s8362_s1 + $0x2a0] sm:$0xff] %v6521_v58  ;;  %v6530_v3 = vld [vmem:[%s8361_s0 + $0x6a8] sm:$0xff]   ;;  %5958 = vst [vmem:[%s8362_s1 + $0x4a8] sm:$0xff] %v6528_v1 }
  0x62   :  { %v6523_v60 = vld [vmem:[%s8361_s0 + $0xa0] sm:$0xff]   ;;  %5934 = vst [vmem:[%s8362_s1 + $0x5a0] sm:$0xff] %v6522_v59  ;;  %5962 = vst [vmem:[%s8362_s1 + $0x7a8] sm:$0xff] %v6529_v2  ;;  %v6531_v4 = vld [vmem:[%s8361_s0 + $0x3a8] sm:$0xff]  }
  0x63   :  { %5938 = vst [vmem:[%s8362_s1 + $0x8a0] sm:$0xff] %v6523_v60  ;;  %v6532_v5 = vld [vmem:[%s8361_s0 + $0xa8] sm:$0xff]   ;;  %5966 = vst [vmem:[%s8362_s1 + $0x2a8] sm:$0xff] %v6530_v3  ;;  %v6533_v6 = vld [vmem:[%s8361_s0 + $0x8b0] sm:$0xff]  }
  0x64   :  { %5970 = vst [vmem:[%s8362_s1 + $0x5a8] sm:$0xff] %v6531_v4  ;;  %5974 = vst [vmem:[%s8362_s1 + $0x8a8] sm:$0xff] %v6532_v5  ;;  %v6534_v7 = vld [vmem:[%s8361_s0 + $0x5b0] sm:$0xff]   ;;  %v6542_v15 = vld [vmem:[%s8361_s0 + $0x8b8] sm:$0xff]  }
  0x65   :  { %v6535_v8 = vld [vmem:[%s8361_s0 + $0x2b0] sm:$0xff]   ;;  %5978 = vst [vmem:[%s8362_s1 + $0xb0] sm:$0xff] %v6533_v6  ;;  %5982 = vst [vmem:[%s8362_s1 + $0x3b0] sm:$0xff] %v6534_v7  ;;  %v6543_v16 = vld [vmem:[%s8361_s0 + $0x5b8] sm:$0xff]  }
  0x66   :  { %v6536_v9 = vld [vmem:[%s8361_s0 + $0x7b0] sm:$0xff]   ;;  %5986 = vst [vmem:[%s8362_s1 + $0x6b0] sm:$0xff] %v6535_v8  ;;  %v6544_v17 = vld [vmem:[%s8361_s0 + $0x2b8] sm:$0xff]   ;;  %6014 = vst [vmem:[%s8362_s1 + $0xb8] sm:$0xff] %v6542_v15 }
  0x67   :  { %v6537_v10 = vld [vmem:[%s8361_s0 + $0x4b0] sm:$0xff]   ;;  %5990 = vst [vmem:[%s8362_s1 + $0x1b0] sm:$0xff] %v6536_v9  ;;  %v6545_v18 = vld [vmem:[%s8361_s0 + $0x7b8] sm:$0xff]   ;;  %6018 = vst [vmem:[%s8362_s1 + $0x3b8] sm:$0xff] %v6543_v16 }
  0x68   :  { %v6538_v11 = vld [vmem:[%s8361_s0 + $0x1b0] sm:$0xff]   ;;  %5994 = vst [vmem:[%s8362_s1 + $0x4b0] sm:$0xff] %v6537_v10  ;;  %6022 = vst [vmem:[%s8362_s1 + $0x6b8] sm:$0xff] %v6544_v17  ;;  %v6546_v19 = vld [vmem:[%s8361_s0 + $0x4b8] sm:$0xff]  }
  0x69   :  { %v6539_v12 = vld [vmem:[%s8361_s0 + $0x6b0] sm:$0xff]   ;;  %5998 = vst [vmem:[%s8362_s1 + $0x7b0] sm:$0xff] %v6538_v11  ;;  %v6547_v20 = vld [vmem:[%s8361_s0 + $0x1b8] sm:$0xff]   ;;  %6026 = vst [vmem:[%s8362_s1 + $0x1b8] sm:$0xff] %v6545_v18 }
  0x6a   :  { %v6540_v13 = vld [vmem:[%s8361_s0 + $0x3b0] sm:$0xff]   ;;  %6002 = vst [vmem:[%s8362_s1 + $0x2b0] sm:$0xff] %v6539_v12  ;;  %v6548_v21 = vld [vmem:[%s8361_s0 + $0x6b8] sm:$0xff]   ;;  %6030 = vst [vmem:[%s8362_s1 + $0x4b8] sm:$0xff] %v6546_v19 }
  0x6b   :  { %v6541_v14 = vld [vmem:[%s8361_s0 + $0xb0] sm:$0xff]   ;;  %6006 = vst [vmem:[%s8362_s1 + $0x5b0] sm:$0xff] %v6540_v13  ;;  %6034 = vst [vmem:[%s8362_s1 + $0x7b8] sm:$0xff] %v6547_v20  ;;  %v6549_v22 = vld [vmem:[%s8361_s0 + $0x3b8] sm:$0xff]  }
  0x6c   :  { %6010 = vst [vmem:[%s8362_s1 + $0x8b0] sm:$0xff] %v6541_v14  ;;  %v6550_v23 = vld [vmem:[%s8361_s0 + $0xb8] sm:$0xff]   ;;  %6038 = vst [vmem:[%s8362_s1 + $0x2b8] sm:$0xff] %v6548_v21  ;;  %v6551_v24 = vld [vmem:[%s8361_s0 + $0x8c0] sm:$0xff]  }
  0x6d   :  { %6042 = vst [vmem:[%s8362_s1 + $0x5b8] sm:$0xff] %v6549_v22  ;;  %6046 = vst [vmem:[%s8362_s1 + $0x8b8] sm:$0xff] %v6550_v23  ;;  %v6552_v25 = vld [vmem:[%s8361_s0 + $0x5c0] sm:$0xff]   ;;  %v6560_v33 = vld [vmem:[%s8361_s0 + $0x8c8] sm:$0xff]  }
  0x6e   :  { %v6553_v26 = vld [vmem:[%s8361_s0 + $0x2c0] sm:$0xff]   ;;  %6050 = vst [vmem:[%s8362_s1 + $0xc0] sm:$0xff] %v6551_v24  ;;  %6054 = vst [vmem:[%s8362_s1 + $0x3c0] sm:$0xff] %v6552_v25  ;;  %v6561_v34 = vld [vmem:[%s8361_s0 + $0x5c8] sm:$0xff]  }
  0x6f   :  { %v6554_v27 = vld [vmem:[%s8361_s0 + $0x7c0] sm:$0xff]   ;;  %6058 = vst [vmem:[%s8362_s1 + $0x6c0] sm:$0xff] %v6553_v26  ;;  %v6562_v35 = vld [vmem:[%s8361_s0 + $0x2c8] sm:$0xff]   ;;  %6086 = vst [vmem:[%s8362_s1 + $0xc8] sm:$0xff] %v6560_v33 }
  0x70   :  { %v6555_v28 = vld [vmem:[%s8361_s0 + $0x4c0] sm:$0xff]   ;;  %6062 = vst [vmem:[%s8362_s1 + $0x1c0] sm:$0xff] %v6554_v27  ;;  %v6563_v36 = vld [vmem:[%s8361_s0 + $0x7c8] sm:$0xff]   ;;  %6090 = vst [vmem:[%s8362_s1 + $0x3c8] sm:$0xff] %v6561_v34 }
  0x71   :  { %v6556_v29 = vld [vmem:[%s8361_s0 + $0x1c0] sm:$0xff]   ;;  %6066 = vst [vmem:[%s8362_s1 + $0x4c0] sm:$0xff] %v6555_v28  ;;  %6094 = vst [vmem:[%s8362_s1 + $0x6c8] sm:$0xff] %v6562_v35  ;;  %v6564_v37 = vld [vmem:[%s8361_s0 + $0x4c8] sm:$0xff]  }
  0x72   :  { %v6557_v30 = vld [vmem:[%s8361_s0 + $0x6c0] sm:$0xff]   ;;  %6070 = vst [vmem:[%s8362_s1 + $0x7c0] sm:$0xff] %v6556_v29  ;;  %v6565_v38 = vld [vmem:[%s8361_s0 + $0x1c8] sm:$0xff]   ;;  %6098 = vst [vmem:[%s8362_s1 + $0x1c8] sm:$0xff] %v6563_v36 }
  0x73   :  { %v6558_v31 = vld [vmem:[%s8361_s0 + $0x3c0] sm:$0xff]   ;;  %6074 = vst [vmem:[%s8362_s1 + $0x2c0] sm:$0xff] %v6557_v30  ;;  %v6566_v39 = vld [vmem:[%s8361_s0 + $0x6c8] sm:$0xff]   ;;  %6102 = vst [vmem:[%s8362_s1 + $0x4c8] sm:$0xff] %v6564_v37 }
  0x74   :  { %v6559_v32 = vld [vmem:[%s8361_s0 + $0xc0] sm:$0xff]   ;;  %6078 = vst [vmem:[%s8362_s1 + $0x5c0] sm:$0xff] %v6558_v31  ;;  %6106 = vst [vmem:[%s8362_s1 + $0x7c8] sm:$0xff] %v6565_v38  ;;  %v6567_v40 = vld [vmem:[%s8361_s0 + $0x3c8] sm:$0xff]  }
  0x75   :  { %6082 = vst [vmem:[%s8362_s1 + $0x8c0] sm:$0xff] %v6559_v32  ;;  %v6568_v41 = vld [vmem:[%s8361_s0 + $0xc8] sm:$0xff]   ;;  %6110 = vst [vmem:[%s8362_s1 + $0x2c8] sm:$0xff] %v6566_v39  ;;  %v6569_v42 = vld [vmem:[%s8361_s0 + $0x8d0] sm:$0xff]  }
  0x76   :  { %6114 = vst [vmem:[%s8362_s1 + $0x5c8] sm:$0xff] %v6567_v40  ;;  %6118 = vst [vmem:[%s8362_s1 + $0x8c8] sm:$0xff] %v6568_v41  ;;  %v6570_v43 = vld [vmem:[%s8361_s0 + $0x5d0] sm:$0xff]   ;;  %v6578_v51 = vld [vmem:[%s8361_s0 + $0x8d8] sm:$0xff]  }
  0x77   :  { %v6571_v44 = vld [vmem:[%s8361_s0 + $0x2d0] sm:$0xff]   ;;  %6122 = vst [vmem:[%s8362_s1 + $0xd0] sm:$0xff] %v6569_v42  ;;  %6126 = vst [vmem:[%s8362_s1 + $0x3d0] sm:$0xff] %v6570_v43  ;;  %v6579_v52 = vld [vmem:[%s8361_s0 + $0x5d8] sm:$0xff]  }
  0x78   :  { %v6572_v45 = vld [vmem:[%s8361_s0 + $0x7d0] sm:$0xff]   ;;  %6130 = vst [vmem:[%s8362_s1 + $0x6d0] sm:$0xff] %v6571_v44  ;;  %v6580_v53 = vld [vmem:[%s8361_s0 + $0x2d8] sm:$0xff]   ;;  %6158 = vst [vmem:[%s8362_s1 + $0xd8] sm:$0xff] %v6578_v51 }
  0x79   :  { %v6573_v46 = vld [vmem:[%s8361_s0 + $0x4d0] sm:$0xff]   ;;  %6134 = vst [vmem:[%s8362_s1 + $0x1d0] sm:$0xff] %v6572_v45  ;;  %v6581_v54 = vld [vmem:[%s8361_s0 + $0x7d8] sm:$0xff]   ;;  %6162 = vst [vmem:[%s8362_s1 + $0x3d8] sm:$0xff] %v6579_v52 }
  0x7a   :  { %v6574_v47 = vld [vmem:[%s8361_s0 + $0x1d0] sm:$0xff]   ;;  %6138 = vst [vmem:[%s8362_s1 + $0x4d0] sm:$0xff] %v6573_v46  ;;  %6166 = vst [vmem:[%s8362_s1 + $0x6d8] sm:$0xff] %v6580_v53  ;;  %v6582_v55 = vld [vmem:[%s8361_s0 + $0x4d8] sm:$0xff]  }
  0x7b   :  { %v6575_v48 = vld [vmem:[%s8361_s0 + $0x6d0] sm:$0xff]   ;;  %6142 = vst [vmem:[%s8362_s1 + $0x7d0] sm:$0xff] %v6574_v47  ;;  %v6583_v56 = vld [vmem:[%s8361_s0 + $0x1d8] sm:$0xff]   ;;  %6170 = vst [vmem:[%s8362_s1 + $0x1d8] sm:$0xff] %v6581_v54 }
  0x7c   :  { %v6576_v49 = vld [vmem:[%s8361_s0 + $0x3d0] sm:$0xff]   ;;  %6146 = vst [vmem:[%s8362_s1 + $0x2d0] sm:$0xff] %v6575_v48  ;;  %v6584_v57 = vld [vmem:[%s8361_s0 + $0x6d8] sm:$0xff]   ;;  %6174 = vst [vmem:[%s8362_s1 + $0x4d8] sm:$0xff] %v6582_v55 }
  0x7d   :  { %v6577_v50 = vld [vmem:[%s8361_s0 + $0xd0] sm:$0xff]   ;;  %6150 = vst [vmem:[%s8362_s1 + $0x5d0] sm:$0xff] %v6576_v49  ;;  %6178 = vst [vmem:[%s8362_s1 + $0x7d8] sm:$0xff] %v6583_v56  ;;  %v6585_v58 = vld [vmem:[%s8361_s0 + $0x3d8] sm:$0xff]  }
  0x7e   :  { %6154 = vst [vmem:[%s8362_s1 + $0x8d0] sm:$0xff] %v6577_v50  ;;  %v6586_v59 = vld [vmem:[%s8361_s0 + $0xd8] sm:$0xff]   ;;  %6182 = vst [vmem:[%s8362_s1 + $0x2d8] sm:$0xff] %v6584_v57  ;;  %v6587_v60 = vld [vmem:[%s8361_s0 + $0x8e0] sm:$0xff]  }
  0x7f   :  { %6186 = vst [vmem:[%s8362_s1 + $0x5d8] sm:$0xff] %v6585_v58  ;;  %6190 = vst [vmem:[%s8362_s1 + $0x8d8] sm:$0xff] %v6586_v59  ;;  %v6588_v61 = vld [vmem:[%s8361_s0 + $0x5e0] sm:$0xff]   ;;  %v6596_v5 = vld [vmem:[%s8361_s0 + $0x8e8] sm:$0xff]  }
  0x80   :  { %v6589_v62 = vld [vmem:[%s8361_s0 + $0x2e0] sm:$0xff]   ;;  %6194 = vst [vmem:[%s8362_s1 + $0xe0] sm:$0xff] %v6587_v60  ;;  %6198 = vst [vmem:[%s8362_s1 + $0x3e0] sm:$0xff] %v6588_v61  ;;  %v6597_v6 = vld [vmem:[%s8361_s0 + $0x5e8] sm:$0xff]  }
  0x81   :  { %v6590_v63 = vld [vmem:[%s8361_s0 + $0x7e0] sm:$0xff]   ;;  %6202 = vst [vmem:[%s8362_s1 + $0x6e0] sm:$0xff] %v6589_v62  ;;  %v6598_v7 = vld [vmem:[%s8361_s0 + $0x2e8] sm:$0xff]   ;;  %6230 = vst [vmem:[%s8362_s1 + $0xe8] sm:$0xff] %v6596_v5 }
  0x82   :  { %v6591_v0 = vld [vmem:[%s8361_s0 + $0x4e0] sm:$0xff]   ;;  %6206 = vst [vmem:[%s8362_s1 + $0x1e0] sm:$0xff] %v6590_v63  ;;  %v6599_v8 = vld [vmem:[%s8361_s0 + $0x7e8] sm:$0xff]   ;;  %6234 = vst [vmem:[%s8362_s1 + $0x3e8] sm:$0xff] %v6597_v6 }
  0x83   :  { %v6592_v1 = vld [vmem:[%s8361_s0 + $0x1e0] sm:$0xff]   ;;  %6210 = vst [vmem:[%s8362_s1 + $0x4e0] sm:$0xff] %v6591_v0  ;;  %6238 = vst [vmem:[%s8362_s1 + $0x6e8] sm:$0xff] %v6598_v7  ;;  %v6600_v9 = vld [vmem:[%s8361_s0 + $0x4e8] sm:$0xff]  }
  0x84   :  { %v6593_v2 = vld [vmem:[%s8361_s0 + $0x6e0] sm:$0xff]   ;;  %6214 = vst [vmem:[%s8362_s1 + $0x7e0] sm:$0xff] %v6592_v1  ;;  %v6601_v10 = vld [vmem:[%s8361_s0 + $0x1e8] sm:$0xff]   ;;  %6242 = vst [vmem:[%s8362_s1 + $0x1e8] sm:$0xff] %v6599_v8 }
  0x85   :  { %v6594_v3 = vld [vmem:[%s8361_s0 + $0x3e0] sm:$0xff]   ;;  %6218 = vst [vmem:[%s8362_s1 + $0x2e0] sm:$0xff] %v6593_v2  ;;  %v6602_v11 = vld [vmem:[%s8361_s0 + $0x6e8] sm:$0xff]   ;;  %6246 = vst [vmem:[%s8362_s1 + $0x4e8] sm:$0xff] %v6600_v9 }
  0x86   :  { %v6595_v4 = vld [vmem:[%s8361_s0 + $0xe0] sm:$0xff]   ;;  %6222 = vst [vmem:[%s8362_s1 + $0x5e0] sm:$0xff] %v6594_v3  ;;  %6250 = vst [vmem:[%s8362_s1 + $0x7e8] sm:$0xff] %v6601_v10  ;;  %v6603_v12 = vld [vmem:[%s8361_s0 + $0x3e8] sm:$0xff]  }
  0x87   :  { %6226 = vst [vmem:[%s8362_s1 + $0x8e0] sm:$0xff] %v6595_v4  ;;  %v6604_v13 = vld [vmem:[%s8361_s0 + $0xe8] sm:$0xff]   ;;  %6254 = vst [vmem:[%s8362_s1 + $0x2e8] sm:$0xff] %v6602_v11  ;;  %v6605_v14 = vld [vmem:[%s8361_s0 + $0x8f0] sm:$0xff]  }
  0x88   :  { %6258 = vst [vmem:[%s8362_s1 + $0x5e8] sm:$0xff] %v6603_v12  ;;  %6262 = vst [vmem:[%s8362_s1 + $0x8e8] sm:$0xff] %v6604_v13  ;;  %v6606_v15 = vld [vmem:[%s8361_s0 + $0x5f0] sm:$0xff]   ;;  %v6614_v23 = vld [vmem:[%s8361_s0 + $0x8f8] sm:$0xff]  }
  0x89   :  { %v6607_v16 = vld [vmem:[%s8361_s0 + $0x2f0] sm:$0xff]   ;;  %6266 = vst [vmem:[%s8362_s1 + $0xf0] sm:$0xff] %v6605_v14  ;;  %6270 = vst [vmem:[%s8362_s1 + $0x3f0] sm:$0xff] %v6606_v15  ;;  %v6615_v24 = vld [vmem:[%s8361_s0 + $0x5f8] sm:$0xff]  }
  0x8a   :  { %v6608_v17 = vld [vmem:[%s8361_s0 + $0x7f0] sm:$0xff]   ;;  %6274 = vst [vmem:[%s8362_s1 + $0x6f0] sm:$0xff] %v6607_v16  ;;  %v6616_v25 = vld [vmem:[%s8361_s0 + $0x2f8] sm:$0xff]   ;;  %6302 = vst [vmem:[%s8362_s1 + $0xf8] sm:$0xff] %v6614_v23 }
  0x8b   :  { %v6609_v18 = vld [vmem:[%s8361_s0 + $0x4f0] sm:$0xff]   ;;  %6278 = vst [vmem:[%s8362_s1 + $0x1f0] sm:$0xff] %v6608_v17  ;;  %v6617_v26 = vld [vmem:[%s8361_s0 + $0x7f8] sm:$0xff]   ;;  %6306 = vst [vmem:[%s8362_s1 + $0x3f8] sm:$0xff] %v6615_v24 }
  0x8c   :  { %v6610_v19 = vld [vmem:[%s8361_s0 + $0x1f0] sm:$0xff]   ;;  %6282 = vst [vmem:[%s8362_s1 + $0x4f0] sm:$0xff] %v6609_v18  ;;  %6310 = vst [vmem:[%s8362_s1 + $0x6f8] sm:$0xff] %v6616_v25  ;;  %v6618_v27 = vld [vmem:[%s8361_s0 + $0x4f8] sm:$0xff]  }
  0x8d   :  { %v6611_v20 = vld [vmem:[%s8361_s0 + $0x6f0] sm:$0xff]   ;;  %6286 = vst [vmem:[%s8362_s1 + $0x7f0] sm:$0xff] %v6610_v19  ;;  %v6619_v28 = vld [vmem:[%s8361_s0 + $0x1f8] sm:$0xff]   ;;  %6314 = vst [vmem:[%s8362_s1 + $0x1f8] sm:$0xff] %v6617_v26 }
  0x8e   :  { %v6612_v21 = vld [vmem:[%s8361_s0 + $0x3f0] sm:$0xff]   ;;  %6290 = vst [vmem:[%s8362_s1 + $0x2f0] sm:$0xff] %v6611_v20  ;;  %v6620_v29 = vld [vmem:[%s8361_s0 + $0x6f8] sm:$0xff]   ;;  %6318 = vst [vmem:[%s8362_s1 + $0x4f8] sm:$0xff] %v6618_v27 }
  0x8f   :  { %v6613_v22 = vld [vmem:[%s8361_s0 + $0xf0] sm:$0xff]   ;;  %6294 = vst [vmem:[%s8362_s1 + $0x5f0] sm:$0xff] %v6612_v21  ;;  %6322 = vst [vmem:[%s8362_s1 + $0x7f8] sm:$0xff] %v6619_v28  ;;  %v6621_v30 = vld [vmem:[%s8361_s0 + $0x3f8] sm:$0xff]  }
  0x90   :  { %6298 = vst [vmem:[%s8362_s1 + $0x8f0] sm:$0xff] %v6613_v22  ;;  %v6622_v31 = vld [vmem:[%s8361_s0 + $0xf8] sm:$0xff]   ;;  %6326 = vst [vmem:[%s8362_s1 + $0x2f8] sm:$0xff] %v6620_v29 }
  0x91   :  { %6330 = vst [vmem:[%s8362_s1 + $0x5f8] sm:$0xff] %v6621_v30  ;;  %6334 = vst [vmem:[%s8362_s1 + $0x8f8] sm:$0xff] %v6622_v31 }

// kernel: reverse.5
= control target key start
LH: loop header
LB: loop body
LE: loop exit
PB: predicated region body
PF: predicated region fallthrough
CT: control target
= control target key end

     0   :  { %s33417_s0 = inlined_call_operand.vmem [shape: bf16[3,3,512,512], index: 0, kind: input, shape index: {}]   ;;  %s33418_s1 = inlined_call_operand.vmem [shape: bf16[3,3,512,512], index: 1, kind: output, shape index: {}]  }
   0x1   :  { %v25343_v0 = vld [vmem:[%s33417_s0 + $0x2000] sm:$0xff]   ;;  %v25352_v9 = vld [vmem:[%s33417_s0 + $0x2010] sm:$0xff]  }
   0x2   :  { %v25344_v1 = vld [vmem:[%s33417_s0 + $0x1400] sm:$0xff]   ;;  %20162 = vst [vmem:[%s33418_s1] sm:$0xff] %v25343_v0  ;;  %v25353_v10 = vld [vmem:[%s33417_s0 + $0x1410] sm:$0xff]   ;;  %20198 = vst [vmem:[%s33418_s1 + $0x10] sm:$0xff] %v25352_v9 }
   0x3   :  { %v25345_v2 = vld [vmem:[%s33417_s0 + $0x800] sm:$0xff]   ;;  %20166 = vst [vmem:[%s33418_s1 + $0xc00] sm:$0xff] %v25344_v1  ;;  %v25354_v11 = vld [vmem:[%s33417_s0 + $0x810] sm:$0xff]   ;;  %20202 = vst [vmem:[%s33418_s1 + $0xc10] sm:$0xff] %v25353_v10 }
   0x4   :  { %v25346_v3 = vld [vmem:[%s33417_s0 + $0x1c00] sm:$0xff]   ;;  %20170 = vst [vmem:[%s33418_s1 + $0x1800] sm:$0xff] %v25345_v2  ;;  %v25355_v12 = vld [vmem:[%s33417_s0 + $0x1c10] sm:$0xff]   ;;  %20206 = vst [vmem:[%s33418_s1 + $0x1810] sm:$0xff] %v25354_v11 }
   0x5   :  { %v25347_v4 = vld [vmem:[%s33417_s0 + $0x1000] sm:$0xff]   ;;  %20174 = vst [vmem:[%s33418_s1 + $0x400] sm:$0xff] %v25346_v3  ;;  %v25356_v13 = vld [vmem:[%s33417_s0 + $0x1010] sm:$0xff]   ;;  %20210 = vst [vmem:[%s33418_s1 + $0x410] sm:$0xff] %v25355_v12 }
   0x6   :  { %v25348_v5 = vld [vmem:[%s33417_s0 + $0x400] sm:$0xff]   ;;  %20178 = vst [vmem:[%s33418_s1 + $0x1000] sm:$0xff] %v25347_v4  ;;  %v25357_v14 = vld [vmem:[%s33417_s0 + $0x410] sm:$0xff]   ;;  %20214 = vst [vmem:[%s33418_s1 + $0x1010] sm:$0xff] %v25356_v13 }
   0x7   :  { %v25349_v6 = vld [vmem:[%s33417_s0 + $0x1800] sm:$0xff]   ;;  %20182 = vst [vmem:[%s33418_s1 + $0x1c00] sm:$0xff] %v25348_v5  ;;  %v25358_v15 = vld [vmem:[%s33417_s0 + $0x1810] sm:$0xff]   ;;  %20218 = vst [vmem:[%s33418_s1 + $0x1c10] sm:$0xff] %v25357_v14 }
   0x8   :  { %v25350_v7 = vld [vmem:[%s33417_s0 + $0xc00] sm:$0xff]   ;;  %20186 = vst [vmem:[%s33418_s1 + $0x800] sm:$0xff] %v25349_v6  ;;  %v25359_v16 = vld [vmem:[%s33417_s0 + $0xc10] sm:$0xff]   ;;  %20222 = vst [vmem:[%s33418_s1 + $0x810] sm:$0xff] %v25358_v15 }
   0x9   :  { %v25351_v8 = vld [vmem:[%s33417_s0] sm:$0xff]   ;;  %20190 = vst [vmem:[%s33418_s1 + $0x1400] sm:$0xff] %v25350_v7  ;;  %v25360_v17 = vld [vmem:[%s33417_s0 + $0x10] sm:$0xff]   ;;  %20226 = vst [vmem:[%s33418_s1 + $0x1410] sm:$0xff] %v25359_v16 }
   0xa   :  { %20194 = vst [vmem:[%s33418_s1 + $0x2000] sm:$0xff] %v25351_v8  ;;  %v25361_v18 = vld [vmem:[%s33417_s0 + $0x2020] sm:$0xff]   ;;  %20230 = vst [vmem:[%s33418_s1 + $0x2010] sm:$0xff] %v25360_v17  ;;  %v25370_v27 = vld [vmem:[%s33417_s0 + $0x2030] sm:$0xff]  }
   0xb   :  { %v25362_v19 = vld [vmem:[%s33417_s0 + $0x1420] sm:$0xff]   ;;  %20234 = vst [vmem:[%s33418_s1 + $0x20] sm:$0xff] %v25361_v18  ;;  %v25371_v28 = vld [vmem:[%s33417_s0 + $0x1430] sm:$0xff]   ;;  %20270 = vst [vmem:[%s33418_s1 + $0x30] sm:$0xff] %v25370_v27 }
   0xc   :  { %v25363_v20 = vld [vmem:[%s33417_s0 + $0x820] sm:$0xff]   ;;  %20238 = vst [vmem:[%s33418_s1 + $0xc20] sm:$0xff] %v25362_v19  ;;  %v25372_v29 = vld [vmem:[%s33417_s0 + $0x830] sm:$0xff]   ;;  %20274 = vst [vmem:[%s33418_s1 + $0xc30] sm:$0xff] %v25371_v28 }
   0xd   :  { %v25364_v21 = vld [vmem:[%s33417_s0 + $0x1c20] sm:$0xff]   ;;  %20242 = vst [vmem:[%s33418_s1 + $0x1820] sm:$0xff] %v25363_v20  ;;  %v25373_v30 = vld [vmem:[%s33417_s0 + $0x1c30] sm:$0xff]   ;;  %20278 = vst [vmem:[%s33418_s1 + $0x1830] sm:$0xff] %v25372_v29 }
   0xe   :  { %v25365_v22 = vld [vmem:[%s33417_s0 + $0x1020] sm:$0xff]   ;;  %20246 = vst [vmem:[%s33418_s1 + $0x420] sm:$0xff] %v25364_v21  ;;  %v25374_v31 = vld [vmem:[%s33417_s0 + $0x1030] sm:$0xff]   ;;  %20282 = vst [vmem:[%s33418_s1 + $0x430] sm:$0xff] %v25373_v30 }
   0xf   :  { %v25366_v23 = vld [vmem:[%s33417_s0 + $0x420] sm:$0xff]   ;;  %20250 = vst [vmem:[%s33418_s1 + $0x1020] sm:$0xff] %v25365_v22  ;;  %v25375_v32 = vld [vmem:[%s33417_s0 + $0x430] sm:$0xff]   ;;  %20286 = vst [vmem:[%s33418_s1 + $0x1030] sm:$0xff] %v25374_v31 }
  0x10   :  { %v25367_v24 = vld [vmem:[%s33417_s0 + $0x1820] sm:$0xff]   ;;  %20254 = vst [vmem:[%s33418_s1 + $0x1c20] sm:$0xff] %v25366_v23  ;;  %v25376_v33 = vld [vmem:[%s33417_s0 + $0x1830] sm:$0xff]   ;;  %20290 = vst [vmem:[%s33418_s1 + $0x1c30] sm:$0xff] %v25375_v32 }
  0x11   :  { %v25368_v25 = vld [vmem:[%s33417_s0 + $0xc20] sm:$0xff]   ;;  %20258 = vst [vmem:[%s33418_s1 + $0x820] sm:$0xff] %v25367_v24  ;;  %v25377_v34 = vld [vmem:[%s33417_s0 + $0xc30] sm:$0xff]   ;;  %20294 = vst [vmem:[%s33418_s1 + $0x830] sm:$0xff] %v25376_v33 }
  0x12   :  { %v25369_v26 = vld [vmem:[%s33417_s0 + $0x20] sm:$0xff]   ;;  %20262 = vst [vmem:[%s33418_s1 + $0x1420] sm:$0xff] %v25368_v25  ;;  %v25378_v35 = vld [vmem:[%s33417_s0 + $0x30] sm:$0xff]   ;;  %20298 = vst [vmem:[%s33418_s1 + $0x1430] sm:$0xff] %v25377_v34 }
  0x13   :  { %20266 = vst [vmem:[%s33418_s1 + $0x2020] sm:$0xff] %v25369_v26  ;;  %v25379_v36 = vld [vmem:[%s33417_s0 + $0x2040] sm:$0xff]   ;;  %20302 = vst [vmem:[%s33418_s1 + $0x2030] sm:$0xff] %v25378_v35  ;;  %v25388_v45 = vld [vmem:[%s33417_s0 + $0x2050] sm:$0xff]  }
  0x14   :  { %v25380_v37 = vld [vmem:[%s33417_s0 + $0x1440] sm:$0xff]   ;;  %20306 = vst [vmem:[%s33418_s1 + $0x40] sm:$0xff] %v25379_v36  ;;  %v25389_v46 = vld [vmem:[%s33417_s0 + $0x1450] sm:$0xff]   ;;  %20342 = vst [vmem:[%s33418_s1 + $0x50] sm:$0xff] %v25388_v45 }
  0x15   :  { %v25381_v38 = vld [vmem:[%s33417_s0 + $0x840] sm:$0xff]   ;;  %20310 = vst [vmem:[%s33418_s1 + $0xc40] sm:$0xff] %v25380_v37  ;;  %v25390_v47 = vld [vmem:[%s33417_s0 + $0x850] sm:$0xff]   ;;  %20346 = vst [vmem:[%s33418_s1 + $0xc50] sm:$0xff] %v25389_v46 }
  0x16   :  { %v25382_v39 = vld [vmem:[%s33417_s0 + $0x1c40] sm:$0xff]   ;;  %20314 = vst [vmem:[%s33418_s1 + $0x1840] sm:$0xff] %v25381_v38  ;;  %v25391_v48 = vld [vmem:[%s33417_s0 + $0x1c50] sm:$0xff]   ;;  %20350 = vst [vmem:[%s33418_s1 + $0x1850] sm:$0xff] %v25390_v47 }
  0x17   :  { %v25383_v40 = vld [vmem:[%s33417_s0 + $0x1040] sm:$0xff]   ;;  %20318 = vst [vmem:[%s33418_s1 + $0x440] sm:$0xff] %v25382_v39  ;;  %v25392_v49 = vld [vmem:[%s33417_s0 + $0x1050] sm:$0xff]   ;;  %20354 = vst [vmem:[%s33418_s1 + $0x450] sm:$0xff] %v25391_v48 }
  0x18   :  { %v25384_v41 = vld [vmem:[%s33417_s0 + $0x440] sm:$0xff]   ;;  %20322 = vst [vmem:[%s33418_s1 + $0x1040] sm:$0xff] %v25383_v40  ;;  %v25393_v50 = vld [vmem:[%s33417_s0 + $0x450] sm:$0xff]   ;;  %20358 = vst [vmem:[%s33418_s1 + $0x1050] sm:$0xff] %v25392_v49 }
  0x19   :  { %v25385_v42 = vld [vmem:[%s33417_s0 + $0x1840] sm:$0xff]   ;;  %20326 = vst [vmem:[%s33418_s1 + $0x1c40] sm:$0xff] %v25384_v41  ;;  %v25394_v51 = vld [vmem:[%s33417_s0 + $0x1850] sm:$0xff]   ;;  %20362 = vst [vmem:[%s33418_s1 + $0x1c50] sm:$0xff] %v25393_v50 }
  0x1a   :  { %v25386_v43 = vld [vmem:[%s33417_s0 + $0xc40] sm:$0xff]   ;;  %20330 = vst [vmem:[%s33418_s1 + $0x840] sm:$0xff] %v25385_v42  ;;  %v25395_v52 = vld [vmem:[%s33417_s0 + $0xc50] sm:$0xff]   ;;  %20366 = vst [vmem:[%s33418_s1 + $0x850] sm:$0xff] %v25394_v51 }
  0x1b   :  { %v25387_v44 = vld [vmem:[%s33417_s0 + $0x40] sm:$0xff]   ;;  %20334 = vst [vmem:[%s33418_s1 + $0x1440] sm:$0xff] %v25386_v43  ;;  %v25396_v53 = vld [vmem:[%s33417_s0 + $0x50] sm:$0xff]   ;;  %20370 = vst [vmem:[%s33418_s1 + $0x1450] sm:$0xff] %v25395_v52 }
  0x1c   :  { %20338 = vst [vmem:[%s33418_s1 + $0x2040] sm:$0xff] %v25387_v44  ;;  %v25397_v54 = vld [vmem:[%s33417_s0 + $0x2060] sm:$0xff]   ;;  %20374 = vst [vmem:[%s33418_s1 + $0x2050] sm:$0xff] %v25396_v53  ;;  %v25406_v63 = vld [vmem:[%s33417_s0 + $0x2070] sm:$0xff]  }
  0x1d   :  { %v25398_v55 = vld [vmem:[%s33417_s0 + $0x1460] sm:$0xff]   ;;  %20378 = vst [vmem:[%s33418_s1 + $0x60] sm:$0xff] %v25397_v54  ;;  %v25407_v0 = vld [vmem:[%s33417_s0 + $0x1470] sm:$0xff]   ;;  %20414 = vst [vmem:[%s33418_s1 + $0x70] sm:$0xff] %v25406_v63 }
  0x1e   :  { %v25399_v56 = vld [vmem:[%s33417_s0 + $0x860] sm:$0xff]   ;;  %20382 = vst [vmem:[%s33418_s1 + $0xc60] sm:$0xff] %v25398_v55  ;;  %v25408_v1 = vld [vmem:[%s33417_s0 + $0x870] sm:$0xff]   ;;  %20418 = vst [vmem:[%s33418_s1 + $0xc70] sm:$0xff] %v25407_v0 }
  0x1f   :  { %v25400_v57 = vld [vmem:[%s33417_s0 + $0x1c60] sm:$0xff]   ;;  %20386 = vst [vmem:[%s33418_s1 + $0x1860] sm:$0xff] %v25399_v56  ;;  %v25409_v2 = vld [vmem:[%s33417_s0 + $0x1c70] sm:$0xff]   ;;  %20422 = vst [vmem:[%s33418_s1 + $0x1870] sm:$0xff] %v25408_v1 }
  0x20   :  { %v25401_v58 = vld [vmem:[%s33417_s0 + $0x1060] sm:$0xff]   ;;  %20390 = vst [vmem:[%s33418_s1 + $0x460] sm:$0xff] %v25400_v57  ;;  %v25410_v3 = vld [vmem:[%s33417_s0 + $0x1070] sm:$0xff]   ;;  %20426 = vst [vmem:[%s33418_s1 + $0x470] sm:$0xff] %v25409_v2 }
  0x21   :  { %v25402_v59 = vld [vmem:[%s33417_s0 + $0x460] sm:$0xff]   ;;  %20394 = vst [vmem:[%s33418_s1 + $0x1060] sm:$0xff] %v25401_v58  ;;  %v25411_v4 = vld [vmem:[%s33417_s0 + $0x470] sm:$0xff]   ;;  %20430 = vst [vmem:[%s33418_s1 + $0x1070] sm:$0xff] %v25410_v3 }
  0x22   :  { %v25403_v60 = vld [vmem:[%s33417_s0 + $0x1860] sm:$0xff]   ;;  %20398 = vst [vmem:[%s33418_s1 + $0x1c60] sm:$0xff] %v25402_v59  ;;  %v25412_v5 = vld [vmem:[%s33417_s0 + $0x1870] sm:$0xff]   ;;  %20434 = vst [vmem:[%s33418_s1 + $0x1c70] sm:$0xff] %v25411_v4 }
  0x23   :  { %v25404_v61 = vld [vmem:[%s33417_s0 + $0xc60] sm:$0xff]   ;;  %20402 = vst [vmem:[%s33418_s1 + $0x860] sm:$0xff] %v25403_v60  ;;  %v25413_v6 = vld [vmem:[%s33417_s0 + $0xc70] sm:$0xff]   ;;  %20438 = vst [vmem:[%s33418_s1 + $0x870] sm:$0xff] %v25412_v5 }
  0x24   :  { %v25405_v62 = vld [vmem:[%s33417_s0 + $0x60] sm:$0xff]   ;;  %20406 = vst [vmem:[%s33418_s1 + $0x1460] sm:$0xff] %v25404_v61  ;;  %v25414_v7 = vld [vmem:[%s33417_s0 + $0x70] sm:$0xff]   ;;  %20442 = vst [vmem:[%s33418_s1 + $0x1470] sm:$0xff] %v25413_v6 }
  0x25   :  { %20410 = vst [vmem:[%s33418_s1 + $0x2060] sm:$0xff] %v25405_v62  ;;  %v25415_v8 = vld [vmem:[%s33417_s0 + $0x2080] sm:$0xff]   ;;  %20446 = vst [vmem:[%s33418_s1 + $0x2070] sm:$0xff] %v25414_v7  ;;  %v25424_v17 = vld [vmem:[%s33417_s0 + $0x2090] sm:$0xff]  }
  0x26   :  { %v25416_v9 = vld [vmem:[%s33417_s0 + $0x1480] sm:$0xff]   ;;  %20450 = vst [vmem:[%s33418_s1 + $0x80] sm:$0xff] %v25415_v8  ;;  %v25425_v18 = vld [vmem:[%s33417_s0 + $0x1490] sm:$0xff]   ;;  %20486 = vst [vmem:[%s33418_s1 + $0x90] sm:$0xff] %v25424_v17 }
  0x27   :  { %v25417_v10 = vld [vmem:[%s33417_s0 + $0x880] sm:$0xff]   ;;  %20454 = vst [vmem:[%s33418_s1 + $0xc80] sm:$0xff] %v25416_v9  ;;  %v25426_v19 = vld [vmem:[%s33417_s0 + $0x890] sm:$0xff]   ;;  %20490 = vst [vmem:[%s33418_s1 + $0xc90] sm:$0xff] %v25425_v18 }
  0x28   :  { %v25418_v11 = vld [vmem:[%s33417_s0 + $0x1c80] sm:$0xff]   ;;  %20458 = vst [vmem:[%s33418_s1 + $0x1880] sm:$0xff] %v25417_v10  ;;  %v25427_v20 = vld [vmem:[%s33417_s0 + $0x1c90] sm:$0xff]   ;;  %20494 = vst [vmem:[%s33418_s1 + $0x1890] sm:$0xff] %v25426_v19 }
  0x29   :  { %v25419_v12 = vld [vmem:[%s33417_s0 + $0x1080] sm:$0xff]   ;;  %20462 = vst [vmem:[%s33418_s1 + $0x480] sm:$0xff] %v25418_v11  ;;  %v25428_v21 = vld [vmem:[%s33417_s0 + $0x1090] sm:$0xff]   ;;  %20498 = vst [vmem:[%s33418_s1 + $0x490] sm:$0xff] %v25427_v20 }
  0x2a   :  { %v25420_v13 = vld [vmem:[%s33417_s0 + $0x480] sm:$0xff]   ;;  %20466 = vst [vmem:[%s33418_s1 + $0x1080] sm:$0xff] %v25419_v12  ;;  %v25429_v22 = vld [vmem:[%s33417_s0 + $0x490] sm:$0xff]   ;;  %20502 = vst [vmem:[%s33418_s1 + $0x1090] sm:$0xff] %v25428_v21 }
  0x2b   :  { %v25421_v14 = vld [vmem:[%s33417_s0 + $0x1880] sm:$0xff]   ;;  %20470 = vst [vmem:[%s33418_s1 + $0x1c80] sm:$0xff] %v25420_v13  ;;  %v25430_v23 = vld [vmem:[%s33417_s0 + $0x1890] sm:$0xff]   ;;  %20506 = vst [vmem:[%s33418_s1 + $0x1c90] sm:$0xff] %v25429_v22 }
  0x2c   :  { %v25422_v15 = vld [vmem:[%s33417_s0 + $0xc80] sm:$0xff]   ;;  %20474 = vst [vmem:[%s33418_s1 + $0x880] sm:$0xff] %v25421_v14  ;;  %v25431_v24 = vld [vmem:[%s33417_s0 + $0xc90] sm:$0xff]   ;;  %20510 = vst [vmem:[%s33418_s1 + $0x890] sm:$0xff] %v25430_v23 }
  0x2d   :  { %v25423_v16 = vld [vmem:[%s33417_s0 + $0x80] sm:$0xff]   ;;  %20478 = vst [vmem:[%s33418_s1 + $0x1480] sm:$0xff] %v25422_v15  ;;  %v25432_v25 = vld [vmem:[%s33417_s0 + $0x90] sm:$0xff]   ;;  %20514 = vst [vmem:[%s33418_s1 + $0x1490] sm:$0xff] %v25431_v24 }
  0x2e   :  { %20482 = vst [vmem:[%s33418_s1 + $0x2080] sm:$0xff] %v25423_v16  ;;  %v25433_v26 = vld [vmem:[%s33417_s0 + $0x20a0] sm:$0xff]   ;;  %20518 = vst [vmem:[%s33418_s1 + $0x2090] sm:$0xff] %v25432_v25  ;;  %v25442_v35 = vld [vmem:[%s33417_s0 + $0x20b0] sm:$0xff]  }
  0x2f   :  { %v25434_v27 = vld [vmem:[%s33417_s0 + $0x14a0] sm:$0xff]   ;;  %20522 = vst [vmem:[%s33418_s1 + $0xa0] sm:$0xff] %v25433_v26  ;;  %v25443_v36 = vld [vmem:[%s33417_s0 + $0x14b0] sm:$0xff]   ;;  %20558 = vst [vmem:[%s33418_s1 + $0xb0] sm:$0xff] %v25442_v35 }
  0x30   :  { %v25435_v28 = vld [vmem:[%s33417_s0 + $0x8a0] sm:$0xff]   ;;  %20526 = vst [vmem:[%s33418_s1 + $0xca0] sm:$0xff] %v25434_v27  ;;  %v25444_v37 = vld [vmem:[%s33417_s0 + $0x8b0] sm:$0xff]   ;;  %20562 = vst [vmem:[%s33418_s1 + $0xcb0] sm:$0xff] %v25443_v36 }
  0x31   :  { %v25436_v29 = vld [vmem:[%s33417_s0 + $0x1ca0] sm:$0xff]   ;;  %20530 = vst [vmem:[%s33418_s1 + $0x18a0] sm:$0xff] %v25435_v28  ;;  %v25445_v38 = vld [vmem:[%s33417_s0 + $0x1cb0] sm:$0xff]   ;;  %20566 = vst [vmem:[%s33418_s1 + $0x18b0] sm:$0xff] %v25444_v37 }
  0x32   :  { %v25437_v30 = vld [vmem:[%s33417_s0 + $0x10a0] sm:$0xff]   ;;  %20534 = vst [vmem:[%s33418_s1 + $0x4a0] sm:$0xff] %v25436_v29  ;;  %v25446_v39 = vld [vmem:[%s33417_s0 + $0x10b0] sm:$0xff]   ;;  %20570 = vst [vmem:[%s33418_s1 + $0x4b0] sm:$0xff] %v25445_v38 }
  0x33   :  { %v25438_v31 = vld [vmem:[%s33417_s0 + $0x4a0] sm:$0xff]   ;;  %20538 = vst [vmem:[%s33418_s1 + $0x10a0] sm:$0xff] %v25437_v30  ;;  %v25447_v40 = vld [vmem:[%s33417_s0 + $0x4b0] sm:$0xff]   ;;  %20574 = vst [vmem:[%s33418_s1 + $0x10b0] sm:$0xff] %v25446_v39 }
  0x34   :  { %v25439_v32 = vld [vmem:[%s33417_s0 + $0x18a0] sm:$0xff]   ;;  %20542 = vst [vmem:[%s33418_s1 + $0x1ca0] sm:$0xff] %v25438_v31  ;;  %v25448_v41 = vld [vmem:[%s33417_s0 + $0x18b0] sm:$0xff]   ;;  %20578 = vst [vmem:[%s33418_s1 + $0x1cb0] sm:$0xff] %v25447_v40 }
  0x35   :  { %v25440_v33 = vld [vmem:[%s33417_s0 + $0xca0] sm:$0xff]   ;;  %20546 = vst [vmem:[%s33418_s1 + $0x8a0] sm:$0xff] %v25439_v32  ;;  %v25449_v42 = vld [vmem:[%s33417_s0 + $0xcb0] sm:$0xff]   ;;  %20582 = vst [vmem:[%s33418_s1 + $0x8b0] sm:$0xff] %v25448_v41 }
  0x36   :  { %v25441_v34 = vld [vmem:[%s33417_s0 + $0xa0] sm:$0xff]   ;;  %20550 = vst [vmem:[%s33418_s1 + $0x14a0] sm:$0xff] %v25440_v33  ;;  %v25450_v43 = vld [vmem:[%s33417_s0 + $0xb0] sm:$0xff]   ;;  %20586 = vst [vmem:[%s33418_s1 + $0x14b0] sm:$0xff] %v25449_v42 }
  0x37   :  { %20554 = vst [vmem:[%s33418_s1 + $0x20a0] sm:$0xff] %v25441_v34  ;;  %v25451_v44 = vld [vmem:[%s33417_s0 + $0x20c0] sm:$0xff]   ;;  %20590 = vst [vmem:[%s33418_s1 + $0x20b0] sm:$0xff] %v25450_v43  ;;  %v25460_v53 = vld [vmem:[%s33417_s0 + $0x20d0] sm:$0xff]  }
  0x38   :  { %v25452_v45 = vld [vmem:[%s33417_s0 + $0x14c0] sm:$0xff]   ;;  %20594 = vst [vmem:[%s33418_s1 + $0xc0] sm:$0xff] %v25451_v44  ;;  %v25461_v54 = vld [vmem:[%s33417_s0 + $0x14d0] sm:$0xff]   ;;  %20630 = vst [vmem:[%s33418_s1 + $0xd0] sm:$0xff] %v25460_v53 }
  0x39   :  { %v25453_v46 = vld [vmem:[%s33417_s0 + $0x8c0] sm:$0xff]   ;;  %20598 = vst [vmem:[%s33418_s1 + $0xcc0] sm:$0xff] %v25452_v45  ;;  %v25462_v55 = vld [vmem:[%s33417_s0 + $0x8d0] sm:$0xff]   ;;  %20634 = vst [vmem:[%s33418_s1 + $0xcd0] sm:$0xff] %v25461_v54 }
  0x3a   :  { %v25454_v47 = vld [vmem:[%s33417_s0 + $0x1cc0] sm:$0xff]   ;;  %20602 = vst [vmem:[%s33418_s1 + $0x18c0] sm:$0xff] %v25453_v46  ;;  %v25463_v56 = vld [vmem:[%s33417_s0 + $0x1cd0] sm:$0xff]   ;;  %20638 = vst [vmem:[%s33418_s1 + $0x18d0] sm:$0xff] %v25462_v55 }
  0x3b   :  { %v25455_v48 = vld [vmem:[%s33417_s0 + $0x10c0] sm:$0xff]   ;;  %20606 = vst [vmem:[%s33418_s1 + $0x4c0] sm:$0xff] %v25454_v47  ;;  %v25464_v57 = vld [vmem:[%s33417_s0 + $0x10d0] sm:$0xff]   ;;  %20642 = vst [vmem:[%s33418_s1 + $0x4d0] sm:$0xff] %v25463_v56 }
  0x3c   :  { %v25456_v49 = vld [vmem:[%s33417_s0 + $0x4c0] sm:$0xff]   ;;  %20610 = vst [vmem:[%s33418_s1 + $0x10c0] sm:$0xff] %v25455_v48  ;;  %v25465_v58 = vld [vmem:[%s33417_s0 + $0x4d0] sm:$0xff]   ;;  %20646 = vst [vmem:[%s33418_s1 + $0x10d0] sm:$0xff] %v25464_v57 }
  0x3d   :  { %v25457_v50 = vld [vmem:[%s33417_s0 + $0x18c0] sm:$0xff]   ;;  %20614 = vst [vmem:[%s33418_s1 + $0x1cc0] sm:$0xff] %v25456_v49  ;;  %v25466_v59 = vld [vmem:[%s33417_s0 + $0x18d0] sm:$0xff]   ;;  %20650 = vst [vmem:[%s33418_s1 + $0x1cd0] sm:$0xff] %v25465_v58 }
  0x3e   :  { %v25458_v51 = vld [vmem:[%s33417_s0 + $0xcc0] sm:$0xff]   ;;  %20618 = vst [vmem:[%s33418_s1 + $0x8c0] sm:$0xff] %v25457_v50  ;;  %v25467_v60 = vld [vmem:[%s33417_s0 + $0xcd0] sm:$0xff]   ;;  %20654 = vst [vmem:[%s33418_s1 + $0x8d0] sm:$0xff] %v25466_v59 }
  0x3f   :  { %v25459_v52 = vld [vmem:[%s33417_s0 + $0xc0] sm:$0xff]   ;;  %20622 = vst [vmem:[%s33418_s1 + $0x14c0] sm:$0xff] %v25458_v51  ;;  %v25468_v61 = vld [vmem:[%s33417_s0 + $0xd0] sm:$0xff]   ;;  %20658 = vst [vmem:[%s33418_s1 + $0x14d0] sm:$0xff] %v25467_v60 }
  0x40   :  { %20626 = vst [vmem:[%s33418_s1 + $0x20c0] sm:$0xff] %v25459_v52  ;;  %v25469_v62 = vld [vmem:[%s33417_s0 + $0x20e0] sm:$0xff]   ;;  %20662 = vst [vmem:[%s33418_s1 + $0x20d0] sm:$0xff] %v25468_v61  ;;  %v25478_v7 = vld [vmem:[%s33417_s0 + $0x20f0] sm:$0xff]  }
  0x41   :  { %v25470_v63 = vld [vmem:[%s33417_s0 + $0x14e0] sm:$0xff]   ;;  %20666 = vst [vmem:[%s33418_s1 + $0xe0] sm:$0xff] %v25469_v62  ;;  %v25479_v8 = vld [vmem:[%s33417_s0 + $0x14f0] sm:$0xff]   ;;  %20702 = vst [vmem:[%s33418_s1 + $0xf0] sm:$0xff] %v25478_v7 }
  0x42   :  { %v25471_v0 = vld [vmem:[%s33417_s0 + $0x8e0] sm:$0xff]   ;;  %20670 = vst [vmem:[%s33418_s1 + $0xce0] sm:$0xff] %v25470_v63  ;;  %v25480_v9 = vld [vmem:[%s33417_s0 + $0x8f0] sm:$0xff]   ;;  %20706 = vst [vmem:[%s33418_s1 + $0xcf0] sm:$0xff] %v25479_v8 }
  0x43   :  { %v25472_v1 = vld [vmem:[%s33417_s0 + $0x1ce0] sm:$0xff]   ;;  %20674 = vst [vmem:[%s33418_s1 + $0x18e0] sm:$0xff] %v25471_v0  ;;  %v25481_v10 = vld [vmem:[%s33417_s0 + $0x1cf0] sm:$0xff]   ;;  %20710 = vst [vmem:[%s33418_s1 + $0x18f0] sm:$0xff] %v25480_v9 }
  0x44   :  { %v25473_v2 = vld [vmem:[%s33417_s0 + $0x10e0] sm:$0xff]   ;;  %20678 = vst [vmem:[%s33418_s1 + $0x4e0] sm:$0xff] %v25472_v1  ;;  %v25482_v11 = vld [vmem:[%s33417_s0 + $0x10f0] sm:$0xff]   ;;  %20714 = vst [vmem:[%s33418_s1 + $0x4f0] sm:$0xff] %v25481_v10 }
  0x45   :  { %v25474_v3 = vld [vmem:[%s33417_s0 + $0x4e0] sm:$0xff]   ;;  %20682 = vst [vmem:[%s33418_s1 + $0x10e0] sm:$0xff] %v25473_v2  ;;  %v25483_v12 = vld [vmem:[%s33417_s0 + $0x4f0] sm:$0xff]   ;;  %20718 = vst [vmem:[%s33418_s1 + $0x10f0] sm:$0xff] %v25482_v11 }
  0x46   :  { %v25475_v4 = vld [vmem:[%s33417_s0 + $0x18e0] sm:$0xff]   ;;  %20686 = vst [vmem:[%s33418_s1 + $0x1ce0] sm:$0xff] %v25474_v3  ;;  %v25484_v13 = vld [vmem:[%s33417_s0 + $0x18f0] sm:$0xff]   ;;  %20722 = vst [vmem:[%s33418_s1 + $0x1cf0] sm:$0xff] %v25483_v12 }
  0x47   :  { %v25476_v5 = vld [vmem:[%s33417_s0 + $0xce0] sm:$0xff]   ;;  %20690 = vst [vmem:[%s33418_s1 + $0x8e0] sm:$0xff] %v25475_v4  ;;  %v25485_v14 = vld [vmem:[%s33417_s0 + $0xcf0] sm:$0xff]   ;;  %20726 = vst [vmem:[%s33418_s1 + $0x8f0] sm:$0xff] %v25484_v13 }
  0x48   :  { %v25477_v6 = vld [vmem:[%s33417_s0 + $0xe0] sm:$0xff]   ;;  %20694 = vst [vmem:[%s33418_s1 + $0x14e0] sm:$0xff] %v25476_v5  ;;  %v25486_v15 = vld [vmem:[%s33417_s0 + $0xf0] sm:$0xff]   ;;  %20730 = vst [vmem:[%s33418_s1 + $0x14f0] sm:$0xff] %v25485_v14 }
  0x49   :  { %20698 = vst [vmem:[%s33418_s1 + $0x20e0] sm:$0xff] %v25477_v6  ;;  %v25487_v16 = vld [vmem:[%s33417_s0 + $0x2100] sm:$0xff]   ;;  %20734 = vst [vmem:[%s33418_s1 + $0x20f0] sm:$0xff] %v25486_v15  ;;  %v25496_v25 = vld [vmem:[%s33417_s0 + $0x2110] sm:$0xff]  }
  0x4a   :  { %v25488_v17 = vld [vmem:[%s33417_s0 + $0x1500] sm:$0xff]   ;;  %20738 = vst [vmem:[%s33418_s1 + $0x100] sm:$0xff] %v25487_v16  ;;  %v25497_v26 = vld [vmem:[%s33417_s0 + $0x1510] sm:$0xff]   ;;  %20774 = vst [vmem:[%s33418_s1 + $0x110] sm:$0xff] %v25496_v25 }
  0x4b   :  { %v25489_v18 = vld [vmem:[%s33417_s0 + $0x900] sm:$0xff]   ;;  %20742 = vst [vmem:[%s33418_s1 + $0xd00] sm:$0xff] %v25488_v17  ;;  %v25498_v27 = vld [vmem:[%s33417_s0 + $0x910] sm:$0xff]   ;;  %20778 = vst [vmem:[%s33418_s1 + $0xd10] sm:$0xff] %v25497_v26 }
  0x4c   :  { %v25490_v19 = vld [vmem:[%s33417_s0 + $0x1d00] sm:$0xff]   ;;  %20746 = vst [vmem:[%s33418_s1 + $0x1900] sm:$0xff] %v25489_v18  ;;  %v25499_v28 = vld [vmem:[%s33417_s0 + $0x1d10] sm:$0xff]   ;;  %20782 = vst [vmem:[%s33418_s1 + $0x1910] sm:$0xff] %v25498_v27 }
  0x4d   :  { %v25491_v20 = vld [vmem:[%s33417_s0 + $0x1100] sm:$0xff]   ;;  %20750 = vst [vmem:[%s33418_s1 + $0x500] sm:$0xff] %v25490_v19  ;;  %v25500_v29 = vld [vmem:[%s33417_s0 + $0x1110] sm:$0xff]   ;;  %20786 = vst [vmem:[%s33418_s1 + $0x510] sm:$0xff] %v25499_v28 }
  0x4e   :  { %v25492_v21 = vld [vmem:[%s33417_s0 + $0x500] sm:$0xff]   ;;  %20754 = vst [vmem:[%s33418_s1 + $0x1100] sm:$0xff] %v25491_v20  ;;  %v25501_v30 = vld [vmem:[%s33417_s0 + $0x510] sm:$0xff]   ;;  %20790 = vst [vmem:[%s33418_s1 + $0x1110] sm:$0xff] %v25500_v29 }
  0x4f   :  { %v25493_v22 = vld [vmem:[%s33417_s0 + $0x1900] sm:$0xff]   ;;  %20758 = vst [vmem:[%s33418_s1 + $0x1d00] sm:$0xff] %v25492_v21  ;;  %v25502_v31 = vld [vmem:[%s33417_s0 + $0x1910] sm:$0xff]   ;;  %20794 = vst [vmem:[%s33418_s1 + $0x1d10] sm:$0xff] %v25501_v30 }
  0x50   :  { %v25494_v23 = vld [vmem:[%s33417_s0 + $0xd00] sm:$0xff]   ;;  %20762 = vst [vmem:[%s33418_s1 + $0x900] sm:$0xff] %v25493_v22  ;;  %v25503_v32 = vld [vmem:[%s33417_s0 + $0xd10] sm:$0xff]   ;;  %20798 = vst [vmem:[%s33418_s1 + $0x910] sm:$0xff] %v25502_v31 }
  0x51   :  { %v25495_v24 = vld [vmem:[%s33417_s0 + $0x100] sm:$0xff]   ;;  %20766 = vst [vmem:[%s33418_s1 + $0x1500] sm:$0xff] %v25494_v23  ;;  %v25504_v33 = vld [vmem:[%s33417_s0 + $0x110] sm:$0xff]   ;;  %20802 = vst [vmem:[%s33418_s1 + $0x1510] sm:$0xff] %v25503_v32 }
  0x52   :  { %20770 = vst [vmem:[%s33418_s1 + $0x2100] sm:$0xff] %v25495_v24  ;;  %v25505_v34 = vld [vmem:[%s33417_s0 + $0x2120] sm:$0xff]   ;;  %20806 = vst [vmem:[%s33418_s1 + $0x2110] sm:$0xff] %v25504_v33  ;;  %v25514_v43 = vld [vmem:[%s33417_s0 + $0x2130] sm:$0xff]  }
  0x53   :  { %v25506_v35 = vld [vmem:[%s33417_s0 + $0x1520] sm:$0xff]   ;;  %20810 = vst [vmem:[%s33418_s1 + $0x120] sm:$0xff] %v25505_v34  ;;  %v25515_v44 = vld [vmem:[%s33417_s0 + $0x1530] sm:$0xff]   ;;  %20846 = vst [vmem:[%s33418_s1 + $0x130] sm:$0xff] %v25514_v43 }
  0x54   :  { %v25507_v36 = vld [vmem:[%s33417_s0 + $0x920] sm:$0xff]   ;;  %20814 = vst [vmem:[%s33418_s1 + $0xd20] sm:$0xff] %v25506_v35  ;;  %v25516_v45 = vld [vmem:[%s33417_s0 + $0x930] sm:$0xff]   ;;  %20850 = vst [vmem:[%s33418_s1 + $0xd30] sm:$0xff] %v25515_v44 }
  0x55   :  { %v25508_v37 = vld [vmem:[%s33417_s0 + $0x1d20] sm:$0xff]   ;;  %20818 = vst [vmem:[%s33418_s1 + $0x1920] sm:$0xff] %v25507_v36  ;;  %v25517_v46 = vld [vmem:[%s33417_s0 + $0x1d30] sm:$0xff]   ;;  %20854 = vst [vmem:[%s33418_s1 + $0x1930] sm:$0xff] %v25516_v45 }
  0x56   :  { %v25509_v38 = vld [vmem:[%s33417_s0 + $0x1120] sm:$0xff]   ;;  %20822 = vst [vmem:[%s33418_s1 + $0x520] sm:$0xff] %v25508_v37  ;;  %v25518_v47 = vld [vmem:[%s33417_s0 + $0x1130] sm:$0xff]   ;;  %20858 = vst [vmem:[%s33418_s1 + $0x530] sm:$0xff] %v25517_v46 }
  0x57   :  { %v25510_v39 = vld [vmem:[%s33417_s0 + $0x520] sm:$0xff]   ;;  %20826 = vst [vmem:[%s33418_s1 + $0x1120] sm:$0xff] %v25509_v38  ;;  %v25519_v48 = vld [vmem:[%s33417_s0 + $0x530] sm:$0xff]   ;;  %20862 = vst [vmem:[%s33418_s1 + $0x1130] sm:$0xff] %v25518_v47 }
  0x58   :  { %v25511_v40 = vld [vmem:[%s33417_s0 + $0x1920] sm:$0xff]   ;;  %20830 = vst [vmem:[%s33418_s1 + $0x1d20] sm:$0xff] %v25510_v39  ;;  %v25520_v49 = vld [vmem:[%s33417_s0 + $0x1930] sm:$0xff]   ;;  %20866 = vst [vmem:[%s33418_s1 + $0x1d30] sm:$0xff] %v25519_v48 }
  0x59   :  { %v25512_v41 = vld [vmem:[%s33417_s0 + $0xd20] sm:$0xff]   ;;  %20834 = vst [vmem:[%s33418_s1 + $0x920] sm:$0xff] %v25511_v40  ;;  %v25521_v50 = vld [vmem:[%s33417_s0 + $0xd30] sm:$0xff]   ;;  %20870 = vst [vmem:[%s33418_s1 + $0x930] sm:$0xff] %v25520_v49 }
  0x5a   :  { %v25513_v42 = vld [vmem:[%s33417_s0 + $0x120] sm:$0xff]   ;;  %20838 = vst [vmem:[%s33418_s1 + $0x1520] sm:$0xff] %v25512_v41  ;;  %v25522_v51 = vld [vmem:[%s33417_s0 + $0x130] sm:$0xff]   ;;  %20874 = vst [vmem:[%s33418_s1 + $0x1530] sm:$0xff] %v25521_v50 }
  0x5b   :  { %20842 = vst [vmem:[%s33418_s1 + $0x2120] sm:$0xff] %v25513_v42  ;;  %v25523_v52 = vld [vmem:[%s33417_s0 + $0x2140] sm:$0xff]   ;;  %20878 = vst [vmem:[%s33418_s1 + $0x2130] sm:$0xff] %v25522_v51  ;;  %v25532_v61 = vld [vmem:[%s33417_s0 + $0x2150] sm:$0xff]  }
  0x5c   :  { %v25524_v53 = vld [vmem:[%s33417_s0 + $0x1540] sm:$0xff]   ;;  %20882 = vst [vmem:[%s33418_s1 + $0x140] sm:$0xff] %v25523_v52  ;;  %v25533_v62 = vld [vmem:[%s33417_s0 + $0x1550] sm:$0xff]   ;;  %20918 = vst [vmem:[%s33418_s1 + $0x150] sm:$0xff] %v25532_v61 }
  0x5d   :  { %v25525_v54 = vld [vmem:[%s33417_s0 + $0x940] sm:$0xff]   ;;  %20886 = vst [vmem:[%s33418_s1 + $0xd40] sm:$0xff] %v25524_v53  ;;  %v25534_v63 = vld [vmem:[%s33417_s0 + $0x950] sm:$0xff]   ;;  %20922 = vst [vmem:[%s33418_s1 + $0xd50] sm:$0xff] %v25533_v62 }
  0x5e   :  { %v25526_v55 = vld [vmem:[%s33417_s0 + $0x1d40] sm:$0xff]   ;;  %20890 = vst [vmem:[%s33418_s1 + $0x1940] sm:$0xff] %v25525_v54  ;;  %v25535_v0 = vld [vmem:[%s33417_s0 + $0x1d50] sm:$0xff]   ;;  %20926 = vst [vmem:[%s33418_s1 + $0x1950] sm:$0xff] %v25534_v63 }
  0x5f   :  { %v25527_v56 = vld [vmem:[%s33417_s0 + $0x1140] sm:$0xff]   ;;  %20894 = vst [vmem:[%s33418_s1 + $0x540] sm:$0xff] %v25526_v55  ;;  %v25536_v1 = vld [vmem:[%s33417_s0 + $0x1150] sm:$0xff]   ;;  %20930 = vst [vmem:[%s33418_s1 + $0x550] sm:$0xff] %v25535_v0 }
  0x60   :  { %v25528_v57 = vld [vmem:[%s33417_s0 + $0x540] sm:$0xff]   ;;  %20898 = vst [vmem:[%s33418_s1 + $0x1140] sm:$0xff] %v25527_v56  ;;  %v25537_v2 = vld [vmem:[%s33417_s0 + $0x550] sm:$0xff]   ;;  %20934 = vst [vmem:[%s33418_s1 + $0x1150] sm:$0xff] %v25536_v1 }
  0x61   :  { %v25529_v58 = vld [vmem:[%s33417_s0 + $0x1940] sm:$0xff]   ;;  %20902 = vst [vmem:[%s33418_s1 + $0x1d40] sm:$0xff] %v25528_v57  ;;  %v25538_v3 = vld [vmem:[%s33417_s0 + $0x1950] sm:$0xff]   ;;  %20938 = vst [vmem:[%s33418_s1 + $0x1d50] sm:$0xff] %v25537_v2 }
  0x62   :  { %v25530_v59 = vld [vmem:[%s33417_s0 + $0xd40] sm:$0xff]   ;;  %20906 = vst [vmem:[%s33418_s1 + $0x940] sm:$0xff] %v25529_v58  ;;  %v25539_v4 = vld [vmem:[%s33417_s0 + $0xd50] sm:$0xff]   ;;  %20942 = vst [vmem:[%s33418_s1 + $0x950] sm:$0xff] %v25538_v3 }
  0x63   :  { %v25531_v60 = vld [vmem:[%s33417_s0 + $0x140] sm:$0xff]   ;;  %20910 = vst [vmem:[%s33418_s1 + $0x1540] sm:$0xff] %v25530_v59  ;;  %v25540_v5 = vld [vmem:[%s33417_s0 + $0x150] sm:$0xff]   ;;  %20946 = vst [vmem:[%s33418_s1 + $0x1550] sm:$0xff] %v25539_v4 }
  0x64   :  { %20914 = vst [vmem:[%s33418_s1 + $0x2140] sm:$0xff] %v25531_v60  ;;  %v25541_v6 = vld [vmem:[%s33417_s0 + $0x2160] sm:$0xff]   ;;  %20950 = vst [vmem:[%s33418_s1 + $0x2150] sm:$0xff] %v25540_v5  ;;  %v25550_v15 = vld [vmem:[%s33417_s0 + $0x2170] sm:$0xff]  }
  0x65   :  { %v25542_v7 = vld [vmem:[%s33417_s0 + $0x1560] sm:$0xff]   ;;  %20954 = vst [vmem:[%s33418_s1 + $0x160] sm:$0xff] %v25541_v6  ;;  %v25551_v16 = vld [vmem:[%s33417_s0 + $0x1570] sm:$0xff]   ;;  %20990 = vst [vmem:[%s33418_s1 + $0x170] sm:$0xff] %v25550_v15 }
  0x66   :  { %v25543_v8 = vld [vmem:[%s33417_s0 + $0x960] sm:$0xff]   ;;  %20958 = vst [vmem:[%s33418_s1 + $0xd60] sm:$0xff] %v25542_v7  ;;  %v25552_v17 = vld [vmem:[%s33417_s0 + $0x970] sm:$0xff]   ;;  %20994 = vst [vmem:[%s33418_s1 + $0xd70] sm:$0xff] %v25551_v16 }
  0x67   :  { %v25544_v9 = vld [vmem:[%s33417_s0 + $0x1d60] sm:$0xff]   ;;  %20962 = vst [vmem:[%s33418_s1 + $0x1960] sm:$0xff] %v25543_v8  ;;  %v25553_v18 = vld [vmem:[%s33417_s0 + $0x1d70] sm:$0xff]   ;;  %20998 = vst [vmem:[%s33418_s1 + $0x1970] sm:$0xff] %v25552_v17 }
  0x68   :  { %v25545_v10 = vld [vmem:[%s33417_s0 + $0x1160] sm:$0xff]   ;;  %20966 = vst [vmem:[%s33418_s1 + $0x560] sm:$0xff] %v25544_v9  ;;  %v25554_v19 = vld [vmem:[%s33417_s0 + $0x1170] sm:$0xff]   ;;  %21002 = vst [vmem:[%s33418_s1 + $0x570] sm:$0xff] %v25553_v18 }
  0x69   :  { %v25546_v11 = vld [vmem:[%s33417_s0 + $0x560] sm:$0xff]   ;;  %20970 = vst [vmem:[%s33418_s1 + $0x1160] sm:$0xff] %v25545_v10  ;;  %v25555_v20 = vld [vmem:[%s33417_s0 + $0x570] sm:$0xff]   ;;  %21006 = vst [vmem:[%s33418_s1 + $0x1170] sm:$0xff] %v25554_v19 }
  0x6a   :  { %v25547_v12 = vld [vmem:[%s33417_s0 + $0x1960] sm:$0xff]   ;;  %20974 = vst [vmem:[%s33418_s1 + $0x1d60] sm:$0xff] %v25546_v11  ;;  %v25556_v21 = vld [vmem:[%s33417_s0 + $0x1970] sm:$0xff]   ;;  %21010 = vst [vmem:[%s33418_s1 + $0x1d70] sm:$0xff] %v25555_v20 }
  0x6b   :  { %v25548_v13 = vld [vmem:[%s33417_s0 + $0xd60] sm:$0xff]   ;;  %20978 = vst [vmem:[%s33418_s1 + $0x960] sm:$0xff] %v25547_v12  ;;  %v25557_v22 = vld [vmem:[%s33417_s0 + $0xd70] sm:$0xff]   ;;  %21014 = vst [vmem:[%s33418_s1 + $0x970] sm:$0xff] %v25556_v21 }
  0x6c   :  { %v25549_v14 = vld [vmem:[%s33417_s0 + $0x160] sm:$0xff]   ;;  %20982 = vst [vmem:[%s33418_s1 + $0x1560] sm:$0xff] %v25548_v13  ;;  %v25558_v23 = vld [vmem:[%s33417_s0 + $0x170] sm:$0xff]   ;;  %21018 = vst [vmem:[%s33418_s1 + $0x1570] sm:$0xff] %v25557_v22 }
  0x6d   :  { %20986 = vst [vmem:[%s33418_s1 + $0x2160] sm:$0xff] %v25549_v14  ;;  %v25559_v24 = vld [vmem:[%s33417_s0 + $0x2180] sm:$0xff]   ;;  %21022 = vst [vmem:[%s33418_s1 + $0x2170] sm:$0xff] %v25558_v23  ;;  %v25568_v33 = vld [vmem:[%s33417_s0 + $0x2190] sm:$0xff]  }
  0x6e   :  { %v25560_v25 = vld [vmem:[%s33417_s0 + $0x1580] sm:$0xff]   ;;  %21026 = vst [vmem:[%s33418_s1 + $0x180] sm:$0xff] %v25559_v24  ;;  %v25569_v34 = vld [vmem:[%s33417_s0 + $0x1590] sm:$0xff]   ;;  %21062 = vst [vmem:[%s33418_s1 + $0x190] sm:$0xff] %v25568_v33 }
  0x6f   :  { %v25561_v26 = vld [vmem:[%s33417_s0 + $0x980] sm:$0xff]   ;;  %21030 = vst [vmem:[%s33418_s1 + $0xd80] sm:$0xff] %v25560_v25  ;;  %v25570_v35 = vld [vmem:[%s33417_s0 + $0x990] sm:$0xff]   ;;  %21066 = vst [vmem:[%s33418_s1 + $0xd90] sm:$0xff] %v25569_v34 }
  0x70   :  { %v25562_v27 = vld [vmem:[%s33417_s0 + $0x1d80] sm:$0xff]   ;;  %21034 = vst [vmem:[%s33418_s1 + $0x1980] sm:$0xff] %v25561_v26  ;;  %v25571_v36 = vld [vmem:[%s33417_s0 + $0x1d90] sm:$0xff]   ;;  %21070 = vst [vmem:[%s33418_s1 + $0x1990] sm:$0xff] %v25570_v35 }
  0x71   :  { %v25563_v28 = vld [vmem:[%s33417_s0 + $0x1180] sm:$0xff]   ;;  %21038 = vst [vmem:[%s33418_s1 + $0x580] sm:$0xff] %v25562_v27  ;;  %v25572_v37 = vld [vmem:[%s33417_s0 + $0x1190] sm:$0xff]   ;;  %21074 = vst [vmem:[%s33418_s1 + $0x590] sm:$0xff] %v25571_v36 }
  0x72   :  { %v25564_v29 = vld [vmem:[%s33417_s0 + $0x580] sm:$0xff]   ;;  %21042 = vst [vmem:[%s33418_s1 + $0x1180] sm:$0xff] %v25563_v28  ;;  %v25573_v38 = vld [vmem:[%s33417_s0 + $0x590] sm:$0xff]   ;;  %21078 = vst [vmem:[%s33418_s1 + $0x1190] sm:$0xff] %v25572_v37 }
  0x73   :  { %v25565_v30 = vld [vmem:[%s33417_s0 + $0x1980] sm:$0xff]   ;;  %21046 = vst [vmem:[%s33418_s1 + $0x1d80] sm:$0xff] %v25564_v29  ;;  %v25574_v39 = vld [vmem:[%s33417_s0 + $0x1990] sm:$0xff]   ;;  %21082 = vst [vmem:[%s33418_s1 + $0x1d90] sm:$0xff] %v25573_v38 }
  0x74   :  { %v25566_v31 = vld [vmem:[%s33417_s0 + $0xd80] sm:$0xff]   ;;  %21050 = vst [vmem:[%s33418_s1 + $0x980] sm:$0xff] %v25565_v30  ;;  %v25575_v40 = vld [vmem:[%s33417_s0 + $0xd90] sm:$0xff]   ;;  %21086 = vst [vmem:[%s33418_s1 + $0x990] sm:$0xff] %v25574_v39 }
  0x75   :  { %v25567_v32 = vld [vmem:[%s33417_s0 + $0x180] sm:$0xff]   ;;  %21054 = vst [vmem:[%s33418_s1 + $0x1580] sm:$0xff] %v25566_v31  ;;  %v25576_v41 = vld [vmem:[%s33417_s0 + $0x190] sm:$0xff]   ;;  %21090 = vst [vmem:[%s33418_s1 + $0x1590] sm:$0xff] %v25575_v40 }
  0x76   :  { %21058 = vst [vmem:[%s33418_s1 + $0x2180] sm:$0xff] %v25567_v32  ;;  %v25577_v42 = vld [vmem:[%s33417_s0 + $0x21a0] sm:$0xff]   ;;  %21094 = vst [vmem:[%s33418_s1 + $0x2190] sm:$0xff] %v25576_v41  ;;  %v25586_v51 = vld [vmem:[%s33417_s0 + $0x21b0] sm:$0xff]  }
  0x77   :  { %v25578_v43 = vld [vmem:[%s33417_s0 + $0x15a0] sm:$0xff]   ;;  %21098 = vst [vmem:[%s33418_s1 + $0x1a0] sm:$0xff] %v25577_v42  ;;  %v25587_v52 = vld [vmem:[%s33417_s0 + $0x15b0] sm:$0xff]   ;;  %21134 = vst [vmem:[%s33418_s1 + $0x1b0] sm:$0xff] %v25586_v51 }
  0x78   :  { %v25579_v44 = vld [vmem:[%s33417_s0 + $0x9a0] sm:$0xff]   ;;  %21102 = vst [vmem:[%s33418_s1 + $0xda0] sm:$0xff] %v25578_v43  ;;  %v25588_v53 = vld [vmem:[%s33417_s0 + $0x9b0] sm:$0xff]   ;;  %21138 = vst [vmem:[%s33418_s1 + $0xdb0] sm:$0xff] %v25587_v52 }
  0x79   :  { %v25580_v45 = vld [vmem:[%s33417_s0 + $0x1da0] sm:$0xff]   ;;  %21106 = vst [vmem:[%s33418_s1 + $0x19a0] sm:$0xff] %v25579_v44  ;;  %v25589_v54 = vld [vmem:[%s33417_s0 + $0x1db0] sm:$0xff]   ;;  %21142 = vst [vmem:[%s33418_s1 + $0x19b0] sm:$0xff] %v25588_v53 }
  0x7a   :  { %v25581_v46 = vld [vmem:[%s33417_s0 + $0x11a0] sm:$0xff]   ;;  %21110 = vst [vmem:[%s33418_s1 + $0x5a0] sm:$0xff] %v25580_v45  ;;  %v25590_v55 = vld [vmem:[%s33417_s0 + $0x11b0] sm:$0xff]   ;;  %21146 = vst [vmem:[%s33418_s1 + $0x5b0] sm:$0xff] %v25589_v54 }
  0x7b   :  { %v25582_v47 = vld [vmem:[%s33417_s0 + $0x5a0] sm:$0xff]   ;;  %21114 = vst [vmem:[%s33418_s1 + $0x11a0] sm:$0xff] %v25581_v46  ;;  %v25591_v56 = vld [vmem:[%s33417_s0 + $0x5b0] sm:$0xff]   ;;  %21150 = vst [vmem:[%s33418_s1 + $0x11b0] sm:$0xff] %v25590_v55 }
  0x7c   :  { %v25583_v48 = vld [vmem:[%s33417_s0 + $0x19a0] sm:$0xff]   ;;  %21118 = vst [vmem:[%s33418_s1 + $0x1da0] sm:$0xff] %v25582_v47  ;;  %v25592_v57 = vld [vmem:[%s33417_s0 + $0x19b0] sm:$0xff]   ;;  %21154 = vst [vmem:[%s33418_s1 + $0x1db0] sm:$0xff] %v25591_v56 }
  0x7d   :  { %v25584_v49 = vld [vmem:[%s33417_s0 + $0xda0] sm:$0xff]   ;;  %21122 = vst [vmem:[%s33418_s1 + $0x9a0] sm:$0xff] %v25583_v48  ;;  %v25593_v58 = vld [vmem:[%s33417_s0 + $0xdb0] sm:$0xff]   ;;  %21158 = vst [vmem:[%s33418_s1 + $0x9b0] sm:$0xff] %v25592_v57 }
  0x7e   :  { %v25585_v50 = vld [vmem:[%s33417_s0 + $0x1a0] sm:$0xff]   ;;  %21126 = vst [vmem:[%s33418_s1 + $0x15a0] sm:$0xff] %v25584_v49  ;;  %v25594_v59 = vld [vmem:[%s33417_s0 + $0x1b0] sm:$0xff]   ;;  %21162 = vst [vmem:[%s33418_s1 + $0x15b0] sm:$0xff] %v25593_v58 }
  0x7f   :  { %21130 = vst [vmem:[%s33418_s1 + $0x21a0] sm:$0xff] %v25585_v50  ;;  %v25595_v60 = vld [vmem:[%s33417_s0 + $0x21c0] sm:$0xff]   ;;  %21166 = vst [vmem:[%s33418_s1 + $0x21b0] sm:$0xff] %v25594_v59  ;;  %v25604_v5 = vld [vmem:[%s33417_s0 + $0x21d0] sm:$0xff]  }
  0x80   :  { %v25596_v61 = vld [vmem:[%s33417_s0 + $0x15c0] sm:$0xff]   ;;  %21170 = vst [vmem:[%s33418_s1 + $0x1c0] sm:$0xff] %v25595_v60  ;;  %v25605_v6 = vld [vmem:[%s33417_s0 + $0x15d0] sm:$0xff]   ;;  %21206 = vst [vmem:[%s33418_s1 + $0x1d0] sm:$0xff] %v25604_v5 }
  0x81   :  { %v25597_v62 = vld [vmem:[%s33417_s0 + $0x9c0] sm:$0xff]   ;;  %21174 = vst [vmem:[%s33418_s1 + $0xdc0] sm:$0xff] %v25596_v61  ;;  %v25606_v7 = vld [vmem:[%s33417_s0 + $0x9d0] sm:$0xff]   ;;  %21210 = vst [vmem:[%s33418_s1 + $0xdd0] sm:$0xff] %v25605_v6 }
  0x82   :  { %v25598_v63 = vld [vmem:[%s33417_s0 + $0x1dc0] sm:$0xff]   ;;  %21178 = vst [vmem:[%s33418_s1 + $0x19c0] sm:$0xff] %v25597_v62  ;;  %v25607_v8 = vld [vmem:[%s33417_s0 + $0x1dd0] sm:$0xff]   ;;  %21214 = vst [vmem:[%s33418_s1 + $0x19d0] sm:$0xff] %v25606_v7 }
  0x83   :  { %v25599_v0 = vld [vmem:[%s33417_s0 + $0x11c0] sm:$0xff]   ;;  %21182 = vst [vmem:[%s33418_s1 + $0x5c0] sm:$0xff] %v25598_v63  ;;  %v25608_v9 = vld [vmem:[%s33417_s0 + $0x11d0] sm:$0xff]   ;;  %21218 = vst [vmem:[%s33418_s1 + $0x5d0] sm:$0xff] %v25607_v8 }
  0x84   :  { %v25600_v1 = vld [vmem:[%s33417_s0 + $0x5c0] sm:$0xff]   ;;  %21186 = vst [vmem:[%s33418_s1 + $0x11c0] sm:$0xff] %v25599_v0  ;;  %v25609_v10 = vld [vmem:[%s33417_s0 + $0x5d0] sm:$0xff]   ;;  %21222 = vst [vmem:[%s33418_s1 + $0x11d0] sm:$0xff] %v25608_v9 }
  0x85   :  { %v25601_v2 = vld [vmem:[%s33417_s0 + $0x19c0] sm:$0xff]   ;;  %21190 = vst [vmem:[%s33418_s1 + $0x1dc0] sm:$0xff] %v25600_v1  ;;  %v25610_v11 = vld [vmem:[%s33417_s0 + $0x19d0] sm:$0xff]   ;;  %21226 = vst [vmem:[%s33418_s1 + $0x1dd0] sm:$0xff] %v25609_v10 }
  0x86   :  { %v25602_v3 = vld [vmem:[%s33417_s0 + $0xdc0] sm:$0xff]   ;;  %21194 = vst [vmem:[%s33418_s1 + $0x9c0] sm:$0xff] %v25601_v2  ;;  %v25611_v12 = vld [vmem:[%s33417_s0 + $0xdd0] sm:$0xff]   ;;  %21230 = vst [vmem:[%s33418_s1 + $0x9d0] sm:$0xff] %v25610_v11 }
  0x87   :  { %v25603_v4 = vld [vmem:[%s33417_s0 + $0x1c0] sm:$0xff]   ;;  %21198 = vst [vmem:[%s33418_s1 + $0x15c0] sm:$0xff] %v25602_v3  ;;  %v25612_v13 = vld [vmem:[%s33417_s0 + $0x1d0] sm:$0xff]   ;;  %21234 = vst [vmem:[%s33418_s1 + $0x15d0] sm:$0xff] %v25611_v12 }
  0x88   :  { %21202 = vst [vmem:[%s33418_s1 + $0x21c0] sm:$0xff] %v25603_v4  ;;  %v25613_v14 = vld [vmem:[%s33417_s0 + $0x21e0] sm:$0xff]   ;;  %21238 = vst [vmem:[%s33418_s1 + $0x21d0] sm:$0xff] %v25612_v13  ;;  %v25622_v23 = vld [vmem:[%s33417_s0 + $0x21f0] sm:$0xff]  }
  0x89   :  { %v25614_v15 = vld [vmem:[%s33417_s0 + $0x15e0] sm:$0xff]   ;;  %21242 = vst [vmem:[%s33418_s1 + $0x1e0] sm:$0xff] %v25613_v14  ;;  %v25623_v24 = vld [vmem:[%s33417_s0 + $0x15f0] sm:$0xff]   ;;  %21278 = vst [vmem:[%s33418_s1 + $0x1f0] sm:$0xff] %v25622_v23 }
  0x8a   :  { %v25615_v16 = vld [vmem:[%s33417_s0 + $0x9e0] sm:$0xff]   ;;  %21246 = vst [vmem:[%s33418_s1 + $0xde0] sm:$0xff] %v25614_v15  ;;  %v25624_v25 = vld [vmem:[%s33417_s0 + $0x9f0] sm:$0xff]   ;;  %21282 = vst [vmem:[%s33418_s1 + $0xdf0] sm:$0xff] %v25623_v24 }
  0x8b   :  { %v25616_v17 = vld [vmem:[%s33417_s0 + $0x1de0] sm:$0xff]   ;;  %21250 = vst [vmem:[%s33418_s1 + $0x19e0] sm:$0xff] %v25615_v16  ;;  %v25625_v26 = vld [vmem:[%s33417_s0 + $0x1df0] sm:$0xff]   ;;  %21286 = vst [vmem:[%s33418_s1 + $0x19f0] sm:$0xff] %v25624_v25 }
  0x8c   :  { %v25617_v18 = vld [vmem:[%s33417_s0 + $0x11e0] sm:$0xff]   ;;  %21254 = vst [vmem:[%s33418_s1 + $0x5e0] sm:$0xff] %v25616_v17  ;;  %v25626_v27 = vld [vmem:[%s33417_s0 + $0x11f0] sm:$0xff]   ;;  %21290 = vst [vmem:[%s33418_s1 + $0x5f0] sm:$0xff] %v25625_v26 }
  0x8d   :  { %v25618_v19 = vld [vmem:[%s33417_s0 + $0x5e0] sm:$0xff]   ;;  %21258 = vst [vmem:[%s33418_s1 + $0x11e0] sm:$0xff] %v25617_v18  ;;  %v25627_v28 = vld [vmem:[%s33417_s0 + $0x5f0] sm:$0xff]   ;;  %21294 = vst [vmem:[%s33418_s1 + $0x11f0] sm:$0xff] %v25626_v27 }
  0x8e   :  { %v25619_v20 = vld [vmem:[%s33417_s0 + $0x19e0] sm:$0xff]   ;;  %21262 = vst [vmem:[%s33418_s1 + $0x1de0] sm:$0xff] %v25618_v19  ;;  %v25628_v29 = vld [vmem:[%s33417_s0 + $0x19f0] sm:$0xff]   ;;  %21298 = vst [vmem:[%s33418_s1 + $0x1df0] sm:$0xff] %v25627_v28 }
  0x8f   :  { %v25620_v21 = vld [vmem:[%s33417_s0 + $0xde0] sm:$0xff]   ;;  %21266 = vst [vmem:[%s33418_s1 + $0x9e0] sm:$0xff] %v25619_v20  ;;  %v25629_v30 = vld [vmem:[%s33417_s0 + $0xdf0] sm:$0xff]   ;;  %21302 = vst [vmem:[%s33418_s1 + $0x9f0] sm:$0xff] %v25628_v29 }
  0x90   :  { %v25621_v22 = vld [vmem:[%s33417_s0 + $0x1e0] sm:$0xff]   ;;  %21270 = vst [vmem:[%s33418_s1 + $0x15e0] sm:$0xff] %v25620_v21  ;;  %v25630_v31 = vld [vmem:[%s33417_s0 + $0x1f0] sm:$0xff]   ;;  %21306 = vst [vmem:[%s33418_s1 + $0x15f0] sm:$0xff] %v25629_v30 }
  0x91   :  { %21274 = vst [vmem:[%s33418_s1 + $0x21e0] sm:$0xff] %v25621_v22  ;;  %v25631_v32 = vld [vmem:[%s33417_s0 + $0x2200] sm:$0xff]   ;;  %21310 = vst [vmem:[%s33418_s1 + $0x21f0] sm:$0xff] %v25630_v31  ;;  %v25640_v41 = vld [vmem:[%s33417_s0 + $0x2210] sm:$0xff]  }
  0x92   :  { %v25632_v33 = vld [vmem:[%s33417_s0 + $0x1600] sm:$0xff]   ;;  %21314 = vst [vmem:[%s33418_s1 + $0x200] sm:$0xff] %v25631_v32  ;;  %v25641_v42 = vld [vmem:[%s33417_s0 + $0x1610] sm:$0xff]   ;;  %21350 = vst [vmem:[%s33418_s1 + $0x210] sm:$0xff] %v25640_v41 }
  0x93   :  { %v25633_v34 = vld [vmem:[%s33417_s0 + $0xa00] sm:$0xff]   ;;  %21318 = vst [vmem:[%s33418_s1 + $0xe00] sm:$0xff] %v25632_v33  ;;  %v25642_v43 = vld [vmem:[%s33417_s0 + $0xa10] sm:$0xff]   ;;  %21354 = vst [vmem:[%s33418_s1 + $0xe10] sm:$0xff] %v25641_v42 }
  0x94   :  { %v25634_v35 = vld [vmem:[%s33417_s0 + $0x1e00] sm:$0xff]   ;;  %21322 = vst [vmem:[%s33418_s1 + $0x1a00] sm:$0xff] %v25633_v34  ;;  %v25643_v44 = vld [vmem:[%s33417_s0 + $0x1e10] sm:$0xff]   ;;  %21358 = vst [vmem:[%s33418_s1 + $0x1a10] sm:$0xff] %v25642_v43 }
  0x95   :  { %v25635_v36 = vld [vmem:[%s33417_s0 + $0x1200] sm:$0xff]   ;;  %21326 = vst [vmem:[%s33418_s1 + $0x600] sm:$0xff] %v25634_v35  ;;  %v25644_v45 = vld [vmem:[%s33417_s0 + $0x1210] sm:$0xff]   ;;  %21362 = vst [vmem:[%s33418_s1 + $0x610] sm:$0xff] %v25643_v44 }
  0x96   :  { %v25636_v37 = vld [vmem:[%s33417_s0 + $0x600] sm:$0xff]   ;;  %21330 = vst [vmem:[%s33418_s1 + $0x1200] sm:$0xff] %v25635_v36  ;;  %v25645_v46 = vld [vmem:[%s33417_s0 + $0x610] sm:$0xff]   ;;  %21366 = vst [vmem:[%s33418_s1 + $0x1210] sm:$0xff] %v25644_v45 }
  0x97   :  { %v25637_v38 = vld [vmem:[%s33417_s0 + $0x1a00] sm:$0xff]   ;;  %21334 = vst [vmem:[%s33418_s1 + $0x1e00] sm:$0xff] %v25636_v37  ;;  %v25646_v47 = vld [vmem:[%s33417_s0 + $0x1a10] sm:$0xff]   ;;  %21370 = vst [vmem:[%s33418_s1 + $0x1e10] sm:$0xff] %v25645_v46 }
  0x98   :  { %v25638_v39 = vld [vmem:[%s33417_s0 + $0xe00] sm:$0xff]   ;;  %21338 = vst [vmem:[%s33418_s1 + $0xa00] sm:$0xff] %v25637_v38  ;;  %v25647_v48 = vld [vmem:[%s33417_s0 + $0xe10] sm:$0xff]   ;;  %21374 = vst [vmem:[%s33418_s1 + $0xa10] sm:$0xff] %v25646_v47 }
  0x99   :  { %v25639_v40 = vld [vmem:[%s33417_s0 + $0x200] sm:$0xff]   ;;  %21342 = vst [vmem:[%s33418_s1 + $0x1600] sm:$0xff] %v25638_v39  ;;  %v25648_v49 = vld [vmem:[%s33417_s0 + $0x210] sm:$0xff]   ;;  %21378 = vst [vmem:[%s33418_s1 + $0x1610] sm:$0xff] %v25647_v48 }
  0x9a   :  { %21346 = vst [vmem:[%s33418_s1 + $0x2200] sm:$0xff] %v25639_v40  ;;  %v25649_v50 = vld [vmem:[%s33417_s0 + $0x2220] sm:$0xff]   ;;  %21382 = vst [vmem:[%s33418_s1 + $0x2210] sm:$0xff] %v25648_v49  ;;  %v25658_v59 = vld [vmem:[%s33417_s0 + $0x2230] sm:$0xff]  }
  0x9b   :  { %v25650_v51 = vld [vmem:[%s33417_s0 + $0x1620] sm:$0xff]   ;;  %21386 = vst [vmem:[%s33418_s1 + $0x220] sm:$0xff] %v25649_v50  ;;  %v25659_v60 = vld [vmem:[%s33417_s0 + $0x1630] sm:$0xff]   ;;  %21422 = vst [vmem:[%s33418_s1 + $0x230] sm:$0xff] %v25658_v59 }
  0x9c   :  { %v25651_v52 = vld [vmem:[%s33417_s0 + $0xa20] sm:$0xff]   ;;  %21390 = vst [vmem:[%s33418_s1 + $0xe20] sm:$0xff] %v25650_v51  ;;  %v25660_v61 = vld [vmem:[%s33417_s0 + $0xa30] sm:$0xff]   ;;  %21426 = vst [vmem:[%s33418_s1 + $0xe30] sm:$0xff] %v25659_v60 }
  0x9d   :  { %v25652_v53 = vld [vmem:[%s33417_s0 + $0x1e20] sm:$0xff]   ;;  %21394 = vst [vmem:[%s33418_s1 + $0x1a20] sm:$0xff] %v25651_v52  ;;  %v25661_v62 = vld [vmem:[%s33417_s0 + $0x1e30] sm:$0xff]   ;;  %21430 = vst [vmem:[%s33418_s1 + $0x1a30] sm:$0xff] %v25660_v61 }
  0x9e   :  { %v25653_v54 = vld [vmem:[%s33417_s0 + $0x1220] sm:$0xff]   ;;  %21398 = vst [vmem:[%s33418_s1 + $0x620] sm:$0xff] %v25652_v53  ;;  %v25662_v63 = vld [vmem:[%s33417_s0 + $0x1230] sm:$0xff]   ;;  %21434 = vst [vmem:[%s33418_s1 + $0x630] sm:$0xff] %v25661_v62 }
  0x9f   :  { %v25654_v55 = vld [vmem:[%s33417_s0 + $0x620] sm:$0xff]   ;;  %21402 = vst [vmem:[%s33418_s1 + $0x1220] sm:$0xff] %v25653_v54  ;;  %v25663_v0 = vld [vmem:[%s33417_s0 + $0x630] sm:$0xff]   ;;  %21438 = vst [vmem:[%s33418_s1 + $0x1230] sm:$0xff] %v25662_v63 }
  0xa0   :  { %v25655_v56 = vld [vmem:[%s33417_s0 + $0x1a20] sm:$0xff]   ;;  %21406 = vst [vmem:[%s33418_s1 + $0x1e20] sm:$0xff] %v25654_v55  ;;  %v25664_v1 = vld [vmem:[%s33417_s0 + $0x1a30] sm:$0xff]   ;;  %21442 = vst [vmem:[%s33418_s1 + $0x1e30] sm:$0xff] %v25663_v0 }
  0xa1   :  { %v25656_v57 = vld [vmem:[%s33417_s0 + $0xe20] sm:$0xff]   ;;  %21410 = vst [vmem:[%s33418_s1 + $0xa20] sm:$0xff] %v25655_v56  ;;  %v25665_v2 = vld [vmem:[%s33417_s0 + $0xe30] sm:$0xff]   ;;  %21446 = vst [vmem:[%s33418_s1 + $0xa30] sm:$0xff] %v25664_v1 }
  0xa2   :  { %v25657_v58 = vld [vmem:[%s33417_s0 + $0x220] sm:$0xff]   ;;  %21414 = vst [vmem:[%s33418_s1 + $0x1620] sm:$0xff] %v25656_v57  ;;  %v25666_v3 = vld [vmem:[%s33417_s0 + $0x230] sm:$0xff]   ;;  %21450 = vst [vmem:[%s33418_s1 + $0x1630] sm:$0xff] %v25665_v2 }
  0xa3   :  { %21418 = vst [vmem:[%s33418_s1 + $0x2220] sm:$0xff] %v25657_v58  ;;  %v25667_v4 = vld [vmem:[%s33417_s0 + $0x2240] sm:$0xff]   ;;  %21454 = vst [vmem:[%s33418_s1 + $0x2230] sm:$0xff] %v25666_v3  ;;  %v25676_v13 = vld [vmem:[%s33417_s0 + $0x2250] sm:$0xff]  }
  0xa4   :  { %v25668_v5 = vld [vmem:[%s33417_s0 + $0x1640] sm:$0xff]   ;;  %21458 = vst [vmem:[%s33418_s1 + $0x240] sm:$0xff] %v25667_v4  ;;  %v25677_v14 = vld [vmem:[%s33417_s0 + $0x1650] sm:$0xff]   ;;  %21494 = vst [vmem:[%s33418_s1 + $0x250] sm:$0xff] %v25676_v13 }
  0xa5   :  { %v25669_v6 = vld [vmem:[%s33417_s0 + $0xa40] sm:$0xff]   ;;  %21462 = vst [vmem:[%s33418_s1 + $0xe40] sm:$0xff] %v25668_v5  ;;  %v25678_v15 = vld [vmem:[%s33417_s0 + $0xa50] sm:$0xff]   ;;  %21498 = vst [vmem:[%s33418_s1 + $0xe50] sm:$0xff] %v25677_v14 }
  0xa6   :  { %v25670_v7 = vld [vmem:[%s33417_s0 + $0x1e40] sm:$0xff]   ;;  %21466 = vst [vmem:[%s33418_s1 + $0x1a40] sm:$0xff] %v25669_v6  ;;  %v25679_v16 = vld [vmem:[%s33417_s0 + $0x1e50] sm:$0xff]   ;;  %21502 = vst [vmem:[%s33418_s1 + $0x1a50] sm:$0xff] %v25678_v15 }
  0xa7   :  { %v25671_v8 = vld [vmem:[%s33417_s0 + $0x1240] sm:$0xff]   ;;  %21470 = vst [vmem:[%s33418_s1 + $0x640] sm:$0xff] %v25670_v7  ;;  %v25680_v17 = vld [vmem:[%s33417_s0 + $0x1250] sm:$0xff]   ;;  %21506 = vst [vmem:[%s33418_s1 + $0x650] sm:$0xff] %v25679_v16 }
  0xa8   :  { %v25672_v9 = vld [vmem:[%s33417_s0 + $0x640] sm:$0xff]   ;;  %21474 = vst [vmem:[%s33418_s1 + $0x1240] sm:$0xff] %v25671_v8  ;;  %v25681_v18 = vld [vmem:[%s33417_s0 + $0x650] sm:$0xff]   ;;  %21510 = vst [vmem:[%s33418_s1 + $0x1250] sm:$0xff] %v25680_v17 }
  0xa9   :  { %v25673_v10 = vld [vmem:[%s33417_s0 + $0x1a40] sm:$0xff]   ;;  %21478 = vst [vmem:[%s33418_s1 + $0x1e40] sm:$0xff] %v25672_v9  ;;  %v25682_v19 = vld [vmem:[%s33417_s0 + $0x1a50] sm:$0xff]   ;;  %21514 = vst [vmem:[%s33418_s1 + $0x1e50] sm:$0xff] %v25681_v18 }
  0xaa   :  { %v25674_v11 = vld [vmem:[%s33417_s0 + $0xe40] sm:$0xff]   ;;  %21482 = vst [vmem:[%s33418_s1 + $0xa40] sm:$0xff] %v25673_v10  ;;  %v25683_v20 = vld [vmem:[%s33417_s0 + $0xe50] sm:$0xff]   ;;  %21518 = vst [vmem:[%s33418_s1 + $0xa50] sm:$0xff] %v25682_v19 }
  0xab   :  { %v25675_v12 = vld [vmem:[%s33417_s0 + $0x240] sm:$0xff]   ;;  %21486 = vst [vmem:[%s33418_s1 + $0x1640] sm:$0xff] %v25674_v11  ;;  %v25684_v21 = vld [vmem:[%s33417_s0 + $0x250] sm:$0xff]   ;;  %21522 = vst [vmem:[%s33418_s1 + $0x1650] sm:$0xff] %v25683_v20 }
  0xac   :  { %21490 = vst [vmem:[%s33418_s1 + $0x2240] sm:$0xff] %v25675_v12  ;;  %v25685_v22 = vld [vmem:[%s33417_s0 + $0x2260] sm:$0xff]   ;;  %21526 = vst [vmem:[%s33418_s1 + $0x2250] sm:$0xff] %v25684_v21  ;;  %v25694_v31 = vld [vmem:[%s33417_s0 + $0x2270] sm:$0xff]  }
  0xad   :  { %v25686_v23 = vld [vmem:[%s33417_s0 + $0x1660] sm:$0xff]   ;;  %21530 = vst [vmem:[%s33418_s1 + $0x260] sm:$0xff] %v25685_v22  ;;  %v25695_v32 = vld [vmem:[%s33417_s0 + $0x1670] sm:$0xff]   ;;  %21566 = vst [vmem:[%s33418_s1 + $0x270] sm:$0xff] %v25694_v31 }
  0xae   :  { %v25687_v24 = vld [vmem:[%s33417_s0 + $0xa60] sm:$0xff]   ;;  %21534 = vst [vmem:[%s33418_s1 + $0xe60] sm:$0xff] %v25686_v23  ;;  %v25696_v33 = vld [vmem:[%s33417_s0 + $0xa70] sm:$0xff]   ;;  %21570 = vst [vmem:[%s33418_s1 + $0xe70] sm:$0xff] %v25695_v32 }
  0xaf   :  { %v25688_v25 = vld [vmem:[%s33417_s0 + $0x1e60] sm:$0xff]   ;;  %21538 = vst [vmem:[%s33418_s1 + $0x1a60] sm:$0xff] %v25687_v24  ;;  %v25697_v34 = vld [vmem:[%s33417_s0 + $0x1e70] sm:$0xff]   ;;  %21574 = vst [vmem:[%s33418_s1 + $0x1a70] sm:$0xff] %v25696_v33 }
  0xb0   :  { %v25689_v26 = vld [vmem:[%s33417_s0 + $0x1260] sm:$0xff]   ;;  %21542 = vst [vmem:[%s33418_s1 + $0x660] sm:$0xff] %v25688_v25  ;;  %v25698_v35 = vld [vmem:[%s33417_s0 + $0x1270] sm:$0xff]   ;;  %21578 = vst [vmem:[%s33418_s1 + $0x670] sm:$0xff] %v25697_v34 }
  0xb1   :  { %v25690_v27 = vld [vmem:[%s33417_s0 + $0x660] sm:$0xff]   ;;  %21546 = vst [vmem:[%s33418_s1 + $0x1260] sm:$0xff] %v25689_v26  ;;  %v25699_v36 = vld [vmem:[%s33417_s0 + $0x670] sm:$0xff]   ;;  %21582 = vst [vmem:[%s33418_s1 + $0x1270] sm:$0xff] %v25698_v35 }
  0xb2   :  { %v25691_v28 = vld [vmem:[%s33417_s0 + $0x1a60] sm:$0xff]   ;;  %21550 = vst [vmem:[%s33418_s1 + $0x1e60] sm:$0xff] %v25690_v27  ;;  %v25700_v37 = vld [vmem:[%s33417_s0 + $0x1a70] sm:$0xff]   ;;  %21586 = vst [vmem:[%s33418_s1 + $0x1e70] sm:$0xff] %v25699_v36 }
  0xb3   :  { %v25692_v29 = vld [vmem:[%s33417_s0 + $0xe60] sm:$0xff]   ;;  %21554 = vst [vmem:[%s33418_s1 + $0xa60] sm:$0xff] %v25691_v28  ;;  %v25701_v38 = vld [vmem:[%s33417_s0 + $0xe70] sm:$0xff]   ;;  %21590 = vst [vmem:[%s33418_s1 + $0xa70] sm:$0xff] %v25700_v37 }
  0xb4   :  { %v25693_v30 = vld [vmem:[%s33417_s0 + $0x260] sm:$0xff]   ;;  %21558 = vst [vmem:[%s33418_s1 + $0x1660] sm:$0xff] %v25692_v29  ;;  %v25702_v39 = vld [vmem:[%s33417_s0 + $0x270] sm:$0xff]   ;;  %21594 = vst [vmem:[%s33418_s1 + $0x1670] sm:$0xff] %v25701_v38 }
  0xb5   :  { %21562 = vst [vmem:[%s33418_s1 + $0x2260] sm:$0xff] %v25693_v30  ;;  %v25703_v40 = vld [vmem:[%s33417_s0 + $0x2280] sm:$0xff]   ;;  %21598 = vst [vmem:[%s33418_s1 + $0x2270] sm:$0xff] %v25702_v39  ;;  %v25712_v49 = vld [vmem:[%s33417_s0 + $0x2290] sm:$0xff]  }
  0xb6   :  { %v25704_v41 = vld [vmem:[%s33417_s0 + $0x1680] sm:$0xff]   ;;  %21602 = vst [vmem:[%s33418_s1 + $0x280] sm:$0xff] %v25703_v40  ;;  %v25713_v50 = vld [vmem:[%s33417_s0 + $0x1690] sm:$0xff]   ;;  %21638 = vst [vmem:[%s33418_s1 + $0x290] sm:$0xff] %v25712_v49 }
  0xb7   :  { %v25705_v42 = vld [vmem:[%s33417_s0 + $0xa80] sm:$0xff]   ;;  %21606 = vst [vmem:[%s33418_s1 + $0xe80] sm:$0xff] %v25704_v41  ;;  %v25714_v51 = vld [vmem:[%s33417_s0 + $0xa90] sm:$0xff]   ;;  %21642 = vst [vmem:[%s33418_s1 + $0xe90] sm:$0xff] %v25713_v50 }
  0xb8   :  { %v25706_v43 = vld [vmem:[%s33417_s0 + $0x1e80] sm:$0xff]   ;;  %21610 = vst [vmem:[%s33418_s1 + $0x1a80] sm:$0xff] %v25705_v42  ;;  %v25715_v52 = vld [vmem:[%s33417_s0 + $0x1e90] sm:$0xff]   ;;  %21646 = vst [vmem:[%s33418_s1 + $0x1a90] sm:$0xff] %v25714_v51 }
  0xb9   :  { %v25707_v44 = vld [vmem:[%s33417_s0 + $0x1280] sm:$0xff]   ;;  %21614 = vst [vmem:[%s33418_s1 + $0x680] sm:$0xff] %v25706_v43  ;;  %v25716_v53 = vld [vmem:[%s33417_s0 + $0x1290] sm:$0xff]   ;;  %21650 = vst [vmem:[%s33418_s1 + $0x690] sm:$0xff] %v25715_v52 }
  0xba   :  { %v25708_v45 = vld [vmem:[%s33417_s0 + $0x680] sm:$0xff]   ;;  %21618 = vst [vmem:[%s33418_s1 + $0x1280] sm:$0xff] %v25707_v44  ;;  %v25717_v54 = vld [vmem:[%s33417_s0 + $0x690] sm:$0xff]   ;;  %21654 = vst [vmem:[%s33418_s1 + $0x1290] sm:$0xff] %v25716_v53 }
  0xbb   :  { %v25709_v46 = vld [vmem:[%s33417_s0 + $0x1a80] sm:$0xff]   ;;  %21622 = vst [vmem:[%s33418_s1 + $0x1e80] sm:$0xff] %v25708_v45  ;;  %v25718_v55 = vld [vmem:[%s33417_s0 + $0x1a90] sm:$0xff]   ;;  %21658 = vst [vmem:[%s33418_s1 + $0x1e90] sm:$0xff] %v25717_v54 }
  0xbc   :  { %v25710_v47 = vld [vmem:[%s33417_s0 + $0xe80] sm:$0xff]   ;;  %21626 = vst [vmem:[%s33418_s1 + $0xa80] sm:$0xff] %v25709_v46  ;;  %v25719_v56 = vld [vmem:[%s33417_s0 + $0xe90] sm:$0xff]   ;;  %21662 = vst [vmem:[%s33418_s1 + $0xa90] sm:$0xff] %v25718_v55 }
  0xbd   :  { %v25711_v48 = vld [vmem:[%s33417_s0 + $0x280] sm:$0xff]   ;;  %21630 = vst [vmem:[%s33418_s1 + $0x1680] sm:$0xff] %v25710_v47  ;;  %v25720_v57 = vld [vmem:[%s33417_s0 + $0x290] sm:$0xff]   ;;  %21666 = vst [vmem:[%s33418_s1 + $0x1690] sm:$0xff] %v25719_v56 }
  0xbe   :  { %21634 = vst [vmem:[%s33418_s1 + $0x2280] sm:$0xff] %v25711_v48  ;;  %v25721_v58 = vld [vmem:[%s33417_s0 + $0x22a0] sm:$0xff]   ;;  %21670 = vst [vmem:[%s33418_s1 + $0x2290] sm:$0xff] %v25720_v57  ;;  %v25730_v3 = vld [vmem:[%s33417_s0 + $0x22b0] sm:$0xff]  }
  0xbf   :  { %v25722_v59 = vld [vmem:[%s33417_s0 + $0x16a0] sm:$0xff]   ;;  %21674 = vst [vmem:[%s33418_s1 + $0x2a0] sm:$0xff] %v25721_v58  ;;  %v25731_v4 = vld [vmem:[%s33417_s0 + $0x16b0] sm:$0xff]   ;;  %21710 = vst [vmem:[%s33418_s1 + $0x2b0] sm:$0xff] %v25730_v3 }
  0xc0   :  { %v25723_v60 = vld [vmem:[%s33417_s0 + $0xaa0] sm:$0xff]   ;;  %21678 = vst [vmem:[%s33418_s1 + $0xea0] sm:$0xff] %v25722_v59  ;;  %v25732_v5 = vld [vmem:[%s33417_s0 + $0xab0] sm:$0xff]   ;;  %21714 = vst [vmem:[%s33418_s1 + $0xeb0] sm:$0xff] %v25731_v4 }
  0xc1   :  { %v25724_v61 = vld [vmem:[%s33417_s0 + $0x1ea0] sm:$0xff]   ;;  %21682 = vst [vmem:[%s33418_s1 + $0x1aa0] sm:$0xff] %v25723_v60  ;;  %v25733_v6 = vld [vmem:[%s33417_s0 + $0x1eb0] sm:$0xff]   ;;  %21718 = vst [vmem:[%s33418_s1 + $0x1ab0] sm:$0xff] %v25732_v5 }
  0xc2   :  { %v25725_v62 = vld [vmem:[%s33417_s0 + $0x12a0] sm:$0xff]   ;;  %21686 = vst [vmem:[%s33418_s1 + $0x6a0] sm:$0xff] %v25724_v61  ;;  %v25734_v7 = vld [vmem:[%s33417_s0 + $0x12b0] sm:$0xff]   ;;  %21722 = vst [vmem:[%s33418_s1 + $0x6b0] sm:$0xff] %v25733_v6 }
  0xc3   :  { %v25726_v63 = vld [vmem:[%s33417_s0 + $0x6a0] sm:$0xff]   ;;  %21690 = vst [vmem:[%s33418_s1 + $0x12a0] sm:$0xff] %v25725_v62  ;;  %v25735_v8 = vld [vmem:[%s33417_s0 + $0x6b0] sm:$0xff]   ;;  %21726 = vst [vmem:[%s33418_s1 + $0x12b0] sm:$0xff] %v25734_v7 }
  0xc4   :  { %v25727_v0 = vld [vmem:[%s33417_s0 + $0x1aa0] sm:$0xff]   ;;  %21694 = vst [vmem:[%s33418_s1 + $0x1ea0] sm:$0xff] %v25726_v63  ;;  %v25736_v9 = vld [vmem:[%s33417_s0 + $0x1ab0] sm:$0xff]   ;;  %21730 = vst [vmem:[%s33418_s1 + $0x1eb0] sm:$0xff] %v25735_v8 }
  0xc5   :  { %v25728_v1 = vld [vmem:[%s33417_s0 + $0xea0] sm:$0xff]   ;;  %21698 = vst [vmem:[%s33418_s1 + $0xaa0] sm:$0xff] %v25727_v0  ;;  %v25737_v10 = vld [vmem:[%s33417_s0 + $0xeb0] sm:$0xff]   ;;  %21734 = vst [vmem:[%s33418_s1 + $0xab0] sm:$0xff] %v25736_v9 }
  0xc6   :  { %v25729_v2 = vld [vmem:[%s33417_s0 + $0x2a0] sm:$0xff]   ;;  %21702 = vst [vmem:[%s33418_s1 + $0x16a0] sm:$0xff] %v25728_v1  ;;  %v25738_v11 = vld [vmem:[%s33417_s0 + $0x2b0] sm:$0xff]   ;;  %21738 = vst [vmem:[%s33418_s1 + $0x16b0] sm:$0xff] %v25737_v10 }
  0xc7   :  { %21706 = vst [vmem:[%s33418_s1 + $0x22a0] sm:$0xff] %v25729_v2  ;;  %v25739_v12 = vld [vmem:[%s33417_s0 + $0x22c0] sm:$0xff]   ;;  %21742 = vst [vmem:[%s33418_s1 + $0x22b0] sm:$0xff] %v25738_v11  ;;  %v25748_v21 = vld [vmem:[%s33417_s0 + $0x22d0] sm:$0xff]  }
  0xc8   :  { %v25740_v13 = vld [vmem:[%s33417_s0 + $0x16c0] sm:$0xff]   ;;  %21746 = vst [vmem:[%s33418_s1 + $0x2c0] sm:$0xff] %v25739_v12  ;;  %v25749_v22 = vld [vmem:[%s33417_s0 + $0x16d0] sm:$0xff]   ;;  %21782 = vst [vmem:[%s33418_s1 + $0x2d0] sm:$0xff] %v25748_v21 }
  0xc9   :  { %v25741_v14 = vld [vmem:[%s33417_s0 + $0xac0] sm:$0xff]   ;;  %21750 = vst [vmem:[%s33418_s1 + $0xec0] sm:$0xff] %v25740_v13  ;;  %v25750_v23 = vld [vmem:[%s33417_s0 + $0xad0] sm:$0xff]   ;;  %21786 = vst [vmem:[%s33418_s1 + $0xed0] sm:$0xff] %v25749_v22 }
  0xca   :  { %v25742_v15 = vld [vmem:[%s33417_s0 + $0x1ec0] sm:$0xff]   ;;  %21754 = vst [vmem:[%s33418_s1 + $0x1ac0] sm:$0xff] %v25741_v14  ;;  %v25751_v24 = vld [vmem:[%s33417_s0 + $0x1ed0] sm:$0xff]   ;;  %21790 = vst [vmem:[%s33418_s1 + $0x1ad0] sm:$0xff] %v25750_v23 }
  0xcb   :  { %v25743_v16 = vld [vmem:[%s33417_s0 + $0x12c0] sm:$0xff]   ;;  %21758 = vst [vmem:[%s33418_s1 + $0x6c0] sm:$0xff] %v25742_v15  ;;  %v25752_v25 = vld [vmem:[%s33417_s0 + $0x12d0] sm:$0xff]   ;;  %21794 = vst [vmem:[%s33418_s1 + $0x6d0] sm:$0xff] %v25751_v24 }
  0xcc   :  { %v25744_v17 = vld [vmem:[%s33417_s0 + $0x6c0] sm:$0xff]   ;;  %21762 = vst [vmem:[%s33418_s1 + $0x12c0] sm:$0xff] %v25743_v16  ;;  %v25753_v26 = vld [vmem:[%s33417_s0 + $0x6d0] sm:$0xff]   ;;  %21798 = vst [vmem:[%s33418_s1 + $0x12d0] sm:$0xff] %v25752_v25 }
  0xcd   :  { %v25745_v18 = vld [vmem:[%s33417_s0 + $0x1ac0] sm:$0xff]   ;;  %21766 = vst [vmem:[%s33418_s1 + $0x1ec0] sm:$0xff] %v25744_v17  ;;  %v25754_v27 = vld [vmem:[%s33417_s0 + $0x1ad0] sm:$0xff]   ;;  %21802 = vst [vmem:[%s33418_s1 + $0x1ed0] sm:$0xff] %v25753_v26 }
  0xce   :  { %v25746_v19 = vld [vmem:[%s33417_s0 + $0xec0] sm:$0xff]   ;;  %21770 = vst [vmem:[%s33418_s1 + $0xac0] sm:$0xff] %v25745_v18  ;;  %v25755_v28 = vld [vmem:[%s33417_s0 + $0xed0] sm:$0xff]   ;;  %21806 = vst [vmem:[%s33418_s1 + $0xad0] sm:$0xff] %v25754_v27 }
  0xcf   :  { %v25747_v20 = vld [vmem:[%s33417_s0 + $0x2c0] sm:$0xff]   ;;  %21774 = vst [vmem:[%s33418_s1 + $0x16c0] sm:$0xff] %v25746_v19  ;;  %v25756_v29 = vld [vmem:[%s33417_s0 + $0x2d0] sm:$0xff]   ;;  %21810 = vst [vmem:[%s33418_s1 + $0x16d0] sm:$0xff] %v25755_v28 }
  0xd0   :  { %21778 = vst [vmem:[%s33418_s1 + $0x22c0] sm:$0xff] %v25747_v20  ;;  %v25757_v30 = vld [vmem:[%s33417_s0 + $0x22e0] sm:$0xff]   ;;  %21814 = vst [vmem:[%s33418_s1 + $0x22d0] sm:$0xff] %v25756_v29  ;;  %v25766_v39 = vld [vmem:[%s33417_s0 + $0x22f0] sm:$0xff]  }
  0xd1   :  { %v25758_v31 = vld [vmem:[%s33417_s0 + $0x16e0] sm:$0xff]   ;;  %21818 = vst [vmem:[%s33418_s1 + $0x2e0] sm:$0xff] %v25757_v30  ;;  %v25767_v40 = vld [vmem:[%s33417_s0 + $0x16f0] sm:$0xff]   ;;  %21854 = vst [vmem:[%s33418_s1 + $0x2f0] sm:$0xff] %v25766_v39 }
  0xd2   :  { %v25759_v32 = vld [vmem:[%s33417_s0 + $0xae0] sm:$0xff]   ;;  %21822 = vst [vmem:[%s33418_s1 + $0xee0] sm:$0xff] %v25758_v31  ;;  %v25768_v41 = vld [vmem:[%s33417_s0 + $0xaf0] sm:$0xff]   ;;  %21858 = vst [vmem:[%s33418_s1 + $0xef0] sm:$0xff] %v25767_v40 }
  0xd3   :  { %v25760_v33 = vld [vmem:[%s33417_s0 + $0x1ee0] sm:$0xff]   ;;  %21826 = vst [vmem:[%s33418_s1 + $0x1ae0] sm:$0xff] %v25759_v32  ;;  %v25769_v42 = vld [vmem:[%s33417_s0 + $0x1ef0] sm:$0xff]   ;;  %21862 = vst [vmem:[%s33418_s1 + $0x1af0] sm:$0xff] %v25768_v41 }
  0xd4   :  { %v25761_v34 = vld [vmem:[%s33417_s0 + $0x12e0] sm:$0xff]   ;;  %21830 = vst [vmem:[%s33418_s1 + $0x6e0] sm:$0xff] %v25760_v33  ;;  %v25770_v43 = vld [vmem:[%s33417_s0 + $0x12f0] sm:$0xff]   ;;  %21866 = vst [vmem:[%s33418_s1 + $0x6f0] sm:$0xff] %v25769_v42 }
  0xd5   :  { %v25762_v35 = vld [vmem:[%s33417_s0 + $0x6e0] sm:$0xff]   ;;  %21834 = vst [vmem:[%s33418_s1 + $0x12e0] sm:$0xff] %v25761_v34  ;;  %v25771_v44 = vld [vmem:[%s33417_s0 + $0x6f0] sm:$0xff]   ;;  %21870 = vst [vmem:[%s33418_s1 + $0x12f0] sm:$0xff] %v25770_v43 }
  0xd6   :  { %v25763_v36 = vld [vmem:[%s33417_s0 + $0x1ae0] sm:$0xff]   ;;  %21838 = vst [vmem:[%s33418_s1 + $0x1ee0] sm:$0xff] %v25762_v35  ;;  %v25772_v45 = vld [vmem:[%s33417_s0 + $0x1af0] sm:$0xff]   ;;  %21874 = vst [vmem:[%s33418_s1 + $0x1ef0] sm:$0xff] %v25771_v44 }
  0xd7   :  { %v25764_v37 = vld [vmem:[%s33417_s0 + $0xee0] sm:$0xff]   ;;  %21842 = vst [vmem:[%s33418_s1 + $0xae0] sm:$0xff] %v25763_v36  ;;  %v25773_v46 = vld [vmem:[%s33417_s0 + $0xef0] sm:$0xff]   ;;  %21878 = vst [vmem:[%s33418_s1 + $0xaf0] sm:$0xff] %v25772_v45 }
  0xd8   :  { %v25765_v38 = vld [vmem:[%s33417_s0 + $0x2e0] sm:$0xff]   ;;  %21846 = vst [vmem:[%s33418_s1 + $0x16e0] sm:$0xff] %v25764_v37  ;;  %v25774_v47 = vld [vmem:[%s33417_s0 + $0x2f0] sm:$0xff]   ;;  %21882 = vst [vmem:[%s33418_s1 + $0x16f0] sm:$0xff] %v25773_v46 }
  0xd9   :  { %21850 = vst [vmem:[%s33418_s1 + $0x22e0] sm:$0xff] %v25765_v38  ;;  %v25775_v48 = vld [vmem:[%s33417_s0 + $0x2300] sm:$0xff]   ;;  %21886 = vst [vmem:[%s33418_s1 + $0x22f0] sm:$0xff] %v25774_v47  ;;  %v25784_v57 = vld [vmem:[%s33417_s0 + $0x2310] sm:$0xff]  }
  0xda   :  { %v25776_v49 = vld [vmem:[%s33417_s0 + $0x1700] sm:$0xff]   ;;  %21890 = vst [vmem:[%s33418_s1 + $0x300] sm:$0xff] %v25775_v48  ;;  %v25785_v58 = vld [vmem:[%s33417_s0 + $0x1710] sm:$0xff]   ;;  %21926 = vst [vmem:[%s33418_s1 + $0x310] sm:$0xff] %v25784_v57 }
  0xdb   :  { %v25777_v50 = vld [vmem:[%s33417_s0 + $0xb00] sm:$0xff]   ;;  %21894 = vst [vmem:[%s33418_s1 + $0xf00] sm:$0xff] %v25776_v49  ;;  %v25786_v59 = vld [vmem:[%s33417_s0 + $0xb10] sm:$0xff]   ;;  %21930 = vst [vmem:[%s33418_s1 + $0xf10] sm:$0xff] %v25785_v58 }
  0xdc   :  { %v25778_v51 = vld [vmem:[%s33417_s0 + $0x1f00] sm:$0xff]   ;;  %21898 = vst [vmem:[%s33418_s1 + $0x1b00] sm:$0xff] %v25777_v50  ;;  %v25787_v60 = vld [vmem:[%s33417_s0 + $0x1f10] sm:$0xff]   ;;  %21934 = vst [vmem:[%s33418_s1 + $0x1b10] sm:$0xff] %v25786_v59 }
  0xdd   :  { %v25779_v52 = vld [vmem:[%s33417_s0 + $0x1300] sm:$0xff]   ;;  %21902 = vst [vmem:[%s33418_s1 + $0x700] sm:$0xff] %v25778_v51  ;;  %v25788_v61 = vld [vmem:[%s33417_s0 + $0x1310] sm:$0xff]   ;;  %21938 = vst [vmem:[%s33418_s1 + $0x710] sm:$0xff] %v25787_v60 }
  0xde   :  { %v25780_v53 = vld [vmem:[%s33417_s0 + $0x700] sm:$0xff]   ;;  %21906 = vst [vmem:[%s33418_s1 + $0x1300] sm:$0xff] %v25779_v52  ;;  %v25789_v62 = vld [vmem:[%s33417_s0 + $0x710] sm:$0xff]   ;;  %21942 = vst [vmem:[%s33418_s1 + $0x1310] sm:$0xff] %v25788_v61 }
  0xdf   :  { %v25781_v54 = vld [vmem:[%s33417_s0 + $0x1b00] sm:$0xff]   ;;  %21910 = vst [vmem:[%s33418_s1 + $0x1f00] sm:$0xff] %v25780_v53  ;;  %v25790_v63 = vld [vmem:[%s33417_s0 + $0x1b10] sm:$0xff]   ;;  %21946 = vst [vmem:[%s33418_s1 + $0x1f10] sm:$0xff] %v25789_v62 }
  0xe0   :  { %v25782_v55 = vld [vmem:[%s33417_s0 + $0xf00] sm:$0xff]   ;;  %21914 = vst [vmem:[%s33418_s1 + $0xb00] sm:$0xff] %v25781_v54  ;;  %v25791_v0 = vld [vmem:[%s33417_s0 + $0xf10] sm:$0xff]   ;;  %21950 = vst [vmem:[%s33418_s1 + $0xb10] sm:$0xff] %v25790_v63 }
  0xe1   :  { %v25783_v56 = vld [vmem:[%s33417_s0 + $0x300] sm:$0xff]   ;;  %21918 = vst [vmem:[%s33418_s1 + $0x1700] sm:$0xff] %v25782_v55  ;;  %v25792_v1 = vld [vmem:[%s33417_s0 + $0x310] sm:$0xff]   ;;  %21954 = vst [vmem:[%s33418_s1 + $0x1710] sm:$0xff] %v25791_v0 }
  0xe2   :  { %21922 = vst [vmem:[%s33418_s1 + $0x2300] sm:$0xff] %v25783_v56  ;;  %v25793_v2 = vld [vmem:[%s33417_s0 + $0x2320] sm:$0xff]   ;;  %21958 = vst [vmem:[%s33418_s1 + $0x2310] sm:$0xff] %v25792_v1  ;;  %v25802_v11 = vld [vmem:[%s33417_s0 + $0x2330] sm:$0xff]  }
  0xe3   :  { %v25794_v3 = vld [vmem:[%s33417_s0 + $0x1720] sm:$0xff]   ;;  %21962 = vst [vmem:[%s33418_s1 + $0x320] sm:$0xff] %v25793_v2  ;;  %v25803_v12 = vld [vmem:[%s33417_s0 + $0x1730] sm:$0xff]   ;;  %21998 = vst [vmem:[%s33418_s1 + $0x330] sm:$0xff] %v25802_v11 }
  0xe4   :  { %v25795_v4 = vld [vmem:[%s33417_s0 + $0xb20] sm:$0xff]   ;;  %21966 = vst [vmem:[%s33418_s1 + $0xf20] sm:$0xff] %v25794_v3  ;;  %v25804_v13 = vld [vmem:[%s33417_s0 + $0xb30] sm:$0xff]   ;;  %22002 = vst [vmem:[%s33418_s1 + $0xf30] sm:$0xff] %v25803_v12 }
  0xe5   :  { %v25796_v5 = vld [vmem:[%s33417_s0 + $0x1f20] sm:$0xff]   ;;  %21970 = vst [vmem:[%s33418_s1 + $0x1b20] sm:$0xff] %v25795_v4  ;;  %v25805_v14 = vld [vmem:[%s33417_s0 + $0x1f30] sm:$0xff]   ;;  %22006 = vst [vmem:[%s33418_s1 + $0x1b30] sm:$0xff] %v25804_v13 }
  0xe6   :  { %v25797_v6 = vld [vmem:[%s33417_s0 + $0x1320] sm:$0xff]   ;;  %21974 = vst [vmem:[%s33418_s1 + $0x720] sm:$0xff] %v25796_v5  ;;  %v25806_v15 = vld [vmem:[%s33417_s0 + $0x1330] sm:$0xff]   ;;  %22010 = vst [vmem:[%s33418_s1 + $0x730] sm:$0xff] %v25805_v14 }
  0xe7   :  { %v25798_v7 = vld [vmem:[%s33417_s0 + $0x720] sm:$0xff]   ;;  %21978 = vst [vmem:[%s33418_s1 + $0x1320] sm:$0xff] %v25797_v6  ;;  %v25807_v16 = vld [vmem:[%s33417_s0 + $0x730] sm:$0xff]   ;;  %22014 = vst [vmem:[%s33418_s1 + $0x1330] sm:$0xff] %v25806_v15 }
  0xe8   :  { %v25799_v8 = vld [vmem:[%s33417_s0 + $0x1b20] sm:$0xff]   ;;  %21982 = vst [vmem:[%s33418_s1 + $0x1f20] sm:$0xff] %v25798_v7  ;;  %v25808_v17 = vld [vmem:[%s33417_s0 + $0x1b30] sm:$0xff]   ;;  %22018 = vst [vmem:[%s33418_s1 + $0x1f30] sm:$0xff] %v25807_v16 }
  0xe9   :  { %v25800_v9 = vld [vmem:[%s33417_s0 + $0xf20] sm:$0xff]   ;;  %21986 = vst [vmem:[%s33418_s1 + $0xb20] sm:$0xff] %v25799_v8  ;;  %v25809_v18 = vld [vmem:[%s33417_s0 + $0xf30] sm:$0xff]   ;;  %22022 = vst [vmem:[%s33418_s1 + $0xb30] sm:$0xff] %v25808_v17 }
  0xea   :  { %v25801_v10 = vld [vmem:[%s33417_s0 + $0x320] sm:$0xff]   ;;  %21990 = vst [vmem:[%s33418_s1 + $0x1720] sm:$0xff] %v25800_v9  ;;  %v25810_v19 = vld [vmem:[%s33417_s0 + $0x330] sm:$0xff]   ;;  %22026 = vst [vmem:[%s33418_s1 + $0x1730] sm:$0xff] %v25809_v18 }
  0xeb   :  { %21994 = vst [vmem:[%s33418_s1 + $0x2320] sm:$0xff] %v25801_v10  ;;  %v25811_v20 = vld [vmem:[%s33417_s0 + $0x2340] sm:$0xff]   ;;  %22030 = vst [vmem:[%s33418_s1 + $0x2330] sm:$0xff] %v25810_v19  ;;  %v25820_v29 = vld [vmem:[%s33417_s0 + $0x2350] sm:$0xff]  }
  0xec   :  { %v25812_v21 = vld [vmem:[%s33417_s0 + $0x1740] sm:$0xff]   ;;  %22034 = vst [vmem:[%s33418_s1 + $0x340] sm:$0xff] %v25811_v20  ;;  %v25821_v30 = vld [vmem:[%s33417_s0 + $0x1750] sm:$0xff]   ;;  %22070 = vst [vmem:[%s33418_s1 + $0x350] sm:$0xff] %v25820_v29 }
  0xed   :  { %v25813_v22 = vld [vmem:[%s33417_s0 + $0xb40] sm:$0xff]   ;;  %22038 = vst [vmem:[%s33418_s1 + $0xf40] sm:$0xff] %v25812_v21  ;;  %v25822_v31 = vld [vmem:[%s33417_s0 + $0xb50] sm:$0xff]   ;;  %22074 = vst [vmem:[%s33418_s1 + $0xf50] sm:$0xff] %v25821_v30 }
  0xee   :  { %v25814_v23 = vld [vmem:[%s33417_s0 + $0x1f40] sm:$0xff]   ;;  %22042 = vst [vmem:[%s33418_s1 + $0x1b40] sm:$0xff] %v25813_v22  ;;  %v25823_v32 = vld [vmem:[%s33417_s0 + $0x1f50] sm:$0xff]   ;;  %22078 = vst [vmem:[%s33418_s1 + $0x1b50] sm:$0xff] %v25822_v31 }
  0xef   :  { %v25815_v24 = vld [vmem:[%s33417_s0 + $0x1340] sm:$0xff]   ;;  %22046 = vst [vmem:[%s33418_s1 + $0x740] sm:$0xff] %v25814_v23  ;;  %v25824_v33 = vld [vmem:[%s33417_s0 + $0x1350] sm:$0xff]   ;;  %22082 = vst [vmem:[%s33418_s1 + $0x750] sm:$0xff] %v25823_v32 }
  0xf0   :  { %v25816_v25 = vld [vmem:[%s33417_s0 + $0x740] sm:$0xff]   ;;  %22050 = vst [vmem:[%s33418_s1 + $0x1340] sm:$0xff] %v25815_v24  ;;  %v25825_v34 = vld [vmem:[%s33417_s0 + $0x750] sm:$0xff]   ;;  %22086 = vst [vmem:[%s33418_s1 + $0x1350] sm:$0xff] %v25824_v33 }
  0xf1   :  { %v25817_v26 = vld [vmem:[%s33417_s0 + $0x1b40] sm:$0xff]   ;;  %22054 = vst [vmem:[%s33418_s1 + $0x1f40] sm:$0xff] %v25816_v25  ;;  %v25826_v35 = vld [vmem:[%s33417_s0 + $0x1b50] sm:$0xff]   ;;  %22090 = vst [vmem:[%s33418_s1 + $0x1f50] sm:$0xff] %v25825_v34 }
  0xf2   :  { %v25818_v27 = vld [vmem:[%s33417_s0 + $0xf40] sm:$0xff]   ;;  %22058 = vst [vmem:[%s33418_s1 + $0xb40] sm:$0xff] %v25817_v26  ;;  %v25827_v36 = vld [vmem:[%s33417_s0 + $0xf50] sm:$0xff]   ;;  %22094 = vst [vmem:[%s33418_s1 + $0xb50] sm:$0xff] %v25826_v35 }
  0xf3   :  { %v25819_v28 = vld [vmem:[%s33417_s0 + $0x340] sm:$0xff]   ;;  %22062 = vst [vmem:[%s33418_s1 + $0x1740] sm:$0xff] %v25818_v27  ;;  %v25828_v37 = vld [vmem:[%s33417_s0 + $0x350] sm:$0xff]   ;;  %22098 = vst [vmem:[%s33418_s1 + $0x1750] sm:$0xff] %v25827_v36 }
  0xf4   :  { %22066 = vst [vmem:[%s33418_s1 + $0x2340] sm:$0xff] %v25819_v28  ;;  %v25829_v38 = vld [vmem:[%s33417_s0 + $0x2360] sm:$0xff]   ;;  %22102 = vst [vmem:[%s33418_s1 + $0x2350] sm:$0xff] %v25828_v37  ;;  %v25838_v47 = vld [vmem:[%s33417_s0 + $0x2370] sm:$0xff]  }
  0xf5   :  { %v25830_v39 = vld [vmem:[%s33417_s0 + $0x1760] sm:$0xff]   ;;  %22106 = vst [vmem:[%s33418_s1 + $0x360] sm:$0xff] %v25829_v38  ;;  %v25839_v48 = vld [vmem:[%s33417_s0 + $0x1770] sm:$0xff]   ;;  %22142 = vst [vmem:[%s33418_s1 + $0x370] sm:$0xff] %v25838_v47 }
  0xf6   :  { %v25831_v40 = vld [vmem:[%s33417_s0 + $0xb60] sm:$0xff]   ;;  %22110 = vst [vmem:[%s33418_s1 + $0xf60] sm:$0xff] %v25830_v39  ;;  %v25840_v49 = vld [vmem:[%s33417_s0 + $0xb70] sm:$0xff]   ;;  %22146 = vst [vmem:[%s33418_s1 + $0xf70] sm:$0xff] %v25839_v48 }
  0xf7   :  { %v25832_v41 = vld [vmem:[%s33417_s0 + $0x1f60] sm:$0xff]   ;;  %22114 = vst [vmem:[%s33418_s1 + $0x1b60] sm:$0xff] %v25831_v40  ;;  %v25841_v50 = vld [vmem:[%s33417_s0 + $0x1f70] sm:$0xff]   ;;  %22150 = vst [vmem:[%s33418_s1 + $0x1b70] sm:$0xff] %v25840_v49 }
  0xf8   :  { %v25833_v42 = vld [vmem:[%s33417_s0 + $0x1360] sm:$0xff]   ;;  %22118 = vst [vmem:[%s33418_s1 + $0x760] sm:$0xff] %v25832_v41  ;;  %v25842_v51 = vld [vmem:[%s33417_s0 + $0x1370] sm:$0xff]   ;;  %22154 = vst [vmem:[%s33418_s1 + $0x770] sm:$0xff] %v25841_v50 }
  0xf9   :  { %v25834_v43 = vld [vmem:[%s33417_s0 + $0x760] sm:$0xff]   ;;  %22122 = vst [vmem:[%s33418_s1 + $0x1360] sm:$0xff] %v25833_v42  ;;  %v25843_v52 = vld [vmem:[%s33417_s0 + $0x770] sm:$0xff]   ;;  %22158 = vst [vmem:[%s33418_s1 + $0x1370] sm:$0xff] %v25842_v51 }
  0xfa   :  { %v25835_v44 = vld [vmem:[%s33417_s0 + $0x1b60] sm:$0xff]   ;;  %22126 = vst [vmem:[%s33418_s1 + $0x1f60] sm:$0xff] %v25834_v43  ;;  %v25844_v53 = vld [vmem:[%s33417_s0 + $0x1b70] sm:$0xff]   ;;  %22162 = vst [vmem:[%s33418_s1 + $0x1f70] sm:$0xff] %v25843_v52 }
  0xfb   :  { %v25836_v45 = vld [vmem:[%s33417_s0 + $0xf60] sm:$0xff]   ;;  %22130 = vst [vmem:[%s33418_s1 + $0xb60] sm:$0xff] %v25835_v44  ;;  %v25845_v54 = vld [vmem:[%s33417_s0 + $0xf70] sm:$0xff]   ;;  %22166 = vst [vmem:[%s33418_s1 + $0xb70] sm:$0xff] %v25844_v53 }
  0xfc   :  { %v25837_v46 = vld [vmem:[%s33417_s0 + $0x360] sm:$0xff]   ;;  %22134 = vst [vmem:[%s33418_s1 + $0x1760] sm:$0xff] %v25836_v45  ;;  %v25846_v55 = vld [vmem:[%s33417_s0 + $0x370] sm:$0xff]   ;;  %22170 = vst [vmem:[%s33418_s1 + $0x1770] sm:$0xff] %v25845_v54 }
  0xfd   :  { %22138 = vst [vmem:[%s33418_s1 + $0x2360] sm:$0xff] %v25837_v46  ;;  %v25847_v56 = vld [vmem:[%s33417_s0 + $0x2380] sm:$0xff]   ;;  %22174 = vst [vmem:[%s33418_s1 + $0x2370] sm:$0xff] %v25846_v55  ;;  %v25856_v1 = vld [vmem:[%s33417_s0 + $0x2390] sm:$0xff]  }
  0xfe   :  { %v25848_v57 = vld [vmem:[%s33417_s0 + $0x1780] sm:$0xff]   ;;  %22178 = vst [vmem:[%s33418_s1 + $0x380] sm:$0xff] %v25847_v56  ;;  %v25857_v2 = vld [vmem:[%s33417_s0 + $0x1790] sm:$0xff]   ;;  %22214 = vst [vmem:[%s33418_s1 + $0x390] sm:$0xff] %v25856_v1 }
  0xff   :  { %v25849_v58 = vld [vmem:[%s33417_s0 + $0xb80] sm:$0xff]   ;;  %22182 = vst [vmem:[%s33418_s1 + $0xf80] sm:$0xff] %v25848_v57  ;;  %v25858_v3 = vld [vmem:[%s33417_s0 + $0xb90] sm:$0xff]   ;;  %22218 = vst [vmem:[%s33418_s1 + $0xf90] sm:$0xff] %v25857_v2 }
 0x100   :  { %v25850_v59 = vld [vmem:[%s33417_s0 + $0x1f80] sm:$0xff]   ;;  %22186 = vst [vmem:[%s33418_s1 + $0x1b80] sm:$0xff] %v25849_v58  ;;  %v25859_v4 = vld [vmem:[%s33417_s0 + $0x1f90] sm:$0xff]   ;;  %22222 = vst [vmem:[%s33418_s1 + $0x1b90] sm:$0xff] %v25858_v3 }
 0x101   :  { %v25851_v60 = vld [vmem:[%s33417_s0 + $0x1380] sm:$0xff]   ;;  %22190 = vst [vmem:[%s33418_s1 + $0x780] sm:$0xff] %v25850_v59  ;;  %v25860_v5 = vld [vmem:[%s33417_s0 + $0x1390] sm:$0xff]   ;;  %22226 = vst [vmem:[%s33418_s1 + $0x790] sm:$0xff] %v25859_v4 }
 0x102   :  { %v25852_v61 = vld [vmem:[%s33417_s0 + $0x780] sm:$0xff]   ;;  %22194 = vst [vmem:[%s33418_s1 + $0x1380] sm:$0xff] %v25851_v60  ;;  %v25861_v6 = vld [vmem:[%s33417_s0 + $0x790] sm:$0xff]   ;;  %22230 = vst [vmem:[%s33418_s1 + $0x1390] sm:$0xff] %v25860_v5 }
 0x103   :  { %v25853_v62 = vld [vmem:[%s33417_s0 + $0x1b80] sm:$0xff]   ;;  %22198 = vst [vmem:[%s33418_s1 + $0x1f80] sm:$0xff] %v25852_v61  ;;  %v25862_v7 = vld [vmem:[%s33417_s0 + $0x1b90] sm:$0xff]   ;;  %22234 = vst [vmem:[%s33418_s1 + $0x1f90] sm:$0xff] %v25861_v6 }
 0x104   :  { %v25854_v63 = vld [vmem:[%s33417_s0 + $0xf80] sm:$0xff]   ;;  %22202 = vst [vmem:[%s33418_s1 + $0xb80] sm:$0xff] %v25853_v62  ;;  %v25863_v8 = vld [vmem:[%s33417_s0 + $0xf90] sm:$0xff]   ;;  %22238 = vst [vmem:[%s33418_s1 + $0xb90] sm:$0xff] %v25862_v7 }
 0x105   :  { %v25855_v0 = vld [vmem:[%s33417_s0 + $0x380] sm:$0xff]   ;;  %22206 = vst [vmem:[%s33418_s1 + $0x1780] sm:$0xff] %v25854_v63  ;;  %v25864_v9 = vld [vmem:[%s33417_s0 + $0x390] sm:$0xff]   ;;  %22242 = vst [vmem:[%s33418_s1 + $0x1790] sm:$0xff] %v25863_v8 }
 0x106   :  { %22210 = vst [vmem:[%s33418_s1 + $0x2380] sm:$0xff] %v25855_v0  ;;  %v25865_v10 = vld [vmem:[%s33417_s0 + $0x23a0] sm:$0xff]   ;;  %22246 = vst [vmem:[%s33418_s1 + $0x2390] sm:$0xff] %v25864_v9  ;;  %v25874_v19 = vld [vmem:[%s33417_s0 + $0x23b0] sm:$0xff]  }
 0x107   :  { %v25866_v11 = vld [vmem:[%s33417_s0 + $0x17a0] sm:$0xff]   ;;  %22250 = vst [vmem:[%s33418_s1 + $0x3a0] sm:$0xff] %v25865_v10  ;;  %v25875_v20 = vld [vmem:[%s33417_s0 + $0x17b0] sm:$0xff]   ;;  %22286 = vst [vmem:[%s33418_s1 + $0x3b0] sm:$0xff] %v25874_v19 }
 0x108   :  { %v25867_v12 = vld [vmem:[%s33417_s0 + $0xba0] sm:$0xff]   ;;  %22254 = vst [vmem:[%s33418_s1 + $0xfa0] sm:$0xff] %v25866_v11  ;;  %v25876_v21 = vld [vmem:[%s33417_s0 + $0xbb0] sm:$0xff]   ;;  %22290 = vst [vmem:[%s33418_s1 + $0xfb0] sm:$0xff] %v25875_v20 }
 0x109   :  { %v25868_v13 = vld [vmem:[%s33417_s0 + $0x1fa0] sm:$0xff]   ;;  %22258 = vst [vmem:[%s33418_s1 + $0x1ba0] sm:$0xff] %v25867_v12  ;;  %v25877_v22 = vld [vmem:[%s33417_s0 + $0x1fb0] sm:$0xff]   ;;  %22294 = vst [vmem:[%s33418_s1 + $0x1bb0] sm:$0xff] %v25876_v21 }
 0x10a   :  { %v25869_v14 = vld [vmem:[%s33417_s0 + $0x13a0] sm:$0xff]   ;;  %22262 = vst [vmem:[%s33418_s1 + $0x7a0] sm:$0xff] %v25868_v13  ;;  %v25878_v23 = vld [vmem:[%s33417_s0 + $0x13b0] sm:$0xff]   ;;  %22298 = vst [vmem:[%s33418_s1 + $0x7b0] sm:$0xff] %v25877_v22 }
 0x10b   :  { %v25870_v15 = vld [vmem:[%s33417_s0 + $0x7a0] sm:$0xff]   ;;  %22266 = vst [vmem:[%s33418_s1 + $0x13a0] sm:$0xff] %v25869_v14  ;;  %v25879_v24 = vld [vmem:[%s33417_s0 + $0x7b0] sm:$0xff]   ;;  %22302 = vst [vmem:[%s33418_s1 + $0x13b0] sm:$0xff] %v25878_v23 }
 0x10c   :  { %v25871_v16 = vld [vmem:[%s33417_s0 + $0x1ba0] sm:$0xff]   ;;  %22270 = vst [vmem:[%s33418_s1 + $0x1fa0] sm:$0xff] %v25870_v15  ;;  %v25880_v25 = vld [vmem:[%s33417_s0 + $0x1bb0] sm:$0xff]   ;;  %22306 = vst [vmem:[%s33418_s1 + $0x1fb0] sm:$0xff] %v25879_v24 }
 0x10d   :  { %v25872_v17 = vld [vmem:[%s33417_s0 + $0xfa0] sm:$0xff]   ;;  %22274 = vst [vmem:[%s33418_s1 + $0xba0] sm:$0xff] %v25871_v16  ;;  %v25881_v26 = vld [vmem:[%s33417_s0 + $0xfb0] sm:$0xff]   ;;  %22310 = vst [vmem:[%s33418_s1 + $0xbb0] sm:$0xff] %v25880_v25 }
 0x10e   :  { %v25873_v18 = vld [vmem:[%s33417_s0 + $0x3a0] sm:$0xff]   ;;  %22278 = vst [vmem:[%s33418_s1 + $0x17a0] sm:$0xff] %v25872_v17  ;;  %v25882_v27 = vld [vmem:[%s33417_s0 + $0x3b0] sm:$0xff]   ;;  %22314 = vst [vmem:[%s33418_s1 + $0x17b0] sm:$0xff] %v25881_v26 }
 0x10f   :  { %22282 = vst [vmem:[%s33418_s1 + $0x23a0] sm:$0xff] %v25873_v18  ;;  %v25883_v28 = vld [vmem:[%s33417_s0 + $0x23c0] sm:$0xff]   ;;  %22318 = vst [vmem:[%s33418_s1 + $0x23b0] sm:$0xff] %v25882_v27  ;;  %v25892_v37 = vld [vmem:[%s33417_s0 + $0x23d0] sm:$0xff]  }
 0x110   :  { %v25884_v29 = vld [vmem:[%s33417_s0 + $0x17c0] sm:$0xff]   ;;  %22322 = vst [vmem:[%s33418_s1 + $0x3c0] sm:$0xff] %v25883_v28  ;;  %v25893_v38 = vld [vmem:[%s33417_s0 + $0x17d0] sm:$0xff]   ;;  %22358 = vst [vmem:[%s33418_s1 + $0x3d0] sm:$0xff] %v25892_v37 }
 0x111   :  { %v25885_v30 = vld [vmem:[%s33417_s0 + $0xbc0] sm:$0xff]   ;;  %22326 = vst [vmem:[%s33418_s1 + $0xfc0] sm:$0xff] %v25884_v29  ;;  %v25894_v39 = vld [vmem:[%s33417_s0 + $0xbd0] sm:$0xff]   ;;  %22362 = vst [vmem:[%s33418_s1 + $0xfd0] sm:$0xff] %v25893_v38 }
 0x112   :  { %v25886_v31 = vld [vmem:[%s33417_s0 + $0x1fc0] sm:$0xff]   ;;  %22330 = vst [vmem:[%s33418_s1 + $0x1bc0] sm:$0xff] %v25885_v30  ;;  %v25895_v40 = vld [vmem:[%s33417_s0 + $0x1fd0] sm:$0xff]   ;;  %22366 = vst [vmem:[%s33418_s1 + $0x1bd0] sm:$0xff] %v25894_v39 }
 0x113   :  { %v25887_v32 = vld [vmem:[%s33417_s0 + $0x13c0] sm:$0xff]   ;;  %22334 = vst [vmem:[%s33418_s1 + $0x7c0] sm:$0xff] %v25886_v31  ;;  %v25896_v41 = vld [vmem:[%s33417_s0 + $0x13d0] sm:$0xff]   ;;  %22370 = vst [vmem:[%s33418_s1 + $0x7d0] sm:$0xff] %v25895_v40 }
 0x114   :  { %v25888_v33 = vld [vmem:[%s33417_s0 + $0x7c0] sm:$0xff]   ;;  %22338 = vst [vmem:[%s33418_s1 + $0x13c0] sm:$0xff] %v25887_v32  ;;  %v25897_v42 = vld [vmem:[%s33417_s0 + $0x7d0] sm:$0xff]   ;;  %22374 = vst [vmem:[%s33418_s1 + $0x13d0] sm:$0xff] %v25896_v41 }
 0x115   :  { %v25889_v34 = vld [vmem:[%s33417_s0 + $0x1bc0] sm:$0xff]   ;;  %22342 = vst [vmem:[%s33418_s1 + $0x1fc0] sm:$0xff] %v25888_v33  ;;  %v25898_v43 = vld [vmem:[%s33417_s0 + $0x1bd0] sm:$0xff]   ;;  %22378 = vst [vmem:[%s33418_s1 + $0x1fd0] sm:$0xff] %v25897_v42 }
 0x116   :  { %v25890_v35 = vld [vmem:[%s33417_s0 + $0xfc0] sm:$0xff]   ;;  %22346 = vst [vmem:[%s33418_s1 + $0xbc0] sm:$0xff] %v25889_v34  ;;  %v25899_v44 = vld [vmem:[%s33417_s0 + $0xfd0] sm:$0xff]   ;;  %22382 = vst [vmem:[%s33418_s1 + $0xbd0] sm:$0xff] %v25898_v43 }
 0x117   :  { %v25891_v36 = vld [vmem:[%s33417_s0 + $0x3c0] sm:$0xff]   ;;  %22350 = vst [vmem:[%s33418_s1 + $0x17c0] sm:$0xff] %v25890_v35  ;;  %v25900_v45 = vld [vmem:[%s33417_s0 + $0x3d0] sm:$0xff]   ;;  %22386 = vst [vmem:[%s33418_s1 + $0x17d0] sm:$0xff] %v25899_v44 }
 0x118   :  { %22354 = vst [vmem:[%s33418_s1 + $0x23c0] sm:$0xff] %v25891_v36  ;;  %v25901_v46 = vld [vmem:[%s33417_s0 + $0x23e0] sm:$0xff]   ;;  %22390 = vst [vmem:[%s33418_s1 + $0x23d0] sm:$0xff] %v25900_v45  ;;  %v25910_v55 = vld [vmem:[%s33417_s0 + $0x23f0] sm:$0xff]  }
 0x119   :  { %v25902_v47 = vld [vmem:[%s33417_s0 + $0x17e0] sm:$0xff]   ;;  %22394 = vst [vmem:[%s33418_s1 + $0x3e0] sm:$0xff] %v25901_v46  ;;  %v25911_v56 = vld [vmem:[%s33417_s0 + $0x17f0] sm:$0xff]   ;;  %22430 = vst [vmem:[%s33418_s1 + $0x3f0] sm:$0xff] %v25910_v55 }
 0x11a   :  { %v25903_v48 = vld [vmem:[%s33417_s0 + $0xbe0] sm:$0xff]   ;;  %22398 = vst [vmem:[%s33418_s1 + $0xfe0] sm:$0xff] %v25902_v47  ;;  %v25912_v57 = vld [vmem:[%s33417_s0 + $0xbf0] sm:$0xff]   ;;  %22434 = vst [vmem:[%s33418_s1 + $0xff0] sm:$0xff] %v25911_v56 }
 0x11b   :  { %v25904_v49 = vld [vmem:[%s33417_s0 + $0x1fe0] sm:$0xff]   ;;  %22402 = vst [vmem:[%s33418_s1 + $0x1be0] sm:$0xff] %v25903_v48  ;;  %v25913_v58 = vld [vmem:[%s33417_s0 + $0x1ff0] sm:$0xff]   ;;  %22438 = vst [vmem:[%s33418_s1 + $0x1bf0] sm:$0xff] %v25912_v57 }
 0x11c   :  { %v25905_v50 = vld [vmem:[%s33417_s0 + $0x13e0] sm:$0xff]   ;;  %22406 = vst [vmem:[%s33418_s1 + $0x7e0] sm:$0xff] %v25904_v49  ;;  %v25914_v59 = vld [vmem:[%s33417_s0 + $0x13f0] sm:$0xff]   ;;  %22442 = vst [vmem:[%s33418_s1 + $0x7f0] sm:$0xff] %v25913_v58 }
 0x11d   :  { %v25906_v51 = vld [vmem:[%s33417_s0 + $0x7e0] sm:$0xff]   ;;  %22410 = vst [vmem:[%s33418_s1 + $0x13e0] sm:$0xff] %v25905_v50  ;;  %v25915_v60 = vld [vmem:[%s33417_s0 + $0x7f0] sm:$0xff]   ;;  %22446 = vst [vmem:[%s33418_s1 + $0x13f0] sm:$0xff] %v25914_v59 }
 0x11e   :  { %v25907_v52 = vld [vmem:[%s33417_s0 + $0x1be0] sm:$0xff]   ;;  %22414 = vst [vmem:[%s33418_s1 + $0x1fe0] sm:$0xff] %v25906_v51  ;;  %v25916_v61 = vld [vmem:[%s33417_s0 + $0x1bf0] sm:$0xff]   ;;  %22450 = vst [vmem:[%s33418_s1 + $0x1ff0] sm:$0xff] %v25915_v60 }
 0x11f   :  { %v25908_v53 = vld [vmem:[%s33417_s0 + $0xfe0] sm:$0xff]   ;;  %22418 = vst [vmem:[%s33418_s1 + $0xbe0] sm:$0xff] %v25907_v52  ;;  %v25917_v62 = vld [vmem:[%s33417_s0 + $0xff0] sm:$0xff]   ;;  %22454 = vst [vmem:[%s33418_s1 + $0xbf0] sm:$0xff] %v25916_v61 }
 0x120   :  { %v25909_v54 = vld [vmem:[%s33417_s0 + $0x3e0] sm:$0xff]   ;;  %22422 = vst [vmem:[%s33418_s1 + $0x17e0] sm:$0xff] %v25908_v53  ;;  %v25918_v63 = vld [vmem:[%s33417_s0 + $0x3f0] sm:$0xff]   ;;  %22458 = vst [vmem:[%s33418_s1 + $0x17f0] sm:$0xff] %v25917_v62 }
 0x121   :  { %22426 = vst [vmem:[%s33418_s1 + $0x23e0] sm:$0xff] %v25909_v54  ;;  %22462 = vst [vmem:[%s33418_s1 + $0x23f0] sm:$0xff] %v25918_v63  ;;  %v25919_v0 = vld [vmem:[%s33417_s0 + $0x2008] sm:$0xff]   ;;  %v25928_v9 = vld [vmem:[%s33417_s0 + $0x2018] sm:$0xff]  }
 0x122   :  { %v25920_v1 = vld [vmem:[%s33417_s0 + $0x1408] sm:$0xff]   ;;  %23042 = vst [vmem:[%s33418_s1 + $0x8] sm:$0xff] %v25919_v0  ;;  %v25929_v10 = vld [vmem:[%s33417_s0 + $0x1418] sm:$0xff]   ;;  %23078 = vst [vmem:[%s33418_s1 + $0x18] sm:$0xff] %v25928_v9 }
 0x123   :  { %v25921_v2 = vld [vmem:[%s33417_s0 + $0x808] sm:$0xff]   ;;  %23046 = vst [vmem:[%s33418_s1 + $0xc08] sm:$0xff] %v25920_v1  ;;  %v25930_v11 = vld [vmem:[%s33417_s0 + $0x818] sm:$0xff]   ;;  %23082 = vst [vmem:[%s33418_s1 + $0xc18] sm:$0xff] %v25929_v10 }
 0x124   :  { %v25922_v3 = vld [vmem:[%s33417_s0 + $0x1c08] sm:$0xff]   ;;  %23050 = vst [vmem:[%s33418_s1 + $0x1808] sm:$0xff] %v25921_v2  ;;  %v25931_v12 = vld [vmem:[%s33417_s0 + $0x1c18] sm:$0xff]   ;;  %23086 = vst [vmem:[%s33418_s1 + $0x1818] sm:$0xff] %v25930_v11 }
 0x125   :  { %v25923_v4 = vld [vmem:[%s33417_s0 + $0x1008] sm:$0xff]   ;;  %23054 = vst [vmem:[%s33418_s1 + $0x408] sm:$0xff] %v25922_v3  ;;  %v25932_v13 = vld [vmem:[%s33417_s0 + $0x1018] sm:$0xff]   ;;  %23090 = vst [vmem:[%s33418_s1 + $0x418] sm:$0xff] %v25931_v12 }
 0x126   :  { %v25924_v5 = vld [vmem:[%s33417_s0 + $0x408] sm:$0xff]   ;;  %23058 = vst [vmem:[%s33418_s1 + $0x1008] sm:$0xff] %v25923_v4  ;;  %v25933_v14 = vld [vmem:[%s33417_s0 + $0x418] sm:$0xff]   ;;  %23094 = vst [vmem:[%s33418_s1 + $0x1018] sm:$0xff] %v25932_v13 }
 0x127   :  { %v25925_v6 = vld [vmem:[%s33417_s0 + $0x1808] sm:$0xff]   ;;  %23062 = vst [vmem:[%s33418_s1 + $0x1c08] sm:$0xff] %v25924_v5  ;;  %v25934_v15 = vld [vmem:[%s33417_s0 + $0x1818] sm:$0xff]   ;;  %23098 = vst [vmem:[%s33418_s1 + $0x1c18] sm:$0xff] %v25933_v14 }
 0x128   :  { %v25926_v7 = vld [vmem:[%s33417_s0 + $0xc08] sm:$0xff]   ;;  %23066 = vst [vmem:[%s33418_s1 + $0x808] sm:$0xff] %v25925_v6  ;;  %v25935_v16 = vld [vmem:[%s33417_s0 + $0xc18] sm:$0xff]   ;;  %23102 = vst [vmem:[%s33418_s1 + $0x818] sm:$0xff] %v25934_v15 }
 0x129   :  { %v25927_v8 = vld [vmem:[%s33417_s0 + $0x8] sm:$0xff]   ;;  %23070 = vst [vmem:[%s33418_s1 + $0x1408] sm:$0xff] %v25926_v7  ;;  %v25936_v17 = vld [vmem:[%s33417_s0 + $0x18] sm:$0xff]   ;;  %23106 = vst [vmem:[%s33418_s1 + $0x1418] sm:$0xff] %v25935_v16 }
 0x12a   :  { %23074 = vst [vmem:[%s33418_s1 + $0x2008] sm:$0xff] %v25927_v8  ;;  %v25937_v18 = vld [vmem:[%s33417_s0 + $0x2028] sm:$0xff]   ;;  %23110 = vst [vmem:[%s33418_s1 + $0x2018] sm:$0xff] %v25936_v17  ;;  %v25946_v27 = vld [vmem:[%s33417_s0 + $0x2038] sm:$0xff]  }
 0x12b   :  { %v25938_v19 = vld [vmem:[%s33417_s0 + $0x1428] sm:$0xff]   ;;  %23114 = vst [vmem:[%s33418_s1 + $0x28] sm:$0xff] %v25937_v18  ;;  %v25947_v28 = vld [vmem:[%s33417_s0 + $0x1438] sm:$0xff]   ;;  %23150 = vst [vmem:[%s33418_s1 + $0x38] sm:$0xff] %v25946_v27 }
 0x12c   :  { %v25939_v20 = vld [vmem:[%s33417_s0 + $0x828] sm:$0xff]   ;;  %23118 = vst [vmem:[%s33418_s1 + $0xc28] sm:$0xff] %v25938_v19  ;;  %v25948_v29 = vld [vmem:[%s33417_s0 + $0x838] sm:$0xff]   ;;  %23154 = vst [vmem:[%s33418_s1 + $0xc38] sm:$0xff] %v25947_v28 }
 0x12d   :  { %v25940_v21 = vld [vmem:[%s33417_s0 + $0x1c28] sm:$0xff]   ;;  %23122 = vst [vmem:[%s33418_s1 + $0x1828] sm:$0xff] %v25939_v20  ;;  %v25949_v30 = vld [vmem:[%s33417_s0 + $0x1c38] sm:$0xff]   ;;  %23158 = vst [vmem:[%s33418_s1 + $0x1838] sm:$0xff] %v25948_v29 }
 0x12e   :  { %v25941_v22 = vld [vmem:[%s33417_s0 + $0x1028] sm:$0xff]   ;;  %23126 = vst [vmem:[%s33418_s1 + $0x428] sm:$0xff] %v25940_v21  ;;  %v25950_v31 = vld [vmem:[%s33417_s0 + $0x1038] sm:$0xff]   ;;  %23162 = vst [vmem:[%s33418_s1 + $0x438] sm:$0xff] %v25949_v30 }
 0x12f   :  { %v25942_v23 = vld [vmem:[%s33417_s0 + $0x428] sm:$0xff]   ;;  %23130 = vst [vmem:[%s33418_s1 + $0x1028] sm:$0xff] %v25941_v22  ;;  %v25951_v32 = vld [vmem:[%s33417_s0 + $0x438] sm:$0xff]   ;;  %23166 = vst [vmem:[%s33418_s1 + $0x1038] sm:$0xff] %v25950_v31 }
 0x130   :  { %v25943_v24 = vld [vmem:[%s33417_s0 + $0x1828] sm:$0xff]   ;;  %23134 = vst [vmem:[%s33418_s1 + $0x1c28] sm:$0xff] %v25942_v23  ;;  %v25952_v33 = vld [vmem:[%s33417_s0 + $0x1838] sm:$0xff]   ;;  %23170 = vst [vmem:[%s33418_s1 + $0x1c38] sm:$0xff] %v25951_v32 }
 0x131   :  { %v25944_v25 = vld [vmem:[%s33417_s0 + $0xc28] sm:$0xff]   ;;  %23138 = vst [vmem:[%s33418_s1 + $0x828] sm:$0xff] %v25943_v24  ;;  %v25953_v34 = vld [vmem:[%s33417_s0 + $0xc38] sm:$0xff]   ;;  %23174 = vst [vmem:[%s33418_s1 + $0x838] sm:$0xff] %v25952_v33 }
 0x132   :  { %v25945_v26 = vld [vmem:[%s33417_s0 + $0x28] sm:$0xff]   ;;  %23142 = vst [vmem:[%s33418_s1 + $0x1428] sm:$0xff] %v25944_v25  ;;  %v25954_v35 = vld [vmem:[%s33417_s0 + $0x38] sm:$0xff]   ;;  %23178 = vst [vmem:[%s33418_s1 + $0x1438] sm:$0xff] %v25953_v34 }
 0x133   :  { %23146 = vst [vmem:[%s33418_s1 + $0x2028] sm:$0xff] %v25945_v26  ;;  %v25955_v36 = vld [vmem:[%s33417_s0 + $0x2048] sm:$0xff]   ;;  %23182 = vst [vmem:[%s33418_s1 + $0x2038] sm:$0xff] %v25954_v35  ;;  %v25964_v45 = vld [vmem:[%s33417_s0 + $0x2058] sm:$0xff]  }
 0x134   :  { %v25956_v37 = vld [vmem:[%s33417_s0 + $0x1448] sm:$0xff]   ;;  %23186 = vst [vmem:[%s33418_s1 + $0x48] sm:$0xff] %v25955_v36  ;;  %v25965_v46 = vld [vmem:[%s33417_s0 + $0x1458] sm:$0xff]   ;;  %23222 = vst [vmem:[%s33418_s1 + $0x58] sm:$0xff] %v25964_v45 }
 0x135   :  { %v25957_v38 = vld [vmem:[%s33417_s0 + $0x848] sm:$0xff]   ;;  %23190 = vst [vmem:[%s33418_s1 + $0xc48] sm:$0xff] %v25956_v37  ;;  %v25966_v47 = vld [vmem:[%s33417_s0 + $0x858] sm:$0xff]   ;;  %23226 = vst [vmem:[%s33418_s1 + $0xc58] sm:$0xff] %v25965_v46 }
 0x136   :  { %v25958_v39 = vld [vmem:[%s33417_s0 + $0x1c48] sm:$0xff]   ;;  %23194 = vst [vmem:[%s33418_s1 + $0x1848] sm:$0xff] %v25957_v38  ;;  %v25967_v48 = vld [vmem:[%s33417_s0 + $0x1c58] sm:$0xff]   ;;  %23230 = vst [vmem:[%s33418_s1 + $0x1858] sm:$0xff] %v25966_v47 }
 0x137   :  { %v25959_v40 = vld [vmem:[%s33417_s0 + $0x1048] sm:$0xff]   ;;  %23198 = vst [vmem:[%s33418_s1 + $0x448] sm:$0xff] %v25958_v39  ;;  %v25968_v49 = vld [vmem:[%s33417_s0 + $0x1058] sm:$0xff]   ;;  %23234 = vst [vmem:[%s33418_s1 + $0x458] sm:$0xff] %v25967_v48 }
 0x138   :  { %v25960_v41 = vld [vmem:[%s33417_s0 + $0x448] sm:$0xff]   ;;  %23202 = vst [vmem:[%s33418_s1 + $0x1048] sm:$0xff] %v25959_v40  ;;  %v25969_v50 = vld [vmem:[%s33417_s0 + $0x458] sm:$0xff]   ;;  %23238 = vst [vmem:[%s33418_s1 + $0x1058] sm:$0xff] %v25968_v49 }
 0x139   :  { %v25961_v42 = vld [vmem:[%s33417_s0 + $0x1848] sm:$0xff]   ;;  %23206 = vst [vmem:[%s33418_s1 + $0x1c48] sm:$0xff] %v25960_v41  ;;  %v25970_v51 = vld [vmem:[%s33417_s0 + $0x1858] sm:$0xff]   ;;  %23242 = vst [vmem:[%s33418_s1 + $0x1c58] sm:$0xff] %v25969_v50 }
 0x13a   :  { %v25962_v43 = vld [vmem:[%s33417_s0 + $0xc48] sm:$0xff]   ;;  %23210 = vst [vmem:[%s33418_s1 + $0x848] sm:$0xff] %v25961_v42  ;;  %v25971_v52 = vld [vmem:[%s33417_s0 + $0xc58] sm:$0xff]   ;;  %23246 = vst [vmem:[%s33418_s1 + $0x858] sm:$0xff] %v25970_v51 }
 0x13b   :  { %v25963_v44 = vld [vmem:[%s33417_s0 + $0x48] sm:$0xff]   ;;  %23214 = vst [vmem:[%s33418_s1 + $0x1448] sm:$0xff] %v25962_v43  ;;  %v25972_v53 = vld [vmem:[%s33417_s0 + $0x58] sm:$0xff]   ;;  %23250 = vst [vmem:[%s33418_s1 + $0x1458] sm:$0xff] %v25971_v52 }
 0x13c   :  { %23218 = vst [vmem:[%s33418_s1 + $0x2048] sm:$0xff] %v25963_v44  ;;  %v25973_v54 = vld [vmem:[%s33417_s0 + $0x2068] sm:$0xff]   ;;  %23254 = vst [vmem:[%s33418_s1 + $0x2058] sm:$0xff] %v25972_v53  ;;  %v25982_v63 = vld [vmem:[%s33417_s0 + $0x2078] sm:$0xff]  }
 0x13d   :  { %v25974_v55 = vld [vmem:[%s33417_s0 + $0x1468] sm:$0xff]   ;;  %23258 = vst [vmem:[%s33418_s1 + $0x68] sm:$0xff] %v25973_v54  ;;  %v25983_v0 = vld [vmem:[%s33417_s0 + $0x1478] sm:$0xff]   ;;  %23294 = vst [vmem:[%s33418_s1 + $0x78] sm:$0xff] %v25982_v63 }
 0x13e   :  { %v25975_v56 = vld [vmem:[%s33417_s0 + $0x868] sm:$0xff]   ;;  %23262 = vst [vmem:[%s33418_s1 + $0xc68] sm:$0xff] %v25974_v55  ;;  %v25984_v1 = vld [vmem:[%s33417_s0 + $0x878] sm:$0xff]   ;;  %23298 = vst [vmem:[%s33418_s1 + $0xc78] sm:$0xff] %v25983_v0 }
 0x13f   :  { %v25976_v57 = vld [vmem:[%s33417_s0 + $0x1c68] sm:$0xff]   ;;  %23266 = vst [vmem:[%s33418_s1 + $0x1868] sm:$0xff] %v25975_v56  ;;  %v25985_v2 = vld [vmem:[%s33417_s0 + $0x1c78] sm:$0xff]   ;;  %23302 = vst [vmem:[%s33418_s1 + $0x1878] sm:$0xff] %v25984_v1 }
 0x140   :  { %v25977_v58 = vld [vmem:[%s33417_s0 + $0x1068] sm:$0xff]   ;;  %23270 = vst [vmem:[%s33418_s1 + $0x468] sm:$0xff] %v25976_v57  ;;  %v25986_v3 = vld [vmem:[%s33417_s0 + $0x1078] sm:$0xff]   ;;  %23306 = vst [vmem:[%s33418_s1 + $0x478] sm:$0xff] %v25985_v2 }
 0x141   :  { %v25978_v59 = vld [vmem:[%s33417_s0 + $0x468] sm:$0xff]   ;;  %23274 = vst [vmem:[%s33418_s1 + $0x1068] sm:$0xff] %v25977_v58  ;;  %v25987_v4 = vld [vmem:[%s33417_s0 + $0x478] sm:$0xff]   ;;  %23310 = vst [vmem:[%s33418_s1 + $0x1078] sm:$0xff] %v25986_v3 }
 0x142   :  { %v25979_v60 = vld [vmem:[%s33417_s0 + $0x1868] sm:$0xff]   ;;  %23278 = vst [vmem:[%s33418_s1 + $0x1c68] sm:$0xff] %v25978_v59  ;;  %v25988_v5 = vld [vmem:[%s33417_s0 + $0x1878] sm:$0xff]   ;;  %23314 = vst [vmem:[%s33418_s1 + $0x1c78] sm:$0xff] %v25987_v4 }
 0x143   :  { %v25980_v61 = vld [vmem:[%s33417_s0 + $0xc68] sm:$0xff]   ;;  %23282 = vst [vmem:[%s33418_s1 + $0x868] sm:$0xff] %v25979_v60  ;;  %v25989_v6 = vld [vmem:[%s33417_s0 + $0xc78] sm:$0xff]   ;;  %23318 = vst [vmem:[%s33418_s1 + $0x878] sm:$0xff] %v25988_v5 }
 0x144   :  { %v25981_v62 = vld [vmem:[%s33417_s0 + $0x68] sm:$0xff]   ;;  %23286 = vst [vmem:[%s33418_s1 + $0x1468] sm:$0xff] %v25980_v61  ;;  %v25990_v7 = vld [vmem:[%s33417_s0 + $0x78] sm:$0xff]   ;;  %23322 = vst [vmem:[%s33418_s1 + $0x1478] sm:$0xff] %v25989_v6 }
 0x145   :  { %23290 = vst [vmem:[%s33418_s1 + $0x2068] sm:$0xff] %v25981_v62  ;;  %v25991_v8 = vld [vmem:[%s33417_s0 + $0x2088] sm:$0xff]   ;;  %23326 = vst [vmem:[%s33418_s1 + $0x2078] sm:$0xff] %v25990_v7  ;;  %v26000_v17 = vld [vmem:[%s33417_s0 + $0x2098] sm:$0xff]  }
 0x146   :  { %v25992_v9 = vld [vmem:[%s33417_s0 + $0x1488] sm:$0xff]   ;;  %23330 = vst [vmem:[%s33418_s1 + $0x88] sm:$0xff] %v25991_v8  ;;  %v26001_v18 = vld [vmem:[%s33417_s0 + $0x1498] sm:$0xff]   ;;  %23366 = vst [vmem:[%s33418_s1 + $0x98] sm:$0xff] %v26000_v17 }
 0x147   :  { %v25993_v10 = vld [vmem:[%s33417_s0 + $0x888] sm:$0xff]   ;;  %23334 = vst [vmem:[%s33418_s1 + $0xc88] sm:$0xff] %v25992_v9  ;;  %v26002_v19 = vld [vmem:[%s33417_s0 + $0x898] sm:$0xff]   ;;  %23370 = vst [vmem:[%s33418_s1 + $0xc98] sm:$0xff] %v26001_v18 }
 0x148   :  { %v25994_v11 = vld [vmem:[%s33417_s0 + $0x1c88] sm:$0xff]   ;;  %23338 = vst [vmem:[%s33418_s1 + $0x1888] sm:$0xff] %v25993_v10  ;;  %v26003_v20 = vld [vmem:[%s33417_s0 + $0x1c98] sm:$0xff]   ;;  %23374 = vst [vmem:[%s33418_s1 + $0x1898] sm:$0xff] %v26002_v19 }
 0x149   :  { %v25995_v12 = vld [vmem:[%s33417_s0 + $0x1088] sm:$0xff]   ;;  %23342 = vst [vmem:[%s33418_s1 + $0x488] sm:$0xff] %v25994_v11  ;;  %v26004_v21 = vld [vmem:[%s33417_s0 + $0x1098] sm:$0xff]   ;;  %23378 = vst [vmem:[%s33418_s1 + $0x498] sm:$0xff] %v26003_v20 }
 0x14a   :  { %v25996_v13 = vld [vmem:[%s33417_s0 + $0x488] sm:$0xff]   ;;  %23346 = vst [vmem:[%s33418_s1 + $0x1088] sm:$0xff] %v25995_v12  ;;  %v26005_v22 = vld [vmem:[%s33417_s0 + $0x498] sm:$0xff]   ;;  %23382 = vst [vmem:[%s33418_s1 + $0x1098] sm:$0xff] %v26004_v21 }
 0x14b   :  { %v25997_v14 = vld [vmem:[%s33417_s0 + $0x1888] sm:$0xff]   ;;  %23350 = vst [vmem:[%s33418_s1 + $0x1c88] sm:$0xff] %v25996_v13  ;;  %v26006_v23 = vld [vmem:[%s33417_s0 + $0x1898] sm:$0xff]   ;;  %23386 = vst [vmem:[%s33418_s1 + $0x1c98] sm:$0xff] %v26005_v22 }
 0x14c   :  { %v25998_v15 = vld [vmem:[%s33417_s0 + $0xc88] sm:$0xff]   ;;  %23354 = vst [vmem:[%s33418_s1 + $0x888] sm:$0xff] %v25997_v14  ;;  %v26007_v24 = vld [vmem:[%s33417_s0 + $0xc98] sm:$0xff]   ;;  %23390 = vst [vmem:[%s33418_s1 + $0x898] sm:$0xff] %v26006_v23 }
 0x14d   :  { %v25999_v16 = vld [vmem:[%s33417_s0 + $0x88] sm:$0xff]   ;;  %23358 = vst [vmem:[%s33418_s1 + $0x1488] sm:$0xff] %v25998_v15  ;;  %v26008_v25 = vld [vmem:[%s33417_s0 + $0x98] sm:$0xff]   ;;  %23394 = vst [vmem:[%s33418_s1 + $0x1498] sm:$0xff] %v26007_v24 }
 0x14e   :  { %23362 = vst [vmem:[%s33418_s1 + $0x2088] sm:$0xff] %v25999_v16  ;;  %v26009_v26 = vld [vmem:[%s33417_s0 + $0x20a8] sm:$0xff]   ;;  %23398 = vst [vmem:[%s33418_s1 + $0x2098] sm:$0xff] %v26008_v25  ;;  %v26018_v35 = vld [vmem:[%s33417_s0 + $0x20b8] sm:$0xff]  }
 0x14f   :  { %v26010_v27 = vld [vmem:[%s33417_s0 + $0x14a8] sm:$0xff]   ;;  %23402 = vst [vmem:[%s33418_s1 + $0xa8] sm:$0xff] %v26009_v26  ;;  %v26019_v36 = vld [vmem:[%s33417_s0 + $0x14b8] sm:$0xff]   ;;  %23438 = vst [vmem:[%s33418_s1 + $0xb8] sm:$0xff] %v26018_v35 }
 0x150   :  { %v26011_v28 = vld [vmem:[%s33417_s0 + $0x8a8] sm:$0xff]   ;;  %23406 = vst [vmem:[%s33418_s1 + $0xca8] sm:$0xff] %v26010_v27  ;;  %v26020_v37 = vld [vmem:[%s33417_s0 + $0x8b8] sm:$0xff]   ;;  %23442 = vst [vmem:[%s33418_s1 + $0xcb8] sm:$0xff] %v26019_v36 }
 0x151   :  { %v26012_v29 = vld [vmem:[%s33417_s0 + $0x1ca8] sm:$0xff]   ;;  %23410 = vst [vmem:[%s33418_s1 + $0x18a8] sm:$0xff] %v26011_v28  ;;  %v26021_v38 = vld [vmem:[%s33417_s0 + $0x1cb8] sm:$0xff]   ;;  %23446 = vst [vmem:[%s33418_s1 + $0x18b8] sm:$0xff] %v26020_v37 }
 0x152   :  { %v26013_v30 = vld [vmem:[%s33417_s0 + $0x10a8] sm:$0xff]   ;;  %23414 = vst [vmem:[%s33418_s1 + $0x4a8] sm:$0xff] %v26012_v29  ;;  %v26022_v39 = vld [vmem:[%s33417_s0 + $0x10b8] sm:$0xff]   ;;  %23450 = vst [vmem:[%s33418_s1 + $0x4b8] sm:$0xff] %v26021_v38 }
 0x153   :  { %v26014_v31 = vld [vmem:[%s33417_s0 + $0x4a8] sm:$0xff]   ;;  %23418 = vst [vmem:[%s33418_s1 + $0x10a8] sm:$0xff] %v26013_v30  ;;  %v26023_v40 = vld [vmem:[%s33417_s0 + $0x4b8] sm:$0xff]   ;;  %23454 = vst [vmem:[%s33418_s1 + $0x10b8] sm:$0xff] %v26022_v39 }
 0x154   :  { %v26015_v32 = vld [vmem:[%s33417_s0 + $0x18a8] sm:$0xff]   ;;  %23422 = vst [vmem:[%s33418_s1 + $0x1ca8] sm:$0xff] %v26014_v31  ;;  %v26024_v41 = vld [vmem:[%s33417_s0 + $0x18b8] sm:$0xff]   ;;  %23458 = vst [vmem:[%s33418_s1 + $0x1cb8] sm:$0xff] %v26023_v40 }
 0x155   :  { %v26016_v33 = vld [vmem:[%s33417_s0 + $0xca8] sm:$0xff]   ;;  %23426 = vst [vmem:[%s33418_s1 + $0x8a8] sm:$0xff] %v26015_v32  ;;  %v26025_v42 = vld [vmem:[%s33417_s0 + $0xcb8] sm:$0xff]   ;;  %23462 = vst [vmem:[%s33418_s1 + $0x8b8] sm:$0xff] %v26024_v41 }
 0x156   :  { %v26017_v34 = vld [vmem:[%s33417_s0 + $0xa8] sm:$0xff]   ;;  %23430 = vst [vmem:[%s33418_s1 + $0x14a8] sm:$0xff] %v26016_v33  ;;  %v26026_v43 = vld [vmem:[%s33417_s0 + $0xb8] sm:$0xff]   ;;  %23466 = vst [vmem:[%s33418_s1 + $0x14b8] sm:$0xff] %v26025_v42 }
 0x157   :  { %23434 = vst [vmem:[%s33418_s1 + $0x20a8] sm:$0xff] %v26017_v34  ;;  %v26027_v44 = vld [vmem:[%s33417_s0 + $0x20c8] sm:$0xff]   ;;  %23470 = vst [vmem:[%s33418_s1 + $0x20b8] sm:$0xff] %v26026_v43  ;;  %v26036_v53 = vld [vmem:[%s33417_s0 + $0x20d8] sm:$0xff]  }
 0x158   :  { %v26028_v45 = vld [vmem:[%s33417_s0 + $0x14c8] sm:$0xff]   ;;  %23474 = vst [vmem:[%s33418_s1 + $0xc8] sm:$0xff] %v26027_v44  ;;  %v26037_v54 = vld [vmem:[%s33417_s0 + $0x14d8] sm:$0xff]   ;;  %23510 = vst [vmem:[%s33418_s1 + $0xd8] sm:$0xff] %v26036_v53 }
 0x159   :  { %v26029_v46 = vld [vmem:[%s33417_s0 + $0x8c8] sm:$0xff]   ;;  %23478 = vst [vmem:[%s33418_s1 + $0xcc8] sm:$0xff] %v26028_v45  ;;  %v26038_v55 = vld [vmem:[%s33417_s0 + $0x8d8] sm:$0xff]   ;;  %23514 = vst [vmem:[%s33418_s1 + $0xcd8] sm:$0xff] %v26037_v54 }
 0x15a   :  { %v26030_v47 = vld [vmem:[%s33417_s0 + $0x1cc8] sm:$0xff]   ;;  %23482 = vst [vmem:[%s33418_s1 + $0x18c8] sm:$0xff] %v26029_v46  ;;  %v26039_v56 = vld [vmem:[%s33417_s0 + $0x1cd8] sm:$0xff]   ;;  %23518 = vst [vmem:[%s33418_s1 + $0x18d8] sm:$0xff] %v26038_v55 }
 0x15b   :  { %v26031_v48 = vld [vmem:[%s33417_s0 + $0x10c8] sm:$0xff]   ;;  %23486 = vst [vmem:[%s33418_s1 + $0x4c8] sm:$0xff] %v26030_v47  ;;  %v26040_v57 = vld [vmem:[%s33417_s0 + $0x10d8] sm:$0xff]   ;;  %23522 = vst [vmem:[%s33418_s1 + $0x4d8] sm:$0xff] %v26039_v56 }
 0x15c   :  { %v26032_v49 = vld [vmem:[%s33417_s0 + $0x4c8] sm:$0xff]   ;;  %23490 = vst [vmem:[%s33418_s1 + $0x10c8] sm:$0xff] %v26031_v48  ;;  %v26041_v58 = vld [vmem:[%s33417_s0 + $0x4d8] sm:$0xff]   ;;  %23526 = vst [vmem:[%s33418_s1 + $0x10d8] sm:$0xff] %v26040_v57 }
 0x15d   :  { %v26033_v50 = vld [vmem:[%s33417_s0 + $0x18c8] sm:$0xff]   ;;  %23494 = vst [vmem:[%s33418_s1 + $0x1cc8] sm:$0xff] %v26032_v49  ;;  %v26042_v59 = vld [vmem:[%s33417_s0 + $0x18d8] sm:$0xff]   ;;  %23530 = vst [vmem:[%s33418_s1 + $0x1cd8] sm:$0xff] %v26041_v58 }
 0x15e   :  { %v26034_v51 = vld [vmem:[%s33417_s0 + $0xcc8] sm:$0xff]   ;;  %23498 = vst [vmem:[%s33418_s1 + $0x8c8] sm:$0xff] %v26033_v50  ;;  %v26043_v60 = vld [vmem:[%s33417_s0 + $0xcd8] sm:$0xff]   ;;  %23534 = vst [vmem:[%s33418_s1 + $0x8d8] sm:$0xff] %v26042_v59 }
 0x15f   :  { %v26035_v52 = vld [vmem:[%s33417_s0 + $0xc8] sm:$0xff]   ;;  %23502 = vst [vmem:[%s33418_s1 + $0x14c8] sm:$0xff] %v26034_v51  ;;  %v26044_v61 = vld [vmem:[%s33417_s0 + $0xd8] sm:$0xff]   ;;  %23538 = vst [vmem:[%s33418_s1 + $0x14d8] sm:$0xff] %v26043_v60 }
 0x160   :  { %23506 = vst [vmem:[%s33418_s1 + $0x20c8] sm:$0xff] %v26035_v52  ;;  %v26045_v62 = vld [vmem:[%s33417_s0 + $0x20e8] sm:$0xff]   ;;  %23542 = vst [vmem:[%s33418_s1 + $0x20d8] sm:$0xff] %v26044_v61  ;;  %v26054_v7 = vld [vmem:[%s33417_s0 + $0x20f8] sm:$0xff]  }
 0x161   :  { %v26046_v63 = vld [vmem:[%s33417_s0 + $0x14e8] sm:$0xff]   ;;  %23546 = vst [vmem:[%s33418_s1 + $0xe8] sm:$0xff] %v26045_v62  ;;  %v26055_v8 = vld [vmem:[%s33417_s0 + $0x14f8] sm:$0xff]   ;;  %23582 = vst [vmem:[%s33418_s1 + $0xf8] sm:$0xff] %v26054_v7 }
 0x162   :  { %v26047_v0 = vld [vmem:[%s33417_s0 + $0x8e8] sm:$0xff]   ;;  %23550 = vst [vmem:[%s33418_s1 + $0xce8] sm:$0xff] %v26046_v63  ;;  %v26056_v9 = vld [vmem:[%s33417_s0 + $0x8f8] sm:$0xff]   ;;  %23586 = vst [vmem:[%s33418_s1 + $0xcf8] sm:$0xff] %v26055_v8 }
 0x163   :  { %v26048_v1 = vld [vmem:[%s33417_s0 + $0x1ce8] sm:$0xff]   ;;  %23554 = vst [vmem:[%s33418_s1 + $0x18e8] sm:$0xff] %v26047_v0  ;;  %v26057_v10 = vld [vmem:[%s33417_s0 + $0x1cf8] sm:$0xff]   ;;  %23590 = vst [vmem:[%s33418_s1 + $0x18f8] sm:$0xff] %v26056_v9 }
 0x164   :  { %v26049_v2 = vld [vmem:[%s33417_s0 + $0x10e8] sm:$0xff]   ;;  %23558 = vst [vmem:[%s33418_s1 + $0x4e8] sm:$0xff] %v26048_v1  ;;  %v26058_v11 = vld [vmem:[%s33417_s0 + $0x10f8] sm:$0xff]   ;;  %23594 = vst [vmem:[%s33418_s1 + $0x4f8] sm:$0xff] %v26057_v10 }
 0x165   :  { %v26050_v3 = vld [vmem:[%s33417_s0 + $0x4e8] sm:$0xff]   ;;  %23562 = vst [vmem:[%s33418_s1 + $0x10e8] sm:$0xff] %v26049_v2  ;;  %v26059_v12 = vld [vmem:[%s33417_s0 + $0x4f8] sm:$0xff]   ;;  %23598 = vst [vmem:[%s33418_s1 + $0x10f8] sm:$0xff] %v26058_v11 }
 0x166   :  { %v26051_v4 = vld [vmem:[%s33417_s0 + $0x18e8] sm:$0xff]   ;;  %23566 = vst [vmem:[%s33418_s1 + $0x1ce8] sm:$0xff] %v26050_v3  ;;  %v26060_v13 = vld [vmem:[%s33417_s0 + $0x18f8] sm:$0xff]   ;;  %23602 = vst [vmem:[%s33418_s1 + $0x1cf8] sm:$0xff] %v26059_v12 }
 0x167   :  { %v26052_v5 = vld [vmem:[%s33417_s0 + $0xce8] sm:$0xff]   ;;  %23570 = vst [vmem:[%s33418_s1 + $0x8e8] sm:$0xff] %v26051_v4  ;;  %v26061_v14 = vld [vmem:[%s33417_s0 + $0xcf8] sm:$0xff]   ;;  %23606 = vst [vmem:[%s33418_s1 + $0x8f8] sm:$0xff] %v26060_v13 }
 0x168   :  { %v26053_v6 = vld [vmem:[%s33417_s0 + $0xe8] sm:$0xff]   ;;  %23574 = vst [vmem:[%s33418_s1 + $0x14e8] sm:$0xff] %v26052_v5  ;;  %v26062_v15 = vld [vmem:[%s33417_s0 + $0xf8] sm:$0xff]   ;;  %23610 = vst [vmem:[%s33418_s1 + $0x14f8] sm:$0xff] %v26061_v14 }
 0x169   :  { %23578 = vst [vmem:[%s33418_s1 + $0x20e8] sm:$0xff] %v26053_v6  ;;  %v26063_v16 = vld [vmem:[%s33417_s0 + $0x2108] sm:$0xff]   ;;  %23614 = vst [vmem:[%s33418_s1 + $0x20f8] sm:$0xff] %v26062_v15  ;;  %v26072_v25 = vld [vmem:[%s33417_s0 + $0x2118] sm:$0xff]  }
 0x16a   :  { %v26064_v17 = vld [vmem:[%s33417_s0 + $0x1508] sm:$0xff]   ;;  %23618 = vst [vmem:[%s33418_s1 + $0x108] sm:$0xff] %v26063_v16  ;;  %v26073_v26 = vld [vmem:[%s33417_s0 + $0x1518] sm:$0xff]   ;;  %23654 = vst [vmem:[%s33418_s1 + $0x118] sm:$0xff] %v26072_v25 }
 0x16b   :  { %v26065_v18 = vld [vmem:[%s33417_s0 + $0x908] sm:$0xff]   ;;  %23622 = vst [vmem:[%s33418_s1 + $0xd08] sm:$0xff] %v26064_v17  ;;  %v26074_v27 = vld [vmem:[%s33417_s0 + $0x918] sm:$0xff]   ;;  %23658 = vst [vmem:[%s33418_s1 + $0xd18] sm:$0xff] %v26073_v26 }
 0x16c   :  { %v26066_v19 = vld [vmem:[%s33417_s0 + $0x1d08] sm:$0xff]   ;;  %23626 = vst [vmem:[%s33418_s1 + $0x1908] sm:$0xff] %v26065_v18  ;;  %v26075_v28 = vld [vmem:[%s33417_s0 + $0x1d18] sm:$0xff]   ;;  %23662 = vst [vmem:[%s33418_s1 + $0x1918] sm:$0xff] %v26074_v27 }
 0x16d   :  { %v26067_v20 = vld [vmem:[%s33417_s0 + $0x1108] sm:$0xff]   ;;  %23630 = vst [vmem:[%s33418_s1 + $0x508] sm:$0xff] %v26066_v19  ;;  %v26076_v29 = vld [vmem:[%s33417_s0 + $0x1118] sm:$0xff]   ;;  %23666 = vst [vmem:[%s33418_s1 + $0x518] sm:$0xff] %v26075_v28 }
 0x16e   :  { %v26068_v21 = vld [vmem:[%s33417_s0 + $0x508] sm:$0xff]   ;;  %23634 = vst [vmem:[%s33418_s1 + $0x1108] sm:$0xff] %v26067_v20  ;;  %v26077_v30 = vld [vmem:[%s33417_s0 + $0x518] sm:$0xff]   ;;  %23670 = vst [vmem:[%s33418_s1 + $0x1118] sm:$0xff] %v26076_v29 }
 0x16f   :  { %v26069_v22 = vld [vmem:[%s33417_s0 + $0x1908] sm:$0xff]   ;;  %23638 = vst [vmem:[%s33418_s1 + $0x1d08] sm:$0xff] %v26068_v21  ;;  %v26078_v31 = vld [vmem:[%s33417_s0 + $0x1918] sm:$0xff]   ;;  %23674 = vst [vmem:[%s33418_s1 + $0x1d18] sm:$0xff] %v26077_v30 }
 0x170   :  { %v26070_v23 = vld [vmem:[%s33417_s0 + $0xd08] sm:$0xff]   ;;  %23642 = vst [vmem:[%s33418_s1 + $0x908] sm:$0xff] %v26069_v22  ;;  %v26079_v32 = vld [vmem:[%s33417_s0 + $0xd18] sm:$0xff]   ;;  %23678 = vst [vmem:[%s33418_s1 + $0x918] sm:$0xff] %v26078_v31 }
 0x171   :  { %v26071_v24 = vld [vmem:[%s33417_s0 + $0x108] sm:$0xff]   ;;  %23646 = vst [vmem:[%s33418_s1 + $0x1508] sm:$0xff] %v26070_v23  ;;  %v26080_v33 = vld [vmem:[%s33417_s0 + $0x118] sm:$0xff]   ;;  %23682 = vst [vmem:[%s33418_s1 + $0x1518] sm:$0xff] %v26079_v32 }
 0x172   :  { %23650 = vst [vmem:[%s33418_s1 + $0x2108] sm:$0xff] %v26071_v24  ;;  %v26081_v34 = vld [vmem:[%s33417_s0 + $0x2128] sm:$0xff]   ;;  %23686 = vst [vmem:[%s33418_s1 + $0x2118] sm:$0xff] %v26080_v33  ;;  %v26090_v43 = vld [vmem:[%s33417_s0 + $0x2138] sm:$0xff]  }
 0x173   :  { %v26082_v35 = vld [vmem:[%s33417_s0 + $0x1528] sm:$0xff]   ;;  %23690 = vst [vmem:[%s33418_s1 + $0x128] sm:$0xff] %v26081_v34  ;;  %v26091_v44 = vld [vmem:[%s33417_s0 + $0x1538] sm:$0xff]   ;;  %23726 = vst [vmem:[%s33418_s1 + $0x138] sm:$0xff] %v26090_v43 }
 0x174   :  { %v26083_v36 = vld [vmem:[%s33417_s0 + $0x928] sm:$0xff]   ;;  %23694 = vst [vmem:[%s33418_s1 + $0xd28] sm:$0xff] %v26082_v35  ;;  %v26092_v45 = vld [vmem:[%s33417_s0 + $0x938] sm:$0xff]   ;;  %23730 = vst [vmem:[%s33418_s1 + $0xd38] sm:$0xff] %v26091_v44 }
 0x175   :  { %v26084_v37 = vld [vmem:[%s33417_s0 + $0x1d28] sm:$0xff]   ;;  %23698 = vst [vmem:[%s33418_s1 + $0x1928] sm:$0xff] %v26083_v36  ;;  %v26093_v46 = vld [vmem:[%s33417_s0 + $0x1d38] sm:$0xff]   ;;  %23734 = vst [vmem:[%s33418_s1 + $0x1938] sm:$0xff] %v26092_v45 }
 0x176   :  { %v26085_v38 = vld [vmem:[%s33417_s0 + $0x1128] sm:$0xff]   ;;  %23702 = vst [vmem:[%s33418_s1 + $0x528] sm:$0xff] %v26084_v37  ;;  %v26094_v47 = vld [vmem:[%s33417_s0 + $0x1138] sm:$0xff]   ;;  %23738 = vst [vmem:[%s33418_s1 + $0x538] sm:$0xff] %v26093_v46 }
 0x177   :  { %v26086_v39 = vld [vmem:[%s33417_s0 + $0x528] sm:$0xff]   ;;  %23706 = vst [vmem:[%s33418_s1 + $0x1128] sm:$0xff] %v26085_v38  ;;  %v26095_v48 = vld [vmem:[%s33417_s0 + $0x538] sm:$0xff]   ;;  %23742 = vst [vmem:[%s33418_s1 + $0x1138] sm:$0xff] %v26094_v47 }
 0x178   :  { %v26087_v40 = vld [vmem:[%s33417_s0 + $0x1928] sm:$0xff]   ;;  %23710 = vst [vmem:[%s33418_s1 + $0x1d28] sm:$0xff] %v26086_v39  ;;  %v26096_v49 = vld [vmem:[%s33417_s0 + $0x1938] sm:$0xff]   ;;  %23746 = vst [vmem:[%s33418_s1 + $0x1d38] sm:$0xff] %v26095_v48 }
 0x179   :  { %v26088_v41 = vld [vmem:[%s33417_s0 + $0xd28] sm:$0xff]   ;;  %23714 = vst [vmem:[%s33418_s1 + $0x928] sm:$0xff] %v26087_v40  ;;  %v26097_v50 = vld [vmem:[%s33417_s0 + $0xd38] sm:$0xff]   ;;  %23750 = vst [vmem:[%s33418_s1 + $0x938] sm:$0xff] %v26096_v49 }
 0x17a   :  { %v26089_v42 = vld [vmem:[%s33417_s0 + $0x128] sm:$0xff]   ;;  %23718 = vst [vmem:[%s33418_s1 + $0x1528] sm:$0xff] %v26088_v41  ;;  %v26098_v51 = vld [vmem:[%s33417_s0 + $0x138] sm:$0xff]   ;;  %23754 = vst [vmem:[%s33418_s1 + $0x1538] sm:$0xff] %v26097_v50 }
 0x17b   :  { %23722 = vst [vmem:[%s33418_s1 + $0x2128] sm:$0xff] %v26089_v42  ;;  %v26099_v52 = vld [vmem:[%s33417_s0 + $0x2148] sm:$0xff]   ;;  %23758 = vst [vmem:[%s33418_s1 + $0x2138] sm:$0xff] %v26098_v51  ;;  %v26108_v61 = vld [vmem:[%s33417_s0 + $0x2158] sm:$0xff]  }
 0x17c   :  { %v26100_v53 = vld [vmem:[%s33417_s0 + $0x1548] sm:$0xff]   ;;  %23762 = vst [vmem:[%s33418_s1 + $0x148] sm:$0xff] %v26099_v52  ;;  %v26109_v62 = vld [vmem:[%s33417_s0 + $0x1558] sm:$0xff]   ;;  %23798 = vst [vmem:[%s33418_s1 + $0x158] sm:$0xff] %v26108_v61 }
 0x17d   :  { %v26101_v54 = vld [vmem:[%s33417_s0 + $0x948] sm:$0xff]   ;;  %23766 = vst [vmem:[%s33418_s1 + $0xd48] sm:$0xff] %v26100_v53  ;;  %v26110_v63 = vld [vmem:[%s33417_s0 + $0x958] sm:$0xff]   ;;  %23802 = vst [vmem:[%s33418_s1 + $0xd58] sm:$0xff] %v26109_v62 }
 0x17e   :  { %v26102_v55 = vld [vmem:[%s33417_s0 + $0x1d48] sm:$0xff]   ;;  %23770 = vst [vmem:[%s33418_s1 + $0x1948] sm:$0xff] %v26101_v54  ;;  %v26111_v0 = vld [vmem:[%s33417_s0 + $0x1d58] sm:$0xff]   ;;  %23806 = vst [vmem:[%s33418_s1 + $0x1958] sm:$0xff] %v26110_v63 }
 0x17f   :  { %v26103_v56 = vld [vmem:[%s33417_s0 + $0x1148] sm:$0xff]   ;;  %23774 = vst [vmem:[%s33418_s1 + $0x548] sm:$0xff] %v26102_v55  ;;  %v26112_v1 = vld [vmem:[%s33417_s0 + $0x1158] sm:$0xff]   ;;  %23810 = vst [vmem:[%s33418_s1 + $0x558] sm:$0xff] %v26111_v0 }
 0x180   :  { %v26104_v57 = vld [vmem:[%s33417_s0 + $0x548] sm:$0xff]   ;;  %23778 = vst [vmem:[%s33418_s1 + $0x1148] sm:$0xff] %v26103_v56  ;;  %v26113_v2 = vld [vmem:[%s33417_s0 + $0x558] sm:$0xff]   ;;  %23814 = vst [vmem:[%s33418_s1 + $0x1158] sm:$0xff] %v26112_v1 }
 0x181   :  { %v26105_v58 = vld [vmem:[%s33417_s0 + $0x1948] sm:$0xff]   ;;  %23782 = vst [vmem:[%s33418_s1 + $0x1d48] sm:$0xff] %v26104_v57  ;;  %v26114_v3 = vld [vmem:[%s33417_s0 + $0x1958] sm:$0xff]   ;;  %23818 = vst [vmem:[%s33418_s1 + $0x1d58] sm:$0xff] %v26113_v2 }
 0x182   :  { %v26106_v59 = vld [vmem:[%s33417_s0 + $0xd48] sm:$0xff]   ;;  %23786 = vst [vmem:[%s33418_s1 + $0x948] sm:$0xff] %v26105_v58  ;;  %v26115_v4 = vld [vmem:[%s33417_s0 + $0xd58] sm:$0xff]   ;;  %23822 = vst [vmem:[%s33418_s1 + $0x958] sm:$0xff] %v26114_v3 }
 0x183   :  { %v26107_v60 = vld [vmem:[%s33417_s0 + $0x148] sm:$0xff]   ;;  %23790 = vst [vmem:[%s33418_s1 + $0x1548] sm:$0xff] %v26106_v59  ;;  %v26116_v5 = vld [vmem:[%s33417_s0 + $0x158] sm:$0xff]   ;;  %23826 = vst [vmem:[%s33418_s1 + $0x1558] sm:$0xff] %v26115_v4 }
 0x184   :  { %23794 = vst [vmem:[%s33418_s1 + $0x2148] sm:$0xff] %v26107_v60  ;;  %v26117_v6 = vld [vmem:[%s33417_s0 + $0x2168] sm:$0xff]   ;;  %23830 = vst [vmem:[%s33418_s1 + $0x2158] sm:$0xff] %v26116_v5  ;;  %v26126_v15 = vld [vmem:[%s33417_s0 + $0x2178] sm:$0xff]  }
 0x185   :  { %v26118_v7 = vld [vmem:[%s33417_s0 + $0x1568] sm:$0xff]   ;;  %23834 = vst [vmem:[%s33418_s1 + $0x168] sm:$0xff] %v26117_v6  ;;  %v26127_v16 = vld [vmem:[%s33417_s0 + $0x1578] sm:$0xff]   ;;  %23870 = vst [vmem:[%s33418_s1 + $0x178] sm:$0xff] %v26126_v15 }
 0x186   :  { %v26119_v8 = vld [vmem:[%s33417_s0 + $0x968] sm:$0xff]   ;;  %23838 = vst [vmem:[%s33418_s1 + $0xd68] sm:$0xff] %v26118_v7  ;;  %v26128_v17 = vld [vmem:[%s33417_s0 + $0x978] sm:$0xff]   ;;  %23874 = vst [vmem:[%s33418_s1 + $0xd78] sm:$0xff] %v26127_v16 }
 0x187   :  { %v26120_v9 = vld [vmem:[%s33417_s0 + $0x1d68] sm:$0xff]   ;;  %23842 = vst [vmem:[%s33418_s1 + $0x1968] sm:$0xff] %v26119_v8  ;;  %v26129_v18 = vld [vmem:[%s33417_s0 + $0x1d78] sm:$0xff]   ;;  %23878 = vst [vmem:[%s33418_s1 + $0x1978] sm:$0xff] %v26128_v17 }
 0x188   :  { %v26121_v10 = vld [vmem:[%s33417_s0 + $0x1168] sm:$0xff]   ;;  %23846 = vst [vmem:[%s33418_s1 + $0x568] sm:$0xff] %v26120_v9  ;;  %v26130_v19 = vld [vmem:[%s33417_s0 + $0x1178] sm:$0xff]   ;;  %23882 = vst [vmem:[%s33418_s1 + $0x578] sm:$0xff] %v26129_v18 }
 0x189   :  { %v26122_v11 = vld [vmem:[%s33417_s0 + $0x568] sm:$0xff]   ;;  %23850 = vst [vmem:[%s33418_s1 + $0x1168] sm:$0xff] %v26121_v10  ;;  %v26131_v20 = vld [vmem:[%s33417_s0 + $0x578] sm:$0xff]   ;;  %23886 = vst [vmem:[%s33418_s1 + $0x1178] sm:$0xff] %v26130_v19 }
 0x18a   :  { %v26123_v12 = vld [vmem:[%s33417_s0 + $0x1968] sm:$0xff]   ;;  %23854 = vst [vmem:[%s33418_s1 + $0x1d68] sm:$0xff] %v26122_v11  ;;  %v26132_v21 = vld [vmem:[%s33417_s0 + $0x1978] sm:$0xff]   ;;  %23890 = vst [vmem:[%s33418_s1 + $0x1d78] sm:$0xff] %v26131_v20 }
 0x18b   :  { %v26124_v13 = vld [vmem:[%s33417_s0 + $0xd68] sm:$0xff]   ;;  %23858 = vst [vmem:[%s33418_s1 + $0x968] sm:$0xff] %v26123_v12  ;;  %v26133_v22 = vld [vmem:[%s33417_s0 + $0xd78] sm:$0xff]   ;;  %23894 = vst [vmem:[%s33418_s1 + $0x978] sm:$0xff] %v26132_v21 }
 0x18c   :  { %v26125_v14 = vld [vmem:[%s33417_s0 + $0x168] sm:$0xff]   ;;  %23862 = vst [vmem:[%s33418_s1 + $0x1568] sm:$0xff] %v26124_v13  ;;  %v26134_v23 = vld [vmem:[%s33417_s0 + $0x178] sm:$0xff]   ;;  %23898 = vst [vmem:[%s33418_s1 + $0x1578] sm:$0xff] %v26133_v22 }
 0x18d   :  { %23866 = vst [vmem:[%s33418_s1 + $0x2168] sm:$0xff] %v26125_v14  ;;  %v26135_v24 = vld [vmem:[%s33417_s0 + $0x2188] sm:$0xff]   ;;  %23902 = vst [vmem:[%s33418_s1 + $0x2178] sm:$0xff] %v26134_v23  ;;  %v26144_v33 = vld [vmem:[%s33417_s0 + $0x2198] sm:$0xff]  }
 0x18e   :  { %v26136_v25 = vld [vmem:[%s33417_s0 + $0x1588] sm:$0xff]   ;;  %23906 = vst [vmem:[%s33418_s1 + $0x188] sm:$0xff] %v26135_v24  ;;  %v26145_v34 = vld [vmem:[%s33417_s0 + $0x1598] sm:$0xff]   ;;  %23942 = vst [vmem:[%s33418_s1 + $0x198] sm:$0xff] %v26144_v33 }
 0x18f   :  { %v26137_v26 = vld [vmem:[%s33417_s0 + $0x988] sm:$0xff]   ;;  %23910 = vst [vmem:[%s33418_s1 + $0xd88] sm:$0xff] %v26136_v25  ;;  %v26146_v35 = vld [vmem:[%s33417_s0 + $0x998] sm:$0xff]   ;;  %23946 = vst [vmem:[%s33418_s1 + $0xd98] sm:$0xff] %v26145_v34 }
 0x190   :  { %v26138_v27 = vld [vmem:[%s33417_s0 + $0x1d88] sm:$0xff]   ;;  %23914 = vst [vmem:[%s33418_s1 + $0x1988] sm:$0xff] %v26137_v26  ;;  %v26147_v36 = vld [vmem:[%s33417_s0 + $0x1d98] sm:$0xff]   ;;  %23950 = vst [vmem:[%s33418_s1 + $0x1998] sm:$0xff] %v26146_v35 }
 0x191   :  { %v26139_v28 = vld [vmem:[%s33417_s0 + $0x1188] sm:$0xff]   ;;  %23918 = vst [vmem:[%s33418_s1 + $0x588] sm:$0xff] %v26138_v27  ;;  %v26148_v37 = vld [vmem:[%s33417_s0 + $0x1198] sm:$0xff]   ;;  %23954 = vst [vmem:[%s33418_s1 + $0x598] sm:$0xff] %v26147_v36 }
 0x192   :  { %v26140_v29 = vld [vmem:[%s33417_s0 + $0x588] sm:$0xff]   ;;  %23922 = vst [vmem:[%s33418_s1 + $0x1188] sm:$0xff] %v26139_v28  ;;  %v26149_v38 = vld [vmem:[%s33417_s0 + $0x598] sm:$0xff]   ;;  %23958 = vst [vmem:[%s33418_s1 + $0x1198] sm:$0xff] %v26148_v37 }
 0x193   :  { %v26141_v30 = vld [vmem:[%s33417_s0 + $0x1988] sm:$0xff]   ;;  %23926 = vst [vmem:[%s33418_s1 + $0x1d88] sm:$0xff] %v26140_v29  ;;  %v26150_v39 = vld [vmem:[%s33417_s0 + $0x1998] sm:$0xff]   ;;  %23962 = vst [vmem:[%s33418_s1 + $0x1d98] sm:$0xff] %v26149_v38 }
 0x194   :  { %v26142_v31 = vld [vmem:[%s33417_s0 + $0xd88] sm:$0xff]   ;;  %23930 = vst [vmem:[%s33418_s1 + $0x988] sm:$0xff] %v26141_v30  ;;  %v26151_v40 = vld [vmem:[%s33417_s0 + $0xd98] sm:$0xff]   ;;  %23966 = vst [vmem:[%s33418_s1 + $0x998] sm:$0xff] %v26150_v39 }
 0x195   :  { %v26143_v32 = vld [vmem:[%s33417_s0 + $0x188] sm:$0xff]   ;;  %23934 = vst [vmem:[%s33418_s1 + $0x1588] sm:$0xff] %v26142_v31  ;;  %v26152_v41 = vld [vmem:[%s33417_s0 + $0x198] sm:$0xff]   ;;  %23970 = vst [vmem:[%s33418_s1 + $0x1598] sm:$0xff] %v26151_v40 }
 0x196   :  { %23938 = vst [vmem:[%s33418_s1 + $0x2188] sm:$0xff] %v26143_v32  ;;  %v26153_v42 = vld [vmem:[%s33417_s0 + $0x21a8] sm:$0xff]   ;;  %23974 = vst [vmem:[%s33418_s1 + $0x2198] sm:$0xff] %v26152_v41  ;;  %v26162_v51 = vld [vmem:[%s33417_s0 + $0x21b8] sm:$0xff]  }
 0x197   :  { %v26154_v43 = vld [vmem:[%s33417_s0 + $0x15a8] sm:$0xff]   ;;  %23978 = vst [vmem:[%s33418_s1 + $0x1a8] sm:$0xff] %v26153_v42  ;;  %v26163_v52 = vld [vmem:[%s33417_s0 + $0x15b8] sm:$0xff]   ;;  %24014 = vst [vmem:[%s33418_s1 + $0x1b8] sm:$0xff] %v26162_v51 }
 0x198   :  { %v26155_v44 = vld [vmem:[%s33417_s0 + $0x9a8] sm:$0xff]   ;;  %23982 = vst [vmem:[%s33418_s1 + $0xda8] sm:$0xff] %v26154_v43  ;;  %v26164_v53 = vld [vmem:[%s33417_s0 + $0x9b8] sm:$0xff]   ;;  %24018 = vst [vmem:[%s33418_s1 + $0xdb8] sm:$0xff] %v26163_v52 }
 0x199   :  { %v26156_v45 = vld [vmem:[%s33417_s0 + $0x1da8] sm:$0xff]   ;;  %23986 = vst [vmem:[%s33418_s1 + $0x19a8] sm:$0xff] %v26155_v44  ;;  %v26165_v54 = vld [vmem:[%s33417_s0 + $0x1db8] sm:$0xff]   ;;  %24022 = vst [vmem:[%s33418_s1 + $0x19b8] sm:$0xff] %v26164_v53 }
 0x19a   :  { %v26157_v46 = vld [vmem:[%s33417_s0 + $0x11a8] sm:$0xff]   ;;  %23990 = vst [vmem:[%s33418_s1 + $0x5a8] sm:$0xff] %v26156_v45  ;;  %v26166_v55 = vld [vmem:[%s33417_s0 + $0x11b8] sm:$0xff]   ;;  %24026 = vst [vmem:[%s33418_s1 + $0x5b8] sm:$0xff] %v26165_v54 }
 0x19b   :  { %v26158_v47 = vld [vmem:[%s33417_s0 + $0x5a8] sm:$0xff]   ;;  %23994 = vst [vmem:[%s33418_s1 + $0x11a8] sm:$0xff] %v26157_v46  ;;  %v26167_v56 = vld [vmem:[%s33417_s0 + $0x5b8] sm:$0xff]   ;;  %24030 = vst [vmem:[%s33418_s1 + $0x11b8] sm:$0xff] %v26166_v55 }
 0x19c   :  { %v26159_v48 = vld [vmem:[%s33417_s0 + $0x19a8] sm:$0xff]   ;;  %23998 = vst [vmem:[%s33418_s1 + $0x1da8] sm:$0xff] %v26158_v47  ;;  %v26168_v57 = vld [vmem:[%s33417_s0 + $0x19b8] sm:$0xff]   ;;  %24034 = vst [vmem:[%s33418_s1 + $0x1db8] sm:$0xff] %v26167_v56 }
 0x19d   :  { %v26160_v49 = vld [vmem:[%s33417_s0 + $0xda8] sm:$0xff]   ;;  %24002 = vst [vmem:[%s33418_s1 + $0x9a8] sm:$0xff] %v26159_v48  ;;  %v26169_v58 = vld [vmem:[%s33417_s0 + $0xdb8] sm:$0xff]   ;;  %24038 = vst [vmem:[%s33418_s1 + $0x9b8] sm:$0xff] %v26168_v57 }
 0x19e   :  { %v26161_v50 = vld [vmem:[%s33417_s0 + $0x1a8] sm:$0xff]   ;;  %24006 = vst [vmem:[%s33418_s1 + $0x15a8] sm:$0xff] %v26160_v49  ;;  %v26170_v59 = vld [vmem:[%s33417_s0 + $0x1b8] sm:$0xff]   ;;  %24042 = vst [vmem:[%s33418_s1 + $0x15b8] sm:$0xff] %v26169_v58 }
 0x19f   :  { %24010 = vst [vmem:[%s33418_s1 + $0x21a8] sm:$0xff] %v26161_v50  ;;  %v26171_v60 = vld [vmem:[%s33417_s0 + $0x21c8] sm:$0xff]   ;;  %24046 = vst [vmem:[%s33418_s1 + $0x21b8] sm:$0xff] %v26170_v59  ;;  %v26180_v5 = vld [vmem:[%s33417_s0 + $0x21d8] sm:$0xff]  }
 0x1a0   :  { %v26172_v61 = vld [vmem:[%s33417_s0 + $0x15c8] sm:$0xff]   ;;  %24050 = vst [vmem:[%s33418_s1 + $0x1c8] sm:$0xff] %v26171_v60  ;;  %v26181_v6 = vld [vmem:[%s33417_s0 + $0x15d8] sm:$0xff]   ;;  %24086 = vst [vmem:[%s33418_s1 + $0x1d8] sm:$0xff] %v26180_v5 }
 0x1a1   :  { %v26173_v62 = vld [vmem:[%s33417_s0 + $0x9c8] sm:$0xff]   ;;  %24054 = vst [vmem:[%s33418_s1 + $0xdc8] sm:$0xff] %v26172_v61  ;;  %v26182_v7 = vld [vmem:[%s33417_s0 + $0x9d8] sm:$0xff]   ;;  %24090 = vst [vmem:[%s33418_s1 + $0xdd8] sm:$0xff] %v26181_v6 }
 0x1a2   :  { %v26174_v63 = vld [vmem:[%s33417_s0 + $0x1dc8] sm:$0xff]   ;;  %24058 = vst [vmem:[%s33418_s1 + $0x19c8] sm:$0xff] %v26173_v62  ;;  %v26183_v8 = vld [vmem:[%s33417_s0 + $0x1dd8] sm:$0xff]   ;;  %24094 = vst [vmem:[%s33418_s1 + $0x19d8] sm:$0xff] %v26182_v7 }
 0x1a3   :  { %v26175_v0 = vld [vmem:[%s33417_s0 + $0x11c8] sm:$0xff]   ;;  %24062 = vst [vmem:[%s33418_s1 + $0x5c8] sm:$0xff] %v26174_v63  ;;  %v26184_v9 = vld [vmem:[%s33417_s0 + $0x11d8] sm:$0xff]   ;;  %24098 = vst [vmem:[%s33418_s1 + $0x5d8] sm:$0xff] %v26183_v8 }
 0x1a4   :  { %v26176_v1 = vld [vmem:[%s33417_s0 + $0x5c8] sm:$0xff]   ;;  %24066 = vst [vmem:[%s33418_s1 + $0x11c8] sm:$0xff] %v26175_v0  ;;  %v26185_v10 = vld [vmem:[%s33417_s0 + $0x5d8] sm:$0xff]   ;;  %24102 = vst [vmem:[%s33418_s1 + $0x11d8] sm:$0xff] %v26184_v9 }
 0x1a5   :  { %v26177_v2 = vld [vmem:[%s33417_s0 + $0x19c8] sm:$0xff]   ;;  %24070 = vst [vmem:[%s33418_s1 + $0x1dc8] sm:$0xff] %v26176_v1  ;;  %v26186_v11 = vld [vmem:[%s33417_s0 + $0x19d8] sm:$0xff]   ;;  %24106 = vst [vmem:[%s33418_s1 + $0x1dd8] sm:$0xff] %v26185_v10 }
 0x1a6   :  { %v26178_v3 = vld [vmem:[%s33417_s0 + $0xdc8] sm:$0xff]   ;;  %24074 = vst [vmem:[%s33418_s1 + $0x9c8] sm:$0xff] %v26177_v2  ;;  %v26187_v12 = vld [vmem:[%s33417_s0 + $0xdd8] sm:$0xff]   ;;  %24110 = vst [vmem:[%s33418_s1 + $0x9d8] sm:$0xff] %v26186_v11 }
 0x1a7   :  { %v26179_v4 = vld [vmem:[%s33417_s0 + $0x1c8] sm:$0xff]   ;;  %24078 = vst [vmem:[%s33418_s1 + $0x15c8] sm:$0xff] %v26178_v3  ;;  %v26188_v13 = vld [vmem:[%s33417_s0 + $0x1d8] sm:$0xff]   ;;  %24114 = vst [vmem:[%s33418_s1 + $0x15d8] sm:$0xff] %v26187_v12 }
 0x1a8   :  { %24082 = vst [vmem:[%s33418_s1 + $0x21c8] sm:$0xff] %v26179_v4  ;;  %v26189_v14 = vld [vmem:[%s33417_s0 + $0x21e8] sm:$0xff]   ;;  %24118 = vst [vmem:[%s33418_s1 + $0x21d8] sm:$0xff] %v26188_v13  ;;  %v26198_v23 = vld [vmem:[%s33417_s0 + $0x21f8] sm:$0xff]  }
 0x1a9   :  { %v26190_v15 = vld [vmem:[%s33417_s0 + $0x15e8] sm:$0xff]   ;;  %24122 = vst [vmem:[%s33418_s1 + $0x1e8] sm:$0xff] %v26189_v14  ;;  %v26199_v24 = vld [vmem:[%s33417_s0 + $0x15f8] sm:$0xff]   ;;  %24158 = vst [vmem:[%s33418_s1 + $0x1f8] sm:$0xff] %v26198_v23 }
 0x1aa   :  { %v26191_v16 = vld [vmem:[%s33417_s0 + $0x9e8] sm:$0xff]   ;;  %24126 = vst [vmem:[%s33418_s1 + $0xde8] sm:$0xff] %v26190_v15  ;;  %v26200_v25 = vld [vmem:[%s33417_s0 + $0x9f8] sm:$0xff]   ;;  %24162 = vst [vmem:[%s33418_s1 + $0xdf8] sm:$0xff] %v26199_v24 }
 0x1ab   :  { %v26192_v17 = vld [vmem:[%s33417_s0 + $0x1de8] sm:$0xff]   ;;  %24130 = vst [vmem:[%s33418_s1 + $0x19e8] sm:$0xff] %v26191_v16  ;;  %v26201_v26 = vld [vmem:[%s33417_s0 + $0x1df8] sm:$0xff]   ;;  %24166 = vst [vmem:[%s33418_s1 + $0x19f8] sm:$0xff] %v26200_v25 }
 0x1ac   :  { %v26193_v18 = vld [vmem:[%s33417_s0 + $0x11e8] sm:$0xff]   ;;  %24134 = vst [vmem:[%s33418_s1 + $0x5e8] sm:$0xff] %v26192_v17  ;;  %v26202_v27 = vld [vmem:[%s33417_s0 + $0x11f8] sm:$0xff]   ;;  %24170 = vst [vmem:[%s33418_s1 + $0x5f8] sm:$0xff] %v26201_v26 }
 0x1ad   :  { %v26194_v19 = vld [vmem:[%s33417_s0 + $0x5e8] sm:$0xff]   ;;  %24138 = vst [vmem:[%s33418_s1 + $0x11e8] sm:$0xff] %v26193_v18  ;;  %v26203_v28 = vld [vmem:[%s33417_s0 + $0x5f8] sm:$0xff]   ;;  %24174 = vst [vmem:[%s33418_s1 + $0x11f8] sm:$0xff] %v26202_v27 }
 0x1ae   :  { %v26195_v20 = vld [vmem:[%s33417_s0 + $0x19e8] sm:$0xff]   ;;  %24142 = vst [vmem:[%s33418_s1 + $0x1de8] sm:$0xff] %v26194_v19  ;;  %v26204_v29 = vld [vmem:[%s33417_s0 + $0x19f8] sm:$0xff]   ;;  %24178 = vst [vmem:[%s33418_s1 + $0x1df8] sm:$0xff] %v26203_v28 }
 0x1af   :  { %v26196_v21 = vld [vmem:[%s33417_s0 + $0xde8] sm:$0xff]   ;;  %24146 = vst [vmem:[%s33418_s1 + $0x9e8] sm:$0xff] %v26195_v20  ;;  %v26205_v30 = vld [vmem:[%s33417_s0 + $0xdf8] sm:$0xff]   ;;  %24182 = vst [vmem:[%s33418_s1 + $0x9f8] sm:$0xff] %v26204_v29 }
 0x1b0   :  { %v26197_v22 = vld [vmem:[%s33417_s0 + $0x1e8] sm:$0xff]   ;;  %24150 = vst [vmem:[%s33418_s1 + $0x15e8] sm:$0xff] %v26196_v21  ;;  %v26206_v31 = vld [vmem:[%s33417_s0 + $0x1f8] sm:$0xff]   ;;  %24186 = vst [vmem:[%s33418_s1 + $0x15f8] sm:$0xff] %v26205_v30 }
 0x1b1   :  { %24154 = vst [vmem:[%s33418_s1 + $0x21e8] sm:$0xff] %v26197_v22  ;;  %v26207_v32 = vld [vmem:[%s33417_s0 + $0x2208] sm:$0xff]   ;;  %24190 = vst [vmem:[%s33418_s1 + $0x21f8] sm:$0xff] %v26206_v31  ;;  %v26216_v41 = vld [vmem:[%s33417_s0 + $0x2218] sm:$0xff]  }
 0x1b2   :  { %v26208_v33 = vld [vmem:[%s33417_s0 + $0x1608] sm:$0xff]   ;;  %24194 = vst [vmem:[%s33418_s1 + $0x208] sm:$0xff] %v26207_v32  ;;  %v26217_v42 = vld [vmem:[%s33417_s0 + $0x1618] sm:$0xff]   ;;  %24230 = vst [vmem:[%s33418_s1 + $0x218] sm:$0xff] %v26216_v41 }
 0x1b3   :  { %v26209_v34 = vld [vmem:[%s33417_s0 + $0xa08] sm:$0xff]   ;;  %24198 = vst [vmem:[%s33418_s1 + $0xe08] sm:$0xff] %v26208_v33  ;;  %v26218_v43 = vld [vmem:[%s33417_s0 + $0xa18] sm:$0xff]   ;;  %24234 = vst [vmem:[%s33418_s1 + $0xe18] sm:$0xff] %v26217_v42 }
 0x1b4   :  { %v26210_v35 = vld [vmem:[%s33417_s0 + $0x1e08] sm:$0xff]   ;;  %24202 = vst [vmem:[%s33418_s1 + $0x1a08] sm:$0xff] %v26209_v34  ;;  %v26219_v44 = vld [vmem:[%s33417_s0 + $0x1e18] sm:$0xff]   ;;  %24238 = vst [vmem:[%s33418_s1 + $0x1a18] sm:$0xff] %v26218_v43 }
 0x1b5   :  { %v26211_v36 = vld [vmem:[%s33417_s0 + $0x1208] sm:$0xff]   ;;  %24206 = vst [vmem:[%s33418_s1 + $0x608] sm:$0xff] %v26210_v35  ;;  %v26220_v45 = vld [vmem:[%s33417_s0 + $0x1218] sm:$0xff]   ;;  %24242 = vst [vmem:[%s33418_s1 + $0x618] sm:$0xff] %v26219_v44 }
 0x1b6   :  { %v26212_v37 = vld [vmem:[%s33417_s0 + $0x608] sm:$0xff]   ;;  %24210 = vst [vmem:[%s33418_s1 + $0x1208] sm:$0xff] %v26211_v36  ;;  %v26221_v46 = vld [vmem:[%s33417_s0 + $0x618] sm:$0xff]   ;;  %24246 = vst [vmem:[%s33418_s1 + $0x1218] sm:$0xff] %v26220_v45 }
 0x1b7   :  { %v26213_v38 = vld [vmem:[%s33417_s0 + $0x1a08] sm:$0xff]   ;;  %24214 = vst [vmem:[%s33418_s1 + $0x1e08] sm:$0xff] %v26212_v37  ;;  %v26222_v47 = vld [vmem:[%s33417_s0 + $0x1a18] sm:$0xff]   ;;  %24250 = vst [vmem:[%s33418_s1 + $0x1e18] sm:$0xff] %v26221_v46 }
 0x1b8   :  { %v26214_v39 = vld [vmem:[%s33417_s0 + $0xe08] sm:$0xff]   ;;  %24218 = vst [vmem:[%s33418_s1 + $0xa08] sm:$0xff] %v26213_v38  ;;  %v26223_v48 = vld [vmem:[%s33417_s0 + $0xe18] sm:$0xff]   ;;  %24254 = vst [vmem:[%s33418_s1 + $0xa18] sm:$0xff] %v26222_v47 }
 0x1b9   :  { %v26215_v40 = vld [vmem:[%s33417_s0 + $0x208] sm:$0xff]   ;;  %24222 = vst [vmem:[%s33418_s1 + $0x1608] sm:$0xff] %v26214_v39  ;;  %v26224_v49 = vld [vmem:[%s33417_s0 + $0x218] sm:$0xff]   ;;  %24258 = vst [vmem:[%s33418_s1 + $0x1618] sm:$0xff] %v26223_v48 }
 0x1ba   :  { %24226 = vst [vmem:[%s33418_s1 + $0x2208] sm:$0xff] %v26215_v40  ;;  %v26225_v50 = vld [vmem:[%s33417_s0 + $0x2228] sm:$0xff]   ;;  %24262 = vst [vmem:[%s33418_s1 + $0x2218] sm:$0xff] %v26224_v49  ;;  %v26234_v59 = vld [vmem:[%s33417_s0 + $0x2238] sm:$0xff]  }
 0x1bb   :  { %v26226_v51 = vld [vmem:[%s33417_s0 + $0x1628] sm:$0xff]   ;;  %24266 = vst [vmem:[%s33418_s1 + $0x228] sm:$0xff] %v26225_v50  ;;  %v26235_v60 = vld [vmem:[%s33417_s0 + $0x1638] sm:$0xff]   ;;  %24302 = vst [vmem:[%s33418_s1 + $0x238] sm:$0xff] %v26234_v59 }
 0x1bc   :  { %v26227_v52 = vld [vmem:[%s33417_s0 + $0xa28] sm:$0xff]   ;;  %24270 = vst [vmem:[%s33418_s1 + $0xe28] sm:$0xff] %v26226_v51  ;;  %v26236_v61 = vld [vmem:[%s33417_s0 + $0xa38] sm:$0xff]   ;;  %24306 = vst [vmem:[%s33418_s1 + $0xe38] sm:$0xff] %v26235_v60 }
 0x1bd   :  { %v26228_v53 = vld [vmem:[%s33417_s0 + $0x1e28] sm:$0xff]   ;;  %24274 = vst [vmem:[%s33418_s1 + $0x1a28] sm:$0xff] %v26227_v52  ;;  %v26237_v62 = vld [vmem:[%s33417_s0 + $0x1e38] sm:$0xff]   ;;  %24310 = vst [vmem:[%s33418_s1 + $0x1a38] sm:$0xff] %v26236_v61 }
 0x1be   :  { %v26229_v54 = vld [vmem:[%s33417_s0 + $0x1228] sm:$0xff]   ;;  %24278 = vst [vmem:[%s33418_s1 + $0x628] sm:$0xff] %v26228_v53  ;;  %v26238_v63 = vld [vmem:[%s33417_s0 + $0x1238] sm:$0xff]   ;;  %24314 = vst [vmem:[%s33418_s1 + $0x638] sm:$0xff] %v26237_v62 }
 0x1bf   :  { %v26230_v55 = vld [vmem:[%s33417_s0 + $0x628] sm:$0xff]   ;;  %24282 = vst [vmem:[%s33418_s1 + $0x1228] sm:$0xff] %v26229_v54  ;;  %v26239_v0 = vld [vmem:[%s33417_s0 + $0x638] sm:$0xff]   ;;  %24318 = vst [vmem:[%s33418_s1 + $0x1238] sm:$0xff] %v26238_v63 }
 0x1c0   :  { %v26231_v56 = vld [vmem:[%s33417_s0 + $0x1a28] sm:$0xff]   ;;  %24286 = vst [vmem:[%s33418_s1 + $0x1e28] sm:$0xff] %v26230_v55  ;;  %v26240_v1 = vld [vmem:[%s33417_s0 + $0x1a38] sm:$0xff]   ;;  %24322 = vst [vmem:[%s33418_s1 + $0x1e38] sm:$0xff] %v26239_v0 }
 0x1c1   :  { %v26232_v57 = vld [vmem:[%s33417_s0 + $0xe28] sm:$0xff]   ;;  %24290 = vst [vmem:[%s33418_s1 + $0xa28] sm:$0xff] %v26231_v56  ;;  %v26241_v2 = vld [vmem:[%s33417_s0 + $0xe38] sm:$0xff]   ;;  %24326 = vst [vmem:[%s33418_s1 + $0xa38] sm:$0xff] %v26240_v1 }
 0x1c2   :  { %v26233_v58 = vld [vmem:[%s33417_s0 + $0x228] sm:$0xff]   ;;  %24294 = vst [vmem:[%s33418_s1 + $0x1628] sm:$0xff] %v26232_v57  ;;  %v26242_v3 = vld [vmem:[%s33417_s0 + $0x238] sm:$0xff]   ;;  %24330 = vst [vmem:[%s33418_s1 + $0x1638] sm:$0xff] %v26241_v2 }
 0x1c3   :  { %24298 = vst [vmem:[%s33418_s1 + $0x2228] sm:$0xff] %v26233_v58  ;;  %v26243_v4 = vld [vmem:[%s33417_s0 + $0x2248] sm:$0xff]   ;;  %24334 = vst [vmem:[%s33418_s1 + $0x2238] sm:$0xff] %v26242_v3  ;;  %v26252_v13 = vld [vmem:[%s33417_s0 + $0x2258] sm:$0xff]  }
 0x1c4   :  { %v26244_v5 = vld [vmem:[%s33417_s0 + $0x1648] sm:$0xff]   ;;  %24338 = vst [vmem:[%s33418_s1 + $0x248] sm:$0xff] %v26243_v4  ;;  %v26253_v14 = vld [vmem:[%s33417_s0 + $0x1658] sm:$0xff]   ;;  %24374 = vst [vmem:[%s33418_s1 + $0x258] sm:$0xff] %v26252_v13 }
 0x1c5   :  { %v26245_v6 = vld [vmem:[%s33417_s0 + $0xa48] sm:$0xff]   ;;  %24342 = vst [vmem:[%s33418_s1 + $0xe48] sm:$0xff] %v26244_v5  ;;  %v26254_v15 = vld [vmem:[%s33417_s0 + $0xa58] sm:$0xff]   ;;  %24378 = vst [vmem:[%s33418_s1 + $0xe58] sm:$0xff] %v26253_v14 }
 0x1c6   :  { %v26246_v7 = vld [vmem:[%s33417_s0 + $0x1e48] sm:$0xff]   ;;  %24346 = vst [vmem:[%s33418_s1 + $0x1a48] sm:$0xff] %v26245_v6  ;;  %v26255_v16 = vld [vmem:[%s33417_s0 + $0x1e58] sm:$0xff]   ;;  %24382 = vst [vmem:[%s33418_s1 + $0x1a58] sm:$0xff] %v26254_v15 }
 0x1c7   :  { %v26247_v8 = vld [vmem:[%s33417_s0 + $0x1248] sm:$0xff]   ;;  %24350 = vst [vmem:[%s33418_s1 + $0x648] sm:$0xff] %v26246_v7  ;;  %v26256_v17 = vld [vmem:[%s33417_s0 + $0x1258] sm:$0xff]   ;;  %24386 = vst [vmem:[%s33418_s1 + $0x658] sm:$0xff] %v26255_v16 }
 0x1c8   :  { %v26248_v9 = vld [vmem:[%s33417_s0 + $0x648] sm:$0xff]   ;;  %24354 = vst [vmem:[%s33418_s1 + $0x1248] sm:$0xff] %v26247_v8  ;;  %v26257_v18 = vld [vmem:[%s33417_s0 + $0x658] sm:$0xff]   ;;  %24390 = vst [vmem:[%s33418_s1 + $0x1258] sm:$0xff] %v26256_v17 }
 0x1c9   :  { %v26249_v10 = vld [vmem:[%s33417_s0 + $0x1a48] sm:$0xff]   ;;  %24358 = vst [vmem:[%s33418_s1 + $0x1e48] sm:$0xff] %v26248_v9  ;;  %v26258_v19 = vld [vmem:[%s33417_s0 + $0x1a58] sm:$0xff]   ;;  %24394 = vst [vmem:[%s33418_s1 + $0x1e58] sm:$0xff] %v26257_v18 }
 0x1ca   :  { %v26250_v11 = vld [vmem:[%s33417_s0 + $0xe48] sm:$0xff]   ;;  %24362 = vst [vmem:[%s33418_s1 + $0xa48] sm:$0xff] %v26249_v10  ;;  %v26259_v20 = vld [vmem:[%s33417_s0 + $0xe58] sm:$0xff]   ;;  %24398 = vst [vmem:[%s33418_s1 + $0xa58] sm:$0xff] %v26258_v19 }
 0x1cb   :  { %v26251_v12 = vld [vmem:[%s33417_s0 + $0x248] sm:$0xff]   ;;  %24366 = vst [vmem:[%s33418_s1 + $0x1648] sm:$0xff] %v26250_v11  ;;  %v26260_v21 = vld [vmem:[%s33417_s0 + $0x258] sm:$0xff]   ;;  %24402 = vst [vmem:[%s33418_s1 + $0x1658] sm:$0xff] %v26259_v20 }
 0x1cc   :  { %24370 = vst [vmem:[%s33418_s1 + $0x2248] sm:$0xff] %v26251_v12  ;;  %v26261_v22 = vld [vmem:[%s33417_s0 + $0x2268] sm:$0xff]   ;;  %24406 = vst [vmem:[%s33418_s1 + $0x2258] sm:$0xff] %v26260_v21  ;;  %v26270_v31 = vld [vmem:[%s33417_s0 + $0x2278] sm:$0xff]  }
 0x1cd   :  { %v26262_v23 = vld [vmem:[%s33417_s0 + $0x1668] sm:$0xff]   ;;  %24410 = vst [vmem:[%s33418_s1 + $0x268] sm:$0xff] %v26261_v22  ;;  %v26271_v32 = vld [vmem:[%s33417_s0 + $0x1678] sm:$0xff]   ;;  %24446 = vst [vmem:[%s33418_s1 + $0x278] sm:$0xff] %v26270_v31 }
 0x1ce   :  { %v26263_v24 = vld [vmem:[%s33417_s0 + $0xa68] sm:$0xff]   ;;  %24414 = vst [vmem:[%s33418_s1 + $0xe68] sm:$0xff] %v26262_v23  ;;  %v26272_v33 = vld [vmem:[%s33417_s0 + $0xa78] sm:$0xff]   ;;  %24450 = vst [vmem:[%s33418_s1 + $0xe78] sm:$0xff] %v26271_v32 }
 0x1cf   :  { %v26264_v25 = vld [vmem:[%s33417_s0 + $0x1e68] sm:$0xff]   ;;  %24418 = vst [vmem:[%s33418_s1 + $0x1a68] sm:$0xff] %v26263_v24  ;;  %v26273_v34 = vld [vmem:[%s33417_s0 + $0x1e78] sm:$0xff]   ;;  %24454 = vst [vmem:[%s33418_s1 + $0x1a78] sm:$0xff] %v26272_v33 }
 0x1d0   :  { %v26265_v26 = vld [vmem:[%s33417_s0 + $0x1268] sm:$0xff]   ;;  %24422 = vst [vmem:[%s33418_s1 + $0x668] sm:$0xff] %v26264_v25  ;;  %v26274_v35 = vld [vmem:[%s33417_s0 + $0x1278] sm:$0xff]   ;;  %24458 = vst [vmem:[%s33418_s1 + $0x678] sm:$0xff] %v26273_v34 }
 0x1d1   :  { %v26266_v27 = vld [vmem:[%s33417_s0 + $0x668] sm:$0xff]   ;;  %24426 = vst [vmem:[%s33418_s1 + $0x1268] sm:$0xff] %v26265_v26  ;;  %v26275_v36 = vld [vmem:[%s33417_s0 + $0x678] sm:$0xff]   ;;  %24462 = vst [vmem:[%s33418_s1 + $0x1278] sm:$0xff] %v26274_v35 }
 0x1d2   :  { %v26267_v28 = vld [vmem:[%s33417_s0 + $0x1a68] sm:$0xff]   ;;  %24430 = vst [vmem:[%s33418_s1 + $0x1e68] sm:$0xff] %v26266_v27  ;;  %v26276_v37 = vld [vmem:[%s33417_s0 + $0x1a78] sm:$0xff]   ;;  %24466 = vst [vmem:[%s33418_s1 + $0x1e78] sm:$0xff] %v26275_v36 }
 0x1d3   :  { %v26268_v29 = vld [vmem:[%s33417_s0 + $0xe68] sm:$0xff]   ;;  %24434 = vst [vmem:[%s33418_s1 + $0xa68] sm:$0xff] %v26267_v28  ;;  %v26277_v38 = vld [vmem:[%s33417_s0 + $0xe78] sm:$0xff]   ;;  %24470 = vst [vmem:[%s33418_s1 + $0xa78] sm:$0xff] %v26276_v37 }
 0x1d4   :  { %v26269_v30 = vld [vmem:[%s33417_s0 + $0x268] sm:$0xff]   ;;  %24438 = vst [vmem:[%s33418_s1 + $0x1668] sm:$0xff] %v26268_v29  ;;  %v26278_v39 = vld [vmem:[%s33417_s0 + $0x278] sm:$0xff]   ;;  %24474 = vst [vmem:[%s33418_s1 + $0x1678] sm:$0xff] %v26277_v38 }
 0x1d5   :  { %24442 = vst [vmem:[%s33418_s1 + $0x2268] sm:$0xff] %v26269_v30  ;;  %v26279_v40 = vld [vmem:[%s33417_s0 + $0x2288] sm:$0xff]   ;;  %24478 = vst [vmem:[%s33418_s1 + $0x2278] sm:$0xff] %v26278_v39  ;;  %v26288_v49 = vld [vmem:[%s33417_s0 + $0x2298] sm:$0xff]  }
 0x1d6   :  { %v26280_v41 = vld [vmem:[%s33417_s0 + $0x1688] sm:$0xff]   ;;  %24482 = vst [vmem:[%s33418_s1 + $0x288] sm:$0xff] %v26279_v40  ;;  %v26289_v50 = vld [vmem:[%s33417_s0 + $0x1698] sm:$0xff]   ;;  %24518 = vst [vmem:[%s33418_s1 + $0x298] sm:$0xff] %v26288_v49 }
 0x1d7   :  { %v26281_v42 = vld [vmem:[%s33417_s0 + $0xa88] sm:$0xff]   ;;  %24486 = vst [vmem:[%s33418_s1 + $0xe88] sm:$0xff] %v26280_v41  ;;  %v26290_v51 = vld [vmem:[%s33417_s0 + $0xa98] sm:$0xff]   ;;  %24522 = vst [vmem:[%s33418_s1 + $0xe98] sm:$0xff] %v26289_v50 }
 0x1d8   :  { %v26282_v43 = vld [vmem:[%s33417_s0 + $0x1e88] sm:$0xff]   ;;  %24490 = vst [vmem:[%s33418_s1 + $0x1a88] sm:$0xff] %v26281_v42  ;;  %v26291_v52 = vld [vmem:[%s33417_s0 + $0x1e98] sm:$0xff]   ;;  %24526 = vst [vmem:[%s33418_s1 + $0x1a98] sm:$0xff] %v26290_v51 }
 0x1d9   :  { %v26283_v44 = vld [vmem:[%s33417_s0 + $0x1288] sm:$0xff]   ;;  %24494 = vst [vmem:[%s33418_s1 + $0x688] sm:$0xff] %v26282_v43  ;;  %v26292_v53 = vld [vmem:[%s33417_s0 + $0x1298] sm:$0xff]   ;;  %24530 = vst [vmem:[%s33418_s1 + $0x698] sm:$0xff] %v26291_v52 }
 0x1da   :  { %v26284_v45 = vld [vmem:[%s33417_s0 + $0x688] sm:$0xff]   ;;  %24498 = vst [vmem:[%s33418_s1 + $0x1288] sm:$0xff] %v26283_v44  ;;  %v26293_v54 = vld [vmem:[%s33417_s0 + $0x698] sm:$0xff]   ;;  %24534 = vst [vmem:[%s33418_s1 + $0x1298] sm:$0xff] %v26292_v53 }
 0x1db   :  { %v26285_v46 = vld [vmem:[%s33417_s0 + $0x1a88] sm:$0xff]   ;;  %24502 = vst [vmem:[%s33418_s1 + $0x1e88] sm:$0xff] %v26284_v45  ;;  %v26294_v55 = vld [vmem:[%s33417_s0 + $0x1a98] sm:$0xff]   ;;  %24538 = vst [vmem:[%s33418_s1 + $0x1e98] sm:$0xff] %v26293_v54 }
 0x1dc   :  { %v26286_v47 = vld [vmem:[%s33417_s0 + $0xe88] sm:$0xff]   ;;  %24506 = vst [vmem:[%s33418_s1 + $0xa88] sm:$0xff] %v26285_v46  ;;  %v26295_v56 = vld [vmem:[%s33417_s0 + $0xe98] sm:$0xff]   ;;  %24542 = vst [vmem:[%s33418_s1 + $0xa98] sm:$0xff] %v26294_v55 }
 0x1dd   :  { %v26287_v48 = vld [vmem:[%s33417_s0 + $0x288] sm:$0xff]   ;;  %24510 = vst [vmem:[%s33418_s1 + $0x1688] sm:$0xff] %v26286_v47  ;;  %v26296_v57 = vld [vmem:[%s33417_s0 + $0x298] sm:$0xff]   ;;  %24546 = vst [vmem:[%s33418_s1 + $0x1698] sm:$0xff] %v26295_v56 }
 0x1de   :  { %24514 = vst [vmem:[%s33418_s1 + $0x2288] sm:$0xff] %v26287_v48  ;;  %v26297_v58 = vld [vmem:[%s33417_s0 + $0x22a8] sm:$0xff]   ;;  %24550 = vst [vmem:[%s33418_s1 + $0x2298] sm:$0xff] %v26296_v57  ;;  %v26306_v3 = vld [vmem:[%s33417_s0 + $0x22b8] sm:$0xff]  }
 0x1df   :  { %v26298_v59 = vld [vmem:[%s33417_s0 + $0x16a8] sm:$0xff]   ;;  %24554 = vst [vmem:[%s33418_s1 + $0x2a8] sm:$0xff] %v26297_v58  ;;  %v26307_v4 = vld [vmem:[%s33417_s0 + $0x16b8] sm:$0xff]   ;;  %24590 = vst [vmem:[%s33418_s1 + $0x2b8] sm:$0xff] %v26306_v3 }
 0x1e0   :  { %v26299_v60 = vld [vmem:[%s33417_s0 + $0xaa8] sm:$0xff]   ;;  %24558 = vst [vmem:[%s33418_s1 + $0xea8] sm:$0xff] %v26298_v59  ;;  %v26308_v5 = vld [vmem:[%s33417_s0 + $0xab8] sm:$0xff]   ;;  %24594 = vst [vmem:[%s33418_s1 + $0xeb8] sm:$0xff] %v26307_v4 }
 0x1e1   :  { %v26300_v61 = vld [vmem:[%s33417_s0 + $0x1ea8] sm:$0xff]   ;;  %24562 = vst [vmem:[%s33418_s1 + $0x1aa8] sm:$0xff] %v26299_v60  ;;  %v26309_v6 = vld [vmem:[%s33417_s0 + $0x1eb8] sm:$0xff]   ;;  %24598 = vst [vmem:[%s33418_s1 + $0x1ab8] sm:$0xff] %v26308_v5 }
 0x1e2   :  { %v26301_v62 = vld [vmem:[%s33417_s0 + $0x12a8] sm:$0xff]   ;;  %24566 = vst [vmem:[%s33418_s1 + $0x6a8] sm:$0xff] %v26300_v61  ;;  %v26310_v7 = vld [vmem:[%s33417_s0 + $0x12b8] sm:$0xff]   ;;  %24602 = vst [vmem:[%s33418_s1 + $0x6b8] sm:$0xff] %v26309_v6 }
 0x1e3   :  { %v26302_v63 = vld [vmem:[%s33417_s0 + $0x6a8] sm:$0xff]   ;;  %24570 = vst [vmem:[%s33418_s1 + $0x12a8] sm:$0xff] %v26301_v62  ;;  %v26311_v8 = vld [vmem:[%s33417_s0 + $0x6b8] sm:$0xff]   ;;  %24606 = vst [vmem:[%s33418_s1 + $0x12b8] sm:$0xff] %v26310_v7 }
 0x1e4   :  { %v26303_v0 = vld [vmem:[%s33417_s0 + $0x1aa8] sm:$0xff]   ;;  %24574 = vst [vmem:[%s33418_s1 + $0x1ea8] sm:$0xff] %v26302_v63  ;;  %v26312_v9 = vld [vmem:[%s33417_s0 + $0x1ab8] sm:$0xff]   ;;  %24610 = vst [vmem:[%s33418_s1 + $0x1eb8] sm:$0xff] %v26311_v8 }
 0x1e5   :  { %v26304_v1 = vld [vmem:[%s33417_s0 + $0xea8] sm:$0xff]   ;;  %24578 = vst [vmem:[%s33418_s1 + $0xaa8] sm:$0xff] %v26303_v0  ;;  %v26313_v10 = vld [vmem:[%s33417_s0 + $0xeb8] sm:$0xff]   ;;  %24614 = vst [vmem:[%s33418_s1 + $0xab8] sm:$0xff] %v26312_v9 }
 0x1e6   :  { %v26305_v2 = vld [vmem:[%s33417_s0 + $0x2a8] sm:$0xff]   ;;  %24582 = vst [vmem:[%s33418_s1 + $0x16a8] sm:$0xff] %v26304_v1  ;;  %v26314_v11 = vld [vmem:[%s33417_s0 + $0x2b8] sm:$0xff]   ;;  %24618 = vst [vmem:[%s33418_s1 + $0x16b8] sm:$0xff] %v26313_v10 }
 0x1e7   :  { %24586 = vst [vmem:[%s33418_s1 + $0x22a8] sm:$0xff] %v26305_v2  ;;  %v26315_v12 = vld [vmem:[%s33417_s0 + $0x22c8] sm:$0xff]   ;;  %24622 = vst [vmem:[%s33418_s1 + $0x22b8] sm:$0xff] %v26314_v11  ;;  %v26324_v21 = vld [vmem:[%s33417_s0 + $0x22d8] sm:$0xff]  }
 0x1e8   :  { %v26316_v13 = vld [vmem:[%s33417_s0 + $0x16c8] sm:$0xff]   ;;  %24626 = vst [vmem:[%s33418_s1 + $0x2c8] sm:$0xff] %v26315_v12  ;;  %v26325_v22 = vld [vmem:[%s33417_s0 + $0x16d8] sm:$0xff]   ;;  %24662 = vst [vmem:[%s33418_s1 + $0x2d8] sm:$0xff] %v26324_v21 }
 0x1e9   :  { %v26317_v14 = vld [vmem:[%s33417_s0 + $0xac8] sm:$0xff]   ;;  %24630 = vst [vmem:[%s33418_s1 + $0xec8] sm:$0xff] %v26316_v13  ;;  %v26326_v23 = vld [vmem:[%s33417_s0 + $0xad8] sm:$0xff]   ;;  %24666 = vst [vmem:[%s33418_s1 + $0xed8] sm:$0xff] %v26325_v22 }
 0x1ea   :  { %v26318_v15 = vld [vmem:[%s33417_s0 + $0x1ec8] sm:$0xff]   ;;  %24634 = vst [vmem:[%s33418_s1 + $0x1ac8] sm:$0xff] %v26317_v14  ;;  %v26327_v24 = vld [vmem:[%s33417_s0 + $0x1ed8] sm:$0xff]   ;;  %24670 = vst [vmem:[%s33418_s1 + $0x1ad8] sm:$0xff] %v26326_v23 }
 0x1eb   :  { %v26319_v16 = vld [vmem:[%s33417_s0 + $0x12c8] sm:$0xff]   ;;  %24638 = vst [vmem:[%s33418_s1 + $0x6c8] sm:$0xff] %v26318_v15  ;;  %v26328_v25 = vld [vmem:[%s33417_s0 + $0x12d8] sm:$0xff]   ;;  %24674 = vst [vmem:[%s33418_s1 + $0x6d8] sm:$0xff] %v26327_v24 }
 0x1ec   :  { %v26320_v17 = vld [vmem:[%s33417_s0 + $0x6c8] sm:$0xff]   ;;  %24642 = vst [vmem:[%s33418_s1 + $0x12c8] sm:$0xff] %v26319_v16  ;;  %v26329_v26 = vld [vmem:[%s33417_s0 + $0x6d8] sm:$0xff]   ;;  %24678 = vst [vmem:[%s33418_s1 + $0x12d8] sm:$0xff] %v26328_v25 }
 0x1ed   :  { %v26321_v18 = vld [vmem:[%s33417_s0 + $0x1ac8] sm:$0xff]   ;;  %24646 = vst [vmem:[%s33418_s1 + $0x1ec8] sm:$0xff] %v26320_v17  ;;  %v26330_v27 = vld [vmem:[%s33417_s0 + $0x1ad8] sm:$0xff]   ;;  %24682 = vst [vmem:[%s33418_s1 + $0x1ed8] sm:$0xff] %v26329_v26 }
 0x1ee   :  { %v26322_v19 = vld [vmem:[%s33417_s0 + $0xec8] sm:$0xff]   ;;  %24650 = vst [vmem:[%s33418_s1 + $0xac8] sm:$0xff] %v26321_v18  ;;  %v26331_v28 = vld [vmem:[%s33417_s0 + $0xed8] sm:$0xff]   ;;  %24686 = vst [vmem:[%s33418_s1 + $0xad8] sm:$0xff] %v26330_v27 }
 0x1ef   :  { %v26323_v20 = vld [vmem:[%s33417_s0 + $0x2c8] sm:$0xff]   ;;  %24654 = vst [vmem:[%s33418_s1 + $0x16c8] sm:$0xff] %v26322_v19  ;;  %v26332_v29 = vld [vmem:[%s33417_s0 + $0x2d8] sm:$0xff]   ;;  %24690 = vst [vmem:[%s33418_s1 + $0x16d8] sm:$0xff] %v26331_v28 }
 0x1f0   :  { %24658 = vst [vmem:[%s33418_s1 + $0x22c8] sm:$0xff] %v26323_v20  ;;  %v26333_v30 = vld [vmem:[%s33417_s0 + $0x22e8] sm:$0xff]   ;;  %24694 = vst [vmem:[%s33418_s1 + $0x22d8] sm:$0xff] %v26332_v29  ;;  %v26342_v39 = vld [vmem:[%s33417_s0 + $0x22f8] sm:$0xff]  }
 0x1f1   :  { %v26334_v31 = vld [vmem:[%s33417_s0 + $0x16e8] sm:$0xff]   ;;  %24698 = vst [vmem:[%s33418_s1 + $0x2e8] sm:$0xff] %v26333_v30  ;;  %v26343_v40 = vld [vmem:[%s33417_s0 + $0x16f8] sm:$0xff]   ;;  %24734 = vst [vmem:[%s33418_s1 + $0x2f8] sm:$0xff] %v26342_v39 }
 0x1f2   :  { %v26335_v32 = vld [vmem:[%s33417_s0 + $0xae8] sm:$0xff]   ;;  %24702 = vst [vmem:[%s33418_s1 + $0xee8] sm:$0xff] %v26334_v31  ;;  %v26344_v41 = vld [vmem:[%s33417_s0 + $0xaf8] sm:$0xff]   ;;  %24738 = vst [vmem:[%s33418_s1 + $0xef8] sm:$0xff] %v26343_v40 }
 0x1f3   :  { %v26336_v33 = vld [vmem:[%s33417_s0 + $0x1ee8] sm:$0xff]   ;;  %24706 = vst [vmem:[%s33418_s1 + $0x1ae8] sm:$0xff] %v26335_v32  ;;  %v26345_v42 = vld [vmem:[%s33417_s0 + $0x1ef8] sm:$0xff]   ;;  %24742 = vst [vmem:[%s33418_s1 + $0x1af8] sm:$0xff] %v26344_v41 }
 0x1f4   :  { %v26337_v34 = vld [vmem:[%s33417_s0 + $0x12e8] sm:$0xff]   ;;  %24710 = vst [vmem:[%s33418_s1 + $0x6e8] sm:$0xff] %v26336_v33  ;;  %v26346_v43 = vld [vmem:[%s33417_s0 + $0x12f8] sm:$0xff]   ;;  %24746 = vst [vmem:[%s33418_s1 + $0x6f8] sm:$0xff] %v26345_v42 }
 0x1f5   :  { %v26338_v35 = vld [vmem:[%s33417_s0 + $0x6e8] sm:$0xff]   ;;  %24714 = vst [vmem:[%s33418_s1 + $0x12e8] sm:$0xff] %v26337_v34  ;;  %v26347_v44 = vld [vmem:[%s33417_s0 + $0x6f8] sm:$0xff]   ;;  %24750 = vst [vmem:[%s33418_s1 + $0x12f8] sm:$0xff] %v26346_v43 }
 0x1f6   :  { %v26339_v36 = vld [vmem:[%s33417_s0 + $0x1ae8] sm:$0xff]   ;;  %24718 = vst [vmem:[%s33418_s1 + $0x1ee8] sm:$0xff] %v26338_v35  ;;  %v26348_v45 = vld [vmem:[%s33417_s0 + $0x1af8] sm:$0xff]   ;;  %24754 = vst [vmem:[%s33418_s1 + $0x1ef8] sm:$0xff] %v26347_v44 }
 0x1f7   :  { %v26340_v37 = vld [vmem:[%s33417_s0 + $0xee8] sm:$0xff]   ;;  %24722 = vst [vmem:[%s33418_s1 + $0xae8] sm:$0xff] %v26339_v36  ;;  %v26349_v46 = vld [vmem:[%s33417_s0 + $0xef8] sm:$0xff]   ;;  %24758 = vst [vmem:[%s33418_s1 + $0xaf8] sm:$0xff] %v26348_v45 }
 0x1f8   :  { %v26341_v38 = vld [vmem:[%s33417_s0 + $0x2e8] sm:$0xff]   ;;  %24726 = vst [vmem:[%s33418_s1 + $0x16e8] sm:$0xff] %v26340_v37  ;;  %v26350_v47 = vld [vmem:[%s33417_s0 + $0x2f8] sm:$0xff]   ;;  %24762 = vst [vmem:[%s33418_s1 + $0x16f8] sm:$0xff] %v26349_v46 }
 0x1f9   :  { %24730 = vst [vmem:[%s33418_s1 + $0x22e8] sm:$0xff] %v26341_v38  ;;  %v26351_v48 = vld [vmem:[%s33417_s0 + $0x2308] sm:$0xff]   ;;  %24766 = vst [vmem:[%s33418_s1 + $0x22f8] sm:$0xff] %v26350_v47  ;;  %v26360_v57 = vld [vmem:[%s33417_s0 + $0x2318] sm:$0xff]  }
 0x1fa   :  { %v26352_v49 = vld [vmem:[%s33417_s0 + $0x1708] sm:$0xff]   ;;  %24770 = vst [vmem:[%s33418_s1 + $0x308] sm:$0xff] %v26351_v48  ;;  %v26361_v58 = vld [vmem:[%s33417_s0 + $0x1718] sm:$0xff]   ;;  %24806 = vst [vmem:[%s33418_s1 + $0x318] sm:$0xff] %v26360_v57 }
 0x1fb   :  { %v26353_v50 = vld [vmem:[%s33417_s0 + $0xb08] sm:$0xff]   ;;  %24774 = vst [vmem:[%s33418_s1 + $0xf08] sm:$0xff] %v26352_v49  ;;  %v26362_v59 = vld [vmem:[%s33417_s0 + $0xb18] sm:$0xff]   ;;  %24810 = vst [vmem:[%s33418_s1 + $0xf18] sm:$0xff] %v26361_v58 }
 0x1fc   :  { %v26354_v51 = vld [vmem:[%s33417_s0 + $0x1f08] sm:$0xff]   ;;  %24778 = vst [vmem:[%s33418_s1 + $0x1b08] sm:$0xff] %v26353_v50  ;;  %v26363_v60 = vld [vmem:[%s33417_s0 + $0x1f18] sm:$0xff]   ;;  %24814 = vst [vmem:[%s33418_s1 + $0x1b18] sm:$0xff] %v26362_v59 }
 0x1fd   :  { %v26355_v52 = vld [vmem:[%s33417_s0 + $0x1308] sm:$0xff]   ;;  %24782 = vst [vmem:[%s33418_s1 + $0x708] sm:$0xff] %v26354_v51  ;;  %v26364_v61 = vld [vmem:[%s33417_s0 + $0x1318] sm:$0xff]   ;;  %24818 = vst [vmem:[%s33418_s1 + $0x718] sm:$0xff] %v26363_v60 }
 0x1fe   :  { %v26356_v53 = vld [vmem:[%s33417_s0 + $0x708] sm:$0xff]   ;;  %24786 = vst [vmem:[%s33418_s1 + $0x1308] sm:$0xff] %v26355_v52  ;;  %v26365_v62 = vld [vmem:[%s33417_s0 + $0x718] sm:$0xff]   ;;  %24822 = vst [vmem:[%s33418_s1 + $0x1318] sm:$0xff] %v26364_v61 }
 0x1ff   :  { %v26357_v54 = vld [vmem:[%s33417_s0 + $0x1b08] sm:$0xff]   ;;  %24790 = vst [vmem:[%s33418_s1 + $0x1f08] sm:$0xff] %v26356_v53  ;;  %v26366_v63 = vld [vmem:[%s33417_s0 + $0x1b18] sm:$0xff]   ;;  %24826 = vst [vmem:[%s33418_s1 + $0x1f18] sm:$0xff] %v26365_v62 }
 0x200   :  { %v26358_v55 = vld [vmem:[%s33417_s0 + $0xf08] sm:$0xff]   ;;  %24794 = vst [vmem:[%s33418_s1 + $0xb08] sm:$0xff] %v26357_v54  ;;  %v26367_v0 = vld [vmem:[%s33417_s0 + $0xf18] sm:$0xff]   ;;  %24830 = vst [vmem:[%s33418_s1 + $0xb18] sm:$0xff] %v26366_v63 }
 0x201   :  { %v26359_v56 = vld [vmem:[%s33417_s0 + $0x308] sm:$0xff]   ;;  %24798 = vst [vmem:[%s33418_s1 + $0x1708] sm:$0xff] %v26358_v55  ;;  %v26368_v1 = vld [vmem:[%s33417_s0 + $0x318] sm:$0xff]   ;;  %24834 = vst [vmem:[%s33418_s1 + $0x1718] sm:$0xff] %v26367_v0 }
 0x202   :  { %24802 = vst [vmem:[%s33418_s1 + $0x2308] sm:$0xff] %v26359_v56  ;;  %v26369_v2 = vld [vmem:[%s33417_s0 + $0x2328] sm:$0xff]   ;;  %24838 = vst [vmem:[%s33418_s1 + $0x2318] sm:$0xff] %v26368_v1  ;;  %v26378_v11 = vld [vmem:[%s33417_s0 + $0x2338] sm:$0xff]  }
 0x203   :  { %v26370_v3 = vld [vmem:[%s33417_s0 + $0x1728] sm:$0xff]   ;;  %24842 = vst [vmem:[%s33418_s1 + $0x328] sm:$0xff] %v26369_v2  ;;  %v26379_v12 = vld [vmem:[%s33417_s0 + $0x1738] sm:$0xff]   ;;  %24878 = vst [vmem:[%s33418_s1 + $0x338] sm:$0xff] %v26378_v11 }
 0x204   :  { %v26371_v4 = vld [vmem:[%s33417_s0 + $0xb28] sm:$0xff]   ;;  %24846 = vst [vmem:[%s33418_s1 + $0xf28] sm:$0xff] %v26370_v3  ;;  %v26380_v13 = vld [vmem:[%s33417_s0 + $0xb38] sm:$0xff]   ;;  %24882 = vst [vmem:[%s33418_s1 + $0xf38] sm:$0xff] %v26379_v12 }
 0x205   :  { %v26372_v5 = vld [vmem:[%s33417_s0 + $0x1f28] sm:$0xff]   ;;  %24850 = vst [vmem:[%s33418_s1 + $0x1b28] sm:$0xff] %v26371_v4  ;;  %v26381_v14 = vld [vmem:[%s33417_s0 + $0x1f38] sm:$0xff]   ;;  %24886 = vst [vmem:[%s33418_s1 + $0x1b38] sm:$0xff] %v26380_v13 }
 0x206   :  { %v26373_v6 = vld [vmem:[%s33417_s0 + $0x1328] sm:$0xff]   ;;  %24854 = vst [vmem:[%s33418_s1 + $0x728] sm:$0xff] %v26372_v5  ;;  %v26382_v15 = vld [vmem:[%s33417_s0 + $0x1338] sm:$0xff]   ;;  %24890 = vst [vmem:[%s33418_s1 + $0x738] sm:$0xff] %v26381_v14 }
 0x207   :  { %v26374_v7 = vld [vmem:[%s33417_s0 + $0x728] sm:$0xff]   ;;  %24858 = vst [vmem:[%s33418_s1 + $0x1328] sm:$0xff] %v26373_v6  ;;  %v26383_v16 = vld [vmem:[%s33417_s0 + $0x738] sm:$0xff]   ;;  %24894 = vst [vmem:[%s33418_s1 + $0x1338] sm:$0xff] %v26382_v15 }
 0x208   :  { %v26375_v8 = vld [vmem:[%s33417_s0 + $0x1b28] sm:$0xff]   ;;  %24862 = vst [vmem:[%s33418_s1 + $0x1f28] sm:$0xff] %v26374_v7  ;;  %v26384_v17 = vld [vmem:[%s33417_s0 + $0x1b38] sm:$0xff]   ;;  %24898 = vst [vmem:[%s33418_s1 + $0x1f38] sm:$0xff] %v26383_v16 }
 0x209   :  { %v26376_v9 = vld [vmem:[%s33417_s0 + $0xf28] sm:$0xff]   ;;  %24866 = vst [vmem:[%s33418_s1 + $0xb28] sm:$0xff] %v26375_v8  ;;  %v26385_v18 = vld [vmem:[%s33417_s0 + $0xf38] sm:$0xff]   ;;  %24902 = vst [vmem:[%s33418_s1 + $0xb38] sm:$0xff] %v26384_v17 }
 0x20a   :  { %v26377_v10 = vld [vmem:[%s33417_s0 + $0x328] sm:$0xff]   ;;  %24870 = vst [vmem:[%s33418_s1 + $0x1728] sm:$0xff] %v26376_v9  ;;  %v26386_v19 = vld [vmem:[%s33417_s0 + $0x338] sm:$0xff]   ;;  %24906 = vst [vmem:[%s33418_s1 + $0x1738] sm:$0xff] %v26385_v18 }
 0x20b   :  { %24874 = vst [vmem:[%s33418_s1 + $0x2328] sm:$0xff] %v26377_v10  ;;  %v26387_v20 = vld [vmem:[%s33417_s0 + $0x2348] sm:$0xff]   ;;  %24910 = vst [vmem:[%s33418_s1 + $0x2338] sm:$0xff] %v26386_v19  ;;  %v26396_v29 = vld [vmem:[%s33417_s0 + $0x2358] sm:$0xff]  }
 0x20c   :  { %v26388_v21 = vld [vmem:[%s33417_s0 + $0x1748] sm:$0xff]   ;;  %24914 = vst [vmem:[%s33418_s1 + $0x348] sm:$0xff] %v26387_v20  ;;  %v26397_v30 = vld [vmem:[%s33417_s0 + $0x1758] sm:$0xff]   ;;  %24950 = vst [vmem:[%s33418_s1 + $0x358] sm:$0xff] %v26396_v29 }
 0x20d   :  { %v26389_v22 = vld [vmem:[%s33417_s0 + $0xb48] sm:$0xff]   ;;  %24918 = vst [vmem:[%s33418_s1 + $0xf48] sm:$0xff] %v26388_v21  ;;  %v26398_v31 = vld [vmem:[%s33417_s0 + $0xb58] sm:$0xff]   ;;  %24954 = vst [vmem:[%s33418_s1 + $0xf58] sm:$0xff] %v26397_v30 }
 0x20e   :  { %v26390_v23 = vld [vmem:[%s33417_s0 + $0x1f48] sm:$0xff]   ;;  %24922 = vst [vmem:[%s33418_s1 + $0x1b48] sm:$0xff] %v26389_v22  ;;  %v26399_v32 = vld [vmem:[%s33417_s0 + $0x1f58] sm:$0xff]   ;;  %24958 = vst [vmem:[%s33418_s1 + $0x1b58] sm:$0xff] %v26398_v31 }
 0x20f   :  { %v26391_v24 = vld [vmem:[%s33417_s0 + $0x1348] sm:$0xff]   ;;  %24926 = vst [vmem:[%s33418_s1 + $0x748] sm:$0xff] %v26390_v23  ;;  %v26400_v33 = vld [vmem:[%s33417_s0 + $0x1358] sm:$0xff]   ;;  %24962 = vst [vmem:[%s33418_s1 + $0x758] sm:$0xff] %v26399_v32 }
 0x210   :  { %v26392_v25 = vld [vmem:[%s33417_s0 + $0x748] sm:$0xff]   ;;  %24930 = vst [vmem:[%s33418_s1 + $0x1348] sm:$0xff] %v26391_v24  ;;  %v26401_v34 = vld [vmem:[%s33417_s0 + $0x758] sm:$0xff]   ;;  %24966 = vst [vmem:[%s33418_s1 + $0x1358] sm:$0xff] %v26400_v33 }
 0x211   :  { %v26393_v26 = vld [vmem:[%s33417_s0 + $0x1b48] sm:$0xff]   ;;  %24934 = vst [vmem:[%s33418_s1 + $0x1f48] sm:$0xff] %v26392_v25  ;;  %v26402_v35 = vld [vmem:[%s33417_s0 + $0x1b58] sm:$0xff]   ;;  %24970 = vst [vmem:[%s33418_s1 + $0x1f58] sm:$0xff] %v26401_v34 }
 0x212   :  { %v26394_v27 = vld [vmem:[%s33417_s0 + $0xf48] sm:$0xff]   ;;  %24938 = vst [vmem:[%s33418_s1 + $0xb48] sm:$0xff] %v26393_v26  ;;  %v26403_v36 = vld [vmem:[%s33417_s0 + $0xf58] sm:$0xff]   ;;  %24974 = vst [vmem:[%s33418_s1 + $0xb58] sm:$0xff] %v26402_v35 }
 0x213   :  { %v26395_v28 = vld [vmem:[%s33417_s0 + $0x348] sm:$0xff]   ;;  %24942 = vst [vmem:[%s33418_s1 + $0x1748] sm:$0xff] %v26394_v27  ;;  %v26404_v37 = vld [vmem:[%s33417_s0 + $0x358] sm:$0xff]   ;;  %24978 = vst [vmem:[%s33418_s1 + $0x1758] sm:$0xff] %v26403_v36 }
 0x214   :  { %24946 = vst [vmem:[%s33418_s1 + $0x2348] sm:$0xff] %v26395_v28  ;;  %v26405_v38 = vld [vmem:[%s33417_s0 + $0x2368] sm:$0xff]   ;;  %24982 = vst [vmem:[%s33418_s1 + $0x2358] sm:$0xff] %v26404_v37  ;;  %v26414_v47 = vld [vmem:[%s33417_s0 + $0x2378] sm:$0xff]  }
 0x215   :  { %v26406_v39 = vld [vmem:[%s33417_s0 + $0x1768] sm:$0xff]   ;;  %24986 = vst [vmem:[%s33418_s1 + $0x368] sm:$0xff] %v26405_v38  ;;  %v26415_v48 = vld [vmem:[%s33417_s0 + $0x1778] sm:$0xff]   ;;  %25022 = vst [vmem:[%s33418_s1 + $0x378] sm:$0xff] %v26414_v47 }
 0x216   :  { %v26407_v40 = vld [vmem:[%s33417_s0 + $0xb68] sm:$0xff]   ;;  %24990 = vst [vmem:[%s33418_s1 + $0xf68] sm:$0xff] %v26406_v39  ;;  %v26416_v49 = vld [vmem:[%s33417_s0 + $0xb78] sm:$0xff]   ;;  %25026 = vst [vmem:[%s33418_s1 + $0xf78] sm:$0xff] %v26415_v48 }
 0x217   :  { %v26408_v41 = vld [vmem:[%s33417_s0 + $0x1f68] sm:$0xff]   ;;  %24994 = vst [vmem:[%s33418_s1 + $0x1b68] sm:$0xff] %v26407_v40  ;;  %v26417_v50 = vld [vmem:[%s33417_s0 + $0x1f78] sm:$0xff]   ;;  %25030 = vst [vmem:[%s33418_s1 + $0x1b78] sm:$0xff] %v26416_v49 }
 0x218   :  { %v26409_v42 = vld [vmem:[%s33417_s0 + $0x1368] sm:$0xff]   ;;  %24998 = vst [vmem:[%s33418_s1 + $0x768] sm:$0xff] %v26408_v41  ;;  %v26418_v51 = vld [vmem:[%s33417_s0 + $0x1378] sm:$0xff]   ;;  %25034 = vst [vmem:[%s33418_s1 + $0x778] sm:$0xff] %v26417_v50 }
 0x219   :  { %v26410_v43 = vld [vmem:[%s33417_s0 + $0x768] sm:$0xff]   ;;  %25002 = vst [vmem:[%s33418_s1 + $0x1368] sm:$0xff] %v26409_v42  ;;  %v26419_v52 = vld [vmem:[%s33417_s0 + $0x778] sm:$0xff]   ;;  %25038 = vst [vmem:[%s33418_s1 + $0x1378] sm:$0xff] %v26418_v51 }
 0x21a   :  { %v26411_v44 = vld [vmem:[%s33417_s0 + $0x1b68] sm:$0xff]   ;;  %25006 = vst [vmem:[%s33418_s1 + $0x1f68] sm:$0xff] %v26410_v43  ;;  %v26420_v53 = vld [vmem:[%s33417_s0 + $0x1b78] sm:$0xff]   ;;  %25042 = vst [vmem:[%s33418_s1 + $0x1f78] sm:$0xff] %v26419_v52 }
 0x21b   :  { %v26412_v45 = vld [vmem:[%s33417_s0 + $0xf68] sm:$0xff]   ;;  %25010 = vst [vmem:[%s33418_s1 + $0xb68] sm:$0xff] %v26411_v44  ;;  %v26421_v54 = vld [vmem:[%s33417_s0 + $0xf78] sm:$0xff]   ;;  %25046 = vst [vmem:[%s33418_s1 + $0xb78] sm:$0xff] %v26420_v53 }
 0x21c   :  { %v26413_v46 = vld [vmem:[%s33417_s0 + $0x368] sm:$0xff]   ;;  %25014 = vst [vmem:[%s33418_s1 + $0x1768] sm:$0xff] %v26412_v45  ;;  %v26422_v55 = vld [vmem:[%s33417_s0 + $0x378] sm:$0xff]   ;;  %25050 = vst [vmem:[%s33418_s1 + $0x1778] sm:$0xff] %v26421_v54 }
 0x21d   :  { %25018 = vst [vmem:[%s33418_s1 + $0x2368] sm:$0xff] %v26413_v46  ;;  %v26423_v56 = vld [vmem:[%s33417_s0 + $0x2388] sm:$0xff]   ;;  %25054 = vst [vmem:[%s33418_s1 + $0x2378] sm:$0xff] %v26422_v55  ;;  %v26432_v1 = vld [vmem:[%s33417_s0 + $0x2398] sm:$0xff]  }
 0x21e   :  { %v26424_v57 = vld [vmem:[%s33417_s0 + $0x1788] sm:$0xff]   ;;  %25058 = vst [vmem:[%s33418_s1 + $0x388] sm:$0xff] %v26423_v56  ;;  %v26433_v2 = vld [vmem:[%s33417_s0 + $0x1798] sm:$0xff]   ;;  %25094 = vst [vmem:[%s33418_s1 + $0x398] sm:$0xff] %v26432_v1 }
 0x21f   :  { %v26425_v58 = vld [vmem:[%s33417_s0 + $0xb88] sm:$0xff]   ;;  %25062 = vst [vmem:[%s33418_s1 + $0xf88] sm:$0xff] %v26424_v57  ;;  %v26434_v3 = vld [vmem:[%s33417_s0 + $0xb98] sm:$0xff]   ;;  %25098 = vst [vmem:[%s33418_s1 + $0xf98] sm:$0xff] %v26433_v2 }
 0x220   :  { %v26426_v59 = vld [vmem:[%s33417_s0 + $0x1f88] sm:$0xff]   ;;  %25066 = vst [vmem:[%s33418_s1 + $0x1b88] sm:$0xff] %v26425_v58  ;;  %v26435_v4 = vld [vmem:[%s33417_s0 + $0x1f98] sm:$0xff]   ;;  %25102 = vst [vmem:[%s33418_s1 + $0x1b98] sm:$0xff] %v26434_v3 }
 0x221   :  { %v26427_v60 = vld [vmem:[%s33417_s0 + $0x1388] sm:$0xff]   ;;  %25070 = vst [vmem:[%s33418_s1 + $0x788] sm:$0xff] %v26426_v59  ;;  %v26436_v5 = vld [vmem:[%s33417_s0 + $0x1398] sm:$0xff]   ;;  %25106 = vst [vmem:[%s33418_s1 + $0x798] sm:$0xff] %v26435_v4 }
 0x222   :  { %v26428_v61 = vld [vmem:[%s33417_s0 + $0x788] sm:$0xff]   ;;  %25074 = vst [vmem:[%s33418_s1 + $0x1388] sm:$0xff] %v26427_v60  ;;  %v26437_v6 = vld [vmem:[%s33417_s0 + $0x798] sm:$0xff]   ;;  %25110 = vst [vmem:[%s33418_s1 + $0x1398] sm:$0xff] %v26436_v5 }
 0x223   :  { %v26429_v62 = vld [vmem:[%s33417_s0 + $0x1b88] sm:$0xff]   ;;  %25078 = vst [vmem:[%s33418_s1 + $0x1f88] sm:$0xff] %v26428_v61  ;;  %v26438_v7 = vld [vmem:[%s33417_s0 + $0x1b98] sm:$0xff]   ;;  %25114 = vst [vmem:[%s33418_s1 + $0x1f98] sm:$0xff] %v26437_v6 }
 0x224   :  { %v26430_v63 = vld [vmem:[%s33417_s0 + $0xf88] sm:$0xff]   ;;  %25082 = vst [vmem:[%s33418_s1 + $0xb88] sm:$0xff] %v26429_v62  ;;  %v26439_v8 = vld [vmem:[%s33417_s0 + $0xf98] sm:$0xff]   ;;  %25118 = vst [vmem:[%s33418_s1 + $0xb98] sm:$0xff] %v26438_v7 }
 0x225   :  { %v26431_v0 = vld [vmem:[%s33417_s0 + $0x388] sm:$0xff]   ;;  %25086 = vst [vmem:[%s33418_s1 + $0x1788] sm:$0xff] %v26430_v63  ;;  %v26440_v9 = vld [vmem:[%s33417_s0 + $0x398] sm:$0xff]   ;;  %25122 = vst [vmem:[%s33418_s1 + $0x1798] sm:$0xff] %v26439_v8 }
 0x226   :  { %25090 = vst [vmem:[%s33418_s1 + $0x2388] sm:$0xff] %v26431_v0  ;;  %v26441_v10 = vld [vmem:[%s33417_s0 + $0x23a8] sm:$0xff]   ;;  %25126 = vst [vmem:[%s33418_s1 + $0x2398] sm:$0xff] %v26440_v9  ;;  %v26450_v19 = vld [vmem:[%s33417_s0 + $0x23b8] sm:$0xff]  }
 0x227   :  { %v26442_v11 = vld [vmem:[%s33417_s0 + $0x17a8] sm:$0xff]   ;;  %25130 = vst [vmem:[%s33418_s1 + $0x3a8] sm:$0xff] %v26441_v10  ;;  %v26451_v20 = vld [vmem:[%s33417_s0 + $0x17b8] sm:$0xff]   ;;  %25166 = vst [vmem:[%s33418_s1 + $0x3b8] sm:$0xff] %v26450_v19 }
 0x228   :  { %v26443_v12 = vld [vmem:[%s33417_s0 + $0xba8] sm:$0xff]   ;;  %25134 = vst [vmem:[%s33418_s1 + $0xfa8] sm:$0xff] %v26442_v11  ;;  %v26452_v21 = vld [vmem:[%s33417_s0 + $0xbb8] sm:$0xff]   ;;  %25170 = vst [vmem:[%s33418_s1 + $0xfb8] sm:$0xff] %v26451_v20 }
 0x229   :  { %v26444_v13 = vld [vmem:[%s33417_s0 + $0x1fa8] sm:$0xff]   ;;  %25138 = vst [vmem:[%s33418_s1 + $0x1ba8] sm:$0xff] %v26443_v12  ;;  %v26453_v22 = vld [vmem:[%s33417_s0 + $0x1fb8] sm:$0xff]   ;;  %25174 = vst [vmem:[%s33418_s1 + $0x1bb8] sm:$0xff] %v26452_v21 }
 0x22a   :  { %v26445_v14 = vld [vmem:[%s33417_s0 + $0x13a8] sm:$0xff]   ;;  %25142 = vst [vmem:[%s33418_s1 + $0x7a8] sm:$0xff] %v26444_v13  ;;  %v26454_v23 = vld [vmem:[%s33417_s0 + $0x13b8] sm:$0xff]   ;;  %25178 = vst [vmem:[%s33418_s1 + $0x7b8] sm:$0xff] %v26453_v22 }
 0x22b   :  { %v26446_v15 = vld [vmem:[%s33417_s0 + $0x7a8] sm:$0xff]   ;;  %25146 = vst [vmem:[%s33418_s1 + $0x13a8] sm:$0xff] %v26445_v14  ;;  %v26455_v24 = vld [vmem:[%s33417_s0 + $0x7b8] sm:$0xff]   ;;  %25182 = vst [vmem:[%s33418_s1 + $0x13b8] sm:$0xff] %v26454_v23 }
 0x22c   :  { %v26447_v16 = vld [vmem:[%s33417_s0 + $0x1ba8] sm:$0xff]   ;;  %25150 = vst [vmem:[%s33418_s1 + $0x1fa8] sm:$0xff] %v26446_v15  ;;  %v26456_v25 = vld [vmem:[%s33417_s0 + $0x1bb8] sm:$0xff]   ;;  %25186 = vst [vmem:[%s33418_s1 + $0x1fb8] sm:$0xff] %v26455_v24 }
 0x22d   :  { %v26448_v17 = vld [vmem:[%s33417_s0 + $0xfa8] sm:$0xff]   ;;  %25154 = vst [vmem:[%s33418_s1 + $0xba8] sm:$0xff] %v26447_v16  ;;  %v26457_v26 = vld [vmem:[%s33417_s0 + $0xfb8] sm:$0xff]   ;;  %25190 = vst [vmem:[%s33418_s1 + $0xbb8] sm:$0xff] %v26456_v25 }
 0x22e   :  { %v26449_v18 = vld [vmem:[%s33417_s0 + $0x3a8] sm:$0xff]   ;;  %25158 = vst [vmem:[%s33418_s1 + $0x17a8] sm:$0xff] %v26448_v17  ;;  %v26458_v27 = vld [vmem:[%s33417_s0 + $0x3b8] sm:$0xff]   ;;  %25194 = vst [vmem:[%s33418_s1 + $0x17b8] sm:$0xff] %v26457_v26 }
 0x22f   :  { %25162 = vst [vmem:[%s33418_s1 + $0x23a8] sm:$0xff] %v26449_v18  ;;  %v26459_v28 = vld [vmem:[%s33417_s0 + $0x23c8] sm:$0xff]   ;;  %25198 = vst [vmem:[%s33418_s1 + $0x23b8] sm:$0xff] %v26458_v27  ;;  %v26468_v37 = vld [vmem:[%s33417_s0 + $0x23d8] sm:$0xff]  }
 0x230   :  { %v26460_v29 = vld [vmem:[%s33417_s0 + $0x17c8] sm:$0xff]   ;;  %25202 = vst [vmem:[%s33418_s1 + $0x3c8] sm:$0xff] %v26459_v28  ;;  %v26469_v38 = vld [vmem:[%s33417_s0 + $0x17d8] sm:$0xff]   ;;  %25238 = vst [vmem:[%s33418_s1 + $0x3d8] sm:$0xff] %v26468_v37 }
 0x231   :  { %v26461_v30 = vld [vmem:[%s33417_s0 + $0xbc8] sm:$0xff]   ;;  %25206 = vst [vmem:[%s33418_s1 + $0xfc8] sm:$0xff] %v26460_v29  ;;  %v26470_v39 = vld [vmem:[%s33417_s0 + $0xbd8] sm:$0xff]   ;;  %25242 = vst [vmem:[%s33418_s1 + $0xfd8] sm:$0xff] %v26469_v38 }
 0x232   :  { %v26462_v31 = vld [vmem:[%s33417_s0 + $0x1fc8] sm:$0xff]   ;;  %25210 = vst [vmem:[%s33418_s1 + $0x1bc8] sm:$0xff] %v26461_v30  ;;  %v26471_v40 = vld [vmem:[%s33417_s0 + $0x1fd8] sm:$0xff]   ;;  %25246 = vst [vmem:[%s33418_s1 + $0x1bd8] sm:$0xff] %v26470_v39 }
 0x233   :  { %v26463_v32 = vld [vmem:[%s33417_s0 + $0x13c8] sm:$0xff]   ;;  %25214 = vst [vmem:[%s33418_s1 + $0x7c8] sm:$0xff] %v26462_v31  ;;  %v26472_v41 = vld [vmem:[%s33417_s0 + $0x13d8] sm:$0xff]   ;;  %25250 = vst [vmem:[%s33418_s1 + $0x7d8] sm:$0xff] %v26471_v40 }
 0x234   :  { %v26464_v33 = vld [vmem:[%s33417_s0 + $0x7c8] sm:$0xff]   ;;  %25218 = vst [vmem:[%s33418_s1 + $0x13c8] sm:$0xff] %v26463_v32  ;;  %v26473_v42 = vld [vmem:[%s33417_s0 + $0x7d8] sm:$0xff]   ;;  %25254 = vst [vmem:[%s33418_s1 + $0x13d8] sm:$0xff] %v26472_v41 }
 0x235   :  { %v26465_v34 = vld [vmem:[%s33417_s0 + $0x1bc8] sm:$0xff]   ;;  %25222 = vst [vmem:[%s33418_s1 + $0x1fc8] sm:$0xff] %v26464_v33  ;;  %v26474_v43 = vld [vmem:[%s33417_s0 + $0x1bd8] sm:$0xff]   ;;  %25258 = vst [vmem:[%s33418_s1 + $0x1fd8] sm:$0xff] %v26473_v42 }
 0x236   :  { %v26466_v35 = vld [vmem:[%s33417_s0 + $0xfc8] sm:$0xff]   ;;  %25226 = vst [vmem:[%s33418_s1 + $0xbc8] sm:$0xff] %v26465_v34  ;;  %v26475_v44 = vld [vmem:[%s33417_s0 + $0xfd8] sm:$0xff]   ;;  %25262 = vst [vmem:[%s33418_s1 + $0xbd8] sm:$0xff] %v26474_v43 }
 0x237   :  { %v26467_v36 = vld [vmem:[%s33417_s0 + $0x3c8] sm:$0xff]   ;;  %25230 = vst [vmem:[%s33418_s1 + $0x17c8] sm:$0xff] %v26466_v35  ;;  %v26476_v45 = vld [vmem:[%s33417_s0 + $0x3d8] sm:$0xff]   ;;  %25266 = vst [vmem:[%s33418_s1 + $0x17d8] sm:$0xff] %v26475_v44 }
 0x238   :  { %25234 = vst [vmem:[%s33418_s1 + $0x23c8] sm:$0xff] %v26467_v36  ;;  %v26477_v46 = vld [vmem:[%s33417_s0 + $0x23e8] sm:$0xff]   ;;  %25270 = vst [vmem:[%s33418_s1 + $0x23d8] sm:$0xff] %v26476_v45  ;;  %v26486_v55 = vld [vmem:[%s33417_s0 + $0x23f8] sm:$0xff]  }
 0x239   :  { %v26478_v47 = vld [vmem:[%s33417_s0 + $0x17e8] sm:$0xff]   ;;  %25274 = vst [vmem:[%s33418_s1 + $0x3e8] sm:$0xff] %v26477_v46  ;;  %v26487_v56 = vld [vmem:[%s33417_s0 + $0x17f8] sm:$0xff]   ;;  %25310 = vst [vmem:[%s33418_s1 + $0x3f8] sm:$0xff] %v26486_v55 }
 0x23a   :  { %v26479_v48 = vld [vmem:[%s33417_s0 + $0xbe8] sm:$0xff]   ;;  %25278 = vst [vmem:[%s33418_s1 + $0xfe8] sm:$0xff] %v26478_v47  ;;  %v26488_v57 = vld [vmem:[%s33417_s0 + $0xbf8] sm:$0xff]   ;;  %25314 = vst [vmem:[%s33418_s1 + $0xff8] sm:$0xff] %v26487_v56 }
 0x23b   :  { %v26480_v49 = vld [vmem:[%s33417_s0 + $0x1fe8] sm:$0xff]   ;;  %25282 = vst [vmem:[%s33418_s1 + $0x1be8] sm:$0xff] %v26479_v48  ;;  %v26489_v58 = vld [vmem:[%s33417_s0 + $0x1ff8] sm:$0xff]   ;;  %25318 = vst [vmem:[%s33418_s1 + $0x1bf8] sm:$0xff] %v26488_v57 }
 0x23c   :  { %v26481_v50 = vld [vmem:[%s33417_s0 + $0x13e8] sm:$0xff]   ;;  %25286 = vst [vmem:[%s33418_s1 + $0x7e8] sm:$0xff] %v26480_v49  ;;  %v26490_v59 = vld [vmem:[%s33417_s0 + $0x13f8] sm:$0xff]   ;;  %25322 = vst [vmem:[%s33418_s1 + $0x7f8] sm:$0xff] %v26489_v58 }
 0x23d   :  { %v26482_v51 = vld [vmem:[%s33417_s0 + $0x7e8] sm:$0xff]   ;;  %25290 = vst [vmem:[%s33418_s1 + $0x13e8] sm:$0xff] %v26481_v50  ;;  %v26491_v60 = vld [vmem:[%s33417_s0 + $0x7f8] sm:$0xff]   ;;  %25326 = vst [vmem:[%s33418_s1 + $0x13f8] sm:$0xff] %v26490_v59 }
 0x23e   :  { %v26483_v52 = vld [vmem:[%s33417_s0 + $0x1be8] sm:$0xff]   ;;  %25294 = vst [vmem:[%s33418_s1 + $0x1fe8] sm:$0xff] %v26482_v51  ;;  %v26492_v61 = vld [vmem:[%s33417_s0 + $0x1bf8] sm:$0xff]   ;;  %25330 = vst [vmem:[%s33418_s1 + $0x1ff8] sm:$0xff] %v26491_v60 }
 0x23f   :  { %v26484_v53 = vld [vmem:[%s33417_s0 + $0xfe8] sm:$0xff]   ;;  %25298 = vst [vmem:[%s33418_s1 + $0xbe8] sm:$0xff] %v26483_v52  ;;  %v26493_v62 = vld [vmem:[%s33417_s0 + $0xff8] sm:$0xff]   ;;  %25334 = vst [vmem:[%s33418_s1 + $0xbf8] sm:$0xff] %v26492_v61 }
 0x240   :  { %v26485_v54 = vld [vmem:[%s33417_s0 + $0x3e8] sm:$0xff]   ;;  %25302 = vst [vmem:[%s33418_s1 + $0x17e8] sm:$0xff] %v26484_v53  ;;  %v26494_v63 = vld [vmem:[%s33417_s0 + $0x3f8] sm:$0xff]   ;;  %25338 = vst [vmem:[%s33418_s1 + $0x17f8] sm:$0xff] %v26493_v62 }
 0x241   :  { %25306 = vst [vmem:[%s33418_s1 + $0x23e8] sm:$0xff] %v26485_v54  ;;  %25342 = vst [vmem:[%s33418_s1 + $0x23f8] sm:$0xff] %v26494_v63 }

// kernel: resnet50_semi_distribution_forward.1
= control target key start
LH: loop header
LB: loop body
LE: loop exit
PB: predicated region body
PF: predicated region fallthrough
CT: control target
= control target key end

     0   :  { %s3960_s1 = inlined_call_operand.vmem [shape: bf16[2048,128], index: 1, kind: input, shape index: {}]   ;;  %s3961_s0 = inlined_call_operand.vmem [shape: bf16[8,2048], index: 0, kind: input, shape index: {}]   ;;  %s3962_s2 = inlined_call_operand.vmem [shape: f32[1,128], index: 2, kind: input, shape index: {}]   ;;  %s3963_s3 = inlined_call_operand.vmem [shape: f32[8,128], index: 3, kind: output, shape index: {}]  }
   0x1   :  { %v3120_v0 = vld [vmem:[%s3960_s1 + $0x40] sm:$0xff]   ;;  %v3124_v4 = vld [vmem:[%s3960_s1 + $0x48] sm:$0xff]   ;;  %v3128_v8 = vld [vmem:[%s3960_s1 + $0x50] sm:$0xff]  }
   0x2   :  { %v3121_v1 = vld [vmem:[%s3960_s1 + $0xc0] sm:$0xff]   ;;  %2674 = vmatprep.subr.bf16.mxu0 %v3120_v0  ;;  %v3125_v5 = vld [vmem:[%s3960_s1 + $0xc8] sm:$0xff]   ;;  %v3129_v9 = vld [vmem:[%s3960_s1 + $0xd0] sm:$0xff]  }
   0x3   :  { %v3122_v2 = vld [vmem:[%s3960_s1] sm:$0xff]   ;;  %2696 = vmatprep.subr.bf16.mxu1 %v3121_v1  ;;  %v3126_v6 = vld [vmem:[%s3960_s1 + $0x8] sm:$0xff]   ;;  %v3130_v10 = vld [vmem:[%s3960_s1 + $0x10] sm:$0xff]  }
   0x4   :  { %v3123_v3 = vld [vmem:[%s3960_s1 + $0x80] sm:$0xff]   ;;  %2675 = vmatpush3.bf16.msra.mxu0 %v3122_v2  ;;  %v3127_v7 = vld [vmem:[%s3960_s1 + $0x88] sm:$0xff]   ;;  %v3131_v11 = vld [vmem:[%s3960_s1 + $0x90] sm:$0xff]  }
   0x5   :  { %2697 = vmatpush3.bf16.msra.mxu1 %v3123_v3  ;;  %2676 = vmatprep.subr.bf16.mxu0 %v3124_v4  ;;  %v3132_v12 = vld [vmem:[%s3960_s1 + $0x58] sm:$0xff]   ;;  %v3136_v16 = vld [vmem:[%s3960_s1 + $0x60] sm:$0xff]   ;;  %v3140_v20 = vld [vmem:[%s3960_s1 + $0x68] sm:$0xff]  }
   0x6   :  { %2698 = vmatprep.subr.bf16.mxu1 %v3125_v5  ;;  %v3133_v13 = vld [vmem:[%s3960_s1 + $0xd8] sm:$0xff]   ;;  %v3137_v17 = vld [vmem:[%s3960_s1 + $0xe0] sm:$0xff]   ;;  %v3141_v21 = vld [vmem:[%s3960_s1 + $0xe8] sm:$0xff]  }
   0x7   :  { %v3134_v14 = vld [vmem:[%s3960_s1 + $0x18] sm:$0xff]   ;;  %v3138_v18 = vld [vmem:[%s3960_s1 + $0x20] sm:$0xff]   ;;  %v3142_v22 = vld [vmem:[%s3960_s1 + $0x28] sm:$0xff]  }
   0x8   :  { %2677 = vmatpush3.bf16.msra.mxu0 %v3126_v6  ;;  %v3135_v15 = vld [vmem:[%s3960_s1 + $0x98] sm:$0xff]   ;;  %v3139_v19 = vld [vmem:[%s3960_s1 + $0xa0] sm:$0xff]   ;;  %v3143_v23 = vld [vmem:[%s3960_s1 + $0xa8] sm:$0xff]  }
   0x9   :  { %2699 = vmatpush3.bf16.msra.mxu1 %v3127_v7  ;;  %2678 = vmatprep.subr.bf16.mxu0 %v3128_v8  ;;  %v3144_v24 = vld [vmem:[%s3960_s1 + $0x70] sm:$0xff]   ;;  %v3148_v28 = vld [vmem:[%s3960_s1 + $0x78] sm:$0xff]   ;;  %v15_v32 = vld [vmem:[%s3961_s0] sm:$0xff] }
   0xa   :  { %2700 = vmatprep.subr.bf16.mxu1 %v3129_v9  ;;  %v3145_v25 = vld [vmem:[%s3960_s1 + $0xf0] sm:$0xff]   ;;  %v3149_v29 = vld [vmem:[%s3960_s1 + $0xf8] sm:$0xff]   ;;  %v16_v33 = vld [vmem:[%s3961_s0 + $0x8] sm:$0xff]  ;;  %v2509_v34 = vcombine.low %v15_v32, %v15_v32  ;;  %v2510_v35 = vcombine.high %v15_v32, %v15_v32 }
   0xb   :  { %v3146_v26 = vld [vmem:[%s3960_s1 + $0x30] sm:$0xff]   ;;  %v3150_v30 = vld [vmem:[%s3960_s1 + $0x38] sm:$0xff]   ;;  %v2511_v36 = vcombine.low %v16_v33, %v16_v33  ;;  %v2512_v37 = vcombine.high %v16_v33, %v16_v33  ;;  %v3156_v38 = vld [vmem:[%s3960_s1 + $0x140] sm:$0xff]  }
   0xc   :  { %2679 = vmatpush3.bf16.msra.mxu0 %v3130_v10  ;;  %v3147_v27 = vld [vmem:[%s3960_s1 + $0xb0] sm:$0xff]   ;;  %v3151_v31 = vld [vmem:[%s3960_s1 + $0xb8] sm:$0xff]   ;;  %v3157_v39 = vld [vmem:[%s3960_s1 + $0x1c0] sm:$0xff]   ;;  %1142 = vmatprep.mubr.bf16.mxu0 %v2510_v35 }
   0xd   :  { %2701 = vmatpush3.bf16.msra.mxu1 %v3131_v11  ;;  %2680 = vmatprep.subr.bf16.mxu0 %v3132_v12  ;;  %v3158_v40 = vld [vmem:[%s3960_s1 + $0x100] sm:$0xff]   ;;  %v3160_v42 = vld [vmem:[%s3960_s1 + $0x148] sm:$0xff]   ;;  %v3164_v46 = vld [vmem:[%s3960_s1 + $0x150] sm:$0xff]  }
   0xe   :  { %2702 = vmatprep.subr.bf16.mxu1 %v3133_v13  ;;  %1182 = vmatprep.mubr.bf16.mxu1 %v2512_v37  ;;  %v3159_v41 = vld [vmem:[%s3960_s1 + $0x180] sm:$0xff]   ;;  %v3161_v43 = vld [vmem:[%s3960_s1 + $0x1c8] sm:$0xff]   ;;  %v3165_v47 = vld [vmem:[%s3960_s1 + $0x1d0] sm:$0xff]  }
   0xf   :  { %v3162_v44 = vld [vmem:[%s3960_s1 + $0x108] sm:$0xff]   ;;  %v3166_v48 = vld [vmem:[%s3960_s1 + $0x110] sm:$0xff]   ;;  %v3168_v50 = vld [vmem:[%s3960_s1 + $0x158] sm:$0xff]  }
  0x10   :  { %2681 = vmatpush3.bf16.msra.mxu0 %v3134_v14  ;;  %v3163_v45 = vld [vmem:[%s3960_s1 + $0x188] sm:$0xff]   ;;  %v3167_v49 = vld [vmem:[%s3960_s1 + $0x190] sm:$0xff]   ;;  %v3169_v51 = vld [vmem:[%s3960_s1 + $0x1d8] sm:$0xff]  }
  0x11   :  { %2703 = vmatpush3.bf16.msra.mxu1 %v3135_v15  ;;  %2682 = vmatprep.subr.bf16.mxu0 %v3136_v16  ;;  %v3170_v52 = vld [vmem:[%s3960_s1 + $0x118] sm:$0xff]   ;;  %v3172_v54 = vld [vmem:[%s3960_s1 + $0x160] sm:$0xff]   ;;  %v3176_v58 = vld [vmem:[%s3960_s1 + $0x168] sm:$0xff]  }
  0x12   :  { %2704 = vmatprep.subr.bf16.mxu1 %v3137_v17  ;;  %v3171_v53 = vld [vmem:[%s3960_s1 + $0x198] sm:$0xff]   ;;  %v3173_v55 = vld [vmem:[%s3960_s1 + $0x1e0] sm:$0xff]   ;;  %v3177_v59 = vld [vmem:[%s3960_s1 + $0x1e8] sm:$0xff]  }
  0x13   :  { %v3174_v56 = vld [vmem:[%s3960_s1 + $0x120] sm:$0xff]   ;;  %v3178_v60 = vld [vmem:[%s3960_s1 + $0x128] sm:$0xff]   ;;  %v3180_v62 = vld [vmem:[%s3960_s1 + $0x170] sm:$0xff]  }
  0x14   :  { %2683 = vmatpush3.bf16.msra.mxu0 %v3138_v18  ;;  %v3175_v57 = vld [vmem:[%s3960_s1 + $0x1a0] sm:$0xff]   ;;  %v3179_v61 = vld [vmem:[%s3960_s1 + $0x1a8] sm:$0xff]   ;;  %v3181_v63 = vld [vmem:[%s3960_s1 + $0x1f0] sm:$0xff]  }
  0x15   :  { %2705 = vmatpush3.bf16.msra.mxu1 %v3139_v19  ;;  %2684 = vmatprep.subr.bf16.mxu0 %v3140_v20  ;;  %v3182_v0 = vld [vmem:[%s3960_s1 + $0x130] sm:$0xff]   ;;  %v3184_v2 = vld [vmem:[%s3960_s1 + $0x178] sm:$0xff]   ;;  %v3192_v12 = vld [vmem:[%s3960_s1 + $0x240] sm:$0xff]  }
  0x16   :  { %2706 = vmatprep.subr.bf16.mxu1 %v3141_v21  ;;  %v3183_v1 = vld [vmem:[%s3960_s1 + $0x1b0] sm:$0xff]   ;;  %v3185_v3 = vld [vmem:[%s3960_s1 + $0x1f8] sm:$0xff]   ;;  %v3193_v13 = vld [vmem:[%s3960_s1 + $0x2c0] sm:$0xff]  }
  0x17   :  { %v3186_v4 = vld [vmem:[%s3960_s1 + $0x138] sm:$0xff]   ;;  %v17_v6 = vld [vmem:[%s3961_s0 + $0x10] sm:$0xff]  ;;  %v3194_v14 = vld [vmem:[%s3960_s1 + $0x200] sm:$0xff]  }
  0x18   :  { %2685 = vmatpush3.bf16.msra.mxu0 %v3142_v22  ;;  %v3187_v5 = vld [vmem:[%s3960_s1 + $0x1b8] sm:$0xff]   ;;  %v2513_v7 = vcombine.low %v17_v6, %v17_v6  ;;  %v2514_v8 = vcombine.high %v17_v6, %v17_v6  ;;  %v3195_v15 = vld [vmem:[%s3960_s1 + $0x280] sm:$0xff]   ;;  %v3196_v16 = vld [vmem:[%s3960_s1 + $0x248] sm:$0xff]  }
  0x19   :  { %2707 = vmatpush3.bf16.msra.mxu1 %v3143_v23  ;;  %2686 = vmatprep.subr.bf16.mxu0 %v3144_v24  ;;  %v18_v9 = vld [vmem:[%s3961_s0 + $0x18] sm:$0xff]  ;;  %v3197_v17 = vld [vmem:[%s3960_s1 + $0x2c8] sm:$0xff]   ;;  %v3200_v20 = vld [vmem:[%s3960_s1 + $0x250] sm:$0xff]  }
  0x1a   :  { %2708 = vmatprep.subr.bf16.mxu1 %v3145_v25  ;;  %v2515_v10 = vcombine.low %v18_v9, %v18_v9  ;;  %v2516_v11 = vcombine.high %v18_v9, %v18_v9  ;;  %v3198_v18 = vld [vmem:[%s3960_s1 + $0x208] sm:$0xff]   ;;  %v3201_v21 = vld [vmem:[%s3960_s1 + $0x2d0] sm:$0xff]   ;;  %v3204_v24 = vld [vmem:[%s3960_s1 + $0x258] sm:$0xff]  }
  0x1b   :  { %v3199_v19 = vld [vmem:[%s3960_s1 + $0x288] sm:$0xff]   ;;  %v3202_v22 = vld [vmem:[%s3960_s1 + $0x210] sm:$0xff]   ;;  %v3205_v25 = vld [vmem:[%s3960_s1 + $0x2d8] sm:$0xff]  }
  0x1c   :  { %2687 = vmatpush3.bf16.msra.mxu0 %v3146_v26  ;;  %v3203_v23 = vld [vmem:[%s3960_s1 + $0x290] sm:$0xff]   ;;  %v3206_v26 = vld [vmem:[%s3960_s1 + $0x218] sm:$0xff]   ;;  %v3212_v32 = vld [vmem:[%s3960_s1 + $0x268] sm:$0xff]  }
  0x1d   :  { %2709 = vmatpush3.bf16.msra.mxu1 %v3147_v27  ;;  %2688 = vmatprep.subr.bf16.mxu0 %v3148_v28  ;;  %v3207_v27 = vld [vmem:[%s3960_s1 + $0x298] sm:$0xff]   ;;  %v3208_v28 = vld [vmem:[%s3960_s1 + $0x260] sm:$0xff]   ;;  %v3213_v33 = vld [vmem:[%s3960_s1 + $0x2e8] sm:$0xff]  }
  0x1e   :  { %2710 = vmatprep.subr.bf16.mxu1 %v3149_v29  ;;  %v3209_v29 = vld [vmem:[%s3960_s1 + $0x2e0] sm:$0xff]   ;;  %v3215_v35 = vld [vmem:[%s3960_s1 + $0x2a8] sm:$0xff]   ;;  %v3217_v37 = vld [vmem:[%s3960_s1 + $0x2f0] sm:$0xff]  }
  0x1f   :  { %v3248_v6 = vld [vmem:[%s3960_s1 + $0x368] sm:$0xff]  }
  0x20   :  { %2689 = vmatpush3.bf16.msra.mxu0 %v3150_v30  ;;  %v3210_v30 = vld [vmem:[%s3960_s1 + $0x220] sm:$0xff]   ;;  %v3251_v9 = vld [vmem:[%s3960_s1 + $0x3a8] sm:$0xff]  }
  0x21   :  { %2711 = vmatpush3.bf16.msra.mxu1 %v3151_v31  ;;  %2718 = vmatprep.subr.bf16.mxu0 %v3156_v38  ;;  %v3211_v31 = vld [vmem:[%s3960_s1 + $0x2a0] sm:$0xff]   ;;  %v3218_v38 = vld [vmem:[%s3960_s1 + $0x230] sm:$0xff]  }
  0x22   :  { %2740 = vmatprep.subr.bf16.mxu1 %v3157_v39  ;;  %v3219_v39 = vld [vmem:[%s3960_s1 + $0x2b0] sm:$0xff]  }
  0x23   :  { %1143 = vmatmul.mubr.bf16.vlgmr.msra.gmra.mrb[0].mxu0 %v2509_v34  ;;  %v3214_v34 = vld [vmem:[%s3960_s1 + $0x228] sm:$0xff]  }
  0x24   :  { %1183 = vmatmul.mubr.bf16.vlgmr.msra.gmra.mrb[0].mxu1 %v2511_v36  ;;  %2719 = vmatpush3.bf16.msra.mxu0 %v3158_v40  ;;  %v3216_v36 = vld [vmem:[%s3960_s1 + $0x270] sm:$0xff]   ;;  %v3220_v40 = vld [vmem:[%s3960_s1 + $0x278] sm:$0xff]  }
  0x25   :  { %2741 = vmatpush3.bf16.msra.mxu1 %v3159_v41  ;;  %2720 = vmatprep.subr.bf16.mxu0 %v3160_v42  ;;  %v3221_v41 = vld [vmem:[%s3960_s1 + $0x2f8] sm:$0xff]  }
  0x26   :  { %2742 = vmatprep.subr.bf16.mxu1 %v3161_v43  ;;  %1222 = vmatprep.mubr.bf16.mxu0 %v2514_v8  ;;  %v3222_v42 = vld [vmem:[%s3960_s1 + $0x238] sm:$0xff]   ;;  %v3250_v8 = vld [vmem:[%s3960_s1 + $0x328] sm:$0xff]  }
  0x27   :  { %1262 = vmatprep.mubr.bf16.mxu1 %v2516_v11  ;;  %v3223_v43 = vld [vmem:[%s3960_s1 + $0x2b8] sm:$0xff]   ;;  %v3253_v11 = vld [vmem:[%s3960_s1 + $0x3f0] sm:$0xff]  }
  0x28   :  { %2721 = vmatpush3.bf16.msra.mxu0 %v3162_v44  ;;  %v19_v44 = vld [vmem:[%s3961_s0 + $0x20] sm:$0xff] }
  0x29   :  { %2743 = vmatpush3.bf16.msra.mxu1 %v3163_v45  ;;  %2722 = vmatprep.subr.bf16.mxu0 %v3164_v46  ;;  %v20_v45 = vld [vmem:[%s3961_s0 + $0x28] sm:$0xff]  ;;  %v2517_v46 = vcombine.low %v19_v44, %v19_v44 }
  0x2a   :  { %2744 = vmatprep.subr.bf16.mxu1 %v3165_v47  ;;  %v2518_v47 = vcombine.high %v19_v44, %v19_v44 }
  0x2c   :  { %2723 = vmatpush3.bf16.msra.mxu0 %v3166_v48  ;;  %v2519_v48 = vcombine.low %v20_v45, %v20_v45 }
  0x2d   :  { %2745 = vmatpush3.bf16.msra.mxu1 %v3167_v49  ;;  %2724 = vmatprep.subr.bf16.mxu0 %v3168_v50  ;;  %v2520_v49 = vcombine.high %v20_v45, %v20_v45  ;;  %v3228_v50 = vld [vmem:[%s3960_s1 + $0x340] sm:$0xff]  }
  0x2e   :  { %2746 = vmatprep.subr.bf16.mxu1 %v3169_v51  ;;  %v3229_v51 = vld [vmem:[%s3960_s1 + $0x3c0] sm:$0xff]  }
  0x30   :  { %2725 = vmatpush3.bf16.msra.mxu0 %v3170_v52  ;;  %v3230_v52 = vld [vmem:[%s3960_s1 + $0x300] sm:$0xff]  }
  0x31   :  { %2747 = vmatpush3.bf16.msra.mxu1 %v3171_v53  ;;  %2726 = vmatprep.subr.bf16.mxu0 %v3172_v54  ;;  %v3231_v53 = vld [vmem:[%s3960_s1 + $0x380] sm:$0xff]   ;;  %v3232_v54 = vld [vmem:[%s3960_s1 + $0x348] sm:$0xff]  }
  0x32   :  { %2748 = vmatprep.subr.bf16.mxu1 %v3173_v55  ;;  %v3233_v55 = vld [vmem:[%s3960_s1 + $0x3c8] sm:$0xff]  }
  0x34   :  { %2727 = vmatpush3.bf16.msra.mxu0 %v3174_v56  ;;  %v3234_v56 = vld [vmem:[%s3960_s1 + $0x308] sm:$0xff]  }
  0x35   :  { %2749 = vmatpush3.bf16.msra.mxu1 %v3175_v57  ;;  %2728 = vmatprep.subr.bf16.mxu0 %v3176_v58  ;;  %v3235_v57 = vld [vmem:[%s3960_s1 + $0x388] sm:$0xff]   ;;  %v3236_v58 = vld [vmem:[%s3960_s1 + $0x350] sm:$0xff]  }
  0x36   :  { %2750 = vmatprep.subr.bf16.mxu1 %v3177_v59  ;;  %v3237_v59 = vld [vmem:[%s3960_s1 + $0x3d0] sm:$0xff]  }
  0x38   :  { %2729 = vmatpush3.bf16.msra.mxu0 %v3178_v60  ;;  %v3238_v60 = vld [vmem:[%s3960_s1 + $0x310] sm:$0xff]  }
  0x39   :  { %2751 = vmatpush3.bf16.msra.mxu1 %v3179_v61  ;;  %2730 = vmatprep.subr.bf16.mxu0 %v3180_v62  ;;  %v3239_v61 = vld [vmem:[%s3960_s1 + $0x390] sm:$0xff]   ;;  %v3240_v62 = vld [vmem:[%s3960_s1 + $0x358] sm:$0xff]  }
  0x3a   :  { %2752 = vmatprep.subr.bf16.mxu1 %v3181_v63  ;;  %v3241_v63 = vld [vmem:[%s3960_s1 + $0x3d8] sm:$0xff]  }
  0x3c   :  { %2731 = vmatpush3.bf16.msra.mxu0 %v3182_v0  ;;  %v3242_v0 = vld [vmem:[%s3960_s1 + $0x318] sm:$0xff]  }
  0x3d   :  { %2753 = vmatpush3.bf16.msra.mxu1 %v3183_v1  ;;  %2732 = vmatprep.subr.bf16.mxu0 %v3184_v2  ;;  %v3243_v1 = vld [vmem:[%s3960_s1 + $0x398] sm:$0xff]   ;;  %v3244_v2 = vld [vmem:[%s3960_s1 + $0x360] sm:$0xff]  }
  0x3e   :  { %2754 = vmatprep.subr.bf16.mxu1 %v3185_v3  ;;  %v3245_v3 = vld [vmem:[%s3960_s1 + $0x3e0] sm:$0xff]  }
  0x40   :  { %2733 = vmatpush3.bf16.msra.mxu0 %v3186_v4  ;;  %v3246_v4 = vld [vmem:[%s3960_s1 + $0x320] sm:$0xff]  }
  0x41   :  { %2755 = vmatpush3.bf16.msra.mxu1 %v3187_v5  ;;  %2762 = vmatprep.subr.bf16.mxu0 %v3192_v12  ;;  %v3247_v5 = vld [vmem:[%s3960_s1 + $0x3a0] sm:$0xff]   ;;  %v3254_v12 = vld [vmem:[%s3960_s1 + $0x330] sm:$0xff]  }
  0x42   :  { %2784 = vmatprep.subr.bf16.mxu1 %v3193_v13  ;;  %v3255_v13 = vld [vmem:[%s3960_s1 + $0x3b0] sm:$0xff]  }
  0x43   :  { %1223 = vmatmul.mubr.bf16.vlgmr.msra.gmra.mrb[4].mxu0 %v2513_v7  ;;  %v3249_v7 = vld [vmem:[%s3960_s1 + $0x3e8] sm:$0xff]  }
  0x44   :  { %1263 = vmatmul.mubr.bf16.vlgmr.msra.gmra.mrb[4].mxu1 %v2515_v10  ;;  %2763 = vmatpush3.bf16.msra.mxu0 %v3194_v14  ;;  %v3252_v10 = vld [vmem:[%s3960_s1 + $0x370] sm:$0xff]   ;;  %v3256_v14 = vld [vmem:[%s3960_s1 + $0x378] sm:$0xff]  }
  0x45   :  { %2785 = vmatpush3.bf16.msra.mxu1 %v3195_v15  ;;  %2764 = vmatprep.subr.bf16.mxu0 %v3196_v16  ;;  %v3257_v15 = vld [vmem:[%s3960_s1 + $0x3f8] sm:$0xff]  }
  0x46   :  { %2786 = vmatprep.subr.bf16.mxu1 %v3197_v17  ;;  %1302 = vmatprep.mubr.bf16.mxu0 %v2518_v47  ;;  %v3258_v16 = vld [vmem:[%s3960_s1 + $0x338] sm:$0xff]  }
  0x47   :  { %1342 = vmatprep.mubr.bf16.mxu1 %v2520_v49  ;;  %v3259_v17 = vld [vmem:[%s3960_s1 + $0x3b8] sm:$0xff]  }
  0x48   :  { %2765 = vmatpush3.bf16.msra.mxu0 %v3198_v18  ;;  %v21_v18 = vld [vmem:[%s3961_s0 + $0x30] sm:$0xff] }
  0x49   :  { %2787 = vmatpush3.bf16.msra.mxu1 %v3199_v19  ;;  %2766 = vmatprep.subr.bf16.mxu0 %v3200_v20  ;;  %v22_v19 = vld [vmem:[%s3961_s0 + $0x38] sm:$0xff]  ;;  %v2521_v20 = vcombine.low %v21_v18, %v21_v18 }
  0x4a   :  { %2788 = vmatprep.subr.bf16.mxu1 %v3201_v21  ;;  %v2522_v21 = vcombine.high %v21_v18, %v21_v18 }
  0x4c   :  { %2767 = vmatpush3.bf16.msra.mxu0 %v3202_v22  ;;  %v2523_v22 = vcombine.low %v22_v19, %v22_v19 }
  0x4d   :  { %2789 = vmatpush3.bf16.msra.mxu1 %v3203_v23  ;;  %2768 = vmatprep.subr.bf16.mxu0 %v3204_v24  ;;  %v2524_v23 = vcombine.high %v22_v19, %v22_v19 }
  0x4e   :  { %2790 = vmatprep.subr.bf16.mxu1 %v3205_v25 }
  0x50   :  { %2769 = vmatpush3.bf16.msra.mxu0 %v3206_v26  ;;  %v2508_v26 = vld [vmem:[%s3962_s2] ss:$0 sm:$0xff] }
  0x51   :  { %2791 = vmatpush3.bf16.msra.mxu1 %v3207_v27  ;;  %2770 = vmatprep.subr.bf16.mxu0 %v3208_v28 }
  0x52   :  { %2792 = vmatprep.subr.bf16.mxu1 %v3209_v29 }
  0x54   :  { %2771 = vmatpush3.bf16.msra.mxu0 %v3210_v30 }
  0x55   :  { %2793 = vmatpush3.bf16.msra.mxu1 %v3211_v31  ;;  %2772 = vmatprep.subr.bf16.mxu0 %v3212_v32 }
  0x56   :  { %2794 = vmatprep.subr.bf16.mxu1 %v3213_v33 }
  0x58   :  { %2773 = vmatpush3.bf16.msra.mxu0 %v3214_v34 }
  0x59   :  { %2795 = vmatpush3.bf16.msra.mxu1 %v3215_v35  ;;  %2774 = vmatprep.subr.bf16.mxu0 %v3216_v36 }
  0x5a   :  { %2796 = vmatprep.subr.bf16.mxu1 %v3217_v37 }
  0x5c   :  { %2775 = vmatpush3.bf16.msra.mxu0 %v3218_v38 }
  0x5d   :  { %2797 = vmatpush3.bf16.msra.mxu1 %v3219_v39  ;;  %2776 = vmatprep.subr.bf16.mxu0 %v3220_v40 }
  0x5e   :  { %2798 = vmatprep.subr.bf16.mxu1 %v3221_v41 }
  0x60   :  { %2777 = vmatpush3.bf16.msra.mxu0 %v3222_v42 }
  0x61   :  { %2799 = vmatpush3.bf16.msra.mxu1 %v3223_v43  ;;  %2806 = vmatprep.subr.bf16.mxu0 %v3228_v50 }
  0x62   :  { %2828 = vmatprep.subr.bf16.mxu1 %v3229_v51 }
  0x63   :  { %1303 = vmatmul.mubr.bf16.vlgmr.msra.gmra.mrb[8].mxu0 %v2517_v46 }
  0x64   :  { %1343 = vmatmul.mubr.bf16.vlgmr.msra.gmra.mrb[8].mxu1 %v2519_v48  ;;  %2807 = vmatpush3.bf16.msra.mxu0 %v3230_v52 }
  0x65   :  { %2829 = vmatpush3.bf16.msra.mxu1 %v3231_v53  ;;  %2808 = vmatprep.subr.bf16.mxu0 %v3232_v54 }
  0x66   :  { %2830 = vmatprep.subr.bf16.mxu1 %v3233_v55  ;;  %1382 = vmatprep.mubr.bf16.mxu0 %v2522_v21 }
  0x67   :  { %1422 = vmatprep.mubr.bf16.mxu1 %v2524_v23 }
  0x68   :  { %2809 = vmatpush3.bf16.msra.mxu0 %v3234_v56 }
  0x69   :  { %2831 = vmatpush3.bf16.msra.mxu1 %v3235_v57  ;;  %2810 = vmatprep.subr.bf16.mxu0 %v3236_v58 }
  0x6a   :  { %2832 = vmatprep.subr.bf16.mxu1 %v3237_v59 }
  0x6c   :  { %2811 = vmatpush3.bf16.msra.mxu0 %v3238_v60 }
  0x6d   :  { %2833 = vmatpush3.bf16.msra.mxu1 %v3239_v61  ;;  %2812 = vmatprep.subr.bf16.mxu0 %v3240_v62  ;;  %v1430_v61 = vlaneseq }
  0x6e   :  { %2834 = vmatprep.subr.bf16.mxu1 %v3241_v63 }
  0x70   :  { %2813 = vmatpush3.bf16.msra.mxu0 %v3242_v0 }
  0x71   :  { %2835 = vmatpush3.bf16.msra.mxu1 %v3243_v1  ;;  %2814 = vmatprep.subr.bf16.mxu0 %v3244_v2  ;;  %v3705_v1 = vand.u32 127, %v1430_v61 }
  0x72   :  { %2836 = vmatprep.subr.bf16.mxu1 %v3245_v3 }
  0x73   :  { %vm1432_vm0 = vcmp.lt.s32.totalorder %v3705_v1, 4  ;;  %vm1433_vm1 = vcmp.ge.s32.totalorder %v3705_v1, 4  ;;  %vm1434_vm2 = vcmp.lt.s32.totalorder %v3705_v1, 69  ;;  %vm1521_vm5 = vcmp.eq.s32.totalorder %v3705_v1, 69 }
  0x74   :  { %2815 = vmatpush3.bf16.msra.mxu0 %v3246_v4  ;;  %vm3712_vm3 = vmand %vm1433_vm1, %vm1434_vm2  ;;  %vm1618_vm7 = vcmp.eq.s32.totalorder %v3705_v1, 70  ;;  %vm1715_vm12 = vcmp.eq.s32.totalorder %v3705_v1, 71  ;;  %vm1812_vm15 = vcmp.eq.s32.totalorder %v3705_v1, 72 }
  0x75   :  { %2837 = vmatpush3.bf16.msra.mxu1 %v3247_v5  ;;  %2816 = vmatprep.subr.bf16.mxu0 %v3248_v6 }
  0x76   :  { %2838 = vmatprep.subr.bf16.mxu1 %v3249_v7 }
  0x78   :  { %2817 = vmatpush3.bf16.msra.mxu0 %v3250_v8 }
  0x79   :  { %2839 = vmatpush3.bf16.msra.mxu1 %v3251_v9  ;;  %2818 = vmatprep.subr.bf16.mxu0 %v3252_v10 }
  0x7a   :  { %2840 = vmatprep.subr.bf16.mxu1 %v3253_v11 }
  0x7c   :  { %2819 = vmatpush3.bf16.msra.mxu0 %v3254_v12 }
  0x7d   :  { %2841 = vmatpush3.bf16.msra.mxu1 %v3255_v13  ;;  %2820 = vmatprep.subr.bf16.mxu0 %v3256_v14 }
  0x7e   :  { %2842 = vmatprep.subr.bf16.mxu1 %v3257_v15 }
  0x80   :  { %2821 = vmatpush3.bf16.msra.mxu0 %v3258_v16 }
  0x81   :  { %2843 = vmatpush3.bf16.msra.mxu1 %v3259_v17 }
  0x83   :  { %1383 = vmatmul.mubr.bf16.vlgmr.msra.gmra.mrb[12].mxu0 %v2521_v20  ;;  %v3720_v20 = vshrl.u32 %v1430_v61, 7 }
  0x84   :  { %1423 = vmatmul.mubr.bf16.vlgmr.msra.gmra.mrb[12].mxu1 %v2523_v22 }
  0x85   :  { %v1458_v22 = vadd.s32 8, %v3720_v20  ;;  %vm1473_vm10 = vcmp.ge.s32.totalorder %v3720_v20, 4 }
  0x86   :  { %vm3738_vm11 = vmand %vm1473_vm10, %vm1521_vm5 }
  0x87   :  { %vm1490_vm4 = vcmp.lt.s32.totalorder %v1458_v22, 9  ;;  %vm1571_vm6 = vcmp.ge.s32.totalorder %v1458_v22, 9 }
  0x88   :  { %vm1523_vm8 = vmand %vm1490_vm4, %vm1521_vm5 }
  0x89   :  { %vm1620_vm9 = vmand %vm1571_vm6, %vm1618_vm7 }
  0x8a   :  { %vm3817_vm5 = vmpackc.low %vm1715_vm12, %vm1618_vm7 }
  0xf6   :  { %v2690_v24 = vpop.f32.mrb[0].mxu0 }
  0xf7   :  { %v2712_v25 = vpop.f32.mrb[0].mxu1  ;;  %v2691_v27 = vpop.f32.mrb[1].mxu0 }
  0xf8   :  { %v2713_v28 = vpop.f32.mrb[1].mxu1  ;;  %v2692_v29 = vadd.f32 %v2691_v27, %v2690_v24  ;;  %v2693_v31 = vpop.f32.mrb[2].mxu0  ;;  %v3268_v24 = vmov 0.0  }
  0xf9   :  { %v2714_v30 = vadd.f32 %v2713_v28, %v2712_v25  ;;  %v2715_v32 = vpop.f32.mrb[2].mxu1  ;;  %v2694_v33 = vpop.f32.mrb[3].mxu0  ;;  %v1539_v25 = vsel %vm1523_vm8, 1.0, %v3268_v24  ;;  %v1636_v27 = vsel %vm1620_vm9, 1.0, %v3268_v24  ;;  %vm3272_vm9 = vmmov 0  }
  0xfa   :  { %v2716_v34 = vpop.f32.mrb[3].mxu1  ;;  %v1145_v35 = vadd.f32 %v2692_v29, %v2508_v26  ;;  %v1652_v28 = vadd.f32 %v1636_v27, %v1539_v25  ;;  %2949 = vmatprep.mubr.msk.f32.mxu1 %vm3272_vm9, %v3268_v24  ;;  %2928 = vmatprep.mubr.msk.f32.mxu0 %vm3272_vm9, %v3268_v24 }
  0xfc   :  { %v1185_v36 = vadd.f32 %v2714_v30, %v1145_v35  ;;  %v1538_v30 = vsel %vm3738_vm11, 1.0, %v3268_v24  ;;  %v1865_v31 = vand.u32 4294901760, %v1652_v28 }
  0xfd   :  { %v3745_v32 = vsub.f32 %v1538_v30, %v1538_v30 }
  0xfe   :  { %v3747_v33 = vsub.f32 %v1652_v28, %v1865_v31 }
  0xff   :  { %v1955_v34 = vand.u32 4294901760, %v3745_v32 }
 0x100   :  { %v1962_v35 = vand.u32 4294901760, %v3747_v33  ;;  %v3063_v22 = vpack.c.bf16 %v3747_v33, %v3745_v32 }
 0x116   :  { %v2734_v37 = vpop.f32.mrb[4].mxu0 }
 0x117   :  { %v2756_v38 = vpop.f32.mrb[4].mxu1  ;;  %v2735_v39 = vpop.f32.mrb[5].mxu0 }
 0x118   :  { %v2757_v40 = vpop.f32.mrb[5].mxu1  ;;  %v2736_v41 = vadd.f32 %v2735_v39, %v2734_v37  ;;  %v2737_v43 = vpop.f32.mrb[6].mxu0  ;;  %v1735_v37 = vsel %vm1715_vm12, 1.0, %v3268_v24  ;;  %v1956_v39 = vsub.f32 %v3745_v32, %v1955_v34 }
 0x119   :  { %v2758_v42 = vadd.f32 %v2757_v40, %v2756_v38  ;;  %v2759_v44 = vpop.f32.mrb[6].mxu1  ;;  %v2738_v45 = vpop.f32.mrb[7].mxu0  ;;  %v1463_v38 = vadd.s32 48, %v3720_v20 }
 0x11a   :  { %v2760_v46 = vpop.f32.mrb[7].mxu1  ;;  %v1225_v47 = vadd.f32 %v2736_v41, %v1185_v36  ;;  %v1637_v36 = vsel %vm1618_vm7, 1.0, %v3268_v24  ;;  %v3764_v41 = vsub.f32 %v1735_v37, %v1735_v37  ;;  %v1957_v43 = vand.u32 4294901760, %v1956_v39  ;;  %vm3846_vm7 = vmpackc.low %vm1715_vm12, %vm1715_vm12 }
 0x11b   :  { %v3762_v40 = vsub.f32 %v1637_v36, %v1637_v36  ;;  %vm1689_vm13 = vcmp.lt.s32.totalorder %v1463_v38, 54  ;;  %vm1770_vm14 = vcmp.ge.s32.totalorder %v1463_v38, 54  ;;  %v3269_v46 = vmov 0.0|0.0  }
 0x11c   :  { %v1265_v48 = vadd.f32 %v2758_v42, %v1225_v47  ;;  %v1963_v42 = vsub.f32 %v3747_v33, %v1962_v35  ;;  %v3772_v45 = vand.u32 4294901760, %v3764_v41  ;;  %vm1722_vm1 = vmand %vm1689_vm13, %vm1715_vm12  ;;  %3050 = vmatprep.subr.bf16.mxu1 %v3269_v46  ;;  %3036 = vmatprep.subr.bf16.mxu0 %v3269_v46 }
 0x11d   :  { %v1969_v44 = vand.u32 4294901760, %v3762_v40 }
 0x11e   :  { %v1964_v47 = vand.u32 4294901760, %v1963_v42  ;;  %v3095_v38 = vpack.c.bf16 %v3772_v45, %v3772_v45 }
 0x11f   :  { %v3092_v27 = vpack.c.bf16 %v3772_v45, %v1969_v44 }
 0x136   :  { %v2778_v49 = vpop.f32.mrb[8].mxu0 }
 0x137   :  { %v2800_v50 = vpop.f32.mrb[8].mxu1  ;;  %v2779_v51 = vpop.f32.mrb[9].mxu0 }
 0x138   :  { %v2780_v52 = vadd.f32 %v2779_v51, %v2778_v49  ;;  %v2801_v53 = vpop.f32.mrb[9].mxu1  ;;  %v2781_v54 = vpop.f32.mrb[10].mxu0  ;;  %v1970_v49 = vsub.f32 %v3762_v40, %v1969_v44 }
 0x139   :  { %v2802_v55 = vadd.f32 %v2801_v53, %v2800_v50  ;;  %v2803_v56 = vpop.f32.mrb[10].mxu1  ;;  %v2782_v57 = vpop.f32.mrb[11].mxu0  ;;  %v1977_v50 = vsub.f32 %v3764_v41, %v3772_v45 }
 0x13a   :  { %v1305_v58 = vadd.f32 %v2780_v52, %v1265_v48  ;;  %v2804_v59 = vpop.f32.mrb[11].mxu1  ;;  %v1738_v48 = vsel %vm1722_vm1, 1.0, %v3268_v24  ;;  %v3051_v52 = vpack.c.bf16 %v1964_v47, %v1957_v43  ;;  %v1971_v54 = vand.u32 4294901760, %v1970_v49 }
 0x13b   :  { %v1836_v56 = vsel %vm1812_vm15, 1.0, %v3268_v24  ;;  %v3270_v59 = vmov 1.0  }
 0x13c   :  { %v1345_v60 = vadd.f32 %v2802_v55, %v1305_v58  ;;  %v1978_v55 = vand.u32 4294901760, %v1977_v50  ;;  %3052 = vmatpush3.bf16.msra.mxu1 %v3051_v52 }
 0x13d   :  { %3053 = vmatprep.subr.bf16.mxu1 %v3269_v46 }
 0x13e   :  { %v3054_v58 = vpack.c.bf16 %v1978_v55, %v1971_v54 }
 0x140   :  { %3055 = vmatpush3.bf16.msra.mxu1 %v3054_v58 }
 0x141   :  { %3056 = vmatprep.subr.bf16.mxu1 %v3269_v46 }
 0x156   :  { %v2822_v62 = vpop.f32.mrb[12].mxu0 }
 0x157   :  { %v2844_v63 = vpop.f32.mrb[12].mxu1  ;;  %v2823_v0 = vpop.f32.mrb[13].mxu0 }
 0x158   :  { %v2824_v2 = vadd.f32 %v2823_v0, %v2822_v62  ;;  %v2845_v3 = vpop.f32.mrb[13].mxu1  ;;  %v2825_v4 = vpop.f32.mrb[14].mxu0  ;;  %v1465_v0 = vadd.s32 64, %v3720_v20 }
 0x159   :  { %v2846_v5 = vadd.f32 %v2845_v3, %v2844_v63  ;;  %v2847_v6 = vpop.f32.mrb[14].mxu1  ;;  %v2826_v7 = vpop.f32.mrb[15].mxu0  ;;  %v3803_v63 = vsub.f32 %v1836_v56, %v1836_v56 }
 0x15a   :  { %v1385_v8 = vadd.f32 %v2824_v2, %v1345_v60  ;;  %v2848_v9 = vpop.f32.mrb[15].mxu1  ;;  %v3792_v60 = vpack.c.bf16 %v1865_v31, %v3270_v59  ;;  %v3057_v2 = vpack.c.bf16 %v1978_v55, %v1978_v55  ;;  %vm1788_vm6 = vcmp.lt.s32.totalorder %v1465_v0, 69 }
 0x15b   :  { %v2004_v4 = vand.u32 4294901760, %v3803_v63  ;;  %vm3825_vm8 = vmand %vm1788_vm6, %vm1812_vm15 }
 0x15c   :  { %v1425_v10 = vadd.f32 %v2846_v5, %v1385_v8  ;;  %v1837_v9 = vsel %vm3825_vm8, 1.0, %v3268_v24  ;;  %3058 = vmatpush3.bf16.msra.mxu1 %v3057_v2 }
 0x15d   :  { %v2005_v7 = vsub.f32 %v3803_v63, %v2004_v4  ;;  %3059 = vmatprep.subr.bf16.mxu1 %v3269_v46 }
 0x15e   :  { %v1436_v11 = vsel %vm1432_vm0, %v1425_v10, -inf  ;;  %v1439_v13 = vsel %vm3712_vm3, %v1425_v10, -inf }
 0x15f   :  { %1437 = vmax.xlane.f32.xlu0 %v1436_v11  ;;  %v2006_v12 = vand.u32 4294901760, %v2005_v7 }
 0x163   :  { %1440 = vmax.xlane.f32.xlu0 %v1439_v13  ;;  %v3839_v13 = vsub.f32 %v1837_v9, %v1837_v9 }
 0x1ec   :  { %v1438_v14 = vpop.xlane.xlu0 %1437 }
 0x1f0   :  { %v1441_v15 = vpop.xlane.xlu0 %1440 }
 0x1f1   :  { %v1442_v16 = vsel %vm1432_vm0, %v1438_v14, %v1441_v15 }
 0x1f2   :  { %v1443_v17 = vsub.f32 %v1425_v10, %v1442_v16  ;;  %v3273_v10 = vmov 1.0|1.0   ;;  %v2011_v16 = vand.u32 4294901760, %v3839_v13 }
 0x1f4   :  { %v1444_v18 = vsel %vm1434_vm2, %v1443_v17, -inf  ;;  %vm1819_vm2 = vmand %vm1770_vm14, %vm1812_vm15  ;;  %v2012_v17 = vsub.f32 %v3839_v13, %v2011_v16 }
 0x1f5   :  { %v1445_v19 = vmul.f32 1.442695, %v1444_v18  ;;  %v1835_v51 = vsel %vm1819_vm2, 1.0, %v3268_v24 }
 0x1f6   :  { %v1851_v53 = vadd.f32 %v1835_v51, %v1738_v48  ;;  %v2013_v18 = vand.u32 4294901760, %v2012_v17 }
 0x1f7   :  { %3264 = vpow2.f32 %v1445_v19 }
 0x1f8   :  { %v1880_v57 = vand.u32 4294901760, %v1851_v53 }
 0x1fa   :  { %v3801_v62 = vsub.f32 %v1851_v53, %v1880_v57  ;;  %v3047_v19 = vpack.c.bf16 %v3270_v59, %v1880_v57 }
 0x1fc   :  { %v1997_v3 = vand.u32 4294901760, %v3801_v62  ;;  %v3072_v25 = vpack.c.bf16 %v3803_v63, %v3801_v62 }
 0x1fe   :  { %v1998_v6 = vsub.f32 %v3801_v62, %v1997_v3  ;;  %v3098_v28 = vpack.c.bf16 %v2004_v4, %v1997_v3 }
 0x200   :  { %v1999_v11 = vand.u32 4294901760, %v1998_v6 }
 0x201   :  { %v3722_v21 = vpop.eup %3264 }
 0x202   :  { %v1447_v23 = vsel %vm1432_vm0, %v3722_v21, 0.0  ;;  %v1450_v26 = vsel %vm3712_vm3, %v3722_v21, 0.0  ;;  %vm3271_vm3 = vmmov 1   ;;  %v3060_v15 = vpack.c.bf16 %v2006_v12, %v1999_v11 }
 0x203   :  { %1448 = vadd.xlane.f32.xlu1 %v1447_v23  ;;  %vm3797_vm4 = vmpackc.low %vm3271_vm3, %vm3738_vm11  ;;  %v3066_v23 = vpack.c.bf16 %v3764_v41, %v3762_v40 }
 0x204   :  { %3039 = vmatpush3.bf16.msk.msra.mxu0 %vm3797_vm4, %v3792_v60  ;;  %3061 = vmatpush3.bf16.msra.mxu1 %v3060_v15  ;;  %vm3864_vm10 = vmpackc.low %vm1812_vm15, %vm3271_vm3 }
 0x205   :  { %3040 = vmatprep.subr.bf16.mxu0 %v3269_v46  ;;  %2947 = vmatprep.subr.mxu1 %v3268_v24 }
 0x207   :  { %1451 = vadd.xlane.f32.xlu1 %v1450_v26  ;;  %v3089_v26 = vpack.c.bf16 %v1962_v35, %v1955_v34  ;;  %v3069_v35 = vpack.c.bf16 %v3764_v41, %v3764_v41 }
 0x208   :  { %3042 = vmatpush3.bf16.msk.msra.mxu0 %vm3817_vm5, %v3273_v10  ;;  %2948 = vmatpush3.msra.mxu1 %v2013_v18 }
 0x209   :  { %3043 = vmatprep.subr.bf16.mxu0 %v3269_v46  ;;  %3074 = vmatprep.subr.bf16.mxu1 %v3269_v46 }
 0x20c   :  { %3045 = vmatpush3.bf16.msk.msra.mxu0 %vm3846_vm7, %v3273_v10 }
 0x20d   :  { %3046 = vmatprep.subr.bf16.mxu0 %v3269_v46 }
 0x210   :  { %3049 = vmatpush3.bf16.msk.msra.mxu0 %vm3864_vm10, %v3047_v19 }
 0x211   :  { %2926 = vmatprep.subr.mxu0 %v3268_v24 }
 0x214   :  { %2927 = vmatpush3.msk.msra.mxu0 %vm3825_vm8, %v3270_v59 }
 0x215   :  { %3062 = vmatprep.subr.bf16.mxu0 %v3269_v46 }
 0x290   :  { %v1449_v29 = vpop.xlane.xlu1 %1448 }
 0x294   :  { %v1452_v30 = vpop.xlane.xlu1 %1451 }
 0x295   :  { %v1453_v31 = vsel %vm1432_vm0, %v1449_v29, %v1452_v30 }
 0x296   :  { %3266 = vrcp.f32 %v1453_v31 }
 0x2a0   :  { %v3267_v36 = vpop.eup %3266 }
 0x2a1   :  { %v3891_v37 = vmul.f32 %v3267_v36, %v3722_v21 }
 0x2a3   :  { %v1942_v32 = vand.u32 4294901760, %v3891_v37 }
 0x2a5   :  { %2950 = vmatmul.mubr.f32.vlgmr.msra.gmra.mrb[16].mxu1 %v1942_v32  ;;  %v1943_v33 = vsub.f32 %v3891_v37, %v1942_v32 }
 0x2a6   :  { %3077 = vmatpush3.bf16.msk.msra.mxu1 %vm3797_vm4, %v3792_v60  ;;  %2991 = vmatprep.mubr.msk.f32.mxu1 %vm3272_vm9, %v3268_v24 }
 0x2a7   :  { %3078 = vmatprep.subr.bf16.mxu1 %v3269_v46  ;;  %v1944_v1 = vand.u32 4294901760, %v1943_v33 }
 0x2a9   :  { %v1945_v34 = vsub.f32 %v1943_v33, %v1944_v1 }
 0x2aa   :  { %3080 = vmatpush3.bf16.msk.msra.mxu1 %vm3817_vm5, %v3273_v10 }
 0x2ab   :  { %3081 = vmatprep.subr.bf16.mxu1 %v3269_v46  ;;  %v1946_v21 = vand.u32 4294901760, %v1945_v34 }
 0x2ad   :  { %2929 = vmatmul.mubr.f32.vlgmr.msra.gmra.mrb[16].mxu0 %v1946_v21 }
 0x2ae   :  { %3064 = vmatpush3.bf16.msra.mxu0 %v3063_v22  ;;  %3083 = vmatpush3.bf16.msk.msra.mxu1 %vm3846_vm7, %v3273_v10 }
 0x2af   :  { %3065 = vmatprep.subr.bf16.mxu0 %v3269_v46  ;;  %3084 = vmatprep.subr.bf16.mxu1 %v3269_v46 }
 0x2b0   :  { %2970 = vmatprep.mubr.msk.f32.mxu0 %vm3272_vm9, %v3268_v24 }
 0x2b2   :  { %3067 = vmatpush3.bf16.msra.mxu0 %v3066_v23  ;;  %3087 = vmatpush3.bf16.msk.msra.mxu1 %vm3864_vm10, %v3047_v19 }
 0x2b3   :  { %3068 = vmatprep.subr.bf16.mxu0 %v3269_v46  ;;  %2989 = vmatprep.subr.mxu1 %v3268_v24 }
 0x2b6   :  { %3070 = vmatpush3.bf16.msra.mxu0 %v3069_v35  ;;  %2990 = vmatpush3.msk.msra.mxu1 %vm3825_vm8, %v3270_v59 }
 0x2b7   :  { %2992 = vmatmul.mubr.f32.vlgmr.msra.gmra.mrb[18].mxu1 %v1944_v1  ;;  %3100 = vmatprep.subr.bf16.mxu1 %v3269_v46 }
 0x2b8   :  { %3103 = vmatpush3.bf16.msk.msra.mxu1 %vm3797_vm4, %v3792_v60  ;;  %3071 = vmatprep.subr.bf16.mxu0 %v3269_v46 }
 0x2b9   :  { %3104 = vmatprep.subr.bf16.mxu1 %v3269_v46  ;;  %3033 = vmatprep.mubr.msk.f32.mxu1 %vm3272_vm9, %v3268_v24 }
 0x2ba   :  { %3073 = vmatpush3.bf16.msra.mxu0 %v3072_v25 }
 0x2bb   :  { %2968 = vmatprep.subr.mxu0 %v3268_v24 }
 0x2bc   :  { %3106 = vmatpush3.bf16.msk.msra.mxu1 %vm3817_vm5, %v3273_v10 }
 0x2bd   :  { %3107 = vmatprep.subr.bf16.mxu1 %v3269_v46 }
 0x2be   :  { %2969 = vmatpush3.msra.mxu0 %v3839_v13 }
 0x2bf   :  { %2971 = vmatmul.mubr.f32.vlgmr.msra.gmra.mrb[18].mxu0 %v1943_v33  ;;  %3088 = vmatprep.subr.bf16.mxu0 %v3269_v46 }
 0x2c0   :  { %3090 = vmatpush3.bf16.msra.mxu0 %v3089_v26  ;;  %3109 = vmatpush3.bf16.msk.msra.mxu1 %vm3846_vm7, %v3273_v10 }
 0x2c1   :  { %3091 = vmatprep.subr.bf16.mxu0 %v3269_v46  ;;  %3110 = vmatprep.subr.bf16.mxu1 %v3269_v46 }
 0x2c2   :  { %3012 = vmatprep.mubr.msk.f32.mxu0 %vm3272_vm9, %v3268_v24 }
 0x2c4   :  { %3093 = vmatpush3.bf16.msra.mxu0 %v3092_v27  ;;  %3113 = vmatpush3.bf16.msk.msra.mxu1 %vm3864_vm10, %v3047_v19 }
 0x2c5   :  { %3094 = vmatprep.subr.bf16.mxu0 %v3269_v46  ;;  %3031 = vmatprep.subr.mxu1 %v3268_v24 }
 0x2c8   :  { %3096 = vmatpush3.bf16.msra.mxu0 %v3095_v38  ;;  %3032 = vmatpush3.msk.msra.mxu1 %vm3825_vm8, %v3270_v59 }
 0x2c9   :  { %3034 = vmatmul.mubr.f32.vlgmr.msra.gmra.mrb[20].mxu1 %v1942_v32  ;;  %3097 = vmatprep.subr.bf16.mxu0 %v3269_v46 }
 0x2cc   :  { %3099 = vmatpush3.bf16.msra.mxu0 %v3098_v28 }
 0x2cd   :  { %3010 = vmatprep.subr.mxu0 %v3268_v24 }
 0x2d0   :  { %3011 = vmatpush3.msra.mxu0 %v2011_v16 }
 0x2d1   :  { %3013 = vmatmul.mubr.f32.vlgmr.msra.gmra.mrb[20].mxu0 %v1942_v32 }
 0x378   :  { %v2099_v39 = vpop.f32.mrb[16].mxu1 }
 0x379   :  { %v2951_v40 = vpop.f32.mrb[17].mxu1 }
 0x380   :  { %v1948_v41 = vpop.f32.mrb[16].mxu0 }
 0x381   :  { %v2100_v42 = vadd.f32 %v2099_v39, %v1948_v41  ;;  %v2930_v43 = vpop.f32.mrb[17].mxu0 }
 0x38a   :  { %v2292_v44 = vpop.f32.mrb[18].mxu1 }
 0x38b   :  { %v2993_v45 = vpop.f32.mrb[19].mxu1 }
 0x392   :  { %v2203_v47 = vpop.f32.mrb[18].mxu0 }
 0x393   :  { %v2204_v48 = vadd.f32 %v2203_v47, %v2100_v42  ;;  %v2972_v49 = vpop.f32.mrb[19].mxu0 }
 0x395   :  { %v2293_v50 = vadd.f32 %v2292_v44, %v2204_v48 }
 0x39c   :  { %v2498_v51 = vpop.f32.mrb[20].mxu1 }
 0x39d   :  { %v3035_v46 = vpop.f32.mrb[21].mxu1 }
 0x3a4   :  { %v2411_v52 = vpop.f32.mrb[20].mxu0 }
 0x3a5   :  { %v2412_v53 = vadd.f32 %v2411_v52, %v2293_v50  ;;  %v3014_v24 = vpop.f32.mrb[21].mxu0 }
 0x3a7   :  { %v2499_v54 = vadd.f32 %v2498_v51, %v2412_v53 }
 0x3a9   :  { %v2502_v55 = vadd.f32 %v2499_v54, %v3891_v37 }
 0x3ab   :  { %2503 = vst [vmem:[%s3963_s3] sm:$0xff] %v2502_v55 }

</bundles_post_ra>
